<compile_context>
chip_gen: v5e
topology: v5e:2x2
jax: 0.10.0
libtpu: 0.0.40
codegen_flags: <defaults>
</compile_context>

<pallas_src>
import functools

import numpy as np
import jax
import jax.numpy as jnp
from jax.experimental import pallas as pl
from jax.experimental.pallas import tpu as pltpu


# -----------------------------------------------------------------------------
# Packed-parameter layout (static indices used inside the fused kernel).
# -----------------------------------------------------------------------------
# Wsq: (8, D, D) bf16 stack of square matrices (zero-padded where the true shape is smaller).
W_M1, W_M2, W_Q, W_S1, W_S2, W_P1, W_P2, W_CLS = range(8)
# Vd: (18, D) f32 stack of bias rows / LayerNorm affine rows / slot mu & exp(0.5*sigma).
(V_M1B, V_M2B, V_NIW, V_NIB, V_BQ, V_NSW, V_NSB, V_NPW, V_NPB,
 V_S1B, V_S2B, V_MU, V_SIGEXP, V_PB1, V_PB2, V_CB, V_C3B, V_C4B) = range(18)
# Wwide: (3, D, 3D) bf16: fused [Wk|Wv|0], GRU input gates [Wir|Wiz|Win], GRU hidden gates.
WW_KV, WW_GI, WW_GH = range(3)
# Vwide: (3, 3D) f32: GRU input bias, GRU hidden bias, [bk|bv|0].
VW_GI, VW_GH, VW_KV = range(3)
# encTD: (3, T, D) f32: encoder_norm weight, encoder_norm bias, precomputed pos-embedding.
E_LNW, E_LNB, E_POS = range(3)


def _const_spec(shape):
    zero = (0,) * len(shape)
    return pl.BlockSpec(shape, lambda b, _z=zero: _z)


# -----------------------------------------------------------------------------
# Tiled fused matmul + bias + ReLU kernel (conv1/conv2 via im2col).
# -----------------------------------------------------------------------------
def _mm_bias_relu_kernel(x_ref, w_ref, b_ref, o_ref):
    y = jnp.dot(x_ref[...], w_ref[...], preferred_element_type=jnp.float32) + b_ref[...]
    o_ref[...] = jnp.maximum(y, 0.0).astype(o_ref.dtype)          # bf16 writeback


def matmul_bias_relu(x, w, b, out_dtype=jnp.bfloat16):
    """x:(M,K) bf16, w:(K,N) bf16, b:(N,) f32 -> (M,N) bf16, tiled & pipelined over M."""
    M, K = x.shape
    N = w.shape[1]
    # Largest 8-aligned tile dividing M while guaranteeing >=2 grid steps when possible
    # (pipelines the patch DMAs and lets both v7x TensorCores work).
    tm = M
    cap = min(256, M // 2)
    for cand in range(cap - cap % 8, 7, -8):
        if M % cand == 0:
            tm = cand
            break
    return pl.pallas_call(
        _mm_bias_relu_kernel,
        out_shape=jax.ShapeDtypeStruct((M, N), out_dtype),
        grid=(M // tm,),
        in_specs=[
            pl.BlockSpec((tm, K), lambda i: (i, 0)),
            pl.BlockSpec((K, N), lambda i: (0, 0)),   # weights stay resident across steps
            pl.BlockSpec((1, N), lambda i: (0, 0)),
        ],
        out_specs=pl.BlockSpec((tm, N), lambda i: (i, 0)),
        compiler_params=pltpu.CompilerParams(
            dimension_semantics=("parallel",),
            vmem_limit_bytes=32 * 1024 * 1024),
    )(x, w, b.reshape(1, N).astype(jnp.float32))


def conv2d_relu(x_nhwc, w2d, b, *, k, stride, pad):
    """Conv2d(k, stride, pad) + ReLU via im2col + Pallas matmul.
    Weight layout: (Kp, C_out) bf16, rows ordered (kh, kw, C_in), zero-padded to 8 sublanes."""
    B, H, W, C = x_nhwc.shape
    OH = (H + 2 * pad - k) // stride + 1
    OW = (W + 2 * pad - k) // stride + 1
    xp = jnp.pad(x_nhwc.astype(jnp.bfloat16), ((0, 0), (pad, pad), (pad, pad), (0, 0)))
    cols = []
    for ki in range(k):
        for kj in range(k):
            cols.append(xp[:, ki:ki + stride * OH:stride, kj:kj + stride * OW:stride, :])
    patches = jnp.stack(cols, axis=3).reshape(B * OH * OW, k * k * C)     # (M, k*k*C) bf16
    Kp = w2d.shape[0]
    if Kp != k * k * C:
        patches = jnp.pad(patches, ((0, 0), (0, Kp - k * k * C)))
    y = matmul_bias_relu(patches, w2d, b)                                 # bf16 output
    return y.reshape(B, OH, OW, w2d.shape[1])


# -----------------------------------------------------------------------------
# Fused conv3/conv4 + slot-attention + property/classifier head kernel (one step per batch).
# -----------------------------------------------------------------------------
def _fused_conv_slot_head_kernel(x2_ref, noise_ref, s3_ref, w3t_ref, s4_ref, w4t_ref,
                                 wsq_ref, wwide_ref, vd_ref, vwide_ref, enc_ref,
                                 pred_ref, prop_ref, *, iters, nprop, nclasses):
    T, D = enc_ref.shape[1], enc_ref.shape[2]

    def vrow(i):                                   # (1, D) row of the packed vector table
        return vd_ref[pl.ds(i, 1), :]

    def vwrow(i):                                  # (1, 3D) row of the packed wide-bias table
        return vwide_ref[pl.ds(i, 1), :]

    def dot_w(a, w):                               # f32/bf16 activations x bf16 weights
        return jnp.dot(a.astype(jnp.bfloat16), w, preferred_element_type=jnp.float32)

    def dot_a(a, b):                               # f32 x f32 attention math
        return jnp.dot(a, b, preferred_element_type=jnp.float32)

    def ln(x, w, b, eps=1e-5):
        m = jnp.mean(x, axis=-1, keepdims=True)
        v = jnp.mean((x - m) ** 2, axis=-1, keepdims=True)
        return (x - m) * jax.lax.rsqrt(v + eps) * w + b

    def conv_taps(xin, s_ref, wt_ref, brow):
        """Conv + ReLU by tap accumulation: out = relu(sum_tap (S_tap @ X) @ W_tap + b).
        S_tap is a 0/1 token-selection matrix encoding the (shift, stride, zero-pad) gather."""
        xin_b = xin.astype(jnp.bfloat16)
        acc = None
        for t in range(s_ref.shape[0]):            # k*k taps, unrolled at trace time
            g = jnp.dot(s_ref[t], xin_b, preferred_element_type=jnp.float32)   # (T_out, Cin)
            c = dot_w(g, wt_ref[t])                                            # (T_out, Cout)
            acc = c if acc is None else acc + c
        return jnp.maximum(acc + brow, 0.0)

    # ---- encoder conv3 + conv4 (fused, no HBM round trip for the tiny intermediates)
    x2 = x2_ref[0]                                                     # (T2, D) bf16
    x3 = conv_taps(x2, s3_ref, w3t_ref, vrow(V_C3B))                   # (T, D) f32
    x = conv_taps(x3, s4_ref, w4t_ref, vrow(V_C4B))                    # (T, D) f32

    # ---- encoder_transformation: SoftPositionEmbed (grid@W+b precomputed constant)
    x = x + enc_ref[E_POS]
    # encoder_norm: LayerNorm over the joint (T, D) normalized_shape (nn.LayerNorm([T, D]))
    me = jnp.mean(x)
    ve = jnp.mean((x - me) ** 2)
    x = (x - me) * jax.lax.rsqrt(ve + 1e-5) * enc_ref[E_LNW] + enc_ref[E_LNB]
    # encoder_feature_mlp: Linear-ReLU-Linear-ReLU
    x = jnp.maximum(dot_w(x, wsq_ref[W_M1]) + vrow(V_M1B), 0.0)
    x = jnp.maximum(dot_w(x, wsq_ref[W_M2]) + vrow(V_M2B), 0.0)
    # norm_input
    x = ln(x, vrow(V_NIW), vrow(V_NIB))

    # fused k/v projection: one (T, 3D) matmul; k transposed ONCE (hoisted out of the loop)
    kv = dot_w(x, wwide_ref[WW_KV]) + vwrow(VW_KV)                     # (T, 3D)
    v = kv[:, D:2 * D]                                                 # (T, D)
    k_t = kv[:, :D].T                                                  # (D, T)

    # baseline slot sampling: mu + exp(0.5*sigma) * noise   (exp precomputed host-side)
    slots = vrow(V_MU) + vrow(V_SIGEXP) * noise_ref[0]                 # (S, D)

    for _ in range(iters + 1):                                         # iters + implicit step
        # NOTE: weights deliberately re-read from refs each unrolled iteration (vreg pressure).
        s_in = slots
        sn = ln(s_in, vrow(V_NSW), vrow(V_NSB))                        # norm_slots
        q = dot_w(sn, wsq_ref[W_Q]) + vrow(V_BQ)                       # to_q (1/sqrt(D) folded)
        dots = dot_a(q, k_t)                                           # (S, T)
        dots = dots - jnp.max(dots, axis=0, keepdims=True)
        e = jnp.exp(dots)
        attn = e / jnp.sum(e, axis=0, keepdims=True) + 1e-8            # softmax over slots + eps
        attn = attn / jnp.sum(attn, axis=1, keepdims=True)             # renormalize over tokens
        upd = dot_a(attn, v)                                           # (S, D)
        # GRUCell(upd, s_in) with fused (D, 3D) gate matmuls
        gi = dot_w(upd, wwide_ref[WW_GI]) + vwrow(VW_GI)
        gh = dot_w(s_in, wwide_ref[WW_GH]) + vwrow(VW_GH)
        r = jax.nn.sigmoid(gi[:, :D] + gh[:, :D])
        z = jax.nn.sigmoid(gi[:, D:2 * D] + gh[:, D:2 * D])
        n = jnp.tanh(gi[:, 2 * D:] + r * gh[:, 2 * D:])
        h = (1.0 - z) * n + z * s_in
        # residual slot_transformation MLP
        hn = ln(h, vrow(V_NPW), vrow(V_NPB))
        y = jnp.maximum(dot_w(hn, wsq_ref[W_S1]) + vrow(V_S1B), 0.0)
        y = jnp.maximum(dot_w(y, wsq_ref[W_S2]) + vrow(V_S2B), 0.0)
        slots = h + y

    # ---- property head + reasoning classifier (fused; W_P2 / W_CLS are zero-padded to DxD)
    hh = jnp.maximum(dot_w(slots, wsq_ref[W_P1]) + vrow(V_PB1), 0.0)   # (S, D)
    props_full = dot_w(hh, wsq_ref[W_P2]) + vrow(V_PB2)                # cols >= nprop are 0
    prop_ref[0] = jax.nn.sigmoid(props_full[:, :nprop])
    # classifier(mean_slots(props)) == mean_slots(props @ Wc) + bc  (linear commutes with mean;
    # PyTorch classifies the *pre-sigmoid* properties)
    pc_full = dot_w(props_full, wsq_ref[W_CLS])                        # (S, D)
    pred_full = jnp.mean(pc_full, axis=0, keepdims=True) + vrow(V_CB)  # (1, D)
    pred_ref[0] = pred_full[:, :nclasses]


def fused_conv_slot_head(feats2, noise, params, *, iters, nprop, nclasses):
    """feats2: (B, T2, D) conv2 activations (bf16); returns (predictions (B,C), sigmoid props)."""
    B, T2, D = feats2.shape
    S = noise.shape[1]
    pred3, props = pl.pallas_call(
        functools.partial(_fused_conv_slot_head_kernel,
                          iters=iters, nprop=nprop, nclasses=nclasses),
        out_shape=(jax.ShapeDtypeStruct((B, 1, nclasses), jnp.float32),
                   jax.ShapeDtypeStruct((B, S, nprop), jnp.float32)),
        grid=(B,),
        in_specs=[pl.BlockSpec((1, T2, D), lambda b: (b, 0, 0)),
                  pl.BlockSpec((1, S, D), lambda b: (b, 0, 0)),
                  _const_spec(params["S3"].shape), _const_spec(params["W3t"].shape),
                  _const_spec(params["S4"].shape), _const_spec(params["W4t"].shape),
                  _const_spec(params["Wsq"].shape), _const_spec(params["Wwide"].shape),
                  _const_spec(params["Vd"].shape), _const_spec(params["Vwide"].shape),
                  _const_spec(params["encTD"].shape)],
        out_specs=(pl.BlockSpec((1, 1, nclasses), lambda b: (b, 0, 0)),
                   pl.BlockSpec((1, S, nprop), lambda b: (b, 0, 0))),
        compiler_params=pltpu.CompilerParams(
            dimension_semantics=("parallel",),
            vmem_limit_bytes=32 * 1024 * 1024),
    )(feats2, noise, params["S3"], params["W3t"], params["S4"], params["W4t"],
      params["Wsq"], params["Wwide"], params["Vd"], params["Vwide"], params["encTD"])
    return pred3[:, 0, :], props


# -----------------------------------------------------------------------------
# Parameter init (deterministic, synthetic) -> packed layout.
# -----------------------------------------------------------------------------
def _conv_token_select(in_hw, *, k, stride, pad):
    """0/1 matrices S[kh*k+kw] of shape (T_out, T_in): the (shift, stride, zero-pad) gather
    of each conv tap, so that conv(X) = sum_tap (S_tap @ X) @ W[kh, kw]."""
    H, W = in_hw
    OH = (H + 2 * pad - k) // stride + 1
    OW = (W + 2 * pad - k) // stride + 1
    s = np.zeros((k * k, OH * OW, H * W), np.float32)
    for kh in range(k):
        for kw in range(k):
            for oh in range(OH):
                for ow in range(OW):
                    ih, iw = oh * stride + kh - pad, ow * stride + kw - pad
                    if 0 <= ih < H and 0 <= iw < W:
                        s[kh * k + kw, oh * OW + ow, ih * W + iw] = 1.0
    return jnp.asarray(s)


def init_params(key, *, hid, nprop, nclasses, enc_res, k=5):
    assert hid >= max(nprop, nclasses), "padding scheme needs hid >= max(nprop, nclasses)"
    D, T = hid, enc_res * enc_res
    keys = iter(jax.random.split(key, 64))

    def rnd(shape, scale=0.1):
        return (scale * jax.random.normal(next(keys), shape)).astype(jnp.float32)

    def pad_rows_to8(w):
        K = w.shape[0]
        Kp = ((K + 7) // 8) * 8
        return jnp.pad(w, ((0, Kp - K), (0, 0)))

    p = {}
    # conv1/conv2: im2col weight layout (k*k*Cin, Cout), rows (kh, kw, Cin), K padded to 8; bf16.
    # TODO(synk): real torch Conv2d weights (Cout,Cin,kh,kw) must be permuted to (kh,kw,Cin,Cout).
    p["c1w"] = pad_rows_to8(rnd((k * k * 3, hid))).astype(jnp.bfloat16)
    p["c1b"] = rnd((hid,))
    p["c2w"] = pad_rows_to8(rnd((k * k * hid, hid))).astype(jnp.bfloat16)
    p["c2b"] = rnd((hid,))

    # conv3/conv4 (fused in-kernel): per-tap weights + 0/1 token-selection matrices.
    h2 = 2 * enc_res                                   # conv2 output spatial (conv3 input)
    w3, b3 = rnd((k, k, hid, hid)), rnd((hid,))
    w4, b4 = rnd((k, k, hid, hid)), rnd((hid,))
    p["W3t"] = w3.reshape(k * k, hid, hid).astype(jnp.bfloat16)
    p["W4t"] = w4.reshape(k * k, hid, hid).astype(jnp.bfloat16)
    p["S3"] = _conv_token_select((h2, h2), k=k, stride=2, pad=2).astype(jnp.bfloat16)
    p["S4"] = _conv_token_select((enc_res, enc_res), k=k, stride=1, pad=2).astype(jnp.bfloat16)

    # SoftPositionEmbed folded to a constant (grid @ W + b); encoder_norm LN([T, D]) affine.
    w_emb, b_emb = rnd((4, D)), rnd((D,))
    rs = jnp.linspace(0.0, 1.0, enc_res)
    g = jnp.stack(jnp.meshgrid(rs, rs, indexing="ij"), axis=-1)
    g = jnp.concatenate([g, 1.0 - g], axis=-1).astype(jnp.float32).reshape(T, 4)
    posemb = g @ w_emb + b_emb                                          # (T, D)
    p["encTD"] = jnp.stack([jnp.ones((T, D), jnp.float32),
                            jnp.zeros((T, D), jnp.float32), posemb])

    scale = float(D) ** -0.5
    m1w, m2w = rnd((D, D)), rnd((D, D))
    wq = rnd((D, D)) * scale                       # fold 1/sqrt(D) into to_q
    s1w, s2w = rnd((D, D)), rnd((D, D))
    pw1 = rnd((D, D))
    pw2 = jnp.zeros((D, D), jnp.float32).at[:, :nprop].set(rnd((D, nprop)))
    cw = jnp.zeros((D, D), jnp.float32).at[:nprop, :nclasses].set(rnd((nprop, nclasses)))
    p["Wsq"] = jnp.stack([m1w, m2w, wq, s1w, s2w, pw1, pw2, cw]).astype(jnp.bfloat16)

    wk, wv = rnd((D, D)), rnd((D, D))
    w_kv = jnp.zeros((D, 3 * D), jnp.float32).at[:, :D].set(wk).at[:, D:2 * D].set(wv)
    w_i = jnp.concatenate([rnd((D, D)), rnd((D, D)), rnd((D, D))], axis=1)
    w_h = jnp.concatenate([rnd((D, D)), rnd((D, D)), rnd((D, D))], axis=1)
    p["Wwide"] = jnp.stack([w_kv, w_i, w_h]).astype(jnp.bfloat16)       # (3, D, 3D)

    bk, bv = rnd((D,)), rnd((D,))
    b_kv = jnp.zeros((3 * D,), jnp.float32).at[:D].set(bk).at[D:2 * D].set(bv)
    b_i = jnp.concatenate([rnd((D,)), rnd((D,)), rnd((D,))])
    b_h = jnp.concatenate([rnd((D,)), rnd((D,)), rnd((D,))])
    p["Vwide"] = jnp.stack([b_i, b_h, b_kv])                            # (3, 3D)

    ones, zeros = jnp.ones((D,), jnp.float32), jnp.zeros((D,), jnp.float32)
    m1b, m2b = rnd((D,)), rnd((D,))
    bq = rnd((D,)) * scale                          # to_q bias with 1/sqrt(D) folded in
    s1b, s2b = rnd((D,)), rnd((D,))
    mu, sigma = rnd((D,)), rnd((D,))
    pb1 = rnd((D,))
    pb2 = jnp.zeros((D,), jnp.float32).at[:nprop].set(rnd((nprop,)))
    cb = jnp.zeros((D,), jnp.float32).at[:nclasses].set(rnd((nclasses,)))
    p["Vd"] = jnp.stack([m1b, m2b, ones, zeros, bq, ones, zeros, ones, zeros,
                         s1b, s2b, mu, jnp.exp(0.5 * sigma), pb1, pb2, cb,
                         b3, b4])                                       # (18, D)
    return p


# -----------------------------------------------------------------------------
# Full forward (mirrors SlotAttentionReasoning.forward, MCsamples=1).
# -----------------------------------------------------------------------------
def slot_attention_reasoning_forward(image_nchw, params, noise, *,
                                     num_slots, iters, nprop, nclasses):
    B = image_nchw.shape[0]
    x = jnp.transpose(image_nchw, (0, 2, 3, 1))                      # NCHW -> NHWC
    x = conv2d_relu(x, params["c1w"], params["c1b"], k=5, stride=2, pad=2)   # bf16
    x = conv2d_relu(x, params["c2w"], params["c2b"], k=5, stride=2, pad=2)   # bf16
    Bx, Hh, Ww, D = x.shape
    feats2 = x.reshape(Bx, Hh * Ww, D)                               # (B, T2, D) bf16
    assert feats2.shape[1] == params["S3"].shape[2], "encoder resolution mismatch"

    # conv3 + conv4 + slot attention (MCsamples == 1) + property/classifier: one fused kernel.
    predictions, properties_sigmoid = fused_conv_slot_head(
        feats2, noise, params, iters=iters, nprop=nprop, nclasses=nclasses)

    cbidxs = jnp.zeros((B, num_slots), jnp.float32)   # sample_baseline_slots outputs
    qloss = jnp.zeros((1,), jnp.float32)
    perplexity = jnp.zeros((1, 1), jnp.float32)
    return predictions, properties_sigmoid, cbidxs, qloss, perplexity


if __name__ == "__main__":
    B, H, W = 2, 32, 32
    HID, NS, ITERS = 32, 8, 3          # hid_dim, num_slots (<= enc_res**2), num_iterations
    NPROP, NCLASS = 8, 4
    ENC_RES = 4                        # 32 -> 16 -> 8 -> 4 spatial after the 3 strided convs

    key = jax.random.PRNGKey(0)
    kparam, kimg, knoise = jax.random.split(key, 3)
    params = init_params(kparam, hid=HID, nprop=NPROP, nclasses=NCLASS, enc_res=ENC_RES)
    image = jax.random.normal(kimg, (B, 3, H, W), jnp.float32)       # NCHW like PyTorch
    # deterministic stand-in for torch.randn in sample_baseline_slots
    slot_noise = jax.random.normal(knoise, (B, NS, HID), jnp.float32)

    fwd = jax.jit(functools.partial(slot_attention_reasoning_forward,
                                    num_slots=NS, iters=ITERS,
                                    nprop=NPROP, nclasses=NCLASS))
    preds, props, cbidxs, qloss, perplexity = fwd(image, params, slot_noise)

    jax.block_until_ready((preds, props, cbidxs, qloss, perplexity))
    assert preds.shape == (B, NCLASS)
    assert props.shape == (B, NS, NPROP)
    assert cbidxs.shape == (B, NS)
    assert bool(jnp.all(jnp.isfinite(preds))) and bool(jnp.all(jnp.isfinite(props)))
    print("KERNEL_OK")
</pallas_src>

<mosaic_0001>
module attributes {stable_mosaic.version = 11 : i64} {
  func.func @_mm_bias_relu_kernel(%arg0: i32, %arg1: memref<256x80xbf16, #tpu.memory_space<vmem>>, %arg2: memref<80x32xbf16, #tpu.memory_space<vmem>>, %arg3: memref<1x32xf32, #tpu.memory_space<vmem>>, %arg4: memref<256x32xbf16, #tpu.memory_space<vmem>>) attributes {dimension_semantics = [#tpu.dimension_semantics<parallel>], iteration_bounds = array<i64: 2>, scalar_prefetch = 0 : i64, scratch_operands = 0 : i64, tpu.core_type = #tpu.core_type<tc>, window_params = [{transform_indices = @transform_0, window_bounds = array<i64: 256, 80>}, {pipeline_mode = #tpu.pipeline_mode<synchronous>, transform_indices = @transform_1, window_bounds = array<i64: 80, 32>}, {pipeline_mode = #tpu.pipeline_mode<synchronous>, transform_indices = @transform_2, window_bounds = array<i64: 1, 32>}, {transform_indices = @transform_3, window_bounds = array<i64: 256, 32>}]} {
    %c0 = arith.constant 0 : index
    %c0_0 = arith.constant 0 : index
    %0 = vector.load %arg1[%c0, %c0_0] : memref<256x80xbf16, #tpu.memory_space<vmem>>, vector<256x80xbf16>
    %c0_1 = arith.constant 0 : index
    %c0_2 = arith.constant 0 : index
    %1 = vector.load %arg2[%c0_1, %c0_2] : memref<80x32xbf16, #tpu.memory_space<vmem>>, vector<80x32xbf16>
    %cst = arith.constant dense<0.000000e+00> : vector<256x32xf32>
    %2 = tpu.matmul %0, %1, %cst {dimension_numbers = #tpu.dot_dimension_numbers<[1], [0], [0], [1], [0, 0, 1, 1], [], []>} : vector<256x80xbf16>, vector<80x32xbf16>, vector<256x32xf32> -> vector<256x32xf32>
    %c0_3 = arith.constant 0 : index
    %c0_4 = arith.constant 0 : index
    %3 = vector.load %arg3[%c0_3, %c0_4] : memref<1x32xf32, #tpu.memory_space<vmem>>, vector<1x32xf32>
    %4 = vector.broadcast %3 : vector<1x32xf32> to vector<256x32xf32>
    %5 = arith.addf %2, %4 : vector<256x32xf32>
    %cst_5 = arith.constant 0.000000e+00 : f32
    %6 = vector.broadcast %cst_5 : f32 to vector<256x32xf32>
    %7 = arith.maximumf %5, %6 : vector<256x32xf32>
    %8 = arith.truncf %7 : vector<256x32xf32> to vector<256x32xbf16>
    %c0_6 = arith.constant 0 : index
    %c0_7 = arith.constant 0 : index
    %9 = vector.load %arg4[%c0_6, %c0_7] : memref<256x32xbf16, #tpu.memory_space<vmem>>, vector<256x32xbf16>
    tpu.vector_store %arg4[%c0_6, %c0_7], %8 {strides = array<i32>} : memref<256x32xbf16, #tpu.memory_space<vmem>>, vector<256x32xbf16>,
    return
  }
  func.func @transform_0(%arg0: i32) -> (i32, i32) {
    %c0_i32 = arith.constant 0 : i32
    %c0_i32_0 = arith.constant 0 : i32
    return %arg0, %c0_i32 : i32, i32
  }
  func.func @transform_1(%arg0: i32) -> (i32, i32) {
    %c0_i32 = arith.constant 0 : i32
    %c0_i32_0 = arith.constant 0 : i32
    %c0_i32_1 = arith.constant 0 : i32
    return %c0_i32, %c0_i32_0 : i32, i32
  }
  func.func @transform_2(%arg0: i32) -> (i32, i32) {
    %c0_i32 = arith.constant 0 : i32
    %c0_i32_0 = arith.constant 0 : i32
    %c0_i32_1 = arith.constant 0 : i32
    return %c0_i32, %c0_i32_0 : i32, i32
  }
  func.func @transform_3(%arg0: i32) -> (i32, i32) {
    %c0_i32 = arith.constant 0 : i32
    %c0_i32_0 = arith.constant 0 : i32
    return %arg0, %c0_i32 : i32, i32
  }
}

module attributes {stable_mosaic.version = 11 : i64} {
  func.func @_mm_bias_relu_kernel(%arg0: i32, %arg1: memref<64x800xbf16, #tpu.memory_space<vmem>>, %arg2: memref<800x32xbf16, #tpu.memory_space<vmem>>, %arg3: memref<1x32xf32, #tpu.memory_space<vmem>>, %arg4: memref<64x32xbf16, #tpu.memory_space<vmem>>) attributes {dimension_semantics = [#tpu.dimension_semantics<parallel>], iteration_bounds = array<i64: 2>, scalar_prefetch = 0 : i64, scratch_operands = 0 : i64, tpu.core_type = #tpu.core_type<tc>, window_params = [{transform_indices = @transform_0, window_bounds = array<i64: 64, 800>}, {pipeline_mode = #tpu.pipeline_mode<synchronous>, transform_indices = @transform_1, window_bounds = array<i64: 800, 32>}, {pipeline_mode = #tpu.pipeline_mode<synchronous>, transform_indices = @transform_2, window_bounds = array<i64: 1, 32>}, {transform_indices = @transform_3, window_bounds = array<i64: 64, 32>}]} {
    %c0 = arith.constant 0 : index
    %c0_0 = arith.constant 0 : index
    %0 = vector.load %arg1[%c0, %c0_0] : memref<64x800xbf16, #tpu.memory_space<vmem>>, vector<64x800xbf16>
    %c0_1 = arith.constant 0 : index
    %c0_2 = arith.constant 0 : index
    %1 = vector.load %arg2[%c0_1, %c0_2] : memref<800x32xbf16, #tpu.memory_space<vmem>>, vector<800x32xbf16>
    %cst = arith.constant dense<0.000000e+00> : vector<64x32xf32>
    %2 = tpu.matmul %0, %1, %cst {dimension_numbers = #tpu.dot_dimension_numbers<[1], [0], [0], [1], [0, 0, 1, 1], [], []>} : vector<64x800xbf16>, vector<800x32xbf16>, vector<64x32xf32> -> vector<64x32xf32>
    %c0_3 = arith.constant 0 : index
    %c0_4 = arith.constant 0 : index
    %3 = vector.load %arg3[%c0_3, %c0_4] : memref<1x32xf32, #tpu.memory_space<vmem>>, vector<1x32xf32>
    %4 = vector.broadcast %3 : vector<1x32xf32> to vector<64x32xf32>
    %5 = arith.addf %2, %4 : vector<64x32xf32>
    %cst_5 = arith.constant 0.000000e+00 : f32
    %6 = vector.broadcast %cst_5 : f32 to vector<64x32xf32>
    %7 = arith.maximumf %5, %6 : vector<64x32xf32>
    %8 = arith.truncf %7 : vector<64x32xf32> to vector<64x32xbf16>
    %c0_6 = arith.constant 0 : index
    %c0_7 = arith.constant 0 : index
    %9 = vector.load %arg4[%c0_6, %c0_7] : memref<64x32xbf16, #tpu.memory_space<vmem>>, vector<64x32xbf16>
    tpu.vector_store %arg4[%c0_6, %c0_7], %8 {strides = array<i32>} : memref<64x32xbf16, #tpu.memory_space<vmem>>, vector<64x32xbf16>,
    return
  }
  func.func @transform_0(%arg0: i32) -> (i32, i32) {
    %c0_i32 = arith.constant 0 : i32
    %c0_i32_0 = arith.constant 0 : i32
    return %arg0, %c0_i32 : i32, i32
  }
  func.func @transform_1(%arg0: i32) -> (i32, i32) {
    %c0_i32 = arith.constant 0 : i32
    %c0_i32_0 = arith.constant 0 : i32
    %c0_i32_1 = arith.constant 0 : i32
    return %c0_i32, %c0_i32_0 : i32, i32
  }
  func.func @transform_2(%arg0: i32) -> (i32, i32) {
    %c0_i32 = arith.constant 0 : i32
    %c0_i32_0 = arith.constant 0 : i32
    %c0_i32_1 = arith.constant 0 : i32
    return %c0_i32, %c0_i32_0 : i32, i32
  }
  func.func @transform_3(%arg0: i32) -> (i32, i32) {
    %c0_i32 = arith.constant 0 : i32
    %c0_i32_0 = arith.constant 0 : i32
    return %arg0, %c0_i32 : i32, i32
  }
}

module attributes {stable_mosaic.version = 11 : i64} {
  func.func @_fused_conv_slot_head_kernel(%arg0: i32, %arg1: memref<1x64x32xbf16, #tpu.memory_space<vmem>>, %arg2: memref<1x8x32xf32, #tpu.memory_space<vmem>>, %arg3: memref<25x16x64xbf16, #tpu.memory_space<vmem>>, %arg4: memref<25x32x32xbf16, #tpu.memory_space<vmem>>, %arg5: memref<25x16x16xbf16, #tpu.memory_space<vmem>>, %arg6: memref<25x32x32xbf16, #tpu.memory_space<vmem>>, %arg7: memref<8x32x32xbf16, #tpu.memory_space<vmem>>, %arg8: memref<3x32x96xbf16, #tpu.memory_space<vmem>>, %arg9: memref<18x32xf32, #tpu.memory_space<vmem>>, %arg10: memref<3x96xf32, #tpu.memory_space<vmem>>, %arg11: memref<3x16x32xf32, #tpu.memory_space<vmem>>, %arg12: memref<1x1x4xf32, #tpu.memory_space<vmem>>, %arg13: memref<1x8x8xf32, #tpu.memory_space<vmem>>) attributes {dimension_semantics = [#tpu.dimension_semantics<parallel>], iteration_bounds = array<i64: 2>, scalar_prefetch = 0 : i64, scratch_operands = 0 : i64, tpu.core_type = #tpu.core_type<tc>, window_params = [{transform_indices = @transform_0, window_bounds = array<i64: 1, 64, 32>}, {transform_indices = @transform_1, window_bounds = array<i64: 1, 8, 32>}, {pipeline_mode = #tpu.pipeline_mode<synchronous>, transform_indices = @transform_2, window_bounds = array<i64: 25, 16, 64>}, {pipeline_mode = #tpu.pipeline_mode<synchronous>, transform_indices = @transform_3, window_bounds = array<i64: 25, 32, 32>}, {pipeline_mode = #tpu.pipeline_mode<synchronous>, transform_indices = @transform_4, window_bounds = array<i64: 25, 16, 16>}, {pipeline_mode = #tpu.pipeline_mode<synchronous>, transform_indices = @transform_5, window_bounds = array<i64: 25, 32, 32>}, {pipeline_mode = #tpu.pipeline_mode<synchronous>, transform_indices = @transform_6, window_bounds = array<i64: 8, 32, 32>}, {pipeline_mode = #tpu.pipeline_mode<synchronous>, transform_indices = @transform_7, window_bounds = array<i64: 3, 32, 96>}, {pipeline_mode = #tpu.pipeline_mode<synchronous>, transform_indices = @transform_8, window_bounds = array<i64: 18, 32>}, {pipeline_mode = #tpu.pipeline_mode<synchronous>, transform_indices = @transform_9, window_bounds = array<i64: 3, 96>}, {pipeline_mode = #tpu.pipeline_mode<synchronous>, transform_indices = @transform_10, window_bounds = array<i64: 3, 16, 32>}, {transform_indices = @transform_11, window_bounds = array<i64: 1, 1, 4>}, {transform_indices = @transform_12, window_bounds = array<i64: 1, 8, 8>}]} {
    %c0 = arith.constant 0 : index
    %c0_0 = arith.constant 0 : index
    %c0_1 = arith.constant 0 : index
    %0 = vector.load %arg1[%c0, %c0_0, %c0_1] : memref<1x64x32xbf16, #tpu.memory_space<vmem>>, vector<1x64x32xbf16>
    %1 = vector.shape_cast %0 : vector<1x64x32xbf16> to vector<64x32xbf16>
    %c16 = arith.constant 16 : index
    %c0_2 = arith.constant 0 : index
    %2 = vector.load %arg9[%c16, %c0_2] : memref<18x32xf32, #tpu.memory_space<vmem>>, vector<1x32xf32>
    %c0_3 = arith.constant 0 : index
    %c0_4 = arith.constant 0 : index
    %c0_5 = arith.constant 0 : index
    %3 = vector.load %arg3[%c0_3, %c0_4, %c0_5] : memref<25x16x64xbf16, #tpu.memory_space<vmem>>, vector<1x16x64xbf16>
    %4 = vector.shape_cast %3 : vector<1x16x64xbf16> to vector<16x64xbf16>
    %cst = arith.constant dense<0.000000e+00> : vector<16x32xf32>
    %5 = tpu.matmul %4, %1, %cst {dimension_numbers = #tpu.dot_dimension_numbers<[1], [0], [0], [1], [0, 0, 1, 1], [], []>} : vector<16x64xbf16>, vector<64x32xbf16>, vector<16x32xf32> -> vector<16x32xf32>
    %c0_6 = arith.constant 0 : index
    %c0_7 = arith.constant 0 : index
    %c0_8 = arith.constant 0 : index
    %6 = vector.load %arg4[%c0_6, %c0_7, %c0_8] : memref<25x32x32xbf16, #tpu.memory_space<vmem>>, vector<1x32x32xbf16>
    %7 = vector.shape_cast %6 : vector<1x32x32xbf16> to vector<32x32xbf16>
    %8 = arith.truncf %5 : vector<16x32xf32> to vector<16x32xbf16>
    %cst_9 = arith.constant dense<0.000000e+00> : vector<16x32xf32>
    %9 = tpu.matmul %8, %7, %cst_9 {dimension_numbers = #tpu.dot_dimension_numbers<[1], [0], [0], [1], [0, 0, 1, 1], [], []>} : vector<16x32xbf16>, vector<32x32xbf16>, vector<16x32xf32> -> vector<16x32xf32>
    %c1 = arith.constant 1 : index
    %c0_10 = arith.constant 0 : index
    %c0_11 = arith.constant 0 : index
    %10 = vector.load %arg3[%c1, %c0_10, %c0_11] : memref<25x16x64xbf16, #tpu.memory_space<vmem>>, vector<1x16x64xbf16>
    %11 = vector.shape_cast %10 : vector<1x16x64xbf16> to vector<16x64xbf16>
    %cst_12 = arith.constant dense<0.000000e+00> : vector<16x32xf32>
    %12 = tpu.matmul %11, %1, %cst_12 {dimension_numbers = #tpu.dot_dimension_numbers<[1], [0], [0], [1], [0, 0, 1, 1], [], []>} : vector<16x64xbf16>, vector<64x32xbf16>, vector<16x32xf32> -> vector<16x32xf32>
    %c1_13 = arith.constant 1 : index
    %c0_14 = arith.constant 0 : index
    %c0_15 = arith.constant 0 : index
    %13 = vector.load %arg4[%c1_13, %c0_14, %c0_15] : memref<25x32x32xbf16, #tpu.memory_space<vmem>>, vector<1x32x32xbf16>
    %14 = vector.shape_cast %13 : vector<1x32x32xbf16> to vector<32x32xbf16>
    %15 = arith.truncf %12 : vector<16x32xf32> to vector<16x32xbf16>
    %cst_16 = arith.constant dense<0.000000e+00> : vector<16x32xf32>
    %16 = tpu.matmul %15, %14, %cst_16 {dimension_numbers = #tpu.dot_dimension_numbers<[1], [0], [0], [1], [0, 0, 1, 1], [], []>} : vector<16x32xbf16>, vector<32x32xbf16>, vector<16x32xf32> -> vector<16x32xf32>
    %17 = arith.addf %9, %16 : vector<16x32xf32>
    %c2 = arith.constant 2 : index
    %c0_17 = arith.constant 0 : index
    %c0_18 = arith.constant 0 : index
    %18 = vector.load %arg3[%c2, %c0_17, %c0_18] : memref<25x16x64xbf16, #tpu.memory_space<vmem>>, vector<1x16x64xbf16>
    %19 = vector.shape_cast %18 : vector<1x16x64xbf16> to vector<16x64xbf16>
    %cst_19 = arith.constant dense<0.000000e+00> : vector<16x32xf32>
    %20 = tpu.matmul %19, %1, %cst_19 {dimension_numbers = #tpu.dot_dimension_numbers<[1], [0], [0], [1], [0, 0, 1, 1], [], []>} : vector<16x64xbf16>, vector<64x32xbf16>, vector<16x32xf32> -> vector<16x32xf32>
    %c2_20 = arith.constant 2 : index
    %c0_21 = arith.constant 0 : index
    %c0_22 = arith.constant 0 : index
    %21 = vector.load %arg4[%c2_20, %c0_21, %c0_22] : memref<25x32x32xbf16, #tpu.memory_space<vmem>>, vector<1x32x32xbf16>
    %22 = vector.shape_cast %21 : vector<1x32x32xbf16> to vector<32x32xbf16>
    %23 = arith.truncf %20 : vector<16x32xf32> to vector<16x32xbf16>
    %cst_23 = arith.constant dense<0.000000e+00> : vector<16x32xf32>
    %24 = tpu.matmul %23, %22, %cst_23 {dimension_numbers = #tpu.dot_dimension_numbers<[1], [0], [0], [1], [0, 0, 1, 1], [], []>} : vector<16x32xbf16>, vector<32x32xbf16>, vector<16x32xf32> -> vector<16x32xf32>
    %25 = arith.addf %17, %24 : vector<16x32xf32>
    %c3 = arith.constant 3 : index
    %c0_24 = arith.constant 0 : index
    %c0_25 = arith.constant 0 : index
    %26 = vector.load %arg3[%c3, %c0_24, %c0_25] : memref<25x16x64xbf16, #tpu.memory_space<vmem>>, vector<1x16x64xbf16>
    %27 = vector.shape_cast %26 : vector<1x16x64xbf16> to vector<16x64xbf16>
    %cst_26 = arith.constant dense<0.000000e+00> : vector<16x32xf32>
    %28 = tpu.matmul %27, %1, %cst_26 {dimension_numbers = #tpu.dot_dimension_numbers<[1], [0], [0], [1], [0, 0, 1, 1], [], []>} : vector<16x64xbf16>, vector<64x32xbf16>, vector<16x32xf32> -> vector<16x32xf32>
    %c3_27 = arith.constant 3 : index
    %c0_28 = arith.constant 0 : index
    %c0_29 = arith.constant 0 : index
    %29 = vector.load %arg4[%c3_27, %c0_28, %c0_29] : memref<25x32x32xbf16, #tpu.memory_space<vmem>>, vector<1x32x32xbf16>
    %30 = vector.shape_cast %29 : vector<1x32x32xbf16> to vector<32x32xbf16>
    %31 = arith.truncf %28 : vector<16x32xf32> to vector<16x32xbf16>
    %cst_30 = arith.constant dense<0.000000e+00> : vector<16x32xf32>
    %32 = tpu.matmul %31, %30, %cst_30 {dimension_numbers = #tpu.dot_dimension_numbers<[1], [0], [0], [1], [0, 0, 1, 1], [], []>} : vector<16x32xbf16>, vector<32x32xbf16>, vector<16x32xf32> -> vector<16x32xf32>
    %33 = arith.addf %25, %32 : vector<16x32xf32>
    %c4 = arith.constant 4 : index
    %c0_31 = arith.constant 0 : index
    %c0_32 = arith.constant 0 : index
    %34 = vector.load %arg3[%c4, %c0_31, %c0_32] : memref<25x16x64xbf16, #tpu.memory_space<vmem>>, vector<1x16x64xbf16>
    %35 = vector.shape_cast %34 : vector<1x16x64xbf16> to vector<16x64xbf16>
    %cst_33 = arith.constant dense<0.000000e+00> : vector<16x32xf32>
    %36 = tpu.matmul %35, %1, %cst_33 {dimension_numbers = #tpu.dot_dimension_numbers<[1], [0], [0], [1], [0, 0, 1, 1], [], []>} : vector<16x64xbf16>, vector<64x32xbf16>, vector<16x32xf32> -> vector<16x32xf32>
    %c4_34 = arith.constant 4 : index
    %c0_35 = arith.constant 0 : index
    %c0_36 = arith.constant 0 : index
    %37 = vector.load %arg4[%c4_34, %c0_35, %c0_36] : memref<25x32x32xbf16, #tpu.memory_space<vmem>>, vector<1x32x32xbf16>
    %38 = vector.shape_cast %37 : vector<1x32x32xbf16> to vector<32x32xbf16>
    %39 = arith.truncf %36 : vector<16x32xf32> to vector<16x32xbf16>
    %cst_37 = arith.constant dense<0.000000e+00> : vector<16x32xf32>
    %40 = tpu.matmul %39, %38, %cst_37 {dimension_numbers = #tpu.dot_dimension_numbers<[1], [0], [0], [1], [0, 0, 1, 1], [], []>} : vector<16x32xbf16>, vector<32x32xbf16>, vector<16x32xf32> -> vector<16x32xf32>
    %41 = arith.addf %33, %40 : vector<16x32xf32>
    %c5 = arith.constant 5 : index
    %c0_38 = arith.constant 0 : index
    %c0_39 = arith.constant 0 : index
    %42 = vector.load %arg3[%c5, %c0_38, %c0_39] : memref<25x16x64xbf16, #tpu.memory_space<vmem>>, vector<1x16x64xbf16>
    %43 = vector.shape_cast %42 : vector<1x16x64xbf16> to vector<16x64xbf16>
    %cst_40 = arith.constant dense<0.000000e+00> : vector<16x32xf32>
    %44 = tpu.matmul %43, %1, %cst_40 {dimension_numbers = #tpu.dot_dimension_numbers<[1], [0], [0], [1], [0, 0, 1, 1], [], []>} : vector<16x64xbf16>, vector<64x32xbf16>, vector<16x32xf32> -> vector<16x32xf32>
    %c5_41 = arith.constant 5 : index
    %c0_42 = arith.constant 0 : index
    %c0_43 = arith.constant 0 : index
    %45 = vector.load %arg4[%c5_41, %c0_42, %c0_43] : memref<25x32x32xbf16, #tpu.memory_space<vmem>>, vector<1x32x32xbf16>
    %46 = vector.shape_cast %45 : vector<1x32x32xbf16> to vector<32x32xbf16>
    %47 = arith.truncf %44 : vector<16x32xf32> to vector<16x32xbf16>
    %cst_44 = arith.constant dense<0.000000e+00> : vector<16x32xf32>
    %48 = tpu.matmul %47, %46, %cst_44 {dimension_numbers = #tpu.dot_dimension_numbers<[1], [0], [0], [1], [0, 0, 1, 1], [], []>} : vector<16x32xbf16>, vector<32x32xbf16>, vector<16x32xf32> -> vector<16x32xf32>
    %49 = arith.addf %41, %48 : vector<16x32xf32>
    %c6 = arith.constant 6 : index
    %c0_45 = arith.constant 0 : index
    %c0_46 = arith.constant 0 : index
    %50 = vector.load %arg3[%c6, %c0_45, %c0_46] : memref<25x16x64xbf16, #tpu.memory_space<vmem>>, vector<1x16x64xbf16>
    %51 = vector.shape_cast %50 : vector<1x16x64xbf16> to vector<16x64xbf16>
    %cst_47 = arith.constant dense<0.000000e+00> : vector<16x32xf32>
    %52 = tpu.matmul %51, %1, %cst_47 {dimension_numbers = #tpu.dot_dimension_numbers<[1], [0], [0], [1], [0, 0, 1, 1], [], []>} : vector<16x64xbf16>, vector<64x32xbf16>, vector<16x32xf32> -> vector<16x32xf32>
    %c6_48 = arith.constant 6 : index
    %c0_49 = arith.constant 0 : index
    %c0_50 = arith.constant 0 : index
    %53 = vector.load %arg4[%c6_48, %c0_49, %c0_50] : memref<25x32x32xbf16, #tpu.memory_space<vmem>>, vector<1x32x32xbf16>
    %54 = vector.shape_cast %53 : vector<1x32x32xbf16> to vector<32x32xbf16>
    %55 = arith.truncf %52 : vector<16x32xf32> to vector<16x32xbf16>
    %cst_51 = arith.constant dense<0.000000e+00> : vector<16x32xf32>
    %56 = tpu.matmul %55, %54, %cst_51 {dimension_numbers = #tpu.dot_dimension_numbers<[1], [0], [0], [1], [0, 0, 1, 1], [], []>} : vector<16x32xbf16>, vector<32x32xbf16>, vector<16x32xf32> -> vector<16x32xf32>
    %57 = arith.addf %49, %56 : vector<16x32xf32>
    %c7 = arith.constant 7 : index
    %c0_52 = arith.constant 0 : index
    %c0_53 = arith.constant 0 : index
    %58 = vector.load %arg3[%c7, %c0_52, %c0_53] : memref<25x16x64xbf16, #tpu.memory_space<vmem>>, vector<1x16x64xbf16>
    %59 = vector.shape_cast %58 : vector<1x16x64xbf16> to vector<16x64xbf16>
    %cst_54 = arith.constant dense<0.000000e+00> : vector<16x32xf32>
    %60 = tpu.matmul %59, %1, %cst_54 {dimension_numbers = #tpu.dot_dimension_numbers<[1], [0], [0], [1], [0, 0, 1, 1], [], []>} : vector<16x64xbf16>, vector<64x32xbf16>, vector<16x32xf32> -> vector<16x32xf32>
    %c7_55 = arith.constant 7 : index
    %c0_56 = arith.constant 0 : index
    %c0_57 = arith.constant 0 : index
    %61 = vector.load %arg4[%c7_55, %c0_56, %c0_57] : memref<25x32x32xbf16, #tpu.memory_space<vmem>>, vector<1x32x32xbf16>
    %62 = vector.shape_cast %61 : vector<1x32x32xbf16> to vector<32x32xbf16>
    %63 = arith.truncf %60 : vector<16x32xf32> to vector<16x32xbf16>
    %cst_58 = arith.constant dense<0.000000e+00> : vector<16x32xf32>
    %64 = tpu.matmul %63, %62, %cst_58 {dimension_numbers = #tpu.dot_dimension_numbers<[1], [0], [0], [1], [0, 0, 1, 1], [], []>} : vector<16x32xbf16>, vector<32x32xbf16>, vector<16x32xf32> -> vector<16x32xf32>
    %65 = arith.addf %57, %64 : vector<16x32xf32>
    %c8 = arith.constant 8 : index
    %c0_59 = arith.constant 0 : index
    %c0_60 = arith.constant 0 : index
    %66 = vector.load %arg3[%c8, %c0_59, %c0_60] : memref<25x16x64xbf16, #tpu.memory_space<vmem>>, vector<1x16x64xbf16>
    %67 = vector.shape_cast %66 : vector<1x16x64xbf16> to vector<16x64xbf16>
    %cst_61 = arith.constant dense<0.000000e+00> : vector<16x32xf32>
    %68 = tpu.matmul %67, %1, %cst_61 {dimension_numbers = #tpu.dot_dimension_numbers<[1], [0], [0], [1], [0, 0, 1, 1], [], []>} : vector<16x64xbf16>, vector<64x32xbf16>, vector<16x32xf32> -> vector<16x32xf32>
    %c8_62 = arith.constant 8 : index
    %c0_63 = arith.constant 0 : index
    %c0_64 = arith.constant 0 : index
    %69 = vector.load %arg4[%c8_62, %c0_63, %c0_64] : memref<25x32x32xbf16, #tpu.memory_space<vmem>>, vector<1x32x32xbf16>
    %70 = vector.shape_cast %69 : vector<1x32x32xbf16> to vector<32x32xbf16>
    %71 = arith.truncf %68 : vector<16x32xf32> to vector<16x32xbf16>
    %cst_65 = arith.constant dense<0.000000e+00> : vector<16x32xf32>
    %72 = tpu.matmul %71, %70, %cst_65 {dimension_numbers = #tpu.dot_dimension_numbers<[1], [0], [0], [1], [0, 0, 1, 1], [], []>} : vector<16x32xbf16>, vector<32x32xbf16>, vector<16x32xf32> -> vector<16x32xf32>
    %73 = arith.addf %65, %72 : vector<16x32xf32>
    %c9 = arith.constant 9 : index
    %c0_66 = arith.constant 0 : index
    %c0_67 = arith.constant 0 : index
    %74 = vector.load %arg3[%c9, %c0_66, %c0_67] : memref<25x16x64xbf16, #tpu.memory_space<vmem>>, vector<1x16x64xbf16>
    %75 = vector.shape_cast %74 : vector<1x16x64xbf16> to vector<16x64xbf16>
    %cst_68 = arith.constant dense<0.000000e+00> : vector<16x32xf32>
    %76 = tpu.matmul %75, %1, %cst_68 {dimension_numbers = #tpu.dot_dimension_numbers<[1], [0], [0], [1], [0, 0, 1, 1], [], []>} : vector<16x64xbf16>, vector<64x32xbf16>, vector<16x32xf32> -> vector<16x32xf32>
    %c9_69 = arith.constant 9 : index
    %c0_70 = arith.constant 0 : index
    %c0_71 = arith.constant 0 : index
    %77 = vector.load %arg4[%c9_69, %c0_70, %c0_71] : memref<25x32x32xbf16, #tpu.memory_space<vmem>>, vector<1x32x32xbf16>
    %78 = vector.shape_cast %77 : vector<1x32x32xbf16> to vector<32x32xbf16>
    %79 = arith.truncf %76 : vector<16x32xf32> to vector<16x32xbf16>
    %cst_72 = arith.constant dense<0.000000e+00> : vector<16x32xf32>
    %80 = tpu.matmul %79, %78, %cst_72 {dimension_numbers = #tpu.dot_dimension_numbers<[1], [0], [0], [1], [0, 0, 1, 1], [], []>} : vector<16x32xbf16>, vector<32x32xbf16>, vector<16x32xf32> -> vector<16x32xf32>
    %81 = arith.addf %73, %80 : vector<16x32xf32>
    %c10 = arith.constant 10 : index
    %c0_73 = arith.constant 0 : index
    %c0_74 = arith.constant 0 : index
    %82 = vector.load %arg3[%c10, %c0_73, %c0_74] : memref<25x16x64xbf16, #tpu.memory_space<vmem>>, vector<1x16x64xbf16>
    %83 = vector.shape_cast %82 : vector<1x16x64xbf16> to vector<16x64xbf16>
    %cst_75 = arith.constant dense<0.000000e+00> : vector<16x32xf32>
    %84 = tpu.matmul %83, %1, %cst_75 {dimension_numbers = #tpu.dot_dimension_numbers<[1], [0], [0], [1], [0, 0, 1, 1], [], []>} : vector<16x64xbf16>, vector<64x32xbf16>, vector<16x32xf32> -> vector<16x32xf32>
    %c10_76 = arith.constant 10 : index
    %c0_77 = arith.constant 0 : index
    %c0_78 = arith.constant 0 : index
    %85 = vector.load %arg4[%c10_76, %c0_77, %c0_78] : memref<25x32x32xbf16, #tpu.memory_space<vmem>>, vector<1x32x32xbf16>
    %86 = vector.shape_cast %85 : vector<1x32x32xbf16> to vector<32x32xbf16>
    %87 = arith.truncf %84 : vector<16x32xf32> to vector<16x32xbf16>
    %cst_79 = arith.constant dense<0.000000e+00> : vector<16x32xf32>
    %88 = tpu.matmul %87, %86, %cst_79 {dimension_numbers = #tpu.dot_dimension_numbers<[1], [0], [0], [1], [0, 0, 1, 1], [], []>} : vector<16x32xbf16>, vector<32x32xbf16>, vector<16x32xf32> -> vector<16x32xf32>
    %89 = arith.addf %81, %88 : vector<16x32xf32>
    %c11 = arith.constant 11 : index
    %c0_80 = arith.constant 0 : index
    %c0_81 = arith.constant 0 : index
    %90 = vector.load %arg3[%c11, %c0_80, %c0_81] : memref<25x16x64xbf16, #tpu.memory_space<vmem>>, vector<1x16x64xbf16>
    %91 = vector.shape_cast %90 : vector<1x16x64xbf16> to vector<16x64xbf16>
    %cst_82 = arith.constant dense<0.000000e+00> : vector<16x32xf32>
    %92 = tpu.matmul %91, %1, %cst_82 {dimension_numbers = #tpu.dot_dimension_numbers<[1], [0], [0], [1], [0, 0, 1, 1], [], []>} : vector<16x64xbf16>, vector<64x32xbf16>, vector<16x32xf32> -> vector<16x32xf32>
    %c11_83 = arith.constant 11 : index
    %c0_84 = arith.constant 0 : index
    %c0_85 = arith.constant 0 : index
    %93 = vector.load %arg4[%c11_83, %c0_84, %c0_85] : memref<25x32x32xbf16, #tpu.memory_space<vmem>>, vector<1x32x32xbf16>
    %94 = vector.shape_cast %93 : vector<1x32x32xbf16> to vector<32x32xbf16>
    %95 = arith.truncf %92 : vector<16x32xf32> to vector<16x32xbf16>
    %cst_86 = arith.constant dense<0.000000e+00> : vector<16x32xf32>
    %96 = tpu.matmul %95, %94, %cst_86 {dimension_numbers = #tpu.dot_dimension_numbers<[1], [0], [0], [1], [0, 0, 1, 1], [], []>} : vector<16x32xbf16>, vector<32x32xbf16>, vector<16x32xf32> -> vector<16x32xf32>
    %97 = arith.addf %89, %96 : vector<16x32xf32>
    %c12 = arith.constant 12 : index
    %c0_87 = arith.constant 0 : index
    %c0_88 = arith.constant 0 : index
    %98 = vector.load %arg3[%c12, %c0_87, %c0_88] : memref<25x16x64xbf16, #tpu.memory_space<vmem>>, vector<1x16x64xbf16>
    %99 = vector.shape_cast %98 : vector<1x16x64xbf16> to vector<16x64xbf16>
    %cst_89 = arith.constant dense<0.000000e+00> : vector<16x32xf32>
    %100 = tpu.matmul %99, %1, %cst_89 {dimension_numbers = #tpu.dot_dimension_numbers<[1], [0], [0], [1], [0, 0, 1, 1], [], []>} : vector<16x64xbf16>, vector<64x32xbf16>, vector<16x32xf32> -> vector<16x32xf32>
    %c12_90 = arith.constant 12 : index
    %c0_91 = arith.constant 0 : index
    %c0_92 = arith.constant 0 : index
    %101 = vector.load %arg4[%c12_90, %c0_91, %c0_92] : memref<25x32x32xbf16, #tpu.memory_space<vmem>>, vector<1x32x32xbf16>
    %102 = vector.shape_cast %101 : vector<1x32x32xbf16> to vector<32x32xbf16>
    %103 = arith.truncf %100 : vector<16x32xf32> to vector<16x32xbf16>
    %cst_93 = arith.constant dense<0.000000e+00> : vector<16x32xf32>
    %104 = tpu.matmul %103, %102, %cst_93 {dimension_numbers = #tpu.dot_dimension_numbers<[1], [0], [0], [1], [0, 0, 1, 1], [], []>} : vector<16x32xbf16>, vector<32x32xbf16>, vector<16x32xf32> -> vector<16x32xf32>
    %105 = arith.addf %97, %104 : vector<16x32xf32>
    %c13 = arith.constant 13 : index
    %c0_94 = arith.constant 0 : index
    %c0_95 = arith.constant 0 : index
    %106 = vector.load %arg3[%c13, %c0_94, %c0_95] : memref<25x16x64xbf16, #tpu.memory_space<vmem>>, vector<1x16x64xbf16>
    %107 = vector.shape_cast %106 : vector<1x16x64xbf16> to vector<16x64xbf16>
    %cst_96 = arith.constant dense<0.000000e+00> : vector<16x32xf32>
    %108 = tpu.matmul %107, %1, %cst_96 {dimension_numbers = #tpu.dot_dimension_numbers<[1], [0], [0], [1], [0, 0, 1, 1], [], []>} : vector<16x64xbf16>, vector<64x32xbf16>, vector<16x32xf32> -> vector<16x32xf32>
    %c13_97 = arith.constant 13 : index
    %c0_98 = arith.constant 0 : index
    %c0_99 = arith.constant 0 : index
    %109 = vector.load %arg4[%c13_97, %c0_98, %c0_99] : memref<25x32x32xbf16, #tpu.memory_space<vmem>>, vector<1x32x32xbf16>
    %110 = vector.shape_cast %109 : vector<1x32x32xbf16> to vector<32x32xbf16>
    %111 = arith.truncf %108 : vector<16x32xf32> to vector<16x32xbf16>
    %cst_100 = arith.constant dense<0.000000e+00> : vector<16x32xf32>
    %112 = tpu.matmul %111, %110, %cst_100 {dimension_numbers = #tpu.dot_dimension_numbers<[1], [0], [0], [1], [0, 0, 1, 1], [], []>} : vector<16x32xbf16>, vector<32x32xbf16>, vector<16x32xf32> -> vector<16x32xf32>
    %113 = arith.addf %105, %112 : vector<16x32xf32>
    %c14 = arith.constant 14 : index
    %c0_101 = arith.constant 0 : index
    %c0_102 = arith.constant 0 : index
    %114 = vector.load %arg3[%c14, %c0_101, %c0_102] : memref<25x16x64xbf16, #tpu.memory_space<vmem>>, vector<1x16x64xbf16>
    %115 = vector.shape_cast %114 : vector<1x16x64xbf16> to vector<16x64xbf16>
    %cst_103 = arith.constant dense<0.000000e+00> : vector<16x32xf32>
    %116 = tpu.matmul %115, %1, %cst_103 {dimension_numbers = #tpu.dot_dimension_numbers<[1], [0], [0], [1], [0, 0, 1, 1], [], []>} : vector<16x64xbf16>, vector<64x32xbf16>, vector<16x32xf32> -> vector<16x32xf32>
    %c14_104 = arith.constant 14 : index
    %c0_105 = arith.constant 0 : index
    %c0_106 = arith.constant 0 : index
    %117 = vector.load %arg4[%c14_104, %c0_105, %c0_106] : memref<25x32x32xbf16, #tpu.memory_space<vmem>>, vector<1x32x32xbf16>
    %118 = vector.shape_cast %117 : vector<1x32x32xbf16> to vector<32x32xbf16>
    %119 = arith.truncf %116 : vector<16x32xf32> to vector<16x32xbf16>
    %cst_107 = arith.constant dense<0.000000e+00> : vector<16x32xf32>
    %120 = tpu.matmul %119, %118, %cst_107 {dimension_numbers = #tpu.dot_dimension_numbers<[1], [0], [0], [1], [0, 0, 1, 1], [], []>} : vector<16x32xbf16>, vector<32x32xbf16>, vector<16x32xf32> -> vector<16x32xf32>
    %121 = arith.addf %113, %120 : vector<16x32xf32>
    %c15 = arith.constant 15 : index
    %c0_108 = arith.constant 0 : index
    %c0_109 = arith.constant 0 : index
    %122 = vector.load %arg3[%c15, %c0_108, %c0_109] : memref<25x16x64xbf16, #tpu.memory_space<vmem>>, vector<1x16x64xbf16>
    %123 = vector.shape_cast %122 : vector<1x16x64xbf16> to vector<16x64xbf16>
    %cst_110 = arith.constant dense<0.000000e+00> : vector<16x32xf32>
    %124 = tpu.matmul %123, %1, %cst_110 {dimension_numbers = #tpu.dot_dimension_numbers<[1], [0], [0], [1], [0, 0, 1, 1], [], []>} : vector<16x64xbf16>, vector<64x32xbf16>, vector<16x32xf32> -> vector<16x32xf32>
    %c15_111 = arith.constant 15 : index
    %c0_112 = arith.constant 0 : index
    %c0_113 = arith.constant 0 : index
    %125 = vector.load %arg4[%c15_111, %c0_112, %c0_113] : memref<25x32x32xbf16, #tpu.memory_space<vmem>>, vector<1x32x32xbf16>
    %126 = vector.shape_cast %125 : vector<1x32x32xbf16> to vector<32x32xbf16>
    %127 = arith.truncf %124 : vector<16x32xf32> to vector<16x32xbf16>
    %cst_114 = arith.constant dense<0.000000e+00> : vector<16x32xf32>
    %128 = tpu.matmul %127, %126, %cst_114 {dimension_numbers = #tpu.dot_dimension_numbers<[1], [0], [0], [1], [0, 0, 1, 1], [], []>} : vector<16x32xbf16>, vector<32x32xbf16>, vector<16x32xf32> -> vector<16x32xf32>
    %129 = arith.addf %121, %128 : vector<16x32xf32>
    %c16_115 = arith.constant 16 : index
    %c0_116 = arith.constant 0 : index
    %c0_117 = arith.constant 0 : index
    %130 = vector.load %arg3[%c16_115, %c0_116, %c0_117] : memref<25x16x64xbf16, #tpu.memory_space<vmem>>, vector<1x16x64xbf16>
    %131 = vector.shape_cast %130 : vector<1x16x64xbf16> to vector<16x64xbf16>
    %cst_118 = arith.constant dense<0.000000e+00> : vector<16x32xf32>
    %132 = tpu.matmul %131, %1, %cst_118 {dimension_numbers = #tpu.dot_dimension_numbers<[1], [0], [0], [1], [0, 0, 1, 1], [], []>} : vector<16x64xbf16>, vector<64x32xbf16>, vector<16x32xf32> -> vector<16x32xf32>
    %c16_119 = arith.constant 16 : index
    %c0_120 = arith.constant 0 : index
    %c0_121 = arith.constant 0 : index
    %133 = vector.load %arg4[%c16_119, %c0_120, %c0_121] : memref<25x32x32xbf16, #tpu.memory_space<vmem>>, vector<1x32x32xbf16>
    %134 = vector.shape_cast %133 : vector<1x32x32xbf16> to vector<32x32xbf16>
    %135 = arith.truncf %132 : vector<16x32xf32> to vector<16x32xbf16>
    %cst_122 = arith.constant dense<0.000000e+00> : vector<16x32xf32>
    %136 = tpu.matmul %135, %134, %cst_122 {dimension_numbers = #tpu.dot_dimension_numbers<[1], [0], [0], [1], [0, 0, 1, 1], [], []>} : vector<16x32xbf16>, vector<32x32xbf16>, vector<16x32xf32> -> vector<16x32xf32>
    %137 = arith.addf %129, %136 : vector<16x32xf32>
    %c17 = arith.constant 17 : index
    %c0_123 = arith.constant 0 : index
    %c0_124 = arith.constant 0 : index
    %138 = vector.load %arg3[%c17, %c0_123, %c0_124] : memref<25x16x64xbf16, #tpu.memory_space<vmem>>, vector<1x16x64xbf16>
    %139 = vector.shape_cast %138 : vector<1x16x64xbf16> to vector<16x64xbf16>
    %cst_125 = arith.constant dense<0.000000e+00> : vector<16x32xf32>
    %140 = tpu.matmul %139, %1, %cst_125 {dimension_numbers = #tpu.dot_dimension_numbers<[1], [0], [0], [1], [0, 0, 1, 1], [], []>} : vector<16x64xbf16>, vector<64x32xbf16>, vector<16x32xf32> -> vector<16x32xf32>
    %c17_126 = arith.constant 17 : index
    %c0_127 = arith.constant 0 : index
    %c0_128 = arith.constant 0 : index
    %141 = vector.load %arg4[%c17_126, %c0_127, %c0_128] : memref<25x32x32xbf16, #tpu.memory_space<vmem>>, vector<1x32x32xbf16>
    %142 = vector.shape_cast %141 : vector<1x32x32xbf16> to vector<32x32xbf16>
    %143 = arith.truncf %140 : vector<16x32xf32> to vector<16x32xbf16>
    %cst_129 = arith.constant dense<0.000000e+00> : vector<16x32xf32>
    %144 = tpu.matmul %143, %142, %cst_129 {dimension_numbers = #tpu.dot_dimension_numbers<[1], [0], [0], [1], [0, 0, 1, 1], [], []>} : vector<16x32xbf16>, vector<32x32xbf16>, vector<16x32xf32> -> vector<16x32xf32>
    %145 = arith.addf %137, %144 : vector<16x32xf32>
    %c18 = arith.constant 18 : index
    %c0_130 = arith.constant 0 : index
    %c0_131 = arith.constant 0 : index
    %146 = vector.load %arg3[%c18, %c0_130, %c0_131] : memref<25x16x64xbf16, #tpu.memory_space<vmem>>, vector<1x16x64xbf16>
    %147 = vector.shape_cast %146 : vector<1x16x64xbf16> to vector<16x64xbf16>
    %cst_132 = arith.constant dense<0.000000e+00> : vector<16x32xf32>
    %148 = tpu.matmul %147, %1, %cst_132 {dimension_numbers = #tpu.dot_dimension_numbers<[1], [0], [0], [1], [0, 0, 1, 1], [], []>} : vector<16x64xbf16>, vector<64x32xbf16>, vector<16x32xf32> -> vector<16x32xf32>
    %c18_133 = arith.constant 18 : index
    %c0_134 = arith.constant 0 : index
    %c0_135 = arith.constant 0 : index
    %149 = vector.load %arg4[%c18_133, %c0_134, %c0_135] : memref<25x32x32xbf16, #tpu.memory_space<vmem>>, vector<1x32x32xbf16>
    %150 = vector.shape_cast %149 : vector<1x32x32xbf16> to vector<32x32xbf16>
    %151 = arith.truncf %148 : vector<16x32xf32> to vector<16x32xbf16>
    %cst_136 = arith.constant dense<0.000000e+00> : vector<16x32xf32>
    %152 = tpu.matmul %151, %150, %cst_136 {dimension_numbers = #tpu.dot_dimension_numbers<[1], [0], [0], [1], [0, 0, 1, 1], [], []>} : vector<16x32xbf16>, vector<32x32xbf16>, vector<16x32xf32> -> vector<16x32xf32>
    %153 = arith.addf %145, %152 : vector<16x32xf32>
    %c19 = arith.constant 19 : index
    %c0_137 = arith.constant 0 : index
    %c0_138 = arith.constant 0 : index
    %154 = vector.load %arg3[%c19, %c0_137, %c0_138] : memref<25x16x64xbf16, #tpu.memory_space<vmem>>, vector<1x16x64xbf16>
    %155 = vector.shape_cast %154 : vector<1x16x64xbf16> to vector<16x64xbf16>
    %cst_139 = arith.constant dense<0.000000e+00> : vector<16x32xf32>
    %156 = tpu.matmul %155, %1, %cst_139 {dimension_numbers = #tpu.dot_dimension_numbers<[1], [0], [0], [1], [0, 0, 1, 1], [], []>} : vector<16x64xbf16>, vector<64x32xbf16>, vector<16x32xf32> -> vector<16x32xf32>
    %c19_140 = arith.constant 19 : index
    %c0_141 = arith.constant 0 : index
    %c0_142 = arith.constant 0 : index
    %157 = vector.load %arg4[%c19_140, %c0_141, %c0_142] : memref<25x32x32xbf16, #tpu.memory_space<vmem>>, vector<1x32x32xbf16>
    %158 = vector.shape_cast %157 : vector<1x32x32xbf16> to vector<32x32xbf16>
    %159 = arith.truncf %156 : vector<16x32xf32> to vector<16x32xbf16>
    %cst_143 = arith.constant dense<0.000000e+00> : vector<16x32xf32>
    %160 = tpu.matmul %159, %158, %cst_143 {dimension_numbers = #tpu.dot_dimension_numbers<[1], [0], [0], [1], [0, 0, 1, 1], [], []>} : vector<16x32xbf16>, vector<32x32xbf16>, vector<16x32xf32> -> vector<16x32xf32>
    %161 = arith.addf %153, %160 : vector<16x32xf32>
    %c20 = arith.constant 20 : index
    %c0_144 = arith.constant 0 : index
    %c0_145 = arith.constant 0 : index
    %162 = vector.load %arg3[%c20, %c0_144, %c0_145] : memref<25x16x64xbf16, #tpu.memory_space<vmem>>, vector<1x16x64xbf16>
    %163 = vector.shape_cast %162 : vector<1x16x64xbf16> to vector<16x64xbf16>
    %cst_146 = arith.constant dense<0.000000e+00> : vector<16x32xf32>
    %164 = tpu.matmul %163, %1, %cst_146 {dimension_numbers = #tpu.dot_dimension_numbers<[1], [0], [0], [1], [0, 0, 1, 1], [], []>} : vector<16x64xbf16>, vector<64x32xbf16>, vector<16x32xf32> -> vector<16x32xf32>
    %c20_147 = arith.constant 20 : index
    %c0_148 = arith.constant 0 : index
    %c0_149 = arith.constant 0 : index
    %165 = vector.load %arg4[%c20_147, %c0_148, %c0_149] : memref<25x32x32xbf16, #tpu.memory_space<vmem>>, vector<1x32x32xbf16>
    %166 = vector.shape_cast %165 : vector<1x32x32xbf16> to vector<32x32xbf16>
    %167 = arith.truncf %164 : vector<16x32xf32> to vector<16x32xbf16>
    %cst_150 = arith.constant dense<0.000000e+00> : vector<16x32xf32>
    %168 = tpu.matmul %167, %166, %cst_150 {dimension_numbers = #tpu.dot_dimension_numbers<[1], [0], [0], [1], [0, 0, 1, 1], [], []>} : vector<16x32xbf16>, vector<32x32xbf16>, vector<16x32xf32> -> vector<16x32xf32>
    %169 = arith.addf %161, %168 : vector<16x32xf32>
    %c21 = arith.constant 21 : index
    %c0_151 = arith.constant 0 : index
    %c0_152 = arith.constant 0 : index
    %170 = vector.load %arg3[%c21, %c0_151, %c0_152] : memref<25x16x64xbf16, #tpu.memory_space<vmem>>, vector<1x16x64xbf16>
    %171 = vector.shape_cast %170 : vector<1x16x64xbf16> to vector<16x64xbf16>
    %cst_153 = arith.constant dense<0.000000e+00> : vector<16x32xf32>
    %172 = tpu.matmul %171, %1, %cst_153 {dimension_numbers = #tpu.dot_dimension_numbers<[1], [0], [0], [1], [0, 0, 1, 1], [], []>} : vector<16x64xbf16>, vector<64x32xbf16>, vector<16x32xf32> -> vector<16x32xf32>
    %c21_154 = arith.constant 21 : index
    %c0_155 = arith.constant 0 : index
    %c0_156 = arith.constant 0 : index
    %173 = vector.load %arg4[%c21_154, %c0_155, %c0_156] : memref<25x32x32xbf16, #tpu.memory_space<vmem>>, vector<1x32x32xbf16>
    %174 = vector.shape_cast %173 : vector<1x32x32xbf16> to vector<32x32xbf16>
    %175 = arith.truncf %172 : vector<16x32xf32> to vector<16x32xbf16>
    %cst_157 = arith.constant dense<0.000000e+00> : vector<16x32xf32>
    %176 = tpu.matmul %175, %174, %cst_157 {dimension_numbers = #tpu.dot_dimension_numbers<[1], [0], [0], [1], [0, 0, 1, 1], [], []>} : vector<16x32xbf16>, vector<32x32xbf16>, vector<16x32xf32> -> vector<16x32xf32>
    %177 = arith.addf %169, %176 : vector<16x32xf32>
    %c22 = arith.constant 22 : index
    %c0_158 = arith.constant 0 : index
    %c0_159 = arith.constant 0 : index
    %178 = vector.load %arg3[%c22, %c0_158, %c0_159] : memref<25x16x64xbf16, #tpu.memory_space<vmem>>, vector<1x16x64xbf16>
    %179 = vector.shape_cast %178 : vector<1x16x64xbf16> to vector<16x64xbf16>
    %cst_160 = arith.constant dense<0.000000e+00> : vector<16x32xf32>
    %180 = tpu.matmul %179, %1, %cst_160 {dimension_numbers = #tpu.dot_dimension_numbers<[1], [0], [0], [1], [0, 0, 1, 1], [], []>} : vector<16x64xbf16>, vector<64x32xbf16>, vector<16x32xf32> -> vector<16x32xf32>
    %c22_161 = arith.constant 22 : index
    %c0_162 = arith.constant 0 : index
    %c0_163 = arith.constant 0 : index
    %181 = vector.load %arg4[%c22_161, %c0_162, %c0_163] : memref<25x32x32xbf16, #tpu.memory_space<vmem>>, vector<1x32x32xbf16>
    %182 = vector.shape_cast %181 : vector<1x32x32xbf16> to vector<32x32xbf16>
    %183 = arith.truncf %180 : vector<16x32xf32> to vector<16x32xbf16>
    %cst_164 = arith.constant dense<0.000000e+00> : vector<16x32xf32>
    %184 = tpu.matmul %183, %182, %cst_164 {dimension_numbers = #tpu.dot_dimension_numbers<[1], [0], [0], [1], [0, 0, 1, 1], [], []>} : vector<16x32xbf16>, vector<32x32xbf16>, vector<16x32xf32> -> vector<16x32xf32>
    %185 = arith.addf %177, %184 : vector<16x32xf32>
    %c23 = arith.constant 23 : index
    %c0_165 = arith.constant 0 : index
    %c0_166 = arith.constant 0 : index
    %186 = vector.load %arg3[%c23, %c0_165, %c0_166] : memref<25x16x64xbf16, #tpu.memory_space<vmem>>, vector<1x16x64xbf16>
    %187 = vector.shape_cast %186 : vector<1x16x64xbf16> to vector<16x64xbf16>
    %cst_167 = arith.constant dense<0.000000e+00> : vector<16x32xf32>
    %188 = tpu.matmul %187, %1, %cst_167 {dimension_numbers = #tpu.dot_dimension_numbers<[1], [0], [0], [1], [0, 0, 1, 1], [], []>} : vector<16x64xbf16>, vector<64x32xbf16>, vector<16x32xf32> -> vector<16x32xf32>
    %c23_168 = arith.constant 23 : index
    %c0_169 = arith.constant 0 : index
    %c0_170 = arith.constant 0 : index
    %189 = vector.load %arg4[%c23_168, %c0_169, %c0_170] : memref<25x32x32xbf16, #tpu.memory_space<vmem>>, vector<1x32x32xbf16>
    %190 = vector.shape_cast %189 : vector<1x32x32xbf16> to vector<32x32xbf16>
    %191 = arith.truncf %188 : vector<16x32xf32> to vector<16x32xbf16>
    %cst_171 = arith.constant dense<0.000000e+00> : vector<16x32xf32>
    %192 = tpu.matmul %191, %190, %cst_171 {dimension_numbers = #tpu.dot_dimension_numbers<[1], [0], [0], [1], [0, 0, 1, 1], [], []>} : vector<16x32xbf16>, vector<32x32xbf16>, vector<16x32xf32> -> vector<16x32xf32>
    %193 = arith.addf %185, %192 : vector<16x32xf32>
    %c24 = arith.constant 24 : index
    %c0_172 = arith.constant 0 : index
    %c0_173 = arith.constant 0 : index
    %194 = vector.load %arg3[%c24, %c0_172, %c0_173] : memref<25x16x64xbf16, #tpu.memory_space<vmem>>, vector<1x16x64xbf16>
    %195 = vector.shape_cast %194 : vector<1x16x64xbf16> to vector<16x64xbf16>
    %cst_174 = arith.constant dense<0.000000e+00> : vector<16x32xf32>
    %196 = tpu.matmul %195, %1, %cst_174 {dimension_numbers = #tpu.dot_dimension_numbers<[1], [0], [0], [1], [0, 0, 1, 1], [], []>} : vector<16x64xbf16>, vector<64x32xbf16>, vector<16x32xf32> -> vector<16x32xf32>
    %c24_175 = arith.constant 24 : index
    %c0_176 = arith.constant 0 : index
    %c0_177 = arith.constant 0 : index
    %197 = vector.load %arg4[%c24_175, %c0_176, %c0_177] : memref<25x32x32xbf16, #tpu.memory_space<vmem>>, vector<1x32x32xbf16>
    %198 = vector.shape_cast %197 : vector<1x32x32xbf16> to vector<32x32xbf16>
    %199 = arith.truncf %196 : vector<16x32xf32> to vector<16x32xbf16>
    %cst_178 = arith.constant dense<0.000000e+00> : vector<16x32xf32>
    %200 = tpu.matmul %199, %198, %cst_178 {dimension_numbers = #tpu.dot_dimension_numbers<[1], [0], [0], [1], [0, 0, 1, 1], [], []>} : vector<16x32xbf16>, vector<32x32xbf16>, vector<16x32xf32> -> vector<16x32xf32>
    %201 = arith.addf %193, %200 : vector<16x32xf32>
    %202 = vector.broadcast %2 : vector<1x32xf32> to vector<16x32xf32>
    %203 = arith.addf %201, %202 : vector<16x32xf32>
    %cst_179 = arith.constant 0.000000e+00 : f32
    %204 = vector.broadcast %cst_179 : f32 to vector<16x32xf32>
    %205 = arith.maximumf %203, %204 : vector<16x32xf32>
    %c17_180 = arith.constant 17 : index
    %c0_181 = arith.constant 0 : index
    %206 = vector.load %arg9[%c17_180, %c0_181] : memref<18x32xf32, #tpu.memory_space<vmem>>, vector<1x32xf32>
    %207 = arith.truncf %205 : vector<16x32xf32> to vector<16x32xbf16>
    %c0_182 = arith.constant 0 : index
    %c0_183 = arith.constant 0 : index
    %c0_184 = arith.constant 0 : index
    %208 = vector.load %arg5[%c0_182, %c0_183, %c0_184] : memref<25x16x16xbf16, #tpu.memory_space<vmem>>, vector<1x16x16xbf16>
    %209 = vector.shape_cast %208 : vector<1x16x16xbf16> to vector<16x16xbf16>
    %cst_185 = arith.constant dense<0.000000e+00> : vector<16x32xf32>
    %210 = tpu.matmul %209, %207, %cst_185 {dimension_numbers = #tpu.dot_dimension_numbers<[1], [0], [0], [1], [0, 0, 1, 1], [], []>} : vector<16x16xbf16>, vector<16x32xbf16>, vector<16x32xf32> -> vector<16x32xf32>
    %c0_186 = arith.constant 0 : index
    %c0_187 = arith.constant 0 : index
    %c0_188 = arith.constant 0 : index
    %211 = vector.load %arg6[%c0_186, %c0_187, %c0_188] : memref<25x32x32xbf16, #tpu.memory_space<vmem>>, vector<1x32x32xbf16>
    %212 = vector.shape_cast %211 : vector<1x32x32xbf16> to vector<32x32xbf16>
    %213 = arith.truncf %210 : vector<16x32xf32> to vector<16x32xbf16>
    %cst_189 = arith.constant dense<0.000000e+00> : vector<16x32xf32>
    %214 = tpu.matmul %213, %212, %cst_189 {dimension_numbers = #tpu.dot_dimension_numbers<[1], [0], [0], [1], [0, 0, 1, 1], [], []>} : vector<16x32xbf16>, vector<32x32xbf16>, vector<16x32xf32> -> vector<16x32xf32>
    %c1_190 = arith.constant 1 : index
    %c0_191 = arith.constant 0 : index
    %c0_192 = arith.constant 0 : index
    %215 = vector.load %arg5[%c1_190, %c0_191, %c0_192] : memref<25x16x16xbf16, #tpu.memory_space<vmem>>, vector<1x16x16xbf16>
    %216 = vector.shape_cast %215 : vector<1x16x16xbf16> to vector<16x16xbf16>
    %cst_193 = arith.constant dense<0.000000e+00> : vector<16x32xf32>
    %217 = tpu.matmul %216, %207, %cst_193 {dimension_numbers = #tpu.dot_dimension_numbers<[1], [0], [0], [1], [0, 0, 1, 1], [], []>} : vector<16x16xbf16>, vector<16x32xbf16>, vector<16x32xf32> -> vector<16x32xf32>
    %c1_194 = arith.constant 1 : index
    %c0_195 = arith.constant 0 : index
    %c0_196 = arith.constant 0 : index
    %218 = vector.load %arg6[%c1_194, %c0_195, %c0_196] : memref<25x32x32xbf16, #tpu.memory_space<vmem>>, vector<1x32x32xbf16>
    %219 = vector.shape_cast %218 : vector<1x32x32xbf16> to vector<32x32xbf16>
    %220 = arith.truncf %217 : vector<16x32xf32> to vector<16x32xbf16>
    %cst_197 = arith.constant dense<0.000000e+00> : vector<16x32xf32>
    %221 = tpu.matmul %220, %219, %cst_197 {dimension_numbers = #tpu.dot_dimension_numbers<[1], [0], [0], [1], [0, 0, 1, 1], [], []>} : vector<16x32xbf16>, vector<32x32xbf16>, vector<16x32xf32> -> vector<16x32xf32>
    %222 = arith.addf %214, %221 : vector<16x32xf32>
    %c2_198 = arith.constant 2 : index
    %c0_199 = arith.constant 0 : index
    %c0_200 = arith.constant 0 : index
    %223 = vector.load %arg5[%c2_198, %c0_199, %c0_200] : memref<25x16x16xbf16, #tpu.memory_space<vmem>>, vector<1x16x16xbf16>
    %224 = vector.shape_cast %223 : vector<1x16x16xbf16> to vector<16x16xbf16>
    %cst_201 = arith.constant dense<0.000000e+00> : vector<16x32xf32>
    %225 = tpu.matmul %224, %207, %cst_201 {dimension_numbers = #tpu.dot_dimension_numbers<[1], [0], [0], [1], [0, 0, 1, 1], [], []>} : vector<16x16xbf16>, vector<16x32xbf16>, vector<16x32xf32> -> vector<16x32xf32>
    %c2_202 = arith.constant 2 : index
    %c0_203 = arith.constant 0 : index
    %c0_204 = arith.constant 0 : index
    %226 = vector.load %arg6[%c2_202, %c0_203, %c0_204] : memref<25x32x32xbf16, #tpu.memory_space<vmem>>, vector<1x32x32xbf16>
    %227 = vector.shape_cast %226 : vector<1x32x32xbf16> to vector<32x32xbf16>
    %228 = arith.truncf %225 : vector<16x32xf32> to vector<16x32xbf16>
    %cst_205 = arith.constant dense<0.000000e+00> : vector<16x32xf32>
    %229 = tpu.matmul %228, %227, %cst_205 {dimension_numbers = #tpu.dot_dimension_numbers<[1], [0], [0], [1], [0, 0, 1, 1], [], []>} : vector<16x32xbf16>, vector<32x32xbf16>, vector<16x32xf32> -> vector<16x32xf32>
    %230 = arith.addf %222, %229 : vector<16x32xf32>
    %c3_206 = arith.constant 3 : index
    %c0_207 = arith.constant 0 : index
    %c0_208 = arith.constant 0 : index
    %231 = vector.load %arg5[%c3_206, %c0_207, %c0_208] : memref<25x16x16xbf16, #tpu.memory_space<vmem>>, vector<1x16x16xbf16>
    %232 = vector.shape_cast %231 : vector<1x16x16xbf16> to vector<16x16xbf16>
    %cst_209 = arith.constant dense<0.000000e+00> : vector<16x32xf32>
    %233 = tpu.matmul %232, %207, %cst_209 {dimension_numbers = #tpu.dot_dimension_numbers<[1], [0], [0], [1], [0, 0, 1, 1], [], []>} : vector<16x16xbf16>, vector<16x32xbf16>, vector<16x32xf32> -> vector<16x32xf32>
    %c3_210 = arith.constant 3 : index
    %c0_211 = arith.constant 0 : index
    %c0_212 = arith.constant 0 : index
    %234 = vector.load %arg6[%c3_210, %c0_211, %c0_212] : memref<25x32x32xbf16, #tpu.memory_space<vmem>>, vector<1x32x32xbf16>
    %235 = vector.shape_cast %234 : vector<1x32x32xbf16> to vector<32x32xbf16>
    %236 = arith.truncf %233 : vector<16x32xf32> to vector<16x32xbf16>
    %cst_213 = arith.constant dense<0.000000e+00> : vector<16x32xf32>
    %237 = tpu.matmul %236, %235, %cst_213 {dimension_numbers = #tpu.dot_dimension_numbers<[1], [0], [0], [1], [0, 0, 1, 1], [], []>} : vector<16x32xbf16>, vector<32x32xbf16>, vector<16x32xf32> -> vector<16x32xf32>
    %238 = arith.addf %230, %237 : vector<16x32xf32>
    %c4_214 = arith.constant 4 : index
    %c0_215 = arith.constant 0 : index
    %c0_216 = arith.constant 0 : index
    %239 = vector.load %arg5[%c4_214, %c0_215, %c0_216] : memref<25x16x16xbf16, #tpu.memory_space<vmem>>, vector<1x16x16xbf16>
    %240 = vector.shape_cast %239 : vector<1x16x16xbf16> to vector<16x16xbf16>
    %cst_217 = arith.constant dense<0.000000e+00> : vector<16x32xf32>
    %241 = tpu.matmul %240, %207, %cst_217 {dimension_numbers = #tpu.dot_dimension_numbers<[1], [0], [0], [1], [0, 0, 1, 1], [], []>} : vector<16x16xbf16>, vector<16x32xbf16>, vector<16x32xf32> -> vector<16x32xf32>
    %c4_218 = arith.constant 4 : index
    %c0_219 = arith.constant 0 : index
    %c0_220 = arith.constant 0 : index
    %242 = vector.load %arg6[%c4_218, %c0_219, %c0_220] : memref<25x32x32xbf16, #tpu.memory_space<vmem>>, vector<1x32x32xbf16>
    %243 = vector.shape_cast %242 : vector<1x32x32xbf16> to vector<32x32xbf16>
    %244 = arith.truncf %241 : vector<16x32xf32> to vector<16x32xbf16>
    %cst_221 = arith.constant dense<0.000000e+00> : vector<16x32xf32>
    %245 = tpu.matmul %244, %243, %cst_221 {dimension_numbers = #tpu.dot_dimension_numbers<[1], [0], [0], [1], [0, 0, 1, 1], [], []>} : vector<16x32xbf16>, vector<32x32xbf16>, vector<16x32xf32> -> vector<16x32xf32>
    %246 = arith.addf %238, %245 : vector<16x32xf32>
    %c5_222 = arith.constant 5 : index
    %c0_223 = arith.constant 0 : index
    %c0_224 = arith.constant 0 : index
    %247 = vector.load %arg5[%c5_222, %c0_223, %c0_224] : memref<25x16x16xbf16, #tpu.memory_space<vmem>>, vector<1x16x16xbf16>
    %248 = vector.shape_cast %247 : vector<1x16x16xbf16> to vector<16x16xbf16>
    %cst_225 = arith.constant dense<0.000000e+00> : vector<16x32xf32>
    %249 = tpu.matmul %248, %207, %cst_225 {dimension_numbers = #tpu.dot_dimension_numbers<[1], [0], [0], [1], [0, 0, 1, 1], [], []>} : vector<16x16xbf16>, vector<16x32xbf16>, vector<16x32xf32> -> vector<16x32xf32>
    %c5_226 = arith.constant 5 : index
    %c0_227 = arith.constant 0 : index
    %c0_228 = arith.constant 0 : index
    %250 = vector.load %arg6[%c5_226, %c0_227, %c0_228] : memref<25x32x32xbf16, #tpu.memory_space<vmem>>, vector<1x32x32xbf16>
    %251 = vector.shape_cast %250 : vector<1x32x32xbf16> to vector<32x32xbf16>
    %252 = arith.truncf %249 : vector<16x32xf32> to vector<16x32xbf16>
    %cst_229 = arith.constant dense<0.000000e+00> : vector<16x32xf32>
    %253 = tpu.matmul %252, %251, %cst_229 {dimension_numbers = #tpu.dot_dimension_numbers<[1], [0], [0], [1], [0, 0, 1, 1], [], []>} : vector<16x32xbf16>, vector<32x32xbf16>, vector<16x32xf32> -> vector<16x32xf32>
    %254 = arith.addf %246, %253 : vector<16x32xf32>
    %c6_230 = arith.constant 6 : index
    %c0_231 = arith.constant 0 : index
    %c0_232 = arith.constant 0 : index
    %255 = vector.load %arg5[%c6_230, %c0_231, %c0_232] : memref<25x16x16xbf16, #tpu.memory_space<vmem>>, vector<1x16x16xbf16>
    %256 = vector.shape_cast %255 : vector<1x16x16xbf16> to vector<16x16xbf16>
    %cst_233 = arith.constant dense<0.000000e+00> : vector<16x32xf32>
    %257 = tpu.matmul %256, %207, %cst_233 {dimension_numbers = #tpu.dot_dimension_numbers<[1], [0], [0], [1], [0, 0, 1, 1], [], []>} : vector<16x16xbf16>, vector<16x32xbf16>, vector<16x32xf32> -> vector<16x32xf32>
    %c6_234 = arith.constant 6 : index
    %c0_235 = arith.constant 0 : index
    %c0_236 = arith.constant 0 : index
    %258 = vector.load %arg6[%c6_234, %c0_235, %c0_236] : memref<25x32x32xbf16, #tpu.memory_space<vmem>>, vector<1x32x32xbf16>
    %259 = vector.shape_cast %258 : vector<1x32x32xbf16> to vector<32x32xbf16>
    %260 = arith.truncf %257 : vector<16x32xf32> to vector<16x32xbf16>
    %cst_237 = arith.constant dense<0.000000e+00> : vector<16x32xf32>
    %261 = tpu.matmul %260, %259, %cst_237 {dimension_numbers = #tpu.dot_dimension_numbers<[1], [0], [0], [1], [0, 0, 1, 1], [], []>} : vector<16x32xbf16>, vector<32x32xbf16>, vector<16x32xf32> -> vector<16x32xf32>
    %262 = arith.addf %254, %261 : vector<16x32xf32>
    %c7_238 = arith.constant 7 : index
    %c0_239 = arith.constant 0 : index
    %c0_240 = arith.constant 0 : index
    %263 = vector.load %arg5[%c7_238, %c0_239, %c0_240] : memref<25x16x16xbf16, #tpu.memory_space<vmem>>, vector<1x16x16xbf16>
    %264 = vector.shape_cast %263 : vector<1x16x16xbf16> to vector<16x16xbf16>
    %cst_241 = arith.constant dense<0.000000e+00> : vector<16x32xf32>
    %265 = tpu.matmul %264, %207, %cst_241 {dimension_numbers = #tpu.dot_dimension_numbers<[1], [0], [0], [1], [0, 0, 1, 1], [], []>} : vector<16x16xbf16>, vector<16x32xbf16>, vector<16x32xf32> -> vector<16x32xf32>
    %c7_242 = arith.constant 7 : index
    %c0_243 = arith.constant 0 : index
    %c0_244 = arith.constant 0 : index
    %266 = vector.load %arg6[%c7_242, %c0_243, %c0_244] : memref<25x32x32xbf16, #tpu.memory_space<vmem>>, vector<1x32x32xbf16>
    %267 = vector.shape_cast %266 : vector<1x32x32xbf16> to vector<32x32xbf16>
    %268 = arith.truncf %265 : vector<16x32xf32> to vector<16x32xbf16>
    %cst_245 = arith.constant dense<0.000000e+00> : vector<16x32xf32>
    %269 = tpu.matmul %268, %267, %cst_245 {dimension_numbers = #tpu.dot_dimension_numbers<[1], [0], [0], [1], [0, 0, 1, 1], [], []>} : vector<16x32xbf16>, vector<32x32xbf16>, vector<16x32xf32> -> vector<16x32xf32>
    %270 = arith.addf %262, %269 : vector<16x32xf32>
    %c8_246 = arith.constant 8 : index
    %c0_247 = arith.constant 0 : index
    %c0_248 = arith.constant 0 : index
    %271 = vector.load %arg5[%c8_246, %c0_247, %c0_248] : memref<25x16x16xbf16, #tpu.memory_space<vmem>>, vector<1x16x16xbf16>
    %272 = vector.shape_cast %271 : vector<1x16x16xbf16> to vector<16x16xbf16>
    %cst_249 = arith.constant dense<0.000000e+00> : vector<16x32xf32>
    %273 = tpu.matmul %272, %207, %cst_249 {dimension_numbers = #tpu.dot_dimension_numbers<[1], [0], [0], [1], [0, 0, 1, 1], [], []>} : vector<16x16xbf16>, vector<16x32xbf16>, vector<16x32xf32> -> vector<16x32xf32>
    %c8_250 = arith.constant 8 : index
    %c0_251 = arith.constant 0 : index
    %c0_252 = arith.constant 0 : index
    %274 = vector.load %arg6[%c8_250, %c0_251, %c0_252] : memref<25x32x32xbf16, #tpu.memory_space<vmem>>, vector<1x32x32xbf16>
    %275 = vector.shape_cast %274 : vector<1x32x32xbf16> to vector<32x32xbf16>
    %276 = arith.truncf %273 : vector<16x32xf32> to vector<16x32xbf16>
    %cst_253 = arith.constant dense<0.000000e+00> : vector<16x32xf32>
    %277 = tpu.matmul %276, %275, %cst_253 {dimension_numbers = #tpu.dot_dimension_numbers<[1], [0], [0], [1], [0, 0, 1, 1], [], []>} : vector<16x32xbf16>, vector<32x32xbf16>, vector<16x32xf32> -> vector<16x32xf32>
    %278 = arith.addf %270, %277 : vector<16x32xf32>
    %c9_254 = arith.constant 9 : index
    %c0_255 = arith.constant 0 : index
    %c0_256 = arith.constant 0 : index
    %279 = vector.load %arg5[%c9_254, %c0_255, %c0_256] : memref<25x16x16xbf16, #tpu.memory_space<vmem>>, vector<1x16x16xbf16>
    %280 = vector.shape_cast %279 : vector<1x16x16xbf16> to vector<16x16xbf16>
    %cst_257 = arith.constant dense<0.000000e+00> : vector<16x32xf32>
    %281 = tpu.matmul %280, %207, %cst_257 {dimension_numbers = #tpu.dot_dimension_numbers<[1], [0], [0], [1], [0, 0, 1, 1], [], []>} : vector<16x16xbf16>, vector<16x32xbf16>, vector<16x32xf32> -> vector<16x32xf32>
    %c9_258 = arith.constant 9 : index
    %c0_259 = arith.constant 0 : index
    %c0_260 = arith.constant 0 : index
    %282 = vector.load %arg6[%c9_258, %c0_259, %c0_260] : memref<25x32x32xbf16, #tpu.memory_space<vmem>>, vector<1x32x32xbf16>
    %283 = vector.shape_cast %282 : vector<1x32x32xbf16> to vector<32x32xbf16>
    %284 = arith.truncf %281 : vector<16x32xf32> to vector<16x32xbf16>
    %cst_261 = arith.constant dense<0.000000e+00> : vector<16x32xf32>
    %285 = tpu.matmul %284, %283, %cst_261 {dimension_numbers = #tpu.dot_dimension_numbers<[1], [0], [0], [1], [0, 0, 1, 1], [], []>} : vector<16x32xbf16>, vector<32x32xbf16>, vector<16x32xf32> -> vector<16x32xf32>
    %286 = arith.addf %278, %285 : vector<16x32xf32>
    %c10_262 = arith.constant 10 : index
    %c0_263 = arith.constant 0 : index
    %c0_264 = arith.constant 0 : index
    %287 = vector.load %arg5[%c10_262, %c0_263, %c0_264] : memref<25x16x16xbf16, #tpu.memory_space<vmem>>, vector<1x16x16xbf16>
    %288 = vector.shape_cast %287 : vector<1x16x16xbf16> to vector<16x16xbf16>
    %cst_265 = arith.constant dense<0.000000e+00> : vector<16x32xf32>
    %289 = tpu.matmul %288, %207, %cst_265 {dimension_numbers = #tpu.dot_dimension_numbers<[1], [0], [0], [1], [0, 0, 1, 1], [], []>} : vector<16x16xbf16>, vector<16x32xbf16>, vector<16x32xf32> -> vector<16x32xf32>
    %c10_266 = arith.constant 10 : index
    %c0_267 = arith.constant 0 : index
    %c0_268 = arith.constant 0 : index
    %290 = vector.load %arg6[%c10_266, %c0_267, %c0_268] : memref<25x32x32xbf16, #tpu.memory_space<vmem>>, vector<1x32x32xbf16>
    %291 = vector.shape_cast %290 : vector<1x32x32xbf16> to vector<32x32xbf16>
    %292 = arith.truncf %289 : vector<16x32xf32> to vector<16x32xbf16>
    %cst_269 = arith.constant dense<0.000000e+00> : vector<16x32xf32>
    %293 = tpu.matmul %292, %291, %cst_269 {dimension_numbers = #tpu.dot_dimension_numbers<[1], [0], [0], [1], [0, 0, 1, 1], [], []>} : vector<16x32xbf16>, vector<32x32xbf16>, vector<16x32xf32> -> vector<16x32xf32>
    %294 = arith.addf %286, %293 : vector<16x32xf32>
    %c11_270 = arith.constant 11 : index
    %c0_271 = arith.constant 0 : index
    %c0_272 = arith.constant 0 : index
    %295 = vector.load %arg5[%c11_270, %c0_271, %c0_272] : memref<25x16x16xbf16, #tpu.memory_space<vmem>>, vector<1x16x16xbf16>
    %296 = vector.shape_cast %295 : vector<1x16x16xbf16> to vector<16x16xbf16>
    %cst_273 = arith.constant dense<0.000000e+00> : vector<16x32xf32>
    %297 = tpu.matmul %296, %207, %cst_273 {dimension_numbers = #tpu.dot_dimension_numbers<[1], [0], [0], [1], [0, 0, 1, 1], [], []>} : vector<16x16xbf16>, vector<16x32xbf16>, vector<16x32xf32> -> vector<16x32xf32>
    %c11_274 = arith.constant 11 : index
    %c0_275 = arith.constant 0 : index
    %c0_276 = arith.constant 0 : index
    %298 = vector.load %arg6[%c11_274, %c0_275, %c0_276] : memref<25x32x32xbf16, #tpu.memory_space<vmem>>, vector<1x32x32xbf16>
    %299 = vector.shape_cast %298 : vector<1x32x32xbf16> to vector<32x32xbf16>
    %300 = arith.truncf %297 : vector<16x32xf32> to vector<16x32xbf16>
    %cst_277 = arith.constant dense<0.000000e+00> : vector<16x32xf32>
    %301 = tpu.matmul %300, %299, %cst_277 {dimension_numbers = #tpu.dot_dimension_numbers<[1], [0], [0], [1], [0, 0, 1, 1], [], []>} : vector<16x32xbf16>, vector<32x32xbf16>, vector<16x32xf32> -> vector<16x32xf32>
    %302 = arith.addf %294, %301 : vector<16x32xf32>
    %c12_278 = arith.constant 12 : index
    %c0_279 = arith.constant 0 : index
    %c0_280 = arith.constant 0 : index
    %303 = vector.load %arg5[%c12_278, %c0_279, %c0_280] : memref<25x16x16xbf16, #tpu.memory_space<vmem>>, vector<1x16x16xbf16>
    %304 = vector.shape_cast %303 : vector<1x16x16xbf16> to vector<16x16xbf16>
    %cst_281 = arith.constant dense<0.000000e+00> : vector<16x32xf32>
    %305 = tpu.matmul %304, %207, %cst_281 {dimension_numbers = #tpu.dot_dimension_numbers<[1], [0], [0], [1], [0, 0, 1, 1], [], []>} : vector<16x16xbf16>, vector<16x32xbf16>, vector<16x32xf32> -> vector<16x32xf32>
    %c12_282 = arith.constant 12 : index
    %c0_283 = arith.constant 0 : index
    %c0_284 = arith.constant 0 : index
    %306 = vector.load %arg6[%c12_282, %c0_283, %c0_284] : memref<25x32x32xbf16, #tpu.memory_space<vmem>>, vector<1x32x32xbf16>
    %307 = vector.shape_cast %306 : vector<1x32x32xbf16> to vector<32x32xbf16>
    %308 = arith.truncf %305 : vector<16x32xf32> to vector<16x32xbf16>
    %cst_285 = arith.constant dense<0.000000e+00> : vector<16x32xf32>
    %309 = tpu.matmul %308, %307, %cst_285 {dimension_numbers = #tpu.dot_dimension_numbers<[1], [0], [0], [1], [0, 0, 1, 1], [], []>} : vector<16x32xbf16>, vector<32x32xbf16>, vector<16x32xf32> -> vector<16x32xf32>
    %310 = arith.addf %302, %309 : vector<16x32xf32>
    %c13_286 = arith.constant 13 : index
    %c0_287 = arith.constant 0 : index
    %c0_288 = arith.constant 0 : index
    %311 = vector.load %arg5[%c13_286, %c0_287, %c0_288] : memref<25x16x16xbf16, #tpu.memory_space<vmem>>, vector<1x16x16xbf16>
    %312 = vector.shape_cast %311 : vector<1x16x16xbf16> to vector<16x16xbf16>
    %cst_289 = arith.constant dense<0.000000e+00> : vector<16x32xf32>
    %313 = tpu.matmul %312, %207, %cst_289 {dimension_numbers = #tpu.dot_dimension_numbers<[1], [0], [0], [1], [0, 0, 1, 1], [], []>} : vector<16x16xbf16>, vector<16x32xbf16>, vector<16x32xf32> -> vector<16x32xf32>
    %c13_290 = arith.constant 13 : index
    %c0_291 = arith.constant 0 : index
    %c0_292 = arith.constant 0 : index
    %314 = vector.load %arg6[%c13_290, %c0_291, %c0_292] : memref<25x32x32xbf16, #tpu.memory_space<vmem>>, vector<1x32x32xbf16>
    %315 = vector.shape_cast %314 : vector<1x32x32xbf16> to vector<32x32xbf16>
    %316 = arith.truncf %313 : vector<16x32xf32> to vector<16x32xbf16>
    %cst_293 = arith.constant dense<0.000000e+00> : vector<16x32xf32>
    %317 = tpu.matmul %316, %315, %cst_293 {dimension_numbers = #tpu.dot_dimension_numbers<[1], [0], [0], [1], [0, 0, 1, 1], [], []>} : vector<16x32xbf16>, vector<32x32xbf16>, vector<16x32xf32> -> vector<16x32xf32>
    %318 = arith.addf %310, %317 : vector<16x32xf32>
    %c14_294 = arith.constant 14 : index
    %c0_295 = arith.constant 0 : index
    %c0_296 = arith.constant 0 : index
    %319 = vector.load %arg5[%c14_294, %c0_295, %c0_296] : memref<25x16x16xbf16, #tpu.memory_space<vmem>>, vector<1x16x16xbf16>
    %320 = vector.shape_cast %319 : vector<1x16x16xbf16> to vector<16x16xbf16>
    %cst_297 = arith.constant dense<0.000000e+00> : vector<16x32xf32>
    %321 = tpu.matmul %320, %207, %cst_297 {dimension_numbers = #tpu.dot_dimension_numbers<[1], [0], [0], [1], [0, 0, 1, 1], [], []>} : vector<16x16xbf16>, vector<16x32xbf16>, vector<16x32xf32> -> vector<16x32xf32>
    %c14_298 = arith.constant 14 : index
    %c0_299 = arith.constant 0 : index
    %c0_300 = arith.constant 0 : index
    %322 = vector.load %arg6[%c14_298, %c0_299, %c0_300] : memref<25x32x32xbf16, #tpu.memory_space<vmem>>, vector<1x32x32xbf16>
    %323 = vector.shape_cast %322 : vector<1x32x32xbf16> to vector<32x32xbf16>
    %324 = arith.truncf %321 : vector<16x32xf32> to vector<16x32xbf16>
    %cst_301 = arith.constant dense<0.000000e+00> : vector<16x32xf32>
    %325 = tpu.matmul %324, %323, %cst_301 {dimension_numbers = #tpu.dot_dimension_numbers<[1], [0], [0], [1], [0, 0, 1, 1], [], []>} : vector<16x32xbf16>, vector<32x32xbf16>, vector<16x32xf32> -> vector<16x32xf32>
    %326 = arith.addf %318, %325 : vector<16x32xf32>
    %c15_302 = arith.constant 15 : index
    %c0_303 = arith.constant 0 : index
    %c0_304 = arith.constant 0 : index
    %327 = vector.load %arg5[%c15_302, %c0_303, %c0_304] : memref<25x16x16xbf16, #tpu.memory_space<vmem>>, vector<1x16x16xbf16>
    %328 = vector.shape_cast %327 : vector<1x16x16xbf16> to vector<16x16xbf16>
    %cst_305 = arith.constant dense<0.000000e+00> : vector<16x32xf32>
    %329 = tpu.matmul %328, %207, %cst_305 {dimension_numbers = #tpu.dot_dimension_numbers<[1], [0], [0], [1], [0, 0, 1, 1], [], []>} : vector<16x16xbf16>, vector<16x32xbf16>, vector<16x32xf32> -> vector<16x32xf32>
    %c15_306 = arith.constant 15 : index
    %c0_307 = arith.constant 0 : index
    %c0_308 = arith.constant 0 : index
    %330 = vector.load %arg6[%c15_306, %c0_307, %c0_308] : memref<25x32x32xbf16, #tpu.memory_space<vmem>>, vector<1x32x32xbf16>
    %331 = vector.shape_cast %330 : vector<1x32x32xbf16> to vector<32x32xbf16>
    %332 = arith.truncf %329 : vector<16x32xf32> to vector<16x32xbf16>
    %cst_309 = arith.constant dense<0.000000e+00> : vector<16x32xf32>
    %333 = tpu.matmul %332, %331, %cst_309 {dimension_numbers = #tpu.dot_dimension_numbers<[1], [0], [0], [1], [0, 0, 1, 1], [], []>} : vector<16x32xbf16>, vector<32x32xbf16>, vector<16x32xf32> -> vector<16x32xf32>
    %334 = arith.addf %326, %333 : vector<16x32xf32>
    %c16_310 = arith.constant 16 : index
    %c0_311 = arith.constant 0 : index
    %c0_312 = arith.constant 0 : index
    %335 = vector.load %arg5[%c16_310, %c0_311, %c0_312] : memref<25x16x16xbf16, #tpu.memory_space<vmem>>, vector<1x16x16xbf16>
    %336 = vector.shape_cast %335 : vector<1x16x16xbf16> to vector<16x16xbf16>
    %cst_313 = arith.constant dense<0.000000e+00> : vector<16x32xf32>
    %337 = tpu.matmul %336, %207, %cst_313 {dimension_numbers = #tpu.dot_dimension_numbers<[1], [0], [0], [1], [0, 0, 1, 1], [], []>} : vector<16x16xbf16>, vector<16x32xbf16>, vector<16x32xf32> -> vector<16x32xf32>
    %c16_314 = arith.constant 16 : index
    %c0_315 = arith.constant 0 : index
    %c0_316 = arith.constant 0 : index
    %338 = vector.load %arg6[%c16_314, %c0_315, %c0_316] : memref<25x32x32xbf16, #tpu.memory_space<vmem>>, vector<1x32x32xbf16>
    %339 = vector.shape_cast %338 : vector<1x32x32xbf16> to vector<32x32xbf16>
    %340 = arith.truncf %337 : vector<16x32xf32> to vector<16x32xbf16>
    %cst_317 = arith.constant dense<0.000000e+00> : vector<16x32xf32>
    %341 = tpu.matmul %340, %339, %cst_317 {dimension_numbers = #tpu.dot_dimension_numbers<[1], [0], [0], [1], [0, 0, 1, 1], [], []>} : vector<16x32xbf16>, vector<32x32xbf16>, vector<16x32xf32> -> vector<16x32xf32>
    %342 = arith.addf %334, %341 : vector<16x32xf32>
    %c17_318 = arith.constant 17 : index
    %c0_319 = arith.constant 0 : index
    %c0_320 = arith.constant 0 : index
    %343 = vector.load %arg5[%c17_318, %c0_319, %c0_320] : memref<25x16x16xbf16, #tpu.memory_space<vmem>>, vector<1x16x16xbf16>
    %344 = vector.shape_cast %343 : vector<1x16x16xbf16> to vector<16x16xbf16>
    %cst_321 = arith.constant dense<0.000000e+00> : vector<16x32xf32>
    %345 = tpu.matmul %344, %207, %cst_321 {dimension_numbers = #tpu.dot_dimension_numbers<[1], [0], [0], [1], [0, 0, 1, 1], [], []>} : vector<16x16xbf16>, vector<16x32xbf16>, vector<16x32xf32> -> vector<16x32xf32>
    %c17_322 = arith.constant 17 : index
    %c0_323 = arith.constant 0 : index
    %c0_324 = arith.constant 0 : index
    %346 = vector.load %arg6[%c17_322, %c0_323, %c0_324] : memref<25x32x32xbf16, #tpu.memory_space<vmem>>, vector<1x32x32xbf16>
    %347 = vector.shape_cast %346 : vector<1x32x32xbf16> to vector<32x32xbf16>
    %348 = arith.truncf %345 : vector<16x32xf32> to vector<16x32xbf16>
    %cst_325 = arith.constant dense<0.000000e+00> : vector<16x32xf32>
    %349 = tpu.matmul %348, %347, %cst_325 {dimension_numbers = #tpu.dot_dimension_numbers<[1], [0], [0], [1], [0, 0, 1, 1], [], []>} : vector<16x32xbf16>, vector<32x32xbf16>, vector<16x32xf32> -> vector<16x32xf32>
    %350 = arith.addf %342, %349 : vector<16x32xf32>
    %c18_326 = arith.constant 18 : index
    %c0_327 = arith.constant 0 : index
    %c0_328 = arith.constant 0 : index
    %351 = vector.load %arg5[%c18_326, %c0_327, %c0_328] : memref<25x16x16xbf16, #tpu.memory_space<vmem>>, vector<1x16x16xbf16>
    %352 = vector.shape_cast %351 : vector<1x16x16xbf16> to vector<16x16xbf16>
    %cst_329 = arith.constant dense<0.000000e+00> : vector<16x32xf32>
    %353 = tpu.matmul %352, %207, %cst_329 {dimension_numbers = #tpu.dot_dimension_numbers<[1], [0], [0], [1], [0, 0, 1, 1], [], []>} : vector<16x16xbf16>, vector<16x32xbf16>, vector<16x32xf32> -> vector<16x32xf32>
    %c18_330 = arith.constant 18 : index
    %c0_331 = arith.constant 0 : index
    %c0_332 = arith.constant 0 : index
    %354 = vector.load %arg6[%c18_330, %c0_331, %c0_332] : memref<25x32x32xbf16, #tpu.memory_space<vmem>>, vector<1x32x32xbf16>
    %355 = vector.shape_cast %354 : vector<1x32x32xbf16> to vector<32x32xbf16>
    %356 = arith.truncf %353 : vector<16x32xf32> to vector<16x32xbf16>
    %cst_333 = arith.constant dense<0.000000e+00> : vector<16x32xf32>
    %357 = tpu.matmul %356, %355, %cst_333 {dimension_numbers = #tpu.dot_dimension_numbers<[1], [0], [0], [1], [0, 0, 1, 1], [], []>} : vector<16x32xbf16>, vector<32x32xbf16>, vector<16x32xf32> -> vector<16x32xf32>
    %358 = arith.addf %350, %357 : vector<16x32xf32>
    %c19_334 = arith.constant 19 : index
    %c0_335 = arith.constant 0 : index
    %c0_336 = arith.constant 0 : index
    %359 = vector.load %arg5[%c19_334, %c0_335, %c0_336] : memref<25x16x16xbf16, #tpu.memory_space<vmem>>, vector<1x16x16xbf16>
    %360 = vector.shape_cast %359 : vector<1x16x16xbf16> to vector<16x16xbf16>
    %cst_337 = arith.constant dense<0.000000e+00> : vector<16x32xf32>
    %361 = tpu.matmul %360, %207, %cst_337 {dimension_numbers = #tpu.dot_dimension_numbers<[1], [0], [0], [1], [0, 0, 1, 1], [], []>} : vector<16x16xbf16>, vector<16x32xbf16>, vector<16x32xf32> -> vector<16x32xf32>
    %c19_338 = arith.constant 19 : index
    %c0_339 = arith.constant 0 : index
    %c0_340 = arith.constant 0 : index
    %362 = vector.load %arg6[%c19_338, %c0_339, %c0_340] : memref<25x32x32xbf16, #tpu.memory_space<vmem>>, vector<1x32x32xbf16>
    %363 = vector.shape_cast %362 : vector<1x32x32xbf16> to vector<32x32xbf16>
    %364 = arith.truncf %361 : vector<16x32xf32> to vector<16x32xbf16>
    %cst_341 = arith.constant dense<0.000000e+00> : vector<16x32xf32>
    %365 = tpu.matmul %364, %363, %cst_341 {dimension_numbers = #tpu.dot_dimension_numbers<[1], [0], [0], [1], [0, 0, 1, 1], [], []>} : vector<16x32xbf16>, vector<32x32xbf16>, vector<16x32xf32> -> vector<16x32xf32>
    %366 = arith.addf %358, %365 : vector<16x32xf32>
    %c20_342 = arith.constant 20 : index
    %c0_343 = arith.constant 0 : index
    %c0_344 = arith.constant 0 : index
    %367 = vector.load %arg5[%c20_342, %c0_343, %c0_344] : memref<25x16x16xbf16, #tpu.memory_space<vmem>>, vector<1x16x16xbf16>
    %368 = vector.shape_cast %367 : vector<1x16x16xbf16> to vector<16x16xbf16>
    %cst_345 = arith.constant dense<0.000000e+00> : vector<16x32xf32>
    %369 = tpu.matmul %368, %207, %cst_345 {dimension_numbers = #tpu.dot_dimension_numbers<[1], [0], [0], [1], [0, 0, 1, 1], [], []>} : vector<16x16xbf16>, vector<16x32xbf16>, vector<16x32xf32> -> vector<16x32xf32>
    %c20_346 = arith.constant 20 : index
    %c0_347 = arith.constant 0 : index
    %c0_348 = arith.constant 0 : index
    %370 = vector.load %arg6[%c20_346, %c0_347, %c0_348] : memref<25x32x32xbf16, #tpu.memory_space<vmem>>, vector<1x32x32xbf16>
    %371 = vector.shape_cast %370 : vector<1x32x32xbf16> to vector<32x32xbf16>
    %372 = arith.truncf %369 : vector<16x32xf32> to vector<16x32xbf16>
    %cst_349 = arith.constant dense<0.000000e+00> : vector<16x32xf32>
    %373 = tpu.matmul %372, %371, %cst_349 {dimension_numbers = #tpu.dot_dimension_numbers<[1], [0], [0], [1], [0, 0, 1, 1], [], []>} : vector<16x32xbf16>, vector<32x32xbf16>, vector<16x32xf32> -> vector<16x32xf32>
    %374 = arith.addf %366, %373 : vector<16x32xf32>
    %c21_350 = arith.constant 21 : index
    %c0_351 = arith.constant 0 : index
    %c0_352 = arith.constant 0 : index
    %375 = vector.load %arg5[%c21_350, %c0_351, %c0_352] : memref<25x16x16xbf16, #tpu.memory_space<vmem>>, vector<1x16x16xbf16>
    %376 = vector.shape_cast %375 : vector<1x16x16xbf16> to vector<16x16xbf16>
    %cst_353 = arith.constant dense<0.000000e+00> : vector<16x32xf32>
    %377 = tpu.matmul %376, %207, %cst_353 {dimension_numbers = #tpu.dot_dimension_numbers<[1], [0], [0], [1], [0, 0, 1, 1], [], []>} : vector<16x16xbf16>, vector<16x32xbf16>, vector<16x32xf32> -> vector<16x32xf32>
    %c21_354 = arith.constant 21 : index
    %c0_355 = arith.constant 0 : index
    %c0_356 = arith.constant 0 : index
    %378 = vector.load %arg6[%c21_354, %c0_355, %c0_356] : memref<25x32x32xbf16, #tpu.memory_space<vmem>>, vector<1x32x32xbf16>
    %379 = vector.shape_cast %378 : vector<1x32x32xbf16> to vector<32x32xbf16>
    %380 = arith.truncf %377 : vector<16x32xf32> to vector<16x32xbf16>
    %cst_357 = arith.constant dense<0.000000e+00> : vector<16x32xf32>
    %381 = tpu.matmul %380, %379, %cst_357 {dimension_numbers = #tpu.dot_dimension_numbers<[1], [0], [0], [1], [0, 0, 1, 1], [], []>} : vector<16x32xbf16>, vector<32x32xbf16>, vector<16x32xf32> -> vector<16x32xf32>
    %382 = arith.addf %374, %381 : vector<16x32xf32>
    %c22_358 = arith.constant 22 : index
    %c0_359 = arith.constant 0 : index
    %c0_360 = arith.constant 0 : index
    %383 = vector.load %arg5[%c22_358, %c0_359, %c0_360] : memref<25x16x16xbf16, #tpu.memory_space<vmem>>, vector<1x16x16xbf16>
    %384 = vector.shape_cast %383 : vector<1x16x16xbf16> to vector<16x16xbf16>
    %cst_361 = arith.constant dense<0.000000e+00> : vector<16x32xf32>
    %385 = tpu.matmul %384, %207, %cst_361 {dimension_numbers = #tpu.dot_dimension_numbers<[1], [0], [0], [1], [0, 0, 1, 1], [], []>} : vector<16x16xbf16>, vector<16x32xbf16>, vector<16x32xf32> -> vector<16x32xf32>
    %c22_362 = arith.constant 22 : index
    %c0_363 = arith.constant 0 : index
    %c0_364 = arith.constant 0 : index
    %386 = vector.load %arg6[%c22_362, %c0_363, %c0_364] : memref<25x32x32xbf16, #tpu.memory_space<vmem>>, vector<1x32x32xbf16>
    %387 = vector.shape_cast %386 : vector<1x32x32xbf16> to vector<32x32xbf16>
    %388 = arith.truncf %385 : vector<16x32xf32> to vector<16x32xbf16>
    %cst_365 = arith.constant dense<0.000000e+00> : vector<16x32xf32>
    %389 = tpu.matmul %388, %387, %cst_365 {dimension_numbers = #tpu.dot_dimension_numbers<[1], [0], [0], [1], [0, 0, 1, 1], [], []>} : vector<16x32xbf16>, vector<32x32xbf16>, vector<16x32xf32> -> vector<16x32xf32>
    %390 = arith.addf %382, %389 : vector<16x32xf32>
    %c23_366 = arith.constant 23 : index
    %c0_367 = arith.constant 0 : index
    %c0_368 = arith.constant 0 : index
    %391 = vector.load %arg5[%c23_366, %c0_367, %c0_368] : memref<25x16x16xbf16, #tpu.memory_space<vmem>>, vector<1x16x16xbf16>
    %392 = vector.shape_cast %391 : vector<1x16x16xbf16> to vector<16x16xbf16>
    %cst_369 = arith.constant dense<0.000000e+00> : vector<16x32xf32>
    %393 = tpu.matmul %392, %207, %cst_369 {dimension_numbers = #tpu.dot_dimension_numbers<[1], [0], [0], [1], [0, 0, 1, 1], [], []>} : vector<16x16xbf16>, vector<16x32xbf16>, vector<16x32xf32> -> vector<16x32xf32>
    %c23_370 = arith.constant 23 : index
    %c0_371 = arith.constant 0 : index
    %c0_372 = arith.constant 0 : index
    %394 = vector.load %arg6[%c23_370, %c0_371, %c0_372] : memref<25x32x32xbf16, #tpu.memory_space<vmem>>, vector<1x32x32xbf16>
    %395 = vector.shape_cast %394 : vector<1x32x32xbf16> to vector<32x32xbf16>
    %396 = arith.truncf %393 : vector<16x32xf32> to vector<16x32xbf16>
    %cst_373 = arith.constant dense<0.000000e+00> : vector<16x32xf32>
    %397 = tpu.matmul %396, %395, %cst_373 {dimension_numbers = #tpu.dot_dimension_numbers<[1], [0], [0], [1], [0, 0, 1, 1], [], []>} : vector<16x32xbf16>, vector<32x32xbf16>, vector<16x32xf32> -> vector<16x32xf32>
    %398 = arith.addf %390, %397 : vector<16x32xf32>
    %c24_374 = arith.constant 24 : index
    %c0_375 = arith.constant 0 : index
    %c0_376 = arith.constant 0 : index
    %399 = vector.load %arg5[%c24_374, %c0_375, %c0_376] : memref<25x16x16xbf16, #tpu.memory_space<vmem>>, vector<1x16x16xbf16>
    %400 = vector.shape_cast %399 : vector<1x16x16xbf16> to vector<16x16xbf16>
    %cst_377 = arith.constant dense<0.000000e+00> : vector<16x32xf32>
    %401 = tpu.matmul %400, %207, %cst_377 {dimension_numbers = #tpu.dot_dimension_numbers<[1], [0], [0], [1], [0, 0, 1, 1], [], []>} : vector<16x16xbf16>, vector<16x32xbf16>, vector<16x32xf32> -> vector<16x32xf32>
    %c24_378 = arith.constant 24 : index
    %c0_379 = arith.constant 0 : index
    %c0_380 = arith.constant 0 : index
    %402 = vector.load %arg6[%c24_378, %c0_379, %c0_380] : memref<25x32x32xbf16, #tpu.memory_space<vmem>>, vector<1x32x32xbf16>
    %403 = vector.shape_cast %402 : vector<1x32x32xbf16> to vector<32x32xbf16>
    %404 = arith.truncf %401 : vector<16x32xf32> to vector<16x32xbf16>
    %cst_381 = arith.constant dense<0.000000e+00> : vector<16x32xf32>
    %405 = tpu.matmul %404, %403, %cst_381 {dimension_numbers = #tpu.dot_dimension_numbers<[1], [0], [0], [1], [0, 0, 1, 1], [], []>} : vector<16x32xbf16>, vector<32x32xbf16>, vector<16x32xf32> -> vector<16x32xf32>
    %406 = arith.addf %398, %405 : vector<16x32xf32>
    %407 = vector.broadcast %206 : vector<1x32xf32> to vector<16x32xf32>
    %408 = arith.addf %406, %407 : vector<16x32xf32>
    %cst_382 = arith.constant 0.000000e+00 : f32
    %409 = vector.broadcast %cst_382 : f32 to vector<16x32xf32>
    %410 = arith.maximumf %408, %409 : vector<16x32xf32>
    %c2_383 = arith.constant 2 : index
    %c0_384 = arith.constant 0 : index
    %c0_385 = arith.constant 0 : index
    %411 = vector.load %arg11[%c2_383, %c0_384, %c0_385] : memref<3x16x32xf32, #tpu.memory_space<vmem>>, vector<1x16x32xf32>
    %412 = vector.shape_cast %411 : vector<1x16x32xf32> to vector<16x32xf32>
    %413 = arith.addf %410, %412 : vector<16x32xf32>
    %414 = vector.shape_cast %413 : vector<16x32xf32> to vector<1x16x32xf32>
    %cst_386 = arith.constant dense<0.000000e+00> : vector<1xf32>
    %415 = vector.multi_reduction <add>, %414, %cst_386 [1, 2] : vector<1x16x32xf32> to vector<1xf32>
    %416 = vector.shape_cast %415 : vector<1xf32> to vector<1x1x1xf32>
    %417 = vector.extract %416[0, 0, 0] : f32 from vector<1x1x1xf32>
    %cst_387 = arith.constant 5.120000e+02 : f32
    %418 = arith.divf %417, %cst_387 : f32
    %419 = vector.broadcast %418 : f32 to vector<16x32xf32>
    %420 = arith.subf %413, %419 : vector<16x32xf32>
    %421 = arith.mulf %420, %420 : vector<16x32xf32>
    %422 = vector.shape_cast %421 : vector<16x32xf32> to vector<1x16x32xf32>
    %cst_388 = arith.constant dense<0.000000e+00> : vector<1xf32>
    %423 = vector.multi_reduction <add>, %422, %cst_388 [1, 2] : vector<1x16x32xf32> to vector<1xf32>
    %424 = vector.shape_cast %423 : vector<1xf32> to vector<1x1x1xf32>
    %425 = vector.extract %424[0, 0, 0] : f32 from vector<1x1x1xf32>
    %cst_389 = arith.constant 5.120000e+02 : f32
    %426 = arith.divf %425, %cst_389 : f32
    %427 = vector.broadcast %418 : f32 to vector<16x32xf32>
    %428 = arith.subf %413, %427 : vector<16x32xf32>
    %cst_390 = arith.constant 9.99999974E-6 : f32
    %429 = arith.addf %426, %cst_390 : f32
    %430 = math.rsqrt %429 : f32
    %431 = vector.broadcast %430 : f32 to vector<16x32xf32>
    %432 = arith.mulf %428, %431 : vector<16x32xf32>
    %c0_391 = arith.constant 0 : index
    %c0_392 = arith.constant 0 : index
    %c0_393 = arith.constant 0 : index
    %433 = vector.load %arg11[%c0_391, %c0_392, %c0_393] : memref<3x16x32xf32, #tpu.memory_space<vmem>>, vector<1x16x32xf32>
    %434 = vector.shape_cast %433 : vector<1x16x32xf32> to vector<16x32xf32>
    %435 = arith.mulf %432, %434 : vector<16x32xf32>
    %c1_394 = arith.constant 1 : index
    %c0_395 = arith.constant 0 : index
    %c0_396 = arith.constant 0 : index
    %436 = vector.load %arg11[%c1_394, %c0_395, %c0_396] : memref<3x16x32xf32, #tpu.memory_space<vmem>>, vector<1x16x32xf32>
    %437 = vector.shape_cast %436 : vector<1x16x32xf32> to vector<16x32xf32>
    %438 = arith.addf %435, %437 : vector<16x32xf32>
    %c0_397 = arith.constant 0 : index
    %c0_398 = arith.constant 0 : index
    %c0_399 = arith.constant 0 : index
    %439 = vector.load %arg7[%c0_397, %c0_398, %c0_399] : memref<8x32x32xbf16, #tpu.memory_space<vmem>>, vector<1x32x32xbf16>
    %440 = vector.shape_cast %439 : vector<1x32x32xbf16> to vector<32x32xbf16>
    %441 = arith.truncf %438 : vector<16x32xf32> to vector<16x32xbf16>
    %cst_400 = arith.constant dense<0.000000e+00> : vector<16x32xf32>
    %442 = tpu.matmul %441, %440, %cst_400 {dimension_numbers = #tpu.dot_dimension_numbers<[1], [0], [0], [1], [0, 0, 1, 1], [], []>} : vector<16x32xbf16>, vector<32x32xbf16>, vector<16x32xf32> -> vector<16x32xf32>
    %c0_401 = arith.constant 0 : index
    %c0_402 = arith.constant 0 : index
    %443 = vector.load %arg9[%c0_401, %c0_402] : memref<18x32xf32, #tpu.memory_space<vmem>>, vector<1x32xf32>
    %444 = vector.broadcast %443 : vector<1x32xf32> to vector<16x32xf32>
    %445 = arith.addf %442, %444 : vector<16x32xf32>
    %cst_403 = arith.constant 0.000000e+00 : f32
    %446 = vector.broadcast %cst_403 : f32 to vector<16x32xf32>
    %447 = arith.maximumf %445, %446 : vector<16x32xf32>
    %c1_404 = arith.constant 1 : index
    %c0_405 = arith.constant 0 : index
    %c0_406 = arith.constant 0 : index
    %448 = vector.load %arg7[%c1_404, %c0_405, %c0_406] : memref<8x32x32xbf16, #tpu.memory_space<vmem>>, vector<1x32x32xbf16>
    %449 = vector.shape_cast %448 : vector<1x32x32xbf16> to vector<32x32xbf16>
    %450 = arith.truncf %447 : vector<16x32xf32> to vector<16x32xbf16>
    %cst_407 = arith.constant dense<0.000000e+00> : vector<16x32xf32>
    %451 = tpu.matmul %450, %449, %cst_407 {dimension_numbers = #tpu.dot_dimension_numbers<[1], [0], [0], [1], [0, 0, 1, 1], [], []>} : vector<16x32xbf16>, vector<32x32xbf16>, vector<16x32xf32> -> vector<16x32xf32>
    %c1_408 = arith.constant 1 : index
    %c0_409 = arith.constant 0 : index
    %452 = vector.load %arg9[%c1_408, %c0_409] : memref<18x32xf32, #tpu.memory_space<vmem>>, vector<1x32xf32>
    %453 = vector.broadcast %452 : vector<1x32xf32> to vector<16x32xf32>
    %454 = arith.addf %451, %453 : vector<16x32xf32>
    %cst_410 = arith.constant 0.000000e+00 : f32
    %455 = vector.broadcast %cst_410 : f32 to vector<16x32xf32>
    %456 = arith.maximumf %454, %455 : vector<16x32xf32>
    %c2_411 = arith.constant 2 : index
    %c0_412 = arith.constant 0 : index
    %457 = vector.load %arg9[%c2_411, %c0_412] : memref<18x32xf32, #tpu.memory_space<vmem>>, vector<1x32xf32>
    %c3_413 = arith.constant 3 : index
    %c0_414 = arith.constant 0 : index
    %458 = vector.load %arg9[%c3_413, %c0_414] : memref<18x32xf32, #tpu.memory_space<vmem>>, vector<1x32xf32>
    %cst_415 = arith.constant dense<0.000000e+00> : vector<16xf32>
    %459 = vector.multi_reduction <add>, %456, %cst_415 [1] : vector<16x32xf32> to vector<16xf32>
    %460 = vector.shape_cast %459 : vector<16xf32> to vector<16x1xf32>
    %cst_416 = arith.constant 3.200000e+01 : f32
    %461 = vector.broadcast %cst_416 : f32 to vector<16x1xf32>
    %462 = arith.divf %460, %461 : vector<16x1xf32>
    %463 = vector.broadcast %462 : vector<16x1xf32> to vector<16x32xf32>
    %464 = arith.subf %456, %463 : vector<16x32xf32>
    %465 = arith.mulf %464, %464 : vector<16x32xf32>
    %cst_417 = arith.constant dense<0.000000e+00> : vector<16xf32>
    %466 = vector.multi_reduction <add>, %465, %cst_417 [1] : vector<16x32xf32> to vector<16xf32>
    %467 = vector.shape_cast %466 : vector<16xf32> to vector<16x1xf32>
    %cst_418 = arith.constant 3.200000e+01 : f32
    %468 = vector.broadcast %cst_418 : f32 to vector<16x1xf32>
    %469 = arith.divf %467, %468 : vector<16x1xf32>
    %470 = vector.broadcast %462 : vector<16x1xf32> to vector<16x32xf32>
    %471 = arith.subf %456, %470 : vector<16x32xf32>
    %cst_419 = arith.constant 9.99999974E-6 : f32
    %472 = vector.broadcast %cst_419 : f32 to vector<16x1xf32>
    %473 = arith.addf %469, %472 : vector<16x1xf32>
    %474 = math.rsqrt %473 : vector<16x1xf32>
    %475 = vector.broadcast %474 : vector<16x1xf32> to vector<16x32xf32>
    %476 = arith.mulf %471, %475 : vector<16x32xf32>
    %477 = vector.broadcast %457 : vector<1x32xf32> to vector<16x32xf32>
    %478 = arith.mulf %476, %477 : vector<16x32xf32>
    %479 = vector.broadcast %458 : vector<1x32xf32> to vector<16x32xf32>
    %480 = arith.addf %478, %479 : vector<16x32xf32>
    %c0_420 = arith.constant 0 : index
    %c0_421 = arith.constant 0 : index
    %c0_422 = arith.constant 0 : index
    %481 = vector.load %arg8[%c0_420, %c0_421, %c0_422] : memref<3x32x96xbf16, #tpu.memory_space<vmem>>, vector<1x32x96xbf16>
    %482 = vector.shape_cast %481 : vector<1x32x96xbf16> to vector<32x96xbf16>
    %483 = arith.truncf %480 : vector<16x32xf32> to vector<16x32xbf16>
    %cst_423 = arith.constant dense<0.000000e+00> : vector<16x96xf32>
    %484 = tpu.matmul %483, %482, %cst_423 {dimension_numbers = #tpu.dot_dimension_numbers<[1], [0], [0], [1], [0, 0, 1, 1], [], []>} : vector<16x32xbf16>, vector<32x96xbf16>, vector<16x96xf32> -> vector<16x96xf32>
    %c2_424 = arith.constant 2 : index
    %c0_425 = arith.constant 0 : index
    %485 = vector.load %arg10[%c2_424, %c0_425] : memref<3x96xf32, #tpu.memory_space<vmem>>, vector<1x96xf32>
    %486 = vector.broadcast %485 : vector<1x96xf32> to vector<16x96xf32>
    %487 = arith.addf %484, %486 : vector<16x96xf32>
    %488 = vector.extract_strided_slice %487 {offsets = [0, 32], sizes = [16, 32], strides = [1, 1]} : vector<16x96xf32> to vector<16x32xf32>
    %489 = vector.extract_strided_slice %487 {offsets = [0, 0], sizes = [16, 32], strides = [1, 1]} : vector<16x96xf32> to vector<16x32xf32>
    %490 = tpu.transpose %489, [1, 0] : vector<16x32xf32> -> vector<32x16xf32>
    %c11_426 = arith.constant 11 : index
    %c0_427 = arith.constant 0 : index
    %491 = vector.load %arg9[%c11_426, %c0_427] : memref<18x32xf32, #tpu.memory_space<vmem>>, vector<1x32xf32>
    %c12_428 = arith.constant 12 : index
    %c0_429 = arith.constant 0 : index
    %492 = vector.load %arg9[%c12_428, %c0_429] : memref<18x32xf32, #tpu.memory_space<vmem>>, vector<1x32xf32>
    %c0_430 = arith.constant 0 : index
    %c0_431 = arith.constant 0 : index
    %c0_432 = arith.constant 0 : index
    %493 = vector.load %arg2[%c0_430, %c0_431, %c0_432] : memref<1x8x32xf32, #tpu.memory_space<vmem>>, vector<1x8x32xf32>
    %494 = vector.shape_cast %493 : vector<1x8x32xf32> to vector<8x32xf32>
    %495 = vector.broadcast %492 : vector<1x32xf32> to vector<8x32xf32>
    %496 = arith.mulf %495, %494 : vector<8x32xf32>
    %497 = vector.broadcast %491 : vector<1x32xf32> to vector<8x32xf32>
    %498 = arith.addf %497, %496 : vector<8x32xf32>
    %c5_433 = arith.constant 5 : index
    %c0_434 = arith.constant 0 : index
    %499 = vector.load %arg9[%c5_433, %c0_434] : memref<18x32xf32, #tpu.memory_space<vmem>>, vector<1x32xf32>
    %c6_435 = arith.constant 6 : index
    %c0_436 = arith.constant 0 : index
    %500 = vector.load %arg9[%c6_435, %c0_436] : memref<18x32xf32, #tpu.memory_space<vmem>>, vector<1x32xf32>
    %cst_437 = arith.constant dense<0.000000e+00> : vector<8xf32>
    %501 = vector.multi_reduction <add>, %498, %cst_437 [1] : vector<8x32xf32> to vector<8xf32>
    %502 = vector.shape_cast %501 : vector<8xf32> to vector<8x1xf32>
    %cst_438 = arith.constant 3.200000e+01 : f32
    %503 = vector.broadcast %cst_438 : f32 to vector<8x1xf32>
    %504 = arith.divf %502, %503 : vector<8x1xf32>
    %505 = vector.broadcast %504 : vector<8x1xf32> to vector<8x32xf32>
    %506 = arith.subf %498, %505 : vector<8x32xf32>
    %507 = arith.mulf %506, %506 : vector<8x32xf32>
    %cst_439 = arith.constant dense<0.000000e+00> : vector<8xf32>
    %508 = vector.multi_reduction <add>, %507, %cst_439 [1] : vector<8x32xf32> to vector<8xf32>
    %509 = vector.shape_cast %508 : vector<8xf32> to vector<8x1xf32>
    %cst_440 = arith.constant 3.200000e+01 : f32
    %510 = vector.broadcast %cst_440 : f32 to vector<8x1xf32>
    %511 = arith.divf %509, %510 : vector<8x1xf32>
    %512 = vector.broadcast %504 : vector<8x1xf32> to vector<8x32xf32>
    %513 = arith.subf %498, %512 : vector<8x32xf32>
    %cst_441 = arith.constant 9.99999974E-6 : f32
    %514 = vector.broadcast %cst_441 : f32 to vector<8x1xf32>
    %515 = arith.addf %511, %514 : vector<8x1xf32>
    %516 = math.rsqrt %515 : vector<8x1xf32>
    %517 = vector.broadcast %516 : vector<8x1xf32> to vector<8x32xf32>
    %518 = arith.mulf %513, %517 : vector<8x32xf32>
    %519 = vector.broadcast %499 : vector<1x32xf32> to vector<8x32xf32>
    %520 = arith.mulf %518, %519 : vector<8x32xf32>
    %521 = vector.broadcast %500 : vector<1x32xf32> to vector<8x32xf32>
    %522 = arith.addf %520, %521 : vector<8x32xf32>
    %c2_442 = arith.constant 2 : index
    %c0_443 = arith.constant 0 : index
    %c0_444 = arith.constant 0 : index
    %523 = vector.load %arg7[%c2_442, %c0_443, %c0_444] : memref<8x32x32xbf16, #tpu.memory_space<vmem>>, vector<1x32x32xbf16>
    %524 = vector.shape_cast %523 : vector<1x32x32xbf16> to vector<32x32xbf16>
    %525 = arith.truncf %522 : vector<8x32xf32> to vector<8x32xbf16>
    %cst_445 = arith.constant dense<0.000000e+00> : vector<8x32xf32>
    %526 = tpu.matmul %525, %524, %cst_445 {dimension_numbers = #tpu.dot_dimension_numbers<[1], [0], [0], [1], [0, 0, 1, 1], [], []>} : vector<8x32xbf16>, vector<32x32xbf16>, vector<8x32xf32> -> vector<8x32xf32>
    %c4_446 = arith.constant 4 : index
    %c0_447 = arith.constant 0 : index
    %527 = vector.load %arg9[%c4_446, %c0_447] : memref<18x32xf32, #tpu.memory_space<vmem>>, vector<1x32xf32>
    %528 = vector.broadcast %527 : vector<1x32xf32> to vector<8x32xf32>
    %529 = arith.addf %526, %528 : vector<8x32xf32>
    %cst_448 = arith.constant dense<0.000000e+00> : vector<8x16xf32>
    %530 = tpu.matmul %529, %490, %cst_448 {dimension_numbers = #tpu.dot_dimension_numbers<[1], [0], [0], [1], [0, 0, 1, 1], [], []>} : vector<8x32xf32>, vector<32x16xf32>, vector<8x16xf32> -> vector<8x16xf32>
    %cst_449 = arith.constant dense<0xFF800000> : vector<16xf32>
    %531 = vector.multi_reduction <maximumf>, %530, %cst_449 [0] : vector<8x16xf32> to vector<16xf32>
    %532 = vector.shape_cast %531 : vector<16xf32> to vector<1x16xf32>
    %533 = vector.broadcast %532 : vector<1x16xf32> to vector<8x16xf32>
    %534 = arith.subf %530, %533 : vector<8x16xf32>
    %535 = math.exp %534 : vector<8x16xf32>
    %cst_450 = arith.constant dense<0.000000e+00> : vector<16xf32>
    %536 = vector.multi_reduction <add>, %535, %cst_450 [0] : vector<8x16xf32> to vector<16xf32>
    %537 = vector.shape_cast %536 : vector<16xf32> to vector<1x16xf32>
    %538 = vector.broadcast %537 : vector<1x16xf32> to vector<8x16xf32>
    %539 = arith.divf %535, %538 : vector<8x16xf32>
    %cst_451 = arith.constant 9.99999993E-9 : f32
    %540 = vector.broadcast %cst_451 : f32 to vector<8x16xf32>
    %541 = arith.addf %539, %540 : vector<8x16xf32>
    %cst_452 = arith.constant dense<0.000000e+00> : vector<8xf32>
    %542 = vector.multi_reduction <add>, %541, %cst_452 [1] : vector<8x16xf32> to vector<8xf32>
    %543 = vector.shape_cast %542 : vector<8xf32> to vector<8x1xf32>
    %544 = vector.broadcast %543 : vector<8x1xf32> to vector<8x16xf32>
    %545 = arith.divf %541, %544 : vector<8x16xf32>
    %cst_453 = arith.constant dense<0.000000e+00> : vector<8x32xf32>
    %546 = tpu.matmul %545, %488, %cst_453 {dimension_numbers = #tpu.dot_dimension_numbers<[1], [0], [0], [1], [0, 0, 1, 1], [], []>} : vector<8x16xf32>, vector<16x32xf32>, vector<8x32xf32> -> vector<8x32xf32>
    %c1_454 = arith.constant 1 : index
    %c0_455 = arith.constant 0 : index
    %c0_456 = arith.constant 0 : index
    %547 = vector.load %arg8[%c1_454, %c0_455, %c0_456] : memref<3x32x96xbf16, #tpu.memory_space<vmem>>, vector<1x32x96xbf16>
    %548 = vector.shape_cast %547 : vector<1x32x96xbf16> to vector<32x96xbf16>
    %549 = arith.truncf %546 : vector<8x32xf32> to vector<8x32xbf16>
    %cst_457 = arith.constant dense<0.000000e+00> : vector<8x96xf32>
    %550 = tpu.matmul %549, %548, %cst_457 {dimension_numbers = #tpu.dot_dimension_numbers<[1], [0], [0], [1], [0, 0, 1, 1], [], []>} : vector<8x32xbf16>, vector<32x96xbf16>, vector<8x96xf32> -> vector<8x96xf32>
    %c0_458 = arith.constant 0 : index
    %c0_459 = arith.constant 0 : index
    %551 = vector.load %arg10[%c0_458, %c0_459] : memref<3x96xf32, #tpu.memory_space<vmem>>, vector<1x96xf32>
    %552 = vector.broadcast %551 : vector<1x96xf32> to vector<8x96xf32>
    %553 = arith.addf %550, %552 : vector<8x96xf32>
    %c2_460 = arith.constant 2 : index
    %c0_461 = arith.constant 0 : index
    %c0_462 = arith.constant 0 : index
    %554 = vector.load %arg8[%c2_460, %c0_461, %c0_462] : memref<3x32x96xbf16, #tpu.memory_space<vmem>>, vector<1x32x96xbf16>
    %555 = vector.shape_cast %554 : vector<1x32x96xbf16> to vector<32x96xbf16>
    %556 = arith.truncf %498 : vector<8x32xf32> to vector<8x32xbf16>
    %cst_463 = arith.constant dense<0.000000e+00> : vector<8x96xf32>
    %557 = tpu.matmul %556, %555, %cst_463 {dimension_numbers = #tpu.dot_dimension_numbers<[1], [0], [0], [1], [0, 0, 1, 1], [], []>} : vector<8x32xbf16>, vector<32x96xbf16>, vector<8x96xf32> -> vector<8x96xf32>
    %c1_464 = arith.constant 1 : index
    %c0_465 = arith.constant 0 : index
    %558 = vector.load %arg10[%c1_464, %c0_465] : memref<3x96xf32, #tpu.memory_space<vmem>>, vector<1x96xf32>
    %559 = vector.broadcast %558 : vector<1x96xf32> to vector<8x96xf32>
    %560 = arith.addf %557, %559 : vector<8x96xf32>
    %561 = vector.extract_strided_slice %553 {offsets = [0, 0], sizes = [8, 32], strides = [1, 1]} : vector<8x96xf32> to vector<8x32xf32>
    %562 = vector.extract_strided_slice %560 {offsets = [0, 0], sizes = [8, 32], strides = [1, 1]} : vector<8x96xf32> to vector<8x32xf32>
    %563 = arith.addf %561, %562 : vector<8x32xf32>
    %564 = arith.negf %563 : vector<8x32xf32>
    %565 = math.exp %564 : vector<8x32xf32>
    %cst_466 = arith.constant 1.000000e+00 : f32
    %566 = vector.broadcast %cst_466 : f32 to vector<8x32xf32>
    %567 = arith.addf %566, %565 : vector<8x32xf32>
    %568 = arith.divf %566, %567 : vector<8x32xf32>
    %569 = vector.extract_strided_slice %553 {offsets = [0, 32], sizes = [8, 32], strides = [1, 1]} : vector<8x96xf32> to vector<8x32xf32>
    %570 = vector.extract_strided_slice %560 {offsets = [0, 32], sizes = [8, 32], strides = [1, 1]} : vector<8x96xf32> to vector<8x32xf32>
    %571 = arith.addf %569, %570 : vector<8x32xf32>
    %572 = arith.negf %571 : vector<8x32xf32>
    %573 = math.exp %572 : vector<8x32xf32>
    %cst_467 = arith.constant 1.000000e+00 : f32
    %574 = vector.broadcast %cst_467 : f32 to vector<8x32xf32>
    %575 = arith.addf %574, %573 : vector<8x32xf32>
    %576 = arith.divf %574, %575 : vector<8x32xf32>
    %577 = vector.extract_strided_slice %553 {offsets = [0, 64], sizes = [8, 32], strides = [1, 1]} : vector<8x96xf32> to vector<8x32xf32>
    %578 = vector.extract_strided_slice %560 {offsets = [0, 64], sizes = [8, 32], strides = [1, 1]} : vector<8x96xf32> to vector<8x32xf32>
    %579 = arith.mulf %568, %578 : vector<8x32xf32>
    %580 = arith.addf %577, %579 : vector<8x32xf32>
    %581 = math.tanh %580 : vector<8x32xf32>
    %cst_468 = arith.constant 1.000000e+00 : f32
    %582 = vector.broadcast %cst_468 : f32 to vector<8x32xf32>
    %583 = arith.subf %582, %576 : vector<8x32xf32>
    %584 = arith.mulf %583, %581 : vector<8x32xf32>
    %585 = arith.mulf %576, %498 : vector<8x32xf32>
    %586 = arith.addf %584, %585 : vector<8x32xf32>
    %c7_469 = arith.constant 7 : index
    %c0_470 = arith.constant 0 : index
    %587 = vector.load %arg9[%c7_469, %c0_470] : memref<18x32xf32, #tpu.memory_space<vmem>>, vector<1x32xf32>
    %c8_471 = arith.constant 8 : index
    %c0_472 = arith.constant 0 : index
    %588 = vector.load %arg9[%c8_471, %c0_472] : memref<18x32xf32, #tpu.memory_space<vmem>>, vector<1x32xf32>
    %cst_473 = arith.constant dense<0.000000e+00> : vector<8xf32>
    %589 = vector.multi_reduction <add>, %586, %cst_473 [1] : vector<8x32xf32> to vector<8xf32>
    %590 = vector.shape_cast %589 : vector<8xf32> to vector<8x1xf32>
    %cst_474 = arith.constant 3.200000e+01 : f32
    %591 = vector.broadcast %cst_474 : f32 to vector<8x1xf32>
    %592 = arith.divf %590, %591 : vector<8x1xf32>
    %593 = vector.broadcast %592 : vector<8x1xf32> to vector<8x32xf32>
    %594 = arith.subf %586, %593 : vector<8x32xf32>
    %595 = arith.mulf %594, %594 : vector<8x32xf32>
    %cst_475 = arith.constant dense<0.000000e+00> : vector<8xf32>
    %596 = vector.multi_reduction <add>, %595, %cst_475 [1] : vector<8x32xf32> to vector<8xf32>
    %597 = vector.shape_cast %596 : vector<8xf32> to vector<8x1xf32>
    %cst_476 = arith.constant 3.200000e+01 : f32
    %598 = vector.broadcast %cst_476 : f32 to vector<8x1xf32>
    %599 = arith.divf %597, %598 : vector<8x1xf32>
    %600 = vector.broadcast %592 : vector<8x1xf32> to vector<8x32xf32>
    %601 = arith.subf %586, %600 : vector<8x32xf32>
    %cst_477 = arith.constant 9.99999974E-6 : f32
    %602 = vector.broadcast %cst_477 : f32 to vector<8x1xf32>
    %603 = arith.addf %599, %602 : vector<8x1xf32>
    %604 = math.rsqrt %603 : vector<8x1xf32>
    %605 = vector.broadcast %604 : vector<8x1xf32> to vector<8x32xf32>
    %606 = arith.mulf %601, %605 : vector<8x32xf32>
    %607 = vector.broadcast %587 : vector<1x32xf32> to vector<8x32xf32>
    %608 = arith.mulf %606, %607 : vector<8x32xf32>
    %609 = vector.broadcast %588 : vector<1x32xf32> to vector<8x32xf32>
    %610 = arith.addf %608, %609 : vector<8x32xf32>
    %c3_478 = arith.constant 3 : index
    %c0_479 = arith.constant 0 : index
    %c0_480 = arith.constant 0 : index
    %611 = vector.load %arg7[%c3_478, %c0_479, %c0_480] : memref<8x32x32xbf16, #tpu.memory_space<vmem>>, vector<1x32x32xbf16>
    %612 = vector.shape_cast %611 : vector<1x32x32xbf16> to vector<32x32xbf16>
    %613 = arith.truncf %610 : vector<8x32xf32> to vector<8x32xbf16>
    %cst_481 = arith.constant dense<0.000000e+00> : vector<8x32xf32>
    %614 = tpu.matmul %613, %612, %cst_481 {dimension_numbers = #tpu.dot_dimension_numbers<[1], [0], [0], [1], [0, 0, 1, 1], [], []>} : vector<8x32xbf16>, vector<32x32xbf16>, vector<8x32xf32> -> vector<8x32xf32>
    %c9_482 = arith.constant 9 : index
    %c0_483 = arith.constant 0 : index
    %615 = vector.load %arg9[%c9_482, %c0_483] : memref<18x32xf32, #tpu.memory_space<vmem>>, vector<1x32xf32>
    %616 = vector.broadcast %615 : vector<1x32xf32> to vector<8x32xf32>
    %617 = arith.addf %614, %616 : vector<8x32xf32>
    %cst_484 = arith.constant 0.000000e+00 : f32
    %618 = vector.broadcast %cst_484 : f32 to vector<8x32xf32>
    %619 = arith.maximumf %617, %618 : vector<8x32xf32>
    %c4_485 = arith.constant 4 : index
    %c0_486 = arith.constant 0 : index
    %c0_487 = arith.constant 0 : index
    %620 = vector.load %arg7[%c4_485, %c0_486, %c0_487] : memref<8x32x32xbf16, #tpu.memory_space<vmem>>, vector<1x32x32xbf16>
    %621 = vector.shape_cast %620 : vector<1x32x32xbf16> to vector<32x32xbf16>
    %622 = arith.truncf %619 : vector<8x32xf32> to vector<8x32xbf16>
    %cst_488 = arith.constant dense<0.000000e+00> : vector<8x32xf32>
    %623 = tpu.matmul %622, %621, %cst_488 {dimension_numbers = #tpu.dot_dimension_numbers<[1], [0], [0], [1], [0, 0, 1, 1], [], []>} : vector<8x32xbf16>, vector<32x32xbf16>, vector<8x32xf32> -> vector<8x32xf32>
    %c10_489 = arith.constant 10 : index
    %c0_490 = arith.constant 0 : index
    %624 = vector.load %arg9[%c10_489, %c0_490] : memref<18x32xf32, #tpu.memory_space<vmem>>, vector<1x32xf32>
    %625 = vector.broadcast %624 : vector<1x32xf32> to vector<8x32xf32>
    %626 = arith.addf %623, %625 : vector<8x32xf32>
    %cst_491 = arith.constant 0.000000e+00 : f32
    %627 = vector.broadcast %cst_491 : f32 to vector<8x32xf32>
    %628 = arith.maximumf %626, %627 : vector<8x32xf32>
    %629 = arith.addf %586, %628 : vector<8x32xf32>
    %c5_492 = arith.constant 5 : index
    %c0_493 = arith.constant 0 : index
    %630 = vector.load %arg9[%c5_492, %c0_493] : memref<18x32xf32, #tpu.memory_space<vmem>>, vector<1x32xf32>
    %c6_494 = arith.constant 6 : index
    %c0_495 = arith.constant 0 : index
    %631 = vector.load %arg9[%c6_494, %c0_495] : memref<18x32xf32, #tpu.memory_space<vmem>>, vector<1x32xf32>
    %cst_496 = arith.constant dense<0.000000e+00> : vector<8xf32>
    %632 = vector.multi_reduction <add>, %629, %cst_496 [1] : vector<8x32xf32> to vector<8xf32>
    %633 = vector.shape_cast %632 : vector<8xf32> to vector<8x1xf32>
    %cst_497 = arith.constant 3.200000e+01 : f32
    %634 = vector.broadcast %cst_497 : f32 to vector<8x1xf32>
    %635 = arith.divf %633, %634 : vector<8x1xf32>
    %636 = vector.broadcast %635 : vector<8x1xf32> to vector<8x32xf32>
    %637 = arith.subf %629, %636 : vector<8x32xf32>
    %638 = arith.mulf %637, %637 : vector<8x32xf32>
    %cst_498 = arith.constant dense<0.000000e+00> : vector<8xf32>
    %639 = vector.multi_reduction <add>, %638, %cst_498 [1] : vector<8x32xf32> to vector<8xf32>
    %640 = vector.shape_cast %639 : vector<8xf32> to vector<8x1xf32>
    %cst_499 = arith.constant 3.200000e+01 : f32
    %641 = vector.broadcast %cst_499 : f32 to vector<8x1xf32>
    %642 = arith.divf %640, %641 : vector<8x1xf32>
    %643 = vector.broadcast %635 : vector<8x1xf32> to vector<8x32xf32>
    %644 = arith.subf %629, %643 : vector<8x32xf32>
    %cst_500 = arith.constant 9.99999974E-6 : f32
    %645 = vector.broadcast %cst_500 : f32 to vector<8x1xf32>
    %646 = arith.addf %642, %645 : vector<8x1xf32>
    %647 = math.rsqrt %646 : vector<8x1xf32>
    %648 = vector.broadcast %647 : vector<8x1xf32> to vector<8x32xf32>
    %649 = arith.mulf %644, %648 : vector<8x32xf32>
    %650 = vector.broadcast %630 : vector<1x32xf32> to vector<8x32xf32>
    %651 = arith.mulf %649, %650 : vector<8x32xf32>
    %652 = vector.broadcast %631 : vector<1x32xf32> to vector<8x32xf32>
    %653 = arith.addf %651, %652 : vector<8x32xf32>
    %c2_501 = arith.constant 2 : index
    %c0_502 = arith.constant 0 : index
    %c0_503 = arith.constant 0 : index
    %654 = vector.load %arg7[%c2_501, %c0_502, %c0_503] : memref<8x32x32xbf16, #tpu.memory_space<vmem>>, vector<1x32x32xbf16>
    %655 = vector.shape_cast %654 : vector<1x32x32xbf16> to vector<32x32xbf16>
    %656 = arith.truncf %653 : vector<8x32xf32> to vector<8x32xbf16>
    %cst_504 = arith.constant dense<0.000000e+00> : vector<8x32xf32>
    %657 = tpu.matmul %656, %655, %cst_504 {dimension_numbers = #tpu.dot_dimension_numbers<[1], [0], [0], [1], [0, 0, 1, 1], [], []>} : vector<8x32xbf16>, vector<32x32xbf16>, vector<8x32xf32> -> vector<8x32xf32>
    %c4_505 = arith.constant 4 : index
    %c0_506 = arith.constant 0 : index
    %658 = vector.load %arg9[%c4_505, %c0_506] : memref<18x32xf32, #tpu.memory_space<vmem>>, vector<1x32xf32>
    %659 = vector.broadcast %658 : vector<1x32xf32> to vector<8x32xf32>
    %660 = arith.addf %657, %659 : vector<8x32xf32>
    %cst_507 = arith.constant dense<0.000000e+00> : vector<8x16xf32>
    %661 = tpu.matmul %660, %490, %cst_507 {dimension_numbers = #tpu.dot_dimension_numbers<[1], [0], [0], [1], [0, 0, 1, 1], [], []>} : vector<8x32xf32>, vector<32x16xf32>, vector<8x16xf32> -> vector<8x16xf32>
    %cst_508 = arith.constant dense<0xFF800000> : vector<16xf32>
    %662 = vector.multi_reduction <maximumf>, %661, %cst_508 [0] : vector<8x16xf32> to vector<16xf32>
    %663 = vector.shape_cast %662 : vector<16xf32> to vector<1x16xf32>
    %664 = vector.broadcast %663 : vector<1x16xf32> to vector<8x16xf32>
    %665 = arith.subf %661, %664 : vector<8x16xf32>
    %666 = math.exp %665 : vector<8x16xf32>
    %cst_509 = arith.constant dense<0.000000e+00> : vector<16xf32>
    %667 = vector.multi_reduction <add>, %666, %cst_509 [0] : vector<8x16xf32> to vector<16xf32>
    %668 = vector.shape_cast %667 : vector<16xf32> to vector<1x16xf32>
    %669 = vector.broadcast %668 : vector<1x16xf32> to vector<8x16xf32>
    %670 = arith.divf %666, %669 : vector<8x16xf32>
    %cst_510 = arith.constant 9.99999993E-9 : f32
    %671 = vector.broadcast %cst_510 : f32 to vector<8x16xf32>
    %672 = arith.addf %670, %671 : vector<8x16xf32>
    %cst_511 = arith.constant dense<0.000000e+00> : vector<8xf32>
    %673 = vector.multi_reduction <add>, %672, %cst_511 [1] : vector<8x16xf32> to vector<8xf32>
    %674 = vector.shape_cast %673 : vector<8xf32> to vector<8x1xf32>
    %675 = vector.broadcast %674 : vector<8x1xf32> to vector<8x16xf32>
    %676 = arith.divf %672, %675 : vector<8x16xf32>
    %cst_512 = arith.constant dense<0.000000e+00> : vector<8x32xf32>
    %677 = tpu.matmul %676, %488, %cst_512 {dimension_numbers = #tpu.dot_dimension_numbers<[1], [0], [0], [1], [0, 0, 1, 1], [], []>} : vector<8x16xf32>, vector<16x32xf32>, vector<8x32xf32> -> vector<8x32xf32>
    %c1_513 = arith.constant 1 : index
    %c0_514 = arith.constant 0 : index
    %c0_515 = arith.constant 0 : index
    %678 = vector.load %arg8[%c1_513, %c0_514, %c0_515] : memref<3x32x96xbf16, #tpu.memory_space<vmem>>, vector<1x32x96xbf16>
    %679 = vector.shape_cast %678 : vector<1x32x96xbf16> to vector<32x96xbf16>
    %680 = arith.truncf %677 : vector<8x32xf32> to vector<8x32xbf16>
    %cst_516 = arith.constant dense<0.000000e+00> : vector<8x96xf32>
    %681 = tpu.matmul %680, %679, %cst_516 {dimension_numbers = #tpu.dot_dimension_numbers<[1], [0], [0], [1], [0, 0, 1, 1], [], []>} : vector<8x32xbf16>, vector<32x96xbf16>, vector<8x96xf32> -> vector<8x96xf32>
    %c0_517 = arith.constant 0 : index
    %c0_518 = arith.constant 0 : index
    %682 = vector.load %arg10[%c0_517, %c0_518] : memref<3x96xf32, #tpu.memory_space<vmem>>, vector<1x96xf32>
    %683 = vector.broadcast %682 : vector<1x96xf32> to vector<8x96xf32>
    %684 = arith.addf %681, %683 : vector<8x96xf32>
    %c2_519 = arith.constant 2 : index
    %c0_520 = arith.constant 0 : index
    %c0_521 = arith.constant 0 : index
    %685 = vector.load %arg8[%c2_519, %c0_520, %c0_521] : memref<3x32x96xbf16, #tpu.memory_space<vmem>>, vector<1x32x96xbf16>
    %686 = vector.shape_cast %685 : vector<1x32x96xbf16> to vector<32x96xbf16>
    %687 = arith.truncf %629 : vector<8x32xf32> to vector<8x32xbf16>
    %cst_522 = arith.constant dense<0.000000e+00> : vector<8x96xf32>
    %688 = tpu.matmul %687, %686, %cst_522 {dimension_numbers = #tpu.dot_dimension_numbers<[1], [0], [0], [1], [0, 0, 1, 1], [], []>} : vector<8x32xbf16>, vector<32x96xbf16>, vector<8x96xf32> -> vector<8x96xf32>
    %c1_523 = arith.constant 1 : index
    %c0_524 = arith.constant 0 : index
    %689 = vector.load %arg10[%c1_523, %c0_524] : memref<3x96xf32, #tpu.memory_space<vmem>>, vector<1x96xf32>
    %690 = vector.broadcast %689 : vector<1x96xf32> to vector<8x96xf32>
    %691 = arith.addf %688, %690 : vector<8x96xf32>
    %692 = vector.extract_strided_slice %684 {offsets = [0, 0], sizes = [8, 32], strides = [1, 1]} : vector<8x96xf32> to vector<8x32xf32>
    %693 = vector.extract_strided_slice %691 {offsets = [0, 0], sizes = [8, 32], strides = [1, 1]} : vector<8x96xf32> to vector<8x32xf32>
    %694 = arith.addf %692, %693 : vector<8x32xf32>
    %695 = arith.negf %694 : vector<8x32xf32>
    %696 = math.exp %695 : vector<8x32xf32>
    %cst_525 = arith.constant 1.000000e+00 : f32
    %697 = vector.broadcast %cst_525 : f32 to vector<8x32xf32>
    %698 = arith.addf %697, %696 : vector<8x32xf32>
    %699 = arith.divf %697, %698 : vector<8x32xf32>
    %700 = vector.extract_strided_slice %684 {offsets = [0, 32], sizes = [8, 32], strides = [1, 1]} : vector<8x96xf32> to vector<8x32xf32>
    %701 = vector.extract_strided_slice %691 {offsets = [0, 32], sizes = [8, 32], strides = [1, 1]} : vector<8x96xf32> to vector<8x32xf32>
    %702 = arith.addf %700, %701 : vector<8x32xf32>
    %703 = arith.negf %702 : vector<8x32xf32>
    %704 = math.exp %703 : vector<8x32xf32>
    %cst_526 = arith.constant 1.000000e+00 : f32
    %705 = vector.broadcast %cst_526 : f32 to vector<8x32xf32>
    %706 = arith.addf %705, %704 : vector<8x32xf32>
    %707 = arith.divf %705, %706 : vector<8x32xf32>
    %708 = vector.extract_strided_slice %684 {offsets = [0, 64], sizes = [8, 32], strides = [1, 1]} : vector<8x96xf32> to vector<8x32xf32>
    %709 = vector.extract_strided_slice %691 {offsets = [0, 64], sizes = [8, 32], strides = [1, 1]} : vector<8x96xf32> to vector<8x32xf32>
    %710 = arith.mulf %699, %709 : vector<8x32xf32>
    %711 = arith.addf %708, %710 : vector<8x32xf32>
    %712 = math.tanh %711 : vector<8x32xf32>
    %cst_527 = arith.constant 1.000000e+00 : f32
    %713 = vector.broadcast %cst_527 : f32 to vector<8x32xf32>
    %714 = arith.subf %713, %707 : vector<8x32xf32>
    %715 = arith.mulf %714, %712 : vector<8x32xf32>
    %716 = arith.mulf %707, %629 : vector<8x32xf32>
    %717 = arith.addf %715, %716 : vector<8x32xf32>
    %c7_528 = arith.constant 7 : index
    %c0_529 = arith.constant 0 : index
    %718 = vector.load %arg9[%c7_528, %c0_529] : memref<18x32xf32, #tpu.memory_space<vmem>>, vector<1x32xf32>
    %c8_530 = arith.constant 8 : index
    %c0_531 = arith.constant 0 : index
    %719 = vector.load %arg9[%c8_530, %c0_531] : memref<18x32xf32, #tpu.memory_space<vmem>>, vector<1x32xf32>
    %cst_532 = arith.constant dense<0.000000e+00> : vector<8xf32>
    %720 = vector.multi_reduction <add>, %717, %cst_532 [1] : vector<8x32xf32> to vector<8xf32>
    %721 = vector.shape_cast %720 : vector<8xf32> to vector<8x1xf32>
    %cst_533 = arith.constant 3.200000e+01 : f32
    %722 = vector.broadcast %cst_533 : f32 to vector<8x1xf32>
    %723 = arith.divf %721, %722 : vector<8x1xf32>
    %724 = vector.broadcast %723 : vector<8x1xf32> to vector<8x32xf32>
    %725 = arith.subf %717, %724 : vector<8x32xf32>
    %726 = arith.mulf %725, %725 : vector<8x32xf32>
    %cst_534 = arith.constant dense<0.000000e+00> : vector<8xf32>
    %727 = vector.multi_reduction <add>, %726, %cst_534 [1] : vector<8x32xf32> to vector<8xf32>
    %728 = vector.shape_cast %727 : vector<8xf32> to vector<8x1xf32>
    %cst_535 = arith.constant 3.200000e+01 : f32
    %729 = vector.broadcast %cst_535 : f32 to vector<8x1xf32>
    %730 = arith.divf %728, %729 : vector<8x1xf32>
    %731 = vector.broadcast %723 : vector<8x1xf32> to vector<8x32xf32>
    %732 = arith.subf %717, %731 : vector<8x32xf32>
    %cst_536 = arith.constant 9.99999974E-6 : f32
    %733 = vector.broadcast %cst_536 : f32 to vector<8x1xf32>
    %734 = arith.addf %730, %733 : vector<8x1xf32>
    %735 = math.rsqrt %734 : vector<8x1xf32>
    %736 = vector.broadcast %735 : vector<8x1xf32> to vector<8x32xf32>
    %737 = arith.mulf %732, %736 : vector<8x32xf32>
    %738 = vector.broadcast %718 : vector<1x32xf32> to vector<8x32xf32>
    %739 = arith.mulf %737, %738 : vector<8x32xf32>
    %740 = vector.broadcast %719 : vector<1x32xf32> to vector<8x32xf32>
    %741 = arith.addf %739, %740 : vector<8x32xf32>
    %c3_537 = arith.constant 3 : index
    %c0_538 = arith.constant 0 : index
    %c0_539 = arith.constant 0 : index
    %742 = vector.load %arg7[%c3_537, %c0_538, %c0_539] : memref<8x32x32xbf16, #tpu.memory_space<vmem>>, vector<1x32x32xbf16>
    %743 = vector.shape_cast %742 : vector<1x32x32xbf16> to vector<32x32xbf16>
    %744 = arith.truncf %741 : vector<8x32xf32> to vector<8x32xbf16>
    %cst_540 = arith.constant dense<0.000000e+00> : vector<8x32xf32>
    %745 = tpu.matmul %744, %743, %cst_540 {dimension_numbers = #tpu.dot_dimension_numbers<[1], [0], [0], [1], [0, 0, 1, 1], [], []>} : vector<8x32xbf16>, vector<32x32xbf16>, vector<8x32xf32> -> vector<8x32xf32>
    %c9_541 = arith.constant 9 : index
    %c0_542 = arith.constant 0 : index
    %746 = vector.load %arg9[%c9_541, %c0_542] : memref<18x32xf32, #tpu.memory_space<vmem>>, vector<1x32xf32>
    %747 = vector.broadcast %746 : vector<1x32xf32> to vector<8x32xf32>
    %748 = arith.addf %745, %747 : vector<8x32xf32>
    %cst_543 = arith.constant 0.000000e+00 : f32
    %749 = vector.broadcast %cst_543 : f32 to vector<8x32xf32>
    %750 = arith.maximumf %748, %749 : vector<8x32xf32>
    %c4_544 = arith.constant 4 : index
    %c0_545 = arith.constant 0 : index
    %c0_546 = arith.constant 0 : index
    %751 = vector.load %arg7[%c4_544, %c0_545, %c0_546] : memref<8x32x32xbf16, #tpu.memory_space<vmem>>, vector<1x32x32xbf16>
    %752 = vector.shape_cast %751 : vector<1x32x32xbf16> to vector<32x32xbf16>
    %753 = arith.truncf %750 : vector<8x32xf32> to vector<8x32xbf16>
    %cst_547 = arith.constant dense<0.000000e+00> : vector<8x32xf32>
    %754 = tpu.matmul %753, %752, %cst_547 {dimension_numbers = #tpu.dot_dimension_numbers<[1], [0], [0], [1], [0, 0, 1, 1], [], []>} : vector<8x32xbf16>, vector<32x32xbf16>, vector<8x32xf32> -> vector<8x32xf32>
    %c10_548 = arith.constant 10 : index
    %c0_549 = arith.constant 0 : index
    %755 = vector.load %arg9[%c10_548, %c0_549] : memref<18x32xf32, #tpu.memory_space<vmem>>, vector<1x32xf32>
    %756 = vector.broadcast %755 : vector<1x32xf32> to vector<8x32xf32>
    %757 = arith.addf %754, %756 : vector<8x32xf32>
    %cst_550 = arith.constant 0.000000e+00 : f32
    %758 = vector.broadcast %cst_550 : f32 to vector<8x32xf32>
    %759 = arith.maximumf %757, %758 : vector<8x32xf32>
    %760 = arith.addf %717, %759 : vector<8x32xf32>
    %c5_551 = arith.constant 5 : index
    %c0_552 = arith.constant 0 : index
    %761 = vector.load %arg9[%c5_551, %c0_552] : memref<18x32xf32, #tpu.memory_space<vmem>>, vector<1x32xf32>
    %c6_553 = arith.constant 6 : index
    %c0_554 = arith.constant 0 : index
    %762 = vector.load %arg9[%c6_553, %c0_554] : memref<18x32xf32, #tpu.memory_space<vmem>>, vector<1x32xf32>
    %cst_555 = arith.constant dense<0.000000e+00> : vector<8xf32>
    %763 = vector.multi_reduction <add>, %760, %cst_555 [1] : vector<8x32xf32> to vector<8xf32>
    %764 = vector.shape_cast %763 : vector<8xf32> to vector<8x1xf32>
    %cst_556 = arith.constant 3.200000e+01 : f32
    %765 = vector.broadcast %cst_556 : f32 to vector<8x1xf32>
    %766 = arith.divf %764, %765 : vector<8x1xf32>
    %767 = vector.broadcast %766 : vector<8x1xf32> to vector<8x32xf32>
    %768 = arith.subf %760, %767 : vector<8x32xf32>
    %769 = arith.mulf %768, %768 : vector<8x32xf32>
    %cst_557 = arith.constant dense<0.000000e+00> : vector<8xf32>
    %770 = vector.multi_reduction <add>, %769, %cst_557 [1] : vector<8x32xf32> to vector<8xf32>
    %771 = vector.shape_cast %770 : vector<8xf32> to vector<8x1xf32>
    %cst_558 = arith.constant 3.200000e+01 : f32
    %772 = vector.broadcast %cst_558 : f32 to vector<8x1xf32>
    %773 = arith.divf %771, %772 : vector<8x1xf32>
    %774 = vector.broadcast %766 : vector<8x1xf32> to vector<8x32xf32>
    %775 = arith.subf %760, %774 : vector<8x32xf32>
    %cst_559 = arith.constant 9.99999974E-6 : f32
    %776 = vector.broadcast %cst_559 : f32 to vector<8x1xf32>
    %777 = arith.addf %773, %776 : vector<8x1xf32>
    %778 = math.rsqrt %777 : vector<8x1xf32>
    %779 = vector.broadcast %778 : vector<8x1xf32> to vector<8x32xf32>
    %780 = arith.mulf %775, %779 : vector<8x32xf32>
    %781 = vector.broadcast %761 : vector<1x32xf32> to vector<8x32xf32>
    %782 = arith.mulf %780, %781 : vector<8x32xf32>
    %783 = vector.broadcast %762 : vector<1x32xf32> to vector<8x32xf32>
    %784 = arith.addf %782, %783 : vector<8x32xf32>
    %c2_560 = arith.constant 2 : index
    %c0_561 = arith.constant 0 : index
    %c0_562 = arith.constant 0 : index
    %785 = vector.load %arg7[%c2_560, %c0_561, %c0_562] : memref<8x32x32xbf16, #tpu.memory_space<vmem>>, vector<1x32x32xbf16>
    %786 = vector.shape_cast %785 : vector<1x32x32xbf16> to vector<32x32xbf16>
    %787 = arith.truncf %784 : vector<8x32xf32> to vector<8x32xbf16>
    %cst_563 = arith.constant dense<0.000000e+00> : vector<8x32xf32>
    %788 = tpu.matmul %787, %786, %cst_563 {dimension_numbers = #tpu.dot_dimension_numbers<[1], [0], [0], [1], [0, 0, 1, 1], [], []>} : vector<8x32xbf16>, vector<32x32xbf16>, vector<8x32xf32> -> vector<8x32xf32>
    %c4_564 = arith.constant 4 : index
    %c0_565 = arith.constant 0 : index
    %789 = vector.load %arg9[%c4_564, %c0_565] : memref<18x32xf32, #tpu.memory_space<vmem>>, vector<1x32xf32>
    %790 = vector.broadcast %789 : vector<1x32xf32> to vector<8x32xf32>
    %791 = arith.addf %788, %790 : vector<8x32xf32>
    %cst_566 = arith.constant dense<0.000000e+00> : vector<8x16xf32>
    %792 = tpu.matmul %791, %490, %cst_566 {dimension_numbers = #tpu.dot_dimension_numbers<[1], [0], [0], [1], [0, 0, 1, 1], [], []>} : vector<8x32xf32>, vector<32x16xf32>, vector<8x16xf32> -> vector<8x16xf32>
    %cst_567 = arith.constant dense<0xFF800000> : vector<16xf32>
    %793 = vector.multi_reduction <maximumf>, %792, %cst_567 [0] : vector<8x16xf32> to vector<16xf32>
    %794 = vector.shape_cast %793 : vector<16xf32> to vector<1x16xf32>
    %795 = vector.broadcast %794 : vector<1x16xf32> to vector<8x16xf32>
    %796 = arith.subf %792, %795 : vector<8x16xf32>
    %797 = math.exp %796 : vector<8x16xf32>
    %cst_568 = arith.constant dense<0.000000e+00> : vector<16xf32>
    %798 = vector.multi_reduction <add>, %797, %cst_568 [0] : vector<8x16xf32> to vector<16xf32>
    %799 = vector.shape_cast %798 : vector<16xf32> to vector<1x16xf32>
    %800 = vector.broadcast %799 : vector<1x16xf32> to vector<8x16xf32>
    %801 = arith.divf %797, %800 : vector<8x16xf32>
    %cst_569 = arith.constant 9.99999993E-9 : f32
    %802 = vector.broadcast %cst_569 : f32 to vector<8x16xf32>
    %803 = arith.addf %801, %802 : vector<8x16xf32>
    %cst_570 = arith.constant dense<0.000000e+00> : vector<8xf32>
    %804 = vector.multi_reduction <add>, %803, %cst_570 [1] : vector<8x16xf32> to vector<8xf32>
    %805 = vector.shape_cast %804 : vector<8xf32> to vector<8x1xf32>
    %806 = vector.broadcast %805 : vector<8x1xf32> to vector<8x16xf32>
    %807 = arith.divf %803, %806 : vector<8x16xf32>
    %cst_571 = arith.constant dense<0.000000e+00> : vector<8x32xf32>
    %808 = tpu.matmul %807, %488, %cst_571 {dimension_numbers = #tpu.dot_dimension_numbers<[1], [0], [0], [1], [0, 0, 1, 1], [], []>} : vector<8x16xf32>, vector<16x32xf32>, vector<8x32xf32> -> vector<8x32xf32>
    %c1_572 = arith.constant 1 : index
    %c0_573 = arith.constant 0 : index
    %c0_574 = arith.constant 0 : index
    %809 = vector.load %arg8[%c1_572, %c0_573, %c0_574] : memref<3x32x96xbf16, #tpu.memory_space<vmem>>, vector<1x32x96xbf16>
    %810 = vector.shape_cast %809 : vector<1x32x96xbf16> to vector<32x96xbf16>
    %811 = arith.truncf %808 : vector<8x32xf32> to vector<8x32xbf16>
    %cst_575 = arith.constant dense<0.000000e+00> : vector<8x96xf32>
    %812 = tpu.matmul %811, %810, %cst_575 {dimension_numbers = #tpu.dot_dimension_numbers<[1], [0], [0], [1], [0, 0, 1, 1], [], []>} : vector<8x32xbf16>, vector<32x96xbf16>, vector<8x96xf32> -> vector<8x96xf32>
    %c0_576 = arith.constant 0 : index
    %c0_577 = arith.constant 0 : index
    %813 = vector.load %arg10[%c0_576, %c0_577] : memref<3x96xf32, #tpu.memory_space<vmem>>, vector<1x96xf32>
    %814 = vector.broadcast %813 : vector<1x96xf32> to vector<8x96xf32>
    %815 = arith.addf %812, %814 : vector<8x96xf32>
    %c2_578 = arith.constant 2 : index
    %c0_579 = arith.constant 0 : index
    %c0_580 = arith.constant 0 : index
    %816 = vector.load %arg8[%c2_578, %c0_579, %c0_580] : memref<3x32x96xbf16, #tpu.memory_space<vmem>>, vector<1x32x96xbf16>
    %817 = vector.shape_cast %816 : vector<1x32x96xbf16> to vector<32x96xbf16>
    %818 = arith.truncf %760 : vector<8x32xf32> to vector<8x32xbf16>
    %cst_581 = arith.constant dense<0.000000e+00> : vector<8x96xf32>
    %819 = tpu.matmul %818, %817, %cst_581 {dimension_numbers = #tpu.dot_dimension_numbers<[1], [0], [0], [1], [0, 0, 1, 1], [], []>} : vector<8x32xbf16>, vector<32x96xbf16>, vector<8x96xf32> -> vector<8x96xf32>
    %c1_582 = arith.constant 1 : index
    %c0_583 = arith.constant 0 : index
    %820 = vector.load %arg10[%c1_582, %c0_583] : memref<3x96xf32, #tpu.memory_space<vmem>>, vector<1x96xf32>
    %821 = vector.broadcast %820 : vector<1x96xf32> to vector<8x96xf32>
    %822 = arith.addf %819, %821 : vector<8x96xf32>
    %823 = vector.extract_strided_slice %815 {offsets = [0, 0], sizes = [8, 32], strides = [1, 1]} : vector<8x96xf32> to vector<8x32xf32>
    %824 = vector.extract_strided_slice %822 {offsets = [0, 0], sizes = [8, 32], strides = [1, 1]} : vector<8x96xf32> to vector<8x32xf32>
    %825 = arith.addf %823, %824 : vector<8x32xf32>
    %826 = arith.negf %825 : vector<8x32xf32>
    %827 = math.exp %826 : vector<8x32xf32>
    %cst_584 = arith.constant 1.000000e+00 : f32
    %828 = vector.broadcast %cst_584 : f32 to vector<8x32xf32>
    %829 = arith.addf %828, %827 : vector<8x32xf32>
    %830 = arith.divf %828, %829 : vector<8x32xf32>
    %831 = vector.extract_strided_slice %815 {offsets = [0, 32], sizes = [8, 32], strides = [1, 1]} : vector<8x96xf32> to vector<8x32xf32>
    %832 = vector.extract_strided_slice %822 {offsets = [0, 32], sizes = [8, 32], strides = [1, 1]} : vector<8x96xf32> to vector<8x32xf32>
    %833 = arith.addf %831, %832 : vector<8x32xf32>
    %834 = arith.negf %833 : vector<8x32xf32>
    %835 = math.exp %834 : vector<8x32xf32>
    %cst_585 = arith.constant 1.000000e+00 : f32
    %836 = vector.broadcast %cst_585 : f32 to vector<8x32xf32>
    %837 = arith.addf %836, %835 : vector<8x32xf32>
    %838 = arith.divf %836, %837 : vector<8x32xf32>
    %839 = vector.extract_strided_slice %815 {offsets = [0, 64], sizes = [8, 32], strides = [1, 1]} : vector<8x96xf32> to vector<8x32xf32>
    %840 = vector.extract_strided_slice %822 {offsets = [0, 64], sizes = [8, 32], strides = [1, 1]} : vector<8x96xf32> to vector<8x32xf32>
    %841 = arith.mulf %830, %840 : vector<8x32xf32>
    %842 = arith.addf %839, %841 : vector<8x32xf32>
    %843 = math.tanh %842 : vector<8x32xf32>
    %cst_586 = arith.constant 1.000000e+00 : f32
    %844 = vector.broadcast %cst_586 : f32 to vector<8x32xf32>
    %845 = arith.subf %844, %838 : vector<8x32xf32>
    %846 = arith.mulf %845, %843 : vector<8x32xf32>
    %847 = arith.mulf %838, %760 : vector<8x32xf32>
    %848 = arith.addf %846, %847 : vector<8x32xf32>
    %c7_587 = arith.constant 7 : index
    %c0_588 = arith.constant 0 : index
    %849 = vector.load %arg9[%c7_587, %c0_588] : memref<18x32xf32, #tpu.memory_space<vmem>>, vector<1x32xf32>
    %c8_589 = arith.constant 8 : index
    %c0_590 = arith.constant 0 : index
    %850 = vector.load %arg9[%c8_589, %c0_590] : memref<18x32xf32, #tpu.memory_space<vmem>>, vector<1x32xf32>
    %cst_591 = arith.constant dense<0.000000e+00> : vector<8xf32>
    %851 = vector.multi_reduction <add>, %848, %cst_591 [1] : vector<8x32xf32> to vector<8xf32>
    %852 = vector.shape_cast %851 : vector<8xf32> to vector<8x1xf32>
    %cst_592 = arith.constant 3.200000e+01 : f32
    %853 = vector.broadcast %cst_592 : f32 to vector<8x1xf32>
    %854 = arith.divf %852, %853 : vector<8x1xf32>
    %855 = vector.broadcast %854 : vector<8x1xf32> to vector<8x32xf32>
    %856 = arith.subf %848, %855 : vector<8x32xf32>
    %857 = arith.mulf %856, %856 : vector<8x32xf32>
    %cst_593 = arith.constant dense<0.000000e+00> : vector<8xf32>
    %858 = vector.multi_reduction <add>, %857, %cst_593 [1] : vector<8x32xf32> to vector<8xf32>
    %859 = vector.shape_cast %858 : vector<8xf32> to vector<8x1xf32>
    %cst_594 = arith.constant 3.200000e+01 : f32
    %860 = vector.broadcast %cst_594 : f32 to vector<8x1xf32>
    %861 = arith.divf %859, %860 : vector<8x1xf32>
    %862 = vector.broadcast %854 : vector<8x1xf32> to vector<8x32xf32>
    %863 = arith.subf %848, %862 : vector<8x32xf32>
    %cst_595 = arith.constant 9.99999974E-6 : f32
    %864 = vector.broadcast %cst_595 : f32 to vector<8x1xf32>
    %865 = arith.addf %861, %864 : vector<8x1xf32>
    %866 = math.rsqrt %865 : vector<8x1xf32>
    %867 = vector.broadcast %866 : vector<8x1xf32> to vector<8x32xf32>
    %868 = arith.mulf %863, %867 : vector<8x32xf32>
    %869 = vector.broadcast %849 : vector<1x32xf32> to vector<8x32xf32>
    %870 = arith.mulf %868, %869 : vector<8x32xf32>
    %871 = vector.broadcast %850 : vector<1x32xf32> to vector<8x32xf32>
    %872 = arith.addf %870, %871 : vector<8x32xf32>
    %c3_596 = arith.constant 3 : index
    %c0_597 = arith.constant 0 : index
    %c0_598 = arith.constant 0 : index
    %873 = vector.load %arg7[%c3_596, %c0_597, %c0_598] : memref<8x32x32xbf16, #tpu.memory_space<vmem>>, vector<1x32x32xbf16>
    %874 = vector.shape_cast %873 : vector<1x32x32xbf16> to vector<32x32xbf16>
    %875 = arith.truncf %872 : vector<8x32xf32> to vector<8x32xbf16>
    %cst_599 = arith.constant dense<0.000000e+00> : vector<8x32xf32>
    %876 = tpu.matmul %875, %874, %cst_599 {dimension_numbers = #tpu.dot_dimension_numbers<[1], [0], [0], [1], [0, 0, 1, 1], [], []>} : vector<8x32xbf16>, vector<32x32xbf16>, vector<8x32xf32> -> vector<8x32xf32>
    %c9_600 = arith.constant 9 : index
    %c0_601 = arith.constant 0 : index
    %877 = vector.load %arg9[%c9_600, %c0_601] : memref<18x32xf32, #tpu.memory_space<vmem>>, vector<1x32xf32>
    %878 = vector.broadcast %877 : vector<1x32xf32> to vector<8x32xf32>
    %879 = arith.addf %876, %878 : vector<8x32xf32>
    %cst_602 = arith.constant 0.000000e+00 : f32
    %880 = vector.broadcast %cst_602 : f32 to vector<8x32xf32>
    %881 = arith.maximumf %879, %880 : vector<8x32xf32>
    %c4_603 = arith.constant 4 : index
    %c0_604 = arith.constant 0 : index
    %c0_605 = arith.constant 0 : index
    %882 = vector.load %arg7[%c4_603, %c0_604, %c0_605] : memref<8x32x32xbf16, #tpu.memory_space<vmem>>, vector<1x32x32xbf16>
    %883 = vector.shape_cast %882 : vector<1x32x32xbf16> to vector<32x32xbf16>
    %884 = arith.truncf %881 : vector<8x32xf32> to vector<8x32xbf16>
    %cst_606 = arith.constant dense<0.000000e+00> : vector<8x32xf32>
    %885 = tpu.matmul %884, %883, %cst_606 {dimension_numbers = #tpu.dot_dimension_numbers<[1], [0], [0], [1], [0, 0, 1, 1], [], []>} : vector<8x32xbf16>, vector<32x32xbf16>, vector<8x32xf32> -> vector<8x32xf32>
    %c10_607 = arith.constant 10 : index
    %c0_608 = arith.constant 0 : index
    %886 = vector.load %arg9[%c10_607, %c0_608] : memref<18x32xf32, #tpu.memory_space<vmem>>, vector<1x32xf32>
    %887 = vector.broadcast %886 : vector<1x32xf32> to vector<8x32xf32>
    %888 = arith.addf %885, %887 : vector<8x32xf32>
    %cst_609 = arith.constant 0.000000e+00 : f32
    %889 = vector.broadcast %cst_609 : f32 to vector<8x32xf32>
    %890 = arith.maximumf %888, %889 : vector<8x32xf32>
    %891 = arith.addf %848, %890 : vector<8x32xf32>
    %c5_610 = arith.constant 5 : index
    %c0_611 = arith.constant 0 : index
    %892 = vector.load %arg9[%c5_610, %c0_611] : memref<18x32xf32, #tpu.memory_space<vmem>>, vector<1x32xf32>
    %c6_612 = arith.constant 6 : index
    %c0_613 = arith.constant 0 : index
    %893 = vector.load %arg9[%c6_612, %c0_613] : memref<18x32xf32, #tpu.memory_space<vmem>>, vector<1x32xf32>
    %cst_614 = arith.constant dense<0.000000e+00> : vector<8xf32>
    %894 = vector.multi_reduction <add>, %891, %cst_614 [1] : vector<8x32xf32> to vector<8xf32>
    %895 = vector.shape_cast %894 : vector<8xf32> to vector<8x1xf32>
    %cst_615 = arith.constant 3.200000e+01 : f32
    %896 = vector.broadcast %cst_615 : f32 to vector<8x1xf32>
    %897 = arith.divf %895, %896 : vector<8x1xf32>
    %898 = vector.broadcast %897 : vector<8x1xf32> to vector<8x32xf32>
    %899 = arith.subf %891, %898 : vector<8x32xf32>
    %900 = arith.mulf %899, %899 : vector<8x32xf32>
    %cst_616 = arith.constant dense<0.000000e+00> : vector<8xf32>
    %901 = vector.multi_reduction <add>, %900, %cst_616 [1] : vector<8x32xf32> to vector<8xf32>
    %902 = vector.shape_cast %901 : vector<8xf32> to vector<8x1xf32>
    %cst_617 = arith.constant 3.200000e+01 : f32
    %903 = vector.broadcast %cst_617 : f32 to vector<8x1xf32>
    %904 = arith.divf %902, %903 : vector<8x1xf32>
    %905 = vector.broadcast %897 : vector<8x1xf32> to vector<8x32xf32>
    %906 = arith.subf %891, %905 : vector<8x32xf32>
    %cst_618 = arith.constant 9.99999974E-6 : f32
    %907 = vector.broadcast %cst_618 : f32 to vector<8x1xf32>
    %908 = arith.addf %904, %907 : vector<8x1xf32>
    %909 = math.rsqrt %908 : vector<8x1xf32>
    %910 = vector.broadcast %909 : vector<8x1xf32> to vector<8x32xf32>
    %911 = arith.mulf %906, %910 : vector<8x32xf32>
    %912 = vector.broadcast %892 : vector<1x32xf32> to vector<8x32xf32>
    %913 = arith.mulf %911, %912 : vector<8x32xf32>
    %914 = vector.broadcast %893 : vector<1x32xf32> to vector<8x32xf32>
    %915 = arith.addf %913, %914 : vector<8x32xf32>
    %c2_619 = arith.constant 2 : index
    %c0_620 = arith.constant 0 : index
    %c0_621 = arith.constant 0 : index
    %916 = vector.load %arg7[%c2_619, %c0_620, %c0_621] : memref<8x32x32xbf16, #tpu.memory_space<vmem>>, vector<1x32x32xbf16>
    %917 = vector.shape_cast %916 : vector<1x32x32xbf16> to vector<32x32xbf16>
    %918 = arith.truncf %915 : vector<8x32xf32> to vector<8x32xbf16>
    %cst_622 = arith.constant dense<0.000000e+00> : vector<8x32xf32>
    %919 = tpu.matmul %918, %917, %cst_622 {dimension_numbers = #tpu.dot_dimension_numbers<[1], [0], [0], [1], [0, 0, 1, 1], [], []>} : vector<8x32xbf16>, vector<32x32xbf16>, vector<8x32xf32> -> vector<8x32xf32>
    %c4_623 = arith.constant 4 : index
    %c0_624 = arith.constant 0 : index
    %920 = vector.load %arg9[%c4_623, %c0_624] : memref<18x32xf32, #tpu.memory_space<vmem>>, vector<1x32xf32>
    %921 = vector.broadcast %920 : vector<1x32xf32> to vector<8x32xf32>
    %922 = arith.addf %919, %921 : vector<8x32xf32>
    %cst_625 = arith.constant dense<0.000000e+00> : vector<8x16xf32>
    %923 = tpu.matmul %922, %490, %cst_625 {dimension_numbers = #tpu.dot_dimension_numbers<[1], [0], [0], [1], [0, 0, 1, 1], [], []>} : vector<8x32xf32>, vector<32x16xf32>, vector<8x16xf32> -> vector<8x16xf32>
    %cst_626 = arith.constant dense<0xFF800000> : vector<16xf32>
    %924 = vector.multi_reduction <maximumf>, %923, %cst_626 [0] : vector<8x16xf32> to vector<16xf32>
    %925 = vector.shape_cast %924 : vector<16xf32> to vector<1x16xf32>
    %926 = vector.broadcast %925 : vector<1x16xf32> to vector<8x16xf32>
    %927 = arith.subf %923, %926 : vector<8x16xf32>
    %928 = math.exp %927 : vector<8x16xf32>
    %cst_627 = arith.constant dense<0.000000e+00> : vector<16xf32>
    %929 = vector.multi_reduction <add>, %928, %cst_627 [0] : vector<8x16xf32> to vector<16xf32>
    %930 = vector.shape_cast %929 : vector<16xf32> to vector<1x16xf32>
    %931 = vector.broadcast %930 : vector<1x16xf32> to vector<8x16xf32>
    %932 = arith.divf %928, %931 : vector<8x16xf32>
    %cst_628 = arith.constant 9.99999993E-9 : f32
    %933 = vector.broadcast %cst_628 : f32 to vector<8x16xf32>
    %934 = arith.addf %932, %933 : vector<8x16xf32>
    %cst_629 = arith.constant dense<0.000000e+00> : vector<8xf32>
    %935 = vector.multi_reduction <add>, %934, %cst_629 [1] : vector<8x16xf32> to vector<8xf32>
    %936 = vector.shape_cast %935 : vector<8xf32> to vector<8x1xf32>
    %937 = vector.broadcast %936 : vector<8x1xf32> to vector<8x16xf32>
    %938 = arith.divf %934, %937 : vector<8x16xf32>
    %cst_630 = arith.constant dense<0.000000e+00> : vector<8x32xf32>
    %939 = tpu.matmul %938, %488, %cst_630 {dimension_numbers = #tpu.dot_dimension_numbers<[1], [0], [0], [1], [0, 0, 1, 1], [], []>} : vector<8x16xf32>, vector<16x32xf32>, vector<8x32xf32> -> vector<8x32xf32>
    %c1_631 = arith.constant 1 : index
    %c0_632 = arith.constant 0 : index
    %c0_633 = arith.constant 0 : index
    %940 = vector.load %arg8[%c1_631, %c0_632, %c0_633] : memref<3x32x96xbf16, #tpu.memory_space<vmem>>, vector<1x32x96xbf16>
    %941 = vector.shape_cast %940 : vector<1x32x96xbf16> to vector<32x96xbf16>
    %942 = arith.truncf %939 : vector<8x32xf32> to vector<8x32xbf16>
    %cst_634 = arith.constant dense<0.000000e+00> : vector<8x96xf32>
    %943 = tpu.matmul %942, %941, %cst_634 {dimension_numbers = #tpu.dot_dimension_numbers<[1], [0], [0], [1], [0, 0, 1, 1], [], []>} : vector<8x32xbf16>, vector<32x96xbf16>, vector<8x96xf32> -> vector<8x96xf32>
    %c0_635 = arith.constant 0 : index
    %c0_636 = arith.constant 0 : index
    %944 = vector.load %arg10[%c0_635, %c0_636] : memref<3x96xf32, #tpu.memory_space<vmem>>, vector<1x96xf32>
    %945 = vector.broadcast %944 : vector<1x96xf32> to vector<8x96xf32>
    %946 = arith.addf %943, %945 : vector<8x96xf32>
    %c2_637 = arith.constant 2 : index
    %c0_638 = arith.constant 0 : index
    %c0_639 = arith.constant 0 : index
    %947 = vector.load %arg8[%c2_637, %c0_638, %c0_639] : memref<3x32x96xbf16, #tpu.memory_space<vmem>>, vector<1x32x96xbf16>
    %948 = vector.shape_cast %947 : vector<1x32x96xbf16> to vector<32x96xbf16>
    %949 = arith.truncf %891 : vector<8x32xf32> to vector<8x32xbf16>
    %cst_640 = arith.constant dense<0.000000e+00> : vector<8x96xf32>
    %950 = tpu.matmul %949, %948, %cst_640 {dimension_numbers = #tpu.dot_dimension_numbers<[1], [0], [0], [1], [0, 0, 1, 1], [], []>} : vector<8x32xbf16>, vector<32x96xbf16>, vector<8x96xf32> -> vector<8x96xf32>
    %c1_641 = arith.constant 1 : index
    %c0_642 = arith.constant 0 : index
    %951 = vector.load %arg10[%c1_641, %c0_642] : memref<3x96xf32, #tpu.memory_space<vmem>>, vector<1x96xf32>
    %952 = vector.broadcast %951 : vector<1x96xf32> to vector<8x96xf32>
    %953 = arith.addf %950, %952 : vector<8x96xf32>
    %954 = vector.extract_strided_slice %946 {offsets = [0, 0], sizes = [8, 32], strides = [1, 1]} : vector<8x96xf32> to vector<8x32xf32>
    %955 = vector.extract_strided_slice %953 {offsets = [0, 0], sizes = [8, 32], strides = [1, 1]} : vector<8x96xf32> to vector<8x32xf32>
    %956 = arith.addf %954, %955 : vector<8x32xf32>
    %957 = arith.negf %956 : vector<8x32xf32>
    %958 = math.exp %957 : vector<8x32xf32>
    %cst_643 = arith.constant 1.000000e+00 : f32
    %959 = vector.broadcast %cst_643 : f32 to vector<8x32xf32>
    %960 = arith.addf %959, %958 : vector<8x32xf32>
    %961 = arith.divf %959, %960 : vector<8x32xf32>
    %962 = vector.extract_strided_slice %946 {offsets = [0, 32], sizes = [8, 32], strides = [1, 1]} : vector<8x96xf32> to vector<8x32xf32>
    %963 = vector.extract_strided_slice %953 {offsets = [0, 32], sizes = [8, 32], strides = [1, 1]} : vector<8x96xf32> to vector<8x32xf32>
    %964 = arith.addf %962, %963 : vector<8x32xf32>
    %965 = arith.negf %964 : vector<8x32xf32>
    %966 = math.exp %965 : vector<8x32xf32>
    %cst_644 = arith.constant 1.000000e+00 : f32
    %967 = vector.broadcast %cst_644 : f32 to vector<8x32xf32>
    %968 = arith.addf %967, %966 : vector<8x32xf32>
    %969 = arith.divf %967, %968 : vector<8x32xf32>
    %970 = vector.extract_strided_slice %946 {offsets = [0, 64], sizes = [8, 32], strides = [1, 1]} : vector<8x96xf32> to vector<8x32xf32>
    %971 = vector.extract_strided_slice %953 {offsets = [0, 64], sizes = [8, 32], strides = [1, 1]} : vector<8x96xf32> to vector<8x32xf32>
    %972 = arith.mulf %961, %971 : vector<8x32xf32>
    %973 = arith.addf %970, %972 : vector<8x32xf32>
    %974 = math.tanh %973 : vector<8x32xf32>
    %cst_645 = arith.constant 1.000000e+00 : f32
    %975 = vector.broadcast %cst_645 : f32 to vector<8x32xf32>
    %976 = arith.subf %975, %969 : vector<8x32xf32>
    %977 = arith.mulf %976, %974 : vector<8x32xf32>
    %978 = arith.mulf %969, %891 : vector<8x32xf32>
    %979 = arith.addf %977, %978 : vector<8x32xf32>
    %c7_646 = arith.constant 7 : index
    %c0_647 = arith.constant 0 : index
    %980 = vector.load %arg9[%c7_646, %c0_647] : memref<18x32xf32, #tpu.memory_space<vmem>>, vector<1x32xf32>
    %c8_648 = arith.constant 8 : index
    %c0_649 = arith.constant 0 : index
    %981 = vector.load %arg9[%c8_648, %c0_649] : memref<18x32xf32, #tpu.memory_space<vmem>>, vector<1x32xf32>
    %cst_650 = arith.constant dense<0.000000e+00> : vector<8xf32>
    %982 = vector.multi_reduction <add>, %979, %cst_650 [1] : vector<8x32xf32> to vector<8xf32>
    %983 = vector.shape_cast %982 : vector<8xf32> to vector<8x1xf32>
    %cst_651 = arith.constant 3.200000e+01 : f32
    %984 = vector.broadcast %cst_651 : f32 to vector<8x1xf32>
    %985 = arith.divf %983, %984 : vector<8x1xf32>
    %986 = vector.broadcast %985 : vector<8x1xf32> to vector<8x32xf32>
    %987 = arith.subf %979, %986 : vector<8x32xf32>
    %988 = arith.mulf %987, %987 : vector<8x32xf32>
    %cst_652 = arith.constant dense<0.000000e+00> : vector<8xf32>
    %989 = vector.multi_reduction <add>, %988, %cst_652 [1] : vector<8x32xf32> to vector<8xf32>
    %990 = vector.shape_cast %989 : vector<8xf32> to vector<8x1xf32>
    %cst_653 = arith.constant 3.200000e+01 : f32
    %991 = vector.broadcast %cst_653 : f32 to vector<8x1xf32>
    %992 = arith.divf %990, %991 : vector<8x1xf32>
    %993 = vector.broadcast %985 : vector<8x1xf32> to vector<8x32xf32>
    %994 = arith.subf %979, %993 : vector<8x32xf32>
    %cst_654 = arith.constant 9.99999974E-6 : f32
    %995 = vector.broadcast %cst_654 : f32 to vector<8x1xf32>
    %996 = arith.addf %992, %995 : vector<8x1xf32>
    %997 = math.rsqrt %996 : vector<8x1xf32>
    %998 = vector.broadcast %997 : vector<8x1xf32> to vector<8x32xf32>
    %999 = arith.mulf %994, %998 : vector<8x32xf32>
    %1000 = vector.broadcast %980 : vector<1x32xf32> to vector<8x32xf32>
    %1001 = arith.mulf %999, %1000 : vector<8x32xf32>
    %1002 = vector.broadcast %981 : vector<1x32xf32> to vector<8x32xf32>
    %1003 = arith.addf %1001, %1002 : vector<8x32xf32>
    %c3_655 = arith.constant 3 : index
    %c0_656 = arith.constant 0 : index
    %c0_657 = arith.constant 0 : index
    %1004 = vector.load %arg7[%c3_655, %c0_656, %c0_657] : memref<8x32x32xbf16, #tpu.memory_space<vmem>>, vector<1x32x32xbf16>
    %1005 = vector.shape_cast %1004 : vector<1x32x32xbf16> to vector<32x32xbf16>
    %1006 = arith.truncf %1003 : vector<8x32xf32> to vector<8x32xbf16>
    %cst_658 = arith.constant dense<0.000000e+00> : vector<8x32xf32>
    %1007 = tpu.matmul %1006, %1005, %cst_658 {dimension_numbers = #tpu.dot_dimension_numbers<[1], [0], [0], [1], [0, 0, 1, 1], [], []>} : vector<8x32xbf16>, vector<32x32xbf16>, vector<8x32xf32> -> vector<8x32xf32>
    %c9_659 = arith.constant 9 : index
    %c0_660 = arith.constant 0 : index
    %1008 = vector.load %arg9[%c9_659, %c0_660] : memref<18x32xf32, #tpu.memory_space<vmem>>, vector<1x32xf32>
    %1009 = vector.broadcast %1008 : vector<1x32xf32> to vector<8x32xf32>
    %1010 = arith.addf %1007, %1009 : vector<8x32xf32>
    %cst_661 = arith.constant 0.000000e+00 : f32
    %1011 = vector.broadcast %cst_661 : f32 to vector<8x32xf32>
    %1012 = arith.maximumf %1010, %1011 : vector<8x32xf32>
    %c4_662 = arith.constant 4 : index
    %c0_663 = arith.constant 0 : index
    %c0_664 = arith.constant 0 : index
    %1013 = vector.load %arg7[%c4_662, %c0_663, %c0_664] : memref<8x32x32xbf16, #tpu.memory_space<vmem>>, vector<1x32x32xbf16>
    %1014 = vector.shape_cast %1013 : vector<1x32x32xbf16> to vector<32x32xbf16>
    %1015 = arith.truncf %1012 : vector<8x32xf32> to vector<8x32xbf16>
    %cst_665 = arith.constant dense<0.000000e+00> : vector<8x32xf32>
    %1016 = tpu.matmul %1015, %1014, %cst_665 {dimension_numbers = #tpu.dot_dimension_numbers<[1], [0], [0], [1], [0, 0, 1, 1], [], []>} : vector<8x32xbf16>, vector<32x32xbf16>, vector<8x32xf32> -> vector<8x32xf32>
    %c10_666 = arith.constant 10 : index
    %c0_667 = arith.constant 0 : index
    %1017 = vector.load %arg9[%c10_666, %c0_667] : memref<18x32xf32, #tpu.memory_space<vmem>>, vector<1x32xf32>
    %1018 = vector.broadcast %1017 : vector<1x32xf32> to vector<8x32xf32>
    %1019 = arith.addf %1016, %1018 : vector<8x32xf32>
    %cst_668 = arith.constant 0.000000e+00 : f32
    %1020 = vector.broadcast %cst_668 : f32 to vector<8x32xf32>
    %1021 = arith.maximumf %1019, %1020 : vector<8x32xf32>
    %1022 = arith.addf %979, %1021 : vector<8x32xf32>
    %c5_669 = arith.constant 5 : index
    %c0_670 = arith.constant 0 : index
    %c0_671 = arith.constant 0 : index
    %1023 = vector.load %arg7[%c5_669, %c0_670, %c0_671] : memref<8x32x32xbf16, #tpu.memory_space<vmem>>, vector<1x32x32xbf16>
    %1024 = vector.shape_cast %1023 : vector<1x32x32xbf16> to vector<32x32xbf16>
    %1025 = arith.truncf %1022 : vector<8x32xf32> to vector<8x32xbf16>
    %cst_672 = arith.constant dense<0.000000e+00> : vector<8x32xf32>
    %1026 = tpu.matmul %1025, %1024, %cst_672 {dimension_numbers = #tpu.dot_dimension_numbers<[1], [0], [0], [1], [0, 0, 1, 1], [], []>} : vector<8x32xbf16>, vector<32x32xbf16>, vector<8x32xf32> -> vector<8x32xf32>
    %c13_673 = arith.constant 13 : index
    %c0_674 = arith.constant 0 : index
    %1027 = vector.load %arg9[%c13_673, %c0_674] : memref<18x32xf32, #tpu.memory_space<vmem>>, vector<1x32xf32>
    %1028 = vector.broadcast %1027 : vector<1x32xf32> to vector<8x32xf32>
    %1029 = arith.addf %1026, %1028 : vector<8x32xf32>
    %cst_675 = arith.constant 0.000000e+00 : f32
    %1030 = vector.broadcast %cst_675 : f32 to vector<8x32xf32>
    %1031 = arith.maximumf %1029, %1030 : vector<8x32xf32>
    %c6_676 = arith.constant 6 : index
    %c0_677 = arith.constant 0 : index
    %c0_678 = arith.constant 0 : index
    %1032 = vector.load %arg7[%c6_676, %c0_677, %c0_678] : memref<8x32x32xbf16, #tpu.memory_space<vmem>>, vector<1x32x32xbf16>
    %1033 = vector.shape_cast %1032 : vector<1x32x32xbf16> to vector<32x32xbf16>
    %1034 = arith.truncf %1031 : vector<8x32xf32> to vector<8x32xbf16>
    %cst_679 = arith.constant dense<0.000000e+00> : vector<8x32xf32>
    %1035 = tpu.matmul %1034, %1033, %cst_679 {dimension_numbers = #tpu.dot_dimension_numbers<[1], [0], [0], [1], [0, 0, 1, 1], [], []>} : vector<8x32xbf16>, vector<32x32xbf16>, vector<8x32xf32> -> vector<8x32xf32>
    %c14_680 = arith.constant 14 : index
    %c0_681 = arith.constant 0 : index
    %1036 = vector.load %arg9[%c14_680, %c0_681] : memref<18x32xf32, #tpu.memory_space<vmem>>, vector<1x32xf32>
    %1037 = vector.broadcast %1036 : vector<1x32xf32> to vector<8x32xf32>
    %1038 = arith.addf %1035, %1037 : vector<8x32xf32>
    %1039 = vector.extract_strided_slice %1038 {offsets = [0, 0], sizes = [8, 8], strides = [1, 1]} : vector<8x32xf32> to vector<8x8xf32>
    %1040 = arith.negf %1039 : vector<8x8xf32>
    %1041 = math.exp %1040 : vector<8x8xf32>
    %cst_682 = arith.constant 1.000000e+00 : f32
    %1042 = vector.broadcast %cst_682 : f32 to vector<8x8xf32>
    %1043 = arith.addf %1042, %1041 : vector<8x8xf32>
    %1044 = arith.divf %1042, %1043 : vector<8x8xf32>
    %c0_683 = arith.constant 0 : index
    %c0_684 = arith.constant 0 : index
    %c0_685 = arith.constant 0 : index
    %1045 = vector.load %arg13[%c0_683, %c0_684, %c0_685] : memref<1x8x8xf32, #tpu.memory_space<vmem>>, vector<1x8x8xf32>
    %1046 = vector.shape_cast %1045 : vector<1x8x8xf32> to vector<8x8xf32>
    %1047 = vector.shape_cast %1044 : vector<8x8xf32> to vector<1x8x8xf32>
    tpu.vector_store %arg13[%c0_683, %c0_684, %c0_685], %1047 {strides = array<i32>} : memref<1x8x8xf32, #tpu.memory_space<vmem>>, vector<1x8x8xf32>,
    %c7_686 = arith.constant 7 : index
    %c0_687 = arith.constant 0 : index
    %c0_688 = arith.constant 0 : index
    %1048 = vector.load %arg7[%c7_686, %c0_687, %c0_688] : memref<8x32x32xbf16, #tpu.memory_space<vmem>>, vector<1x32x32xbf16>
    %1049 = vector.shape_cast %1048 : vector<1x32x32xbf16> to vector<32x32xbf16>
    %1050 = arith.truncf %1038 : vector<8x32xf32> to vector<8x32xbf16>
    %cst_689 = arith.constant dense<0.000000e+00> : vector<8x32xf32>
    %1051 = tpu.matmul %1050, %1049, %cst_689 {dimension_numbers = #tpu.dot_dimension_numbers<[1], [0], [0], [1], [0, 0, 1, 1], [], []>} : vector<8x32xbf16>, vector<32x32xbf16>, vector<8x32xf32> -> vector<8x32xf32>
    %cst_690 = arith.constant dense<0.000000e+00> : vector<32xf32>
    %1052 = vector.multi_reduction <add>, %1051, %cst_690 [0] : vector<8x32xf32> to vector<32xf32>
    %1053 = vector.shape_cast %1052 : vector<32xf32> to vector<1x32xf32>
    %cst_691 = arith.constant 8.000000e+00 : f32
    %1054 = vector.broadcast %cst_691 : f32 to vector<1x32xf32>
    %1055 = arith.divf %1053, %1054 : vector<1x32xf32>
    %c15_692 = arith.constant 15 : index
    %c0_693 = arith.constant 0 : index
    %1056 = vector.load %arg9[%c15_692, %c0_693] : memref<18x32xf32, #tpu.memory_space<vmem>>, vector<1x32xf32>
    %1057 = arith.addf %1055, %1056 : vector<1x32xf32>
    %1058 = vector.extract_strided_slice %1057 {offsets = [0, 0], sizes = [1, 4], strides = [1, 1]} : vector<1x32xf32> to vector<1x4xf32>
    %c0_694 = arith.constant 0 : index
    %c0_695 = arith.constant 0 : index
    %c0_696 = arith.constant 0 : index
    %1059 = vector.load %arg12[%c0_694, %c0_695, %c0_696] : memref<1x1x4xf32, #tpu.memory_space<vmem>>, vector<1x1x4xf32>
    %1060 = vector.shape_cast %1059 : vector<1x1x4xf32> to vector<1x4xf32>
    %1061 = vector.shape_cast %1058 : vector<1x4xf32> to vector<1x1x4xf32>
    tpu.vector_store %arg12[%c0_694, %c0_695, %c0_696], %1061 {strides = array<i32>} : memref<1x1x4xf32, #tpu.memory_space<vmem>>, vector<1x1x4xf32>,
    return
  }
  func.func @transform_0(%arg0: i32) -> (i32, i32, i32) {
    %c0_i32 = arith.constant 0 : i32
    %c0_i32_0 = arith.constant 0 : i32
    %c0_i32_1 = arith.constant 0 : i32
    return %arg0, %c0_i32, %c0_i32_0 : i32, i32, i32
  }
  func.func @transform_1(%arg0: i32) -> (i32, i32, i32) {
    %c0_i32 = arith.constant 0 : i32
    %c0_i32_0 = arith.constant 0 : i32
    %c0_i32_1 = arith.constant 0 : i32
    return %arg0, %c0_i32, %c0_i32_0 : i32, i32, i32
  }
  func.func @transform_2(%arg0: i32) -> (i32, i32, i32) {
    %c0_i32 = arith.constant 0 : i32
    %c0_i32_0 = arith.constant 0 : i32
    %c0_i32_1 = arith.constant 0 : i32
    %c0_i32_2 = arith.constant 0 : i32
    return %c0_i32, %c0_i32_0, %c0_i32_1 : i32, i32, i32
  }
  func.func @transform_3(%arg0: i32) -> (i32, i32, i32) {
    %c0_i32 = arith.constant 0 : i32
    %c0_i32_0 = arith.constant 0 : i32
    %c0_i32_1 = arith.constant 0 : i32
    %c0_i32_2 = arith.constant 0 : i32
    return %c0_i32, %c0_i32_0, %c0_i32_1 : i32, i32, i32
  }
  func.func @transform_4(%arg0: i32) -> (i32, i32, i32) {
    %c0_i32 = arith.constant 0 : i32
    %c0_i32_0 = arith.constant 0 : i32
    %c0_i32_1 = arith.constant 0 : i32
    %c0_i32_2 = arith.constant 0 : i32
    return %c0_i32, %c0_i32_0, %c0_i32_1 : i32, i32, i32
  }
  func.func @transform_5(%arg0: i32) -> (i32, i32, i32) {
    %c0_i32 = arith.constant 0 : i32
    %c0_i32_0 = arith.constant 0 : i32
    %c0_i32_1 = arith.constant 0 : i32
    %c0_i32_2 = arith.constant 0 : i32
    return %c0_i32, %c0_i32_0, %c0_i32_1 : i32, i32, i32
  }
  func.func @transform_6(%arg0: i32) -> (i32, i32, i32) {
    %c0_i32 = arith.constant 0 : i32
    %c0_i32_0 = arith.constant 0 : i32
    %c0_i32_1 = arith.constant 0 : i32
    %c0_i32_2 = arith.constant 0 : i32
    return %c0_i32, %c0_i32_0, %c0_i32_1 : i32, i32, i32
  }
  func.func @transform_7(%arg0: i32) -> (i32, i32, i32) {
    %c0_i32 = arith.constant 0 : i32
    %c0_i32_0 = arith.constant 0 : i32
    %c0_i32_1 = arith.constant 0 : i32
    %c0_i32_2 = arith.constant 0 : i32
    return %c0_i32, %c0_i32_0, %c0_i32_1 : i32, i32, i32
  }
  func.func @transform_8(%arg0: i32) -> (i32, i32) {
    %c0_i32 = arith.constant 0 : i32
    %c0_i32_0 = arith.constant 0 : i32
    %c0_i32_1 = arith.constant 0 : i32
    return %c0_i32, %c0_i32_0 : i32, i32
  }
  func.func @transform_9(%arg0: i32) -> (i32, i32) {
    %c0_i32 = arith.constant 0 : i32
    %c0_i32_0 = arith.constant 0 : i32
    %c0_i32_1 = arith.constant 0 : i32
    return %c0_i32, %c0_i32_0 : i32, i32
  }
  func.func @transform_10(%arg0: i32) -> (i32, i32, i32) {
    %c0_i32 = arith.constant 0 : i32
    %c0_i32_0 = arith.constant 0 : i32
    %c0_i32_1 = arith.constant 0 : i32
    %c0_i32_2 = arith.constant 0 : i32
    return %c0_i32, %c0_i32_0, %c0_i32_1 : i32, i32, i32
  }
  func.func @transform_11(%arg0: i32) -> (i32, i32, i32) {
    %c0_i32 = arith.constant 0 : i32
    %c0_i32_0 = arith.constant 0 : i32
    %c0_i32_1 = arith.constant 0 : i32
    return %arg0, %c0_i32, %c0_i32_0 : i32, i32, i32
  }
  func.func @transform_12(%arg0: i32) -> (i32, i32, i32) {
    %c0_i32 = arith.constant 0 : i32
    %c0_i32_0 = arith.constant 0 : i32
    %c0_i32_1 = arith.constant 0 : i32
    return %arg0, %c0_i32, %c0_i32_0 : i32, i32, i32
  }
}

</mosaic_0001>

<bundles_post_ra>
// kernel: slot_attention_reasoning_forward.3
= control target key start
LH: loop header
LB: loop body
LE: loop exit
PB: predicated region body
PF: predicated region fallthrough
CT: control target
= control target key end

     0   :  { %s806_s12 = smov 0   ;;  %s982_s0 = inlined_call_operand.vmem [shape: bf16[512,80], index: 0, kind: input, shape index: {}]   ;;  %s983_s1 = inlined_call_operand.vmem [shape: bf16[80,32], index: 1, kind: input, shape index: {}]   ;;  %s984_s2 = inlined_call_operand.vmem [shape: f32[1,32], index: 2, kind: input, shape index: {}]   ;;  %s985_s3 = inlined_call_operand.vmem [shape: bf16[512,32], index: 3, kind: output, shape index: {}]  }
   0x1 LB: > { %s622_s13 = sadd.s32 4294967295, %s784_s12   ;;  %p626_p0 = scmp.ge.s32.totalorder %s784_s12, 1  ;;  %s784_s12 = sphi %s806_s12, %s13_s12  }
   0x2   : > { %p138_p1 = scmp.lt.s32.totalorder %s784_s12, 3 }
   0x4   : > { %p139_p2 = pnand %p626_p0, %p138_p1 }
   0x5   : > { %s627_s16 = sshll.u32 (!%p139_p2), %s622_s13, 5 }
   0x6   : > { %142 = sbr.rel (%p139_p2) target bundleno = 228 (0xe4), region = 32  ;;  %p163_p3 = scmp.lt.s32.totalorder (!%p139_p2), %s627_s16, 63 }
   0xb   : > { %v753_v0 = vld [vmem:[%s983_s1 + $0x20] sm:$0xff]  ;;  %v752_v1 = vld [vmem:[%s983_s1 + $0x18] sm:$0xff]  ;;  %v751_v2 = vld [vmem:[%s983_s1 + $0x10] sm:$0xff]  ;;  %s987_s16 = smov (!%p163_p3, %s627_s16), 63  ;;  %vm331_vm0 = vcmask 654336   ;;  %vm533_vm1 = vcmask 257024  }
   0xc   : > { %383 = vmatpush.bf16.msra.mxu0 %v753_v0  ;;  %754 = vmatpush.bf16.msra.mxu1 %v753_v0  ;;  %v750_v3 = vld [vmem:[%s983_s1 + $0x8] sm:$0xff]  ;;  %s628_s23 = sshll.u32 %s987_s16, 2  ;;  %v749_v4 = vld [vmem:[%s983_s1] sm:$0xff] }
   0xd   : > { %755 = vmatpush.bf16.msra.mxu2 %v753_v0  ;;  %756 = vmatpush.bf16.msra.mxu3 %v753_v0  ;;  %s837_s28 = scalar_lea.vmem %s982_s0, %s628_s23  ;;  %v874_v21 = vld [vmem:[%s984_s2] ss:$0 sm:$0xff]  ;;  %s883_s6 = scalar_lea.vmem %s985_s3, %s628_s23 }
   0xe   : > { %v733_v5 = vld [vmem:[%s837_s28] sm:$0xff]  ;;  %v734_v9 = vld [vmem:[%s837_s28 + $0x8] sm:$0xff]  ;;  %v735_v13 = vld [vmem:[%s837_s28 + $0x10] sm:$0xff] }
   0xf   : > { %v737_v6 = vld [vmem:[%s837_s28 + $0x20] sm:$0xff]  ;;  %v738_v10 = vld [vmem:[%s837_s28 + $0x28] sm:$0xff]  ;;  %v739_v14 = vld [vmem:[%s837_s28 + $0x30] sm:$0xff] }
  0x10   : > { %384 = vmatpush.bf16.msra.mxu0 %v752_v1  ;;  %757 = vmatpush.bf16.msra.mxu1 %v752_v1  ;;  %v741_v7 = vld [vmem:[%s837_s28 + $0x40] sm:$0xff]  ;;  %v742_v11 = vld [vmem:[%s837_s28 + $0x48] sm:$0xff]  ;;  %v743_v15 = vld [vmem:[%s837_s28 + $0x50] sm:$0xff] }
  0x11   : > { %758 = vmatpush.bf16.msra.mxu2 %v752_v1  ;;  %759 = vmatpush.bf16.msra.mxu3 %v752_v1  ;;  %v745_v8 = vld [vmem:[%s837_s28 + $0x60] sm:$0xff]  ;;  %v746_v12 = vld [vmem:[%s837_s28 + $0x68] sm:$0xff]  ;;  %v747_v16 = vld [vmem:[%s837_s28 + $0x70] sm:$0xff] }
  0x12   : > { %v736_v17 = vld [vmem:[%s837_s28 + $0x18] sm:$0xff] }
  0x13   : > { %v740_v18 = vld [vmem:[%s837_s28 + $0x38] sm:$0xff] }
  0x14   : > { %385 = vmatpush.bf16.msra.mxu0 %v751_v2  ;;  %760 = vmatpush.bf16.msra.mxu1 %v751_v2  ;;  %v744_v19 = vld [vmem:[%s837_s28 + $0x58] sm:$0xff] }
  0x15   : > { %761 = vmatpush.bf16.msra.mxu2 %v751_v2  ;;  %762 = vmatpush.bf16.msra.mxu3 %v751_v2  ;;  %v748_v20 = vld [vmem:[%s837_s28 + $0x78] sm:$0xff] }
  0x18   : > { %386 = vmatpush.bf16.msra.mxu0 %v750_v3  ;;  %763 = vmatpush.bf16.msra.mxu1 %v750_v3 }
  0x19   : > { %764 = vmatpush.bf16.msra.mxu2 %v750_v3  ;;  %765 = vmatpush.bf16.msra.mxu3 %v750_v3 }
  0x1c   : > { %387 = vmatpush.bf16.msra.mxu0 %v749_v4  ;;  %766 = vmatpush.bf16.msra.mxu1 %v749_v4 }
  0x1d   : > { %767 = vmatpush.bf16.msra.mxu2 %v749_v4  ;;  %768 = vmatpush.bf16.msra.mxu3 %v749_v4 }
  0x1f   : > { %715 = vmatmul.msk.bf16.vlgmr.msra.gmra.mxu0 %vm331_vm0, %v733_v5  ;;  %719 = vmatmul.msk.bf16.vlgmr.msra.gmra.mxu1 %vm331_vm0, %v737_v6 }
  0x20   : > { %723 = vmatmul.msk.bf16.vlgmr.msra.gmra.mxu2 %vm331_vm0, %v741_v7  ;;  %727 = vmatmul.msk.bf16.vlgmr.msra.gmra.mxu3 %vm331_vm0, %v745_v8 }
  0x2f   : > { %716 = vmatmul.msk.bf16.gmra.mxu0 %vm331_vm0, %v734_v9  ;;  %720 = vmatmul.msk.bf16.gmra.mxu1 %vm331_vm0, %v738_v10 }
  0x30   : > { %724 = vmatmul.msk.bf16.gmra.mxu2 %vm331_vm0, %v742_v11  ;;  %728 = vmatmul.msk.bf16.gmra.mxu3 %vm331_vm0, %v746_v12 }
  0x3f   : > { %717 = vmatmul.msk.bf16.gmra.mxu0 %vm331_vm0, %v735_v13  ;;  %721 = vmatmul.msk.bf16.gmra.mxu1 %vm331_vm0, %v739_v14 }
  0x40   : > { %725 = vmatmul.msk.bf16.gmra.mxu2 %vm331_vm0, %v743_v15  ;;  %729 = vmatmul.msk.bf16.gmra.mxu3 %vm331_vm0, %v747_v16 }
  0x4f   : > { %718 = vmatmul.msk.bf16.gmra.mxu0 %vm331_vm0, %v736_v17  ;;  %722 = vmatmul.msk.bf16.gmra.mxu1 %vm331_vm0, %v740_v18 }
  0x50   : > { %726 = vmatmul.msk.bf16.gmra.mxu2 %vm331_vm0, %v744_v19  ;;  %730 = vmatmul.msk.bf16.gmra.mxu3 %vm331_vm0, %v748_v20 }
  0x9c   : > { %v389_v22 = vpop.f32.mrf.mxu0  ;;  %v409_v23 = vpop.f32.mrf.mxu1 }
  0x9d   : > { %v390_v24 = vadd.f32 %v874_v21, %v389_v22  ;;  %v410_v25 = vadd.f32 %v874_v21, %v409_v23 }
  0x9f   : > { %v469_v26 = vmax.f32 %v390_v24, 0.0  ;;  %v477_v27 = vmax.f32 %v410_v25, 0.0 }
  0xa1   : > { %v501_v28 = vpack.c.bf16 %v469_v26, %v469_v26  ;;  %v509_v29 = vpack.c.bf16 %v477_v27, %v477_v27 }
  0xa3   : > { %534 = vst.msk [vmem:[%s883_s6] sm:$0xf] %vm533_vm1, %v501_v28  ;;  %v429_v30 = vpop.f32.mrf.mxu2  ;;  %v449_v31 = vpop.f32.mrf.mxu3 }
  0xa4   : > { %542 = vst.msk [vmem:[%s883_s6 + $0x20] sm:$0xf] %vm533_vm1, %v509_v29  ;;  %v430_v32 = vadd.f32 %v874_v21, %v429_v30  ;;  %v450_v33 = vadd.f32 %v874_v21, %v449_v31  ;;  %v391_v34 = vpop.f32.mrf.mxu0  ;;  %v411_v35 = vpop.f32.mrf.mxu1 }
  0xa5   : > { %v392_v36 = vadd.f32 %v874_v21, %v391_v34  ;;  %v412_v37 = vadd.f32 %v874_v21, %v411_v35 }
  0xa6   : > { %v485_v38 = vmax.f32 %v430_v32, 0.0  ;;  %v493_v39 = vmax.f32 %v450_v33, 0.0 }
  0xa7   : > { %v470_v40 = vmax.f32 %v392_v36, 0.0  ;;  %v478_v41 = vmax.f32 %v412_v37, 0.0 }
  0xa8   : > { %v517_v42 = vpack.c.bf16 %v485_v38, %v485_v38  ;;  %v525_v43 = vpack.c.bf16 %v493_v39, %v493_v39 }
  0xa9   : > { %v502_v44 = vpack.c.bf16 %v470_v40, %v470_v40  ;;  %v510_v45 = vpack.c.bf16 %v478_v41, %v478_v41 }
  0xaa   : > { %550 = vst.msk [vmem:[%s883_s6 + $0x40] sm:$0xf] %vm533_vm1, %v517_v42 }
  0xab   : > { %558 = vst.msk [vmem:[%s883_s6 + $0x60] sm:$0xf] %vm533_vm1, %v525_v43  ;;  %v431_v46 = vpop.f32.mrf.mxu2  ;;  %v451_v47 = vpop.f32.mrf.mxu3 }
  0xac   : > { %535 = vst.msk [vmem:[%s883_s6 + $0x4] sm:$0xf] %vm533_vm1, %v502_v44  ;;  %v432_v48 = vadd.f32 %v874_v21, %v431_v46  ;;  %v452_v49 = vadd.f32 %v874_v21, %v451_v47  ;;  %v394_v50 = vpop.f32.mrf.mxu0  ;;  %v414_v51 = vpop.f32.mrf.mxu1 }
  0xad   : > { %543 = vst.msk [vmem:[%s883_s6 + $0x24] sm:$0xf] %vm533_vm1, %v510_v45  ;;  %v395_v52 = vadd.f32 %v874_v21, %v394_v50  ;;  %v415_v53 = vadd.f32 %v874_v21, %v414_v51 }
  0xae   : > { %v486_v54 = vmax.f32 %v432_v48, 0.0  ;;  %v494_v55 = vmax.f32 %v452_v49, 0.0 }
  0xaf   : > { %v471_v56 = vmax.f32 %v395_v52, 0.0  ;;  %v479_v57 = vmax.f32 %v415_v53, 0.0 }
  0xb0   : > { %v518_v58 = vpack.c.bf16 %v486_v54, %v486_v54  ;;  %v526_v59 = vpack.c.bf16 %v494_v55, %v494_v55 }
  0xb1   : > { %v503_v60 = vpack.c.bf16 %v471_v56, %v471_v56  ;;  %v511_v61 = vpack.c.bf16 %v479_v57, %v479_v57 }
  0xb2   : > { %551 = vst.msk [vmem:[%s883_s6 + $0x44] sm:$0xf] %vm533_vm1, %v518_v58 }
  0xb3   : > { %559 = vst.msk [vmem:[%s883_s6 + $0x64] sm:$0xf] %vm533_vm1, %v526_v59  ;;  %v434_v62 = vpop.f32.mrf.mxu2  ;;  %v454_v63 = vpop.f32.mrf.mxu3 }
  0xb4   : > { %536 = vst.msk [vmem:[%s883_s6 + $0x8] sm:$0xf] %vm533_vm1, %v503_v60  ;;  %v435_v0 = vadd.f32 %v874_v21, %v434_v62  ;;  %v455_v1 = vadd.f32 %v874_v21, %v454_v63  ;;  %v396_v2 = vpop.f32.mrf.mxu0  ;;  %v416_v3 = vpop.f32.mrf.mxu1 }
  0xb5   : > { %544 = vst.msk [vmem:[%s883_s6 + $0x28] sm:$0xf] %vm533_vm1, %v511_v61  ;;  %v397_v4 = vadd.f32 %v874_v21, %v396_v2  ;;  %v417_v5 = vadd.f32 %v874_v21, %v416_v3 }
  0xb6   : > { %v487_v6 = vmax.f32 %v435_v0, 0.0  ;;  %v495_v7 = vmax.f32 %v455_v1, 0.0 }
  0xb7   : > { %v472_v8 = vmax.f32 %v397_v4, 0.0  ;;  %v480_v9 = vmax.f32 %v417_v5, 0.0 }
  0xb8   : > { %v519_v10 = vpack.c.bf16 %v487_v6, %v487_v6  ;;  %v527_v11 = vpack.c.bf16 %v495_v7, %v495_v7 }
  0xb9   : > { %v504_v12 = vpack.c.bf16 %v472_v8, %v472_v8  ;;  %v512_v13 = vpack.c.bf16 %v480_v9, %v480_v9 }
  0xba   : > { %552 = vst.msk [vmem:[%s883_s6 + $0x48] sm:$0xf] %vm533_vm1, %v519_v10 }
  0xbb   : > { %560 = vst.msk [vmem:[%s883_s6 + $0x68] sm:$0xf] %vm533_vm1, %v527_v11  ;;  %v436_v14 = vpop.f32.mrf.mxu2  ;;  %v456_v15 = vpop.f32.mrf.mxu3 }
  0xbc   : > { %537 = vst.msk [vmem:[%s883_s6 + $0xc] sm:$0xf] %vm533_vm1, %v504_v12  ;;  %v437_v16 = vadd.f32 %v874_v21, %v436_v14  ;;  %v457_v17 = vadd.f32 %v874_v21, %v456_v15  ;;  %v399_v18 = vpop.f32.mrf.mxu0  ;;  %v419_v19 = vpop.f32.mrf.mxu1 }
  0xbd   : > { %545 = vst.msk [vmem:[%s883_s6 + $0x2c] sm:$0xf] %vm533_vm1, %v512_v13  ;;  %v400_v20 = vadd.f32 %v874_v21, %v399_v18  ;;  %v420_v22 = vadd.f32 %v874_v21, %v419_v19 }
  0xbe   : > { %v488_v23 = vmax.f32 %v437_v16, 0.0  ;;  %v496_v24 = vmax.f32 %v457_v17, 0.0 }
  0xbf   : > { %v473_v25 = vmax.f32 %v400_v20, 0.0  ;;  %v481_v26 = vmax.f32 %v420_v22, 0.0 }
  0xc0   : > { %v520_v27 = vpack.c.bf16 %v488_v23, %v488_v23  ;;  %v528_v28 = vpack.c.bf16 %v496_v24, %v496_v24 }
  0xc1   : > { %v505_v29 = vpack.c.bf16 %v473_v25, %v473_v25  ;;  %v513_v30 = vpack.c.bf16 %v481_v26, %v481_v26 }
  0xc2   : > { %553 = vst.msk [vmem:[%s883_s6 + $0x4c] sm:$0xf] %vm533_vm1, %v520_v27 }
  0xc3   : > { %561 = vst.msk [vmem:[%s883_s6 + $0x6c] sm:$0xf] %vm533_vm1, %v528_v28  ;;  %v439_v31 = vpop.f32.mrf.mxu2  ;;  %v459_v32 = vpop.f32.mrf.mxu3 }
  0xc4   : > { %538 = vst.msk [vmem:[%s883_s6 + $0x10] sm:$0xf] %vm533_vm1, %v505_v29  ;;  %v440_v33 = vadd.f32 %v874_v21, %v439_v31  ;;  %v460_v34 = vadd.f32 %v874_v21, %v459_v32  ;;  %v401_v35 = vpop.f32.mrf.mxu0  ;;  %v421_v36 = vpop.f32.mrf.mxu1 }
  0xc5   : > { %546 = vst.msk [vmem:[%s883_s6 + $0x30] sm:$0xf] %vm533_vm1, %v513_v30  ;;  %v402_v37 = vadd.f32 %v874_v21, %v401_v35  ;;  %v422_v38 = vadd.f32 %v874_v21, %v421_v36 }
  0xc6   : > { %v489_v39 = vmax.f32 %v440_v33, 0.0  ;;  %v497_v40 = vmax.f32 %v460_v34, 0.0 }
  0xc7   : > { %v474_v41 = vmax.f32 %v402_v37, 0.0  ;;  %v482_v42 = vmax.f32 %v422_v38, 0.0 }
  0xc8   : > { %v521_v43 = vpack.c.bf16 %v489_v39, %v489_v39  ;;  %v529_v44 = vpack.c.bf16 %v497_v40, %v497_v40 }
  0xc9   : > { %v506_v45 = vpack.c.bf16 %v474_v41, %v474_v41  ;;  %v514_v46 = vpack.c.bf16 %v482_v42, %v482_v42 }
  0xca   : > { %554 = vst.msk [vmem:[%s883_s6 + $0x50] sm:$0xf] %vm533_vm1, %v521_v43 }
  0xcb   : > { %562 = vst.msk [vmem:[%s883_s6 + $0x70] sm:$0xf] %vm533_vm1, %v529_v44  ;;  %v441_v47 = vpop.f32.mrf.mxu2  ;;  %v461_v48 = vpop.f32.mrf.mxu3 }
  0xcc   : > { %539 = vst.msk [vmem:[%s883_s6 + $0x14] sm:$0xf] %vm533_vm1, %v506_v45  ;;  %v442_v49 = vadd.f32 %v874_v21, %v441_v47  ;;  %v462_v50 = vadd.f32 %v874_v21, %v461_v48  ;;  %v404_v51 = vpop.f32.mrf.mxu0  ;;  %v424_v52 = vpop.f32.mrf.mxu1 }
  0xcd   : > { %547 = vst.msk [vmem:[%s883_s6 + $0x34] sm:$0xf] %vm533_vm1, %v514_v46  ;;  %v405_v53 = vadd.f32 %v874_v21, %v404_v51  ;;  %v425_v54 = vadd.f32 %v874_v21, %v424_v52 }
  0xce   : > { %v490_v55 = vmax.f32 %v442_v49, 0.0  ;;  %v498_v56 = vmax.f32 %v462_v50, 0.0 }
  0xcf   : > { %v475_v57 = vmax.f32 %v405_v53, 0.0  ;;  %v483_v58 = vmax.f32 %v425_v54, 0.0 }
  0xd0   : > { %v522_v59 = vpack.c.bf16 %v490_v55, %v490_v55  ;;  %v530_v60 = vpack.c.bf16 %v498_v56, %v498_v56 }
  0xd1   : > { %v507_v61 = vpack.c.bf16 %v475_v57, %v475_v57  ;;  %v515_v62 = vpack.c.bf16 %v483_v58, %v483_v58 }
  0xd2   : > { %555 = vst.msk [vmem:[%s883_s6 + $0x54] sm:$0xf] %vm533_vm1, %v522_v59 }
  0xd3   : > { %563 = vst.msk [vmem:[%s883_s6 + $0x74] sm:$0xf] %vm533_vm1, %v530_v60  ;;  %v444_v63 = vpop.f32.mrf.mxu2  ;;  %v464_v0 = vpop.f32.mrf.mxu3 }
  0xd4   : > { %540 = vst.msk [vmem:[%s883_s6 + $0x18] sm:$0xf] %vm533_vm1, %v507_v61  ;;  %v445_v1 = vadd.f32 %v874_v21, %v444_v63  ;;  %v465_v2 = vadd.f32 %v874_v21, %v464_v0  ;;  %v406_v3 = vpop.f32.mrf.mxu0  ;;  %v426_v4 = vpop.f32.mrf.mxu1 }
  0xd5   : > { %548 = vst.msk [vmem:[%s883_s6 + $0x38] sm:$0xf] %vm533_vm1, %v515_v62  ;;  %v407_v5 = vadd.f32 %v874_v21, %v406_v3  ;;  %v427_v6 = vadd.f32 %v874_v21, %v426_v4 }
  0xd6   : > { %v491_v7 = vmax.f32 %v445_v1, 0.0  ;;  %v499_v8 = vmax.f32 %v465_v2, 0.0 }
  0xd7   : > { %v476_v9 = vmax.f32 %v407_v5, 0.0  ;;  %v484_v10 = vmax.f32 %v427_v6, 0.0 }
  0xd8   : > { %v523_v11 = vpack.c.bf16 %v491_v7, %v491_v7  ;;  %v531_v12 = vpack.c.bf16 %v499_v8, %v499_v8 }
  0xd9   : > { %v508_v13 = vpack.c.bf16 %v476_v9, %v476_v9  ;;  %v516_v14 = vpack.c.bf16 %v484_v10, %v484_v10 }
  0xda   : > { %556 = vst.msk [vmem:[%s883_s6 + $0x58] sm:$0xf] %vm533_vm1, %v523_v11 }
  0xdb   : > { %564 = vst.msk [vmem:[%s883_s6 + $0x78] sm:$0xf] %vm533_vm1, %v531_v12  ;;  %v446_v15 = vpop.f32.mrf.mxu2  ;;  %v466_v16 = vpop.f32.mrf.mxu3 }
  0xdc   : > { %541 = vst.msk [vmem:[%s883_s6 + $0x1c] sm:$0xf] %vm533_vm1, %v508_v13  ;;  %v447_v17 = vadd.f32 %v874_v21, %v446_v15  ;;  %v467_v18 = vadd.f32 %v874_v21, %v466_v16 }
  0xdd   : > { %549 = vst.msk [vmem:[%s883_s6 + $0x3c] sm:$0xf] %vm533_vm1, %v516_v14 }
  0xde   : > { %v492_v19 = vmax.f32 %v447_v17, 0.0  ;;  %v500_v20 = vmax.f32 %v467_v18, 0.0 }
  0xe0   : > { %v524_v22 = vpack.c.bf16 %v492_v19, %v492_v19  ;;  %v532_v23 = vpack.c.bf16 %v500_v20, %v500_v20 }
  0xe2   : > { %557 = vst.msk [vmem:[%s883_s6 + $0x5c] sm:$0xf] %vm533_vm1, %v524_v22 }
  0xe3   : > { %565 = vst.msk [vmem:[%s883_s6 + $0x7c] sm:$0xf] %vm533_vm1, %v532_v23 }
  0xe4 PF: > { %s13_s12 = sadd.s32 1, %s784_s12  }
  0xe5   : > { %p10_p4 = scmp.ge.s32.totalorder %s13_s12, 4  }
  0xe7   :  { %12 = sbr.rel (!%p10_p4) target bundleno = 1 (0x1), region = 62 }

// kernel: slot_attention_reasoning_forward.4
= control target key start
LH: loop header
LB: loop body
LE: loop exit
PB: predicated region body
PF: predicated region fallthrough
CT: control target
= control target key end

     0   :  { %s1512_s12 = smov 0   ;;  %s1830_s0 = inlined_call_operand.vmem [shape: bf16[128,800], index: 0, kind: input, shape index: {}]   ;;  %s1831_s1 = inlined_call_operand.vmem [shape: bf16[800,32], index: 1, kind: input, shape index: {}]   ;;  %s1832_s2 = inlined_call_operand.vmem [shape: f32[1,32], index: 2, kind: input, shape index: {}]   ;;  %s1833_s3 = inlined_call_operand.vmem [shape: bf16[128,32], index: 3, kind: output, shape index: {}]  }
   0x1 LB: > { %s1051_s13 = sadd.s32 4294967295, %s1490_s12   ;;  %p1055_p0 = scmp.ge.s32.totalorder %s1490_s12, 1  ;;  %s1490_s12 = sphi %s1512_s12, %s13_s12  }
   0x2   : > { %p139_p1 = scmp.lt.s32.totalorder %s1490_s12, 3 }
   0x4   : > { %p140_p2 = pnand %p1055_p0, %p139_p1 }
   0x5   : > { %s1056_s5 = sshll.u32 (!%p140_p2), %s1051_s13, 3 }
   0x6   : > { %143 = sbr.rel (%p140_p2) target bundleno = 288 (0x120), region = 32  ;;  %p165_p3 = scmp.lt.s32.totalorder (!%p140_p2), %s1056_s5, 15 }
   0xb   : > { %v1413_v0 = vld [vmem:[%s1831_s1 + $0x38] sm:$0xff]  ;;  %v1412_v3 = vld [vmem:[%s1831_s1 + $0x30] sm:$0xff]  ;;  %v1411_v6 = vld [vmem:[%s1831_s1 + $0x28] sm:$0xff]  ;;  %s1835_s5 = smov (!%p165_p3, %s1056_s5), 15  ;;  %vm754_vm0 = vcmask 261120   ;;  %vm986_vm1 = vcmask 257024  }
   0xc   : > { %v1421_v1 = vld [vmem:[%s1831_s1 + $0x78] sm:$0xff]  ;;  %767 = vmatpush.bf16.msra.mxu0 %v1413_v0  ;;  %1456 = vmatpush.bf16.msra.mxu3 %v1413_v0  ;;  %v1420_v4 = vld [vmem:[%s1831_s1 + $0x70] sm:$0xff]  ;;  %v1419_v7 = vld [vmem:[%s1831_s1 + $0x68] sm:$0xff]  ;;  %s1474_s21 = smul.u32 28, %s1835_s5 }
   0xd   : > { %v1429_v2 = vld [vmem:[%s1831_s1 + $0xb8] sm:$0xff]  ;;  %796 = vmatpush.bf16.msra.mxu1 %v1421_v1  ;;  %v1428_v5 = vld [vmem:[%s1831_s1 + $0xb0] sm:$0xff]  ;;  %v1427_v8 = vld [vmem:[%s1831_s1 + $0xa8] sm:$0xff] }
   0xe   : > { %825 = vmatpush.bf16.msra.mxu2 %v1429_v2  ;;  %v1410_v9 = vld [vmem:[%s1831_s1 + $0x20] sm:$0xff]  ;;  %v1409_v12 = vld [vmem:[%s1831_s1 + $0x18] sm:$0xff]  ;;  %v1408_v15 = vld [vmem:[%s1831_s1 + $0x10] sm:$0xff]  ;;  %s1583_s30 = scalar_lea.vmem %s1830_s0, %s1474_s21 }
   0xf   : > { %v1418_v10 = vld [vmem:[%s1831_s1 + $0x60] sm:$0xff]  ;;  %v1417_v13 = vld [vmem:[%s1831_s1 + $0x58] sm:$0xff]  ;;  %v1416_v16 = vld [vmem:[%s1831_s1 + $0x50] sm:$0xff] }
  0x10   : > { %768 = vmatpush.bf16.msra.mxu0 %v1412_v3  ;;  %1457 = vmatpush.bf16.msra.mxu3 %v1412_v3  ;;  %v1426_v11 = vld [vmem:[%s1831_s1 + $0xa0] sm:$0xff]  ;;  %v1425_v14 = vld [vmem:[%s1831_s1 + $0x98] sm:$0xff]  ;;  %v1424_v17 = vld [vmem:[%s1831_s1 + $0x90] sm:$0xff] }
  0x11   : > { %797 = vmatpush.bf16.msra.mxu1 %v1420_v4  ;;  %v1407_v18 = vld [vmem:[%s1831_s1 + $0x8] sm:$0xff]  ;;  %v1406_v21 = vld [vmem:[%s1831_s1] sm:$0xff]  ;;  %v1381_v25 = vld [vmem:[%s1583_s30 + $0x18] sm:$0xf0] }
  0x12   : > { %826 = vmatpush.bf16.msra.mxu2 %v1428_v5  ;;  %v1415_v19 = vld [vmem:[%s1831_s1 + $0x48] sm:$0xff]  ;;  %v1414_v22 = vld [vmem:[%s1831_s1 + $0x40] sm:$0xff]  ;;  %v1118_v26 = vld [vmem:[%s1583_s30 + $0x70] sm:$0xf] }
  0x13   : > { %v1423_v20 = vld [vmem:[%s1831_s1 + $0x88] sm:$0xff]  ;;  %v1422_v23 = vld [vmem:[%s1831_s1 + $0x80] sm:$0xff]  ;;  %v1437_v32 = vld [vmem:[%s1831_s1 + $0xf8] sm:$0xff] }
  0x14   : > { %769 = vmatpush.bf16.msra.mxu0 %v1411_v6  ;;  %1458 = vmatpush.bf16.msra.mxu3 %v1411_v6  ;;  %v1062_v24 = vld [vmem:[%s1583_s30] sm:$0xf]  ;;  %v1395_v27 = vld [vmem:[%s1583_s30 + $0x88] sm:$0xf0]  ;;  %v1378_v28 = vld [vmem:[%s1583_s30 + $0x4] sm:$0xf] }
  0x15   : > { %798 = vmatpush.bf16.msra.mxu1 %v1419_v7  ;;  %v1064_v29 = vld [vmem:[%s1583_s30 + $0x1c] sm:$0xf0]  ;;  %v1070_v30 = vld [vmem:[%s1583_s30 + $0x8] sm:$0xf]  ;;  %v1382_v31 = vld [vmem:[%s1583_s30 + $0x20] sm:$0xf0]  ;;  %v1063_v34 = vor.u32 %v1381_v25, %v1062_v24  ;;  %v1119_v35 = vor.u32 %v1395_v27, %v1118_v26 }
  0x16   : > { %827 = vmatpush.bf16.msra.mxu2 %v1427_v8  ;;  %v1614_v33 = vld [vmem:[%s1831_s1 + $0x188] sm:$0xff]  ;;  %v1067_v36 = vor.u32 %v1378_v28, %v1064_v29  ;;  %v1071_v37 = vor.u32 %v1382_v31, %v1070_v30  ;;  %v1445_v38 = vld [vmem:[%s1831_s1 + $0x138] sm:$0xff]  ;;  %v1436_v40 = vld [vmem:[%s1831_s1 + $0xf0] sm:$0xff] }
  0x17   : > { %v1622_v39 = vld [vmem:[%s1831_s1 + $0x178] sm:$0xff]  ;;  %v1444_v41 = vld [vmem:[%s1831_s1 + $0x130] sm:$0xff]  ;;  %v1640_v43 = vld [vmem:[%s1831_s1 + $0x180] sm:$0xff] }
  0x18   : > { %770 = vmatpush.bf16.msra.mxu0 %v1410_v9  ;;  %1459 = vmatpush.bf16.msra.mxu3 %v1410_v9  ;;  %v1635_v42 = vld [vmem:[%s1831_s1 + $0x170] sm:$0xff]  ;;  %v1435_v44 = vld [vmem:[%s1831_s1 + $0xe8] sm:$0xff]  ;;  %v1434_v47 = vld [vmem:[%s1831_s1 + $0xe0] sm:$0xff] }
  0x19   : > { %799 = vmatpush.bf16.msra.mxu1 %v1418_v10  ;;  %v1443_v45 = vld [vmem:[%s1831_s1 + $0x128] sm:$0xff]  ;;  %v1442_v48 = vld [vmem:[%s1831_s1 + $0x120] sm:$0xff]  ;;  %v1090_v49 = vld [vmem:[%s1583_s30 + $0x38] sm:$0xf] }
  0x1a   : > { %828 = vmatpush.bf16.msra.mxu2 %v1426_v11  ;;  %v1653_v46 = vld [vmem:[%s1831_s1 + $0x168] sm:$0xff]  ;;  %v1388_v50 = vld [vmem:[%s1583_s30 + $0x50] sm:$0xf0]  ;;  %v1402_v52 = vld [vmem:[%s1583_s30 + $0xc0] sm:$0xf0] }
  0x1b   : > { %v1146_v51 = vld [vmem:[%s1583_s30 + $0xa8] sm:$0xf]  ;;  %v1385_v53 = vld [vmem:[%s1583_s30 + $0x3c] sm:$0xf]  ;;  %v1092_v54 = vld [vmem:[%s1583_s30 + $0x54] sm:$0xf0]  ;;  %v1091_v59 = vor.u32 %v1388_v50, %v1090_v49 }
  0x1c   : > { %771 = vmatpush.bf16.msra.mxu0 %v1409_v12  ;;  %1460 = vmatpush.bf16.msra.mxu3 %v1409_v12  ;;  %v1098_v55 = vld [vmem:[%s1583_s30 + $0x40] sm:$0xf]  ;;  %v1389_v56 = vld [vmem:[%s1583_s30 + $0x58] sm:$0xf0]  ;;  %v1147_v60 = vor.u32 %v1402_v52, %v1146_v51  ;;  %v1095_v61 = vor.u32 %v1385_v53, %v1092_v54  ;;  %v1432_v1 = vld [vmem:[%s1831_s1 + $0xd0] sm:$0xff] }
  0x1d   : > { %800 = vmatpush.bf16.msra.mxu1 %v1417_v13  ;;  %v1673_v57 = vld [vmem:[%s1831_s1 + $0x160] sm:$0xff]  ;;  %v1433_v58 = vld [vmem:[%s1831_s1 + $0xd8] sm:$0xff]  ;;  %v1099_v62 = vor.u32 %v1389_v56, %v1098_v55  ;;  %v1440_v2 = vld [vmem:[%s1831_s1 + $0x110] sm:$0xff] }
  0x1e   : > { %829 = vmatpush.bf16.msra.mxu2 %v1425_v14  ;;  %v1441_v63 = vld [vmem:[%s1831_s1 + $0x118] sm:$0xff]  ;;  %v1448_v3 = vld [vmem:[%s1831_s1 + $0x150] sm:$0xff]  ;;  %v1431_v4 = vld [vmem:[%s1831_s1 + $0xc8] sm:$0xff] }
  0x1f   : > { %v1449_v0 = vld [vmem:[%s1831_s1 + $0x158] sm:$0xff]  ;;  %v1439_v5 = vld [vmem:[%s1831_s1 + $0x108] sm:$0xff]  ;;  %v1430_v7 = vld [vmem:[%s1831_s1 + $0xc0] sm:$0xff] }
  0x20   : > { %772 = vmatpush.bf16.msra.mxu0 %v1408_v15  ;;  %1461 = vmatpush.bf16.msra.mxu3 %v1408_v15  ;;  %v1447_v6 = vld [vmem:[%s1831_s1 + $0x148] sm:$0xff]  ;;  %v1438_v8 = vld [vmem:[%s1831_s1 + $0x100] sm:$0xff]  ;;  %v1392_v9 = vld [vmem:[%s1583_s30 + $0x74] sm:$0xf] }
  0x21   : > { %801 = vmatpush.bf16.msra.mxu1 %v1416_v16  ;;  %v1120_v10 = vld [vmem:[%s1583_s30 + $0x8c] sm:$0xf0]  ;;  %v1379_v11 = vld [vmem:[%s1583_s30 + $0xc] sm:$0xf]  ;;  %v1072_v12 = vld [vmem:[%s1583_s30 + $0x24] sm:$0xf0] }
  0x22   : > { %830 = vmatpush.bf16.msra.mxu2 %v1424_v17  ;;  %v1126_v13 = vld [vmem:[%s1583_s30 + $0x78] sm:$0xf]  ;;  %v1396_v14 = vld [vmem:[%s1583_s30 + $0x90] sm:$0xf0]  ;;  %v1446_v15 = vld [vmem:[%s1831_s1 + $0x140] sm:$0xff] }
  0x23   : > { %v1078_v16 = vld [vmem:[%s1583_s30 + $0x10] sm:$0xf]  ;;  %v1383_v17 = vld [vmem:[%s1583_s30 + $0x28] sm:$0xf0]  ;;  %v1100_v24 = vld [vmem:[%s1583_s30 + $0x5c] sm:$0xf0] }
  0x24   : > { %773 = vmatpush.bf16.msra.mxu0 %v1407_v18  ;;  %1462 = vmatpush.bf16.msra.mxu3 %v1407_v18  ;;  %v1075_v18 = vor.u32 %v1379_v11, %v1072_v12  ;;  %v1148_v25 = vld [vmem:[%s1583_s30 + $0xc4] sm:$0xf0]  ;;  %v1154_v26 = vld [vmem:[%s1583_s30 + $0xb0] sm:$0xf]  ;;  %v1403_v27 = vld [vmem:[%s1583_s30 + $0xc8] sm:$0xf0] }
  0x25   : > { %802 = vmatpush.bf16.msra.mxu1 %v1415_v19  ;;  %v1123_v19 = vor.u32 %v1392_v9, %v1120_v10  ;;  %v1106_v28 = vld [vmem:[%s1583_s30 + $0x48] sm:$0xf]  ;;  %v1390_v29 = vld [vmem:[%s1583_s30 + $0x60] sm:$0xf0]  ;;  %v1136_v49 = vld [vmem:[%s1583_s30 + $0x9c] sm:$0xf0] }
  0x26   : > { %831 = vmatpush.bf16.msra.mxu2 %v1423_v20  ;;  %v1127_v20 = vor.u32 %v1396_v14, %v1126_v13  ;;  %v1114_v50 = vld [vmem:[%s1583_s30 + $0x50] sm:$0xf]  ;;  %v1391_v51 = vld [vmem:[%s1583_s30 + $0x68] sm:$0xf0]  ;;  %v1162_v52 = vld [vmem:[%s1583_s30 + $0xb8] sm:$0xf] }
  0x27   : > { %v1404_v53 = vld [vmem:[%s1583_s30 + $0xd0] sm:$0xf0]  ;;  %v1115_v56 = vor.u32 %v1391_v51, %v1114_v50 }
  0x28   : > { %774 = vmatpush.bf16.msra.mxu0 %v1406_v21  ;;  %1463 = vmatpush.bf16.msra.mxu3 %v1406_v21  ;;  %v1079_v21 = vor.u32 %v1383_v17, %v1078_v16 }
  0x29   : > { %803 = vmatpush.bf16.msra.mxu1 %v1414_v22  ;;  %v1399_v22 = vld [vmem:[%s1583_s30 + $0xac] sm:$0xf] }
  0x2a   : > { %832 = vmatpush.bf16.msra.mxu2 %v1422_v23  ;;  %v1386_v23 = vld [vmem:[%s1583_s30 + $0x44] sm:$0xf]  ;;  %v1151_v31 = vor.u32 %v1399_v22, %v1148_v25 }
  0x2b   : > { %775 = vmatmul.bf16.vlgmr.msra.gmra.mxu0 %v1063_v34  ;;  %785 = vmatmul.bf16.vlgmr.msra.gmra.mxu3 %v1119_v35  ;;  %v1103_v30 = vor.u32 %v1386_v23, %v1100_v24  ;;  %v1393_v34 = vld [vmem:[%s1583_s30 + $0x7c] sm:$0xf]  ;;  %v1128_v35 = vld [vmem:[%s1583_s30 + $0x94] sm:$0xf0] }
  0x2c   : > { %854 = vmatpush.bf16.msrb.mxu3 %v1437_v32  ;;  %804 = vmatmul.bf16.vlgmr.msra.gmra.mxu1 %v1067_v36  ;;  %v1155_v32 = vor.u32 %v1403_v27, %v1154_v26  ;;  %v1387_v36 = vld [vmem:[%s1583_s30 + $0x4c] sm:$0xf] }
  0x2d   : > { %833 = vmatmul.bf16.vlgmr.msra.gmra.mxu2 %v1071_v37  ;;  %883 = vmatpush.bf16.msrb.mxu0 %v1445_v38  ;;  %v1108_v37 = vld [vmem:[%s1583_s30 + $0x64] sm:$0xf0]  ;;  %v1086_v38 = vld [vmem:[%s1583_s30 + $0x18] sm:$0xf] }
  0x2e   : > { %947 = vmatpush.bf16.msrb.mxu2 %v1614_v33  ;;  %1464 = vmatpush.bf16.msrb.mxu1 %v1622_v39 }
  0x30   : > { %855 = vmatpush.bf16.msrb.mxu3 %v1436_v40  ;;  %v1134_v40 = vld [vmem:[%s1583_s30 + $0x80] sm:$0xf] }
  0x31   : > { %884 = vmatpush.bf16.msrb.mxu0 %v1444_v41  ;;  %v1397_v41 = vld [vmem:[%s1583_s30 + $0x98] sm:$0xf0] }
  0x32   : > { %948 = vmatpush.bf16.msrb.mxu2 %v1640_v43  ;;  %1465 = vmatpush.bf16.msrb.mxu1 %v1635_v42 }
  0x34   : > { %856 = vmatpush.bf16.msrb.mxu3 %v1435_v44 }
  0x35   : > { %885 = vmatpush.bf16.msrb.mxu0 %v1443_v45  ;;  %v1135_v45 = vor.u32 %v1397_v41, %v1134_v40 }
  0x36   : > { %1466 = vmatpush.bf16.msrb.mxu1 %v1653_v46 }
  0x38   : > { %857 = vmatpush.bf16.msrb.mxu3 %v1434_v47  ;;  %v1156_v47 = vld [vmem:[%s1583_s30 + $0xcc] sm:$0xf0] }
  0x39   : > { %886 = vmatpush.bf16.msrb.mxu0 %v1442_v48  ;;  %v1394_v48 = vld [vmem:[%s1583_s30 + $0x84] sm:$0xf] }
  0x3a   : > { %1467 = vmatpush.bf16.msrb.mxu1 %v1673_v57  ;;  %v1139_v55 = vor.u32 %v1394_v48, %v1136_v49 }
  0x3b   : > { %780 = vmatmul.bf16.gmra.mxu0 %v1091_v59  ;;  %790 = vmatmul.bf16.gmra.mxu3 %v1147_v60  ;;  %v1170_v59 = vld [vmem:[%s1583_s30 + $0xc0] sm:$0xf]  ;;  %v1405_v60 = vld [vmem:[%s1583_s30 + $0xd8] sm:$0xf0] }
  0x3c   : > { %858 = vmatpush.bf16.msrb.mxu3 %v1433_v58  ;;  %809 = vmatmul.bf16.gmra.mxu1 %v1095_v61  ;;  %v1401_v58 = vld [vmem:[%s1583_s30 + $0xbc] sm:$0xf]  ;;  %v1164_v61 = vld [vmem:[%s1583_s30 + $0xd4] sm:$0xf0] }
  0x3d   : > { %838 = vmatmul.bf16.gmra.mxu2 %v1099_v62  ;;  %887 = vmatpush.bf16.msrb.mxu0 %v1441_v63  ;;  %v1142_v62 = vld [vmem:[%s1583_s30 + $0x88] sm:$0xf]  ;;  %v1398_v63 = vld [vmem:[%s1583_s30 + $0xa0] sm:$0xf0] }
  0x3e   : > { %1468 = vmatpush.bf16.msrb.mxu1 %v1449_v0 }
  0x40   : > { %859 = vmatpush.bf16.msrb.mxu3 %v1432_v1  ;;  %v1080_v1 = vld [vmem:[%s1583_s30 + $0x2c] sm:$0xf0] }
  0x41   : > { %888 = vmatpush.bf16.msrb.mxu0 %v1440_v2  ;;  %v1171_v2 = vor.u32 %v1405_v60, %v1170_v59 }
  0x42   : > { %1469 = vmatpush.bf16.msrb.mxu1 %v1448_v3 }
  0x44   : > { %860 = vmatpush.bf16.msrb.mxu3 %v1431_v4  ;;  %v1143_v4 = vor.u32 %v1398_v63, %v1142_v62 }
  0x45   : > { %889 = vmatpush.bf16.msrb.mxu0 %v1439_v5 }
  0x46   : > { %1470 = vmatpush.bf16.msrb.mxu1 %v1447_v6 }
  0x48   : > { %861 = vmatpush.bf16.msrb.mxu3 %v1430_v7 }
  0x49   : > { %890 = vmatpush.bf16.msrb.mxu0 %v1438_v8 }
  0x4a   : > { %1471 = vmatpush.bf16.msrb.mxu1 %v1446_v15 }
  0x4b   : > { %862 = vmatmul.bf16.vlgmr.msrb.gmra.mxu3 %v1075_v18 }
  0x4c   : > { %1472 = vmatpush.bf16.msra.mxu3 %v1614_v33  ;;  %814 = vmatmul.bf16.gmra.mxu1 %v1123_v19  ;;  %v1107_v33 = vor.u32 %v1390_v29, %v1106_v28 }
  0x4d   : > { %912 = vmatpush.bf16.msra.mxu0 %v1622_v39  ;;  %843 = vmatmul.bf16.gmra.mxu2 %v1127_v20  ;;  %v1384_v39 = vld [vmem:[%s1583_s30 + $0x30] sm:$0xf0] }
  0x4e   : > { %891 = vmatmul.bf16.vlgmr.msrb.gmra.mxu0 %v1079_v21  ;;  %v1087_v44 = vor.u32 %v1384_v39, %v1086_v38 }
  0x50   : > { %1473 = vmatpush.bf16.msra.mxu3 %v1640_v43  ;;  %v1111_v43 = vor.u32 %v1387_v36, %v1108_v37 }
  0x51   : > { %913 = vmatpush.bf16.msra.mxu0 %v1635_v42  ;;  %v1131_v42 = vor.u32 %v1393_v34, %v1128_v35 }
  0x55   : > { %914 = vmatpush.bf16.msra.mxu0 %v1653_v46  ;;  %v1400_v46 = vld [vmem:[%s1583_s30 + $0xb4] sm:$0xf] }
  0x56   : > { %v1159_v54 = vor.u32 %v1400_v46, %v1156_v47 }
  0x59   : > { %915 = vmatpush.bf16.msra.mxu0 %v1673_v57  ;;  %v1163_v57 = vor.u32 %v1404_v53, %v1162_v52 }
  0x5b   : > { %867 = vmatmul.bf16.gmra.mxu3 %v1103_v30 }
  0x5c   : > { %819 = vmatmul.bf16.gmra.mxu1 %v1151_v31 }
  0x5d   : > { %916 = vmatpush.bf16.msra.mxu0 %v1449_v0  ;;  %848 = vmatmul.bf16.gmra.mxu2 %v1155_v32  ;;  %v1380_v0 = vld [vmem:[%s1583_s30 + $0x14] sm:$0xf]  ;;  %s1059_s30 = sshll.u32 %s1835_s5, 2 }
  0x5e   : > { %896 = vmatmul.bf16.gmra.mxu0 %v1107_v33  ;;  %v1083_v5 = vor.u32 %v1380_v0, %v1080_v1  ;;  %s1797_s24 = scalar_lea.vmem %s1833_s3, %s1059_s30 }
  0x61   : > { %917 = vmatpush.bf16.msra.mxu0 %v1448_v3  ;;  %v1167_v3 = vor.u32 %v1401_v58, %v1164_v61 }
  0x65   : > { %918 = vmatpush.bf16.msra.mxu0 %v1447_v6  ;;  %v1765_v6 = vld [vmem:[%s1832_s2] ss:$0 sm:$0xff] }
  0x69   : > { %919 = vmatpush.bf16.msra.mxu0 %v1446_v15 }
  0x6b   : > { %872 = vmatmul.bf16.gmra.mxu3 %v1131_v42 }
  0x6c   : > { %925 = vmatmul.bf16.vlgmr.msrb.gmra.mxu1 %v1111_v43 }
  0x6d   : > { %1372 = vmatmul.msk.bf16.vlgmr.msrb.gmra.mxu2 %vm754_vm0, %v1087_v44 }
  0x6e   : > { %901 = vmatmul.bf16.gmra.mxu0 %v1135_v45 }
  0x7b   : > { %877 = vmatmul.bf16.gmra.mxu3 %v1159_v54 }
  0x7c   : > { %930 = vmatmul.bf16.gmra.mxu1 %v1139_v55 }
  0x7d   : > { %1373 = vmatmul.msk.bf16.gmra.mxu2 %vm754_vm0, %v1115_v56 }
  0x7e   : > { %906 = vmatmul.bf16.gmra.mxu0 %v1163_v57 }
  0x8b   : > { %1375 = vmatmul.msk.bf16.vlgmr.msra.gmra.mxu3 %vm754_vm0, %v1171_v2 }
  0x8c   : > { %935 = vmatmul.bf16.gmra.mxu1 %v1167_v3 }
  0x8d   : > { %1374 = vmatmul.msk.bf16.gmra.mxu2 %vm754_vm0, %v1143_v4 }
  0x8e   : > { %920 = vmatmul.bf16.vlgmr.msra.gmra.mxu0 %v1083_v5 }
  0xa8   : > { %v776_v7 = vpop.f32.mrf.mxu0 }
  0xa9   : > { %v777_v8 = vadd.f32 %v1765_v6, %v776_v7  ;;  %v805_v9 = vpop.f32.mrf.mxu1 }
  0xab   : > { %v806_v10 = vadd.f32 %v805_v9, %v777_v8 }
  0xae   : > { %v786_v11 = vpop.f32.mrf.mxu3 }
  0xaf   : > { %v787_v7 = vadd.f32 %v1765_v6, %v786_v11 }
  0xb0   : > { %v834_v12 = vpop.f32.mrf.mxu2  ;;  %v778_v14 = vpop.f32.mrf.mxu0 }
  0xb1   : > { %v1768_v13 = vadd.f32 %v834_v12, %v806_v10  ;;  %v779_v15 = vadd.f32 %v1765_v6, %v778_v14  ;;  %v807_v16 = vpop.f32.mrf.mxu1 }
  0xb3   : > { %v808_v17 = vadd.f32 %v807_v16, %v779_v15 }
  0xb6   : > { %v1771_v18 = vpop.f32.mrf.mxu3 }
  0xb8   : > { %v836_v19 = vpop.f32.mrf.mxu2  ;;  %v781_v21 = vpop.f32.mrf.mxu0 }
  0xb9   : > { %v1773_v20 = vadd.f32 %v836_v19, %v808_v17  ;;  %v810_v22 = vpop.f32.mrf.mxu1  ;;  %v782_v47 = vadd.f32 %v1765_v6, %v781_v21 }
  0xbb   : > { %v811_v51 = vadd.f32 %v810_v22, %v782_v47 }
  0xbe   : > { %v791_v23 = vpop.f32.mrf.mxu3 }
  0xbf   : > { %v792_v4 = vadd.f32 %v1765_v6, %v791_v23 }
  0xc0   : > { %v839_v24 = vpop.f32.mrf.mxu2  ;;  %v783_v25 = vpop.f32.mrf.mxu0 }
  0xc1   : > { %v812_v26 = vpop.f32.mrf.mxu1  ;;  %v840_v53 = vadd.f32 %v839_v24, %v811_v51  ;;  %v784_v56 = vadd.f32 %v1765_v6, %v783_v25 }
  0xc3   : > { %v813_v60 = vadd.f32 %v812_v26, %v784_v56 }
  0xc6   : > { %v1775_v27 = vpop.f32.mrf.mxu3 }
  0xc7   : > { %v794_v26 = vadd.f32 %v1765_v6, %v1775_v27 }
  0xc8   : > { %v841_v28 = vpop.f32.mrf.mxu2 }
  0xc9   : > { %v815_v29 = vpop.f32.mrf.mxu1  ;;  %v842_v62 = vadd.f32 %v841_v28, %v813_v60 }
  0xca   : > { %v816_v12 = vadd.f32 %v815_v29, %v787_v7  ;;  %v789_v29 = vadd.f32 %v1765_v6, %v1771_v18 }
  0xcb   : > { %v892_v30 = vpop.f32.mrf.mxu0 }
  0xce   : > { %v863_v31 = vpop.f32.mrf.mxu3 }
  0xcf   : > { %v864_v16 = vadd.f32 %v863_v31, %v1768_v13 }
  0xd0   : > { %v844_v32 = vpop.f32.mrf.mxu2 }
  0xd1   : > { %v1777_v33 = vpop.f32.mrf.mxu1  ;;  %v845_v19 = vadd.f32 %v844_v32, %v816_v12  ;;  %v893_v28 = vadd.f32 %v892_v30, %v864_v16 }
  0xd3   : > { %v1779_v34 = vpop.f32.mrf.mxu0 }
  0xd6   : > { %v1781_v35 = vpop.f32.mrf.mxu3 }
  0xd8   : > { %v1783_v36 = vpop.f32.mrf.mxu2 }
  0xd9   : > { %v820_v37 = vpop.f32.mrf.mxu1 }
  0xda   : > { %v821_v10 = vadd.f32 %v820_v37, %v792_v4 }
  0xdb   : > { %v897_v38 = vpop.f32.mrf.mxu0 }
  0xde   : > { %v868_v39 = vpop.f32.mrf.mxu3 }
  0xdf   : > { %v869_v57 = vadd.f32 %v868_v39, %v840_v53 }
  0xe0   : > { %v849_v40 = vpop.f32.mrf.mxu2 }
  0xe1   : > { %v822_v41 = vpop.f32.mrf.mxu1  ;;  %v898_v61 = vadd.f32 %v897_v38, %v869_v57  ;;  %v850_v17 = vadd.f32 %v849_v40, %v821_v10  ;;  %v818_v40 = vadd.f32 %v1777_v33, %v789_v29 }
  0xe2   : > { %v823_v32 = vadd.f32 %v822_v41, %v794_v26 }
  0xe3   : > { %v899_v42 = vpop.f32.mrf.mxu0 }
  0xe6   : > { %v870_v43 = vpop.f32.mrf.mxu3 }
  0xe7   : > { %v871_v2 = vadd.f32 %v870_v43, %v842_v62 }
  0xe8   : > { %v851_v44 = vpop.f32.mrf.mxu2 }
  0xe9   : > { %v926_v45 = vpop.f32.mrf.mxu1  ;;  %v900_v14 = vadd.f32 %v899_v42, %v871_v2  ;;  %v852_v47 = vadd.f32 %v851_v44, %v823_v32 }
  0xea   : > { %v927_v63 = vadd.f32 %v926_v45, %v898_v61  ;;  %v866_v45 = vadd.f32 %v1781_v35, %v1773_v20 }
  0xeb   : > { %v902_v46 = vpop.f32.mrf.mxu0 }
  0xec   : > { %v895_v35 = vadd.f32 %v1779_v34, %v866_v45 }
  0xee   : > { %v873_v48 = vpop.f32.mrf.mxu3 }
  0xef   : > { %v874_v24 = vadd.f32 %v873_v48, %v845_v19  ;;  %v847_v48 = vadd.f32 %v1783_v36, %v818_v40 }
  0xf0   : > { %v950_v49 = vpop.f32.mrf.mxu2 }
  0xf1   : > { %v928_v50 = vpop.f32.mrf.mxu1  ;;  %v903_v42 = vadd.f32 %v902_v46, %v874_v24 }
  0xf2   : > { %v929_v21 = vadd.f32 %v928_v50, %v900_v14 }
  0xf3   : > { %v1786_v52 = vpop.f32.mrf.mxu0 }
  0xf6   : > { %v875_v54 = vpop.f32.mrf.mxu3 }
  0xf7   : > { %v876_v46 = vadd.f32 %v875_v54, %v847_v48 }
  0xf8   : > { %v1788_v55 = vpop.f32.mrf.mxu2 }
  0xf9   : > { %v931_v58 = vpop.f32.mrf.mxu1  ;;  %v905_v60 = vadd.f32 %v1786_v52, %v876_v46 }
  0xfa   : > { %v932_v50 = vadd.f32 %v931_v58, %v903_v42 }
  0xfb   : > { %v907_v59 = vpop.f32.mrf.mxu0 }
  0xfe   : > { %v878_v0 = vpop.f32.mrf.mxu3 }
  0xff   : > { %v879_v22 = vadd.f32 %v878_v0, %v850_v17 }
 0x100   : > { %v955_v1 = vpop.f32.mrf.mxu2 }
 0x101   : > { %v956_v3 = vadd.f32 %v955_v1, %v927_v63  ;;  %v933_v5 = vpop.f32.mrf.mxu1  ;;  %v908_v39 = vadd.f32 %v907_v59, %v879_v22 }
 0x102   : > { %v934_v34 = vadd.f32 %v933_v5, %v905_v60 }
 0x103   : > { %v972_v8 = vmax.f32 %v956_v3, 0.0  ;;  %v909_v9 = vpop.f32.mrf.mxu0 }
 0x105   : > { %v980_v15 = vpack.c.bf16 %v972_v8, %v972_v8 }
 0x106   : > { %v880_v11 = vpop.f32.mrf.mxu3 }
 0x107   : > { %989 = vst.msk [vmem:[%s1797_s24 + $0x8] sm:$0xf] %vm986_vm1, %v980_v15  ;;  %v881_v18 = vadd.f32 %v880_v11, %v852_v47 }
 0x108   : > { %v957_v23 = vpop.f32.mrf.mxu2 }
 0x109   : > { %v958_v25 = vadd.f32 %v957_v23, %v929_v21  ;;  %v936_v37 = vpop.f32.mrf.mxu1  ;;  %v910_v59 = vadd.f32 %v909_v9, %v881_v18 }
 0x10a   : > { %v937_v30 = vadd.f32 %v936_v37, %v908_v39 }
 0x10b   : > { %v973_v13 = vmax.f32 %v958_v25, 0.0  ;;  %v921_v31 = vpop.f32.mrf.mxu0 }
 0x10c   : > { %v922_v38 = vadd.f32 %v921_v31, %v893_v28 }
 0x10d   : > { %v981_v43 = vpack.c.bf16 %v973_v13, %v973_v13 }
 0x10e   : > { %v951_v27 = vadd.f32 %v950_v49, %v922_v38  ;;  %v965_v6 = vpop.f32.mrf.mxu3 }
 0x10f   : > { %990 = vst.msk [vmem:[%s1797_s24 + $0xc] sm:$0xf] %vm986_vm1, %v981_v43  ;;  %v966_v33 = vadd.f32 %v965_v6, %v937_v30 }
 0x110   : > { %v970_v41 = vmax.f32 %v951_v27, 0.0  ;;  %v960_v51 = vpop.f32.mrf.mxu2 }
 0x111   : > { %v961_v53 = vadd.f32 %v960_v51, %v932_v50  ;;  %v976_v20 = vmax.f32 %v966_v33, 0.0  ;;  %v938_v36 = vpop.f32.mrf.mxu1 }
 0x112   : > { %v978_v56 = vpack.c.bf16 %v970_v41, %v970_v41  ;;  %v939_v62 = vadd.f32 %v938_v36, %v910_v59 }
 0x113   : > { %v974_v44 = vmax.f32 %v961_v53, 0.0  ;;  %v923_v49 = vpop.f32.mrf.mxu0  ;;  %v984_v57 = vpack.c.bf16 %v976_v20, %v976_v20 }
 0x114   : > { %987 = vst.msk [vmem:[%s1797_s24] sm:$0xf] %vm986_vm1, %v978_v56  ;;  %v924_v58 = vadd.f32 %v923_v49, %v895_v35 }
 0x115   : > { %v982_v61 = vpack.c.bf16 %v974_v44, %v974_v44  ;;  %993 = vst.msk [vmem:[%s1797_s24 + $0x18] sm:$0xf] %vm986_vm1, %v984_v57 }
 0x116   : > { %v953_v54 = vadd.f32 %v1788_v55, %v924_v58  ;;  %v967_v63 = vpop.f32.mrf.mxu3 }
 0x117   : > { %991 = vst.msk [vmem:[%s1797_s24 + $0x10] sm:$0xf] %vm986_vm1, %v982_v61  ;;  %v968_v2 = vadd.f32 %v967_v63, %v939_v62 }
 0x118   : > { %v971_v0 = vmax.f32 %v953_v54, 0.0  ;;  %v962_v1 = vpop.f32.mrf.mxu2 }
 0x119   : > { %v963_v3 = vadd.f32 %v962_v1, %v934_v34  ;;  %v977_v7 = vmax.f32 %v968_v2, 0.0 }
 0x11a   : > { %v979_v4 = vpack.c.bf16 %v971_v0, %v971_v0 }
 0x11b   : > { %v975_v8 = vmax.f32 %v963_v3, 0.0  ;;  %v985_v52 = vpack.c.bf16 %v977_v7, %v977_v7 }
 0x11c   : > { %988 = vst.msk [vmem:[%s1797_s24 + $0x4] sm:$0xf] %vm986_vm1, %v979_v4 }
 0x11d   : > { %v983_v9 = vpack.c.bf16 %v975_v8, %v975_v8  ;;  %994 = vst.msk [vmem:[%s1797_s24 + $0x1c] sm:$0xf] %vm986_vm1, %v985_v52 }
 0x11f   : > { %992 = vst.msk [vmem:[%s1797_s24 + $0x14] sm:$0xf] %vm986_vm1, %v983_v9 }
 0x120 PF: > { %s13_s12 = sadd.s32 1, %s1490_s12  }
 0x121   : > { %p10_p4 = scmp.ge.s32.totalorder %s13_s12, 4  }
 0x123   :  { %12 = sbr.rel (!%p10_p4) target bundleno = 1 (0x1), region = 62 }

// kernel: slot_attention_reasoning_forward.5
= control target key start
LH: loop header
LB: loop body
LE: loop exit
PB: predicated region body
PF: predicated region fallthrough
CT: control target
= control target key end

     0   :  { %s8455_s0 = inlined_call_operand.vmem [shape: bf16[2,64,32], index: 0, kind: input, shape index: {}]   ;;  %s8456_s1 = inlined_call_operand.vmem [shape: f32[2,8,32], index: 1, kind: input, shape index: {}]   ;;  %s8457_s2 = inlined_call_operand.vmem [shape: bf16[25,16,64], index: 2, kind: input, shape index: {}]   ;;  %s8458_s3 = inlined_call_operand.vmem [shape: bf16[25,32,32], index: 3, kind: input, shape index: {}]   ;;  %s8459_s4 = inlined_call_operand.vmem [shape: bf16[25,16,16], index: 4, kind: input, shape index: {}]   ;;  %s8460_s5 = inlined_call_operand.vmem [shape: bf16[25,32,32], index: 5, kind: input, shape index: {}]   ;;  %s8461_s6 = inlined_call_operand.vmem [shape: bf16[8,32,32], index: 6, kind: input, shape index: {}]   ;;  %s8462_s7 = inlined_call_operand.vmem [shape: bf16[3,32,96], index: 7, kind: input, shape index: {}]   ;;  %s8463_s8 = inlined_call_operand.vmem [shape: f32[18,32], index: 8, kind: input, shape index: {}]   ;;  %s8464_s9 = inlined_call_operand.vmem [shape: f32[3,96], index: 9, kind: input, shape index: {}]   ;;  %s8465_s10 = inlined_call_operand.vmem [shape: f32[3,16,32], index: 10, kind: input, shape index: {}]   ;;  %s8466_s11 = inlined_call_operand.hbm [shape: f32[2,1,4], index: 11, kind: output, shape index: {0}]   ;;  %s8467_s12 = inlined_call_operand.hbm [shape: f32[2,8,8], index: 12, kind: output, shape index: {1}]  }
   0x1   :  { %8468 = sst [smem:[#allocation8_spill]] %s8455_s0 }
   0x2   :  { %8469 = sst [smem:[#allocation9_spill]] %s8457_s2 }
   0x3   :  { %8470 = sst [smem:[#allocation10_spill]] %s8458_s3 }
   0x4   :  { %8471 = sst [smem:[#allocation11_spill]] %s8459_s4 }
   0x5   :  { %18 = vsyncpa [#allocation3], 0 }
   0x6   :  { %20 = vsyncpa [#allocation3 + $0x1], 0 }
   0x7   :  { %21 = vsyncpa [#allocation5], 0 }
   0x8   :  { %23 = vsyncpa [#allocation5 + $0x1], 0  ;;  %s7144_s21 = smov 0   ;;  %s7146_s22 = smov 0  }
   0x9   :  { %s7148_s23 = smov 0   ;;  %s7150_s24 = smov 0  }
   0xa LB: > { %s7165_s25 = sadd.s32 4294967295, %s7071_s24   ;;  %s5439_s26 = sadd.s32 4294967294, %s7071_s24   ;;  %s7071_s24 = sphi %s7150_s24, %s8481_s24   ;;  %s7067_s23 = sphi %s7148_s23, %s8480_s23   ;;  %s7063_s22 = sphi %s7146_s22, %s8479_s22   ;;  %s7059_s21 = sphi %s7144_s21, %s8478_s21  }
   0xb   : > { %s7169_s27 = sadd.s32 1, %s7071_s24   ;;  %s277_s28 = sadd.s32 1, %s7067_s23 }
   0xc   : > { %s274_s29 = ssub.s32 %s7071_s24, %s7169_s27  ;;  %p287_p0 = scmp.ne.s32.totalorder %s7067_s23, %s7063_s22 }
   0xd   : > { %p275_p1 = scmp.eq.s32.totalorder %s274_s29, 0  ;;  %p288_p2 = scmp.eq.s32.totalorder %s7165_s25, 1 }
   0xe   : > { %p293_p3 = scmp.ne.s32.totalorder %s7063_s22, %s7059_s21  ;;  %p294_p4 = scmp.eq.s32.totalorder %s5439_s26, 1 }
   0xf   : > { %s7180_s30 = scalar_select %p275_p1, %s7067_s23, %s277_s28  }
  0x10   : > { %p7182_p5 = por %p288_p2, %p287_p0  ;;  %p7186_p6 = por %p294_p4, %p293_p3 }
  0x11   : > { %p5442_p7 = scmp.ge.s32.totalorder %s7071_s24, 1  ;;  %p380_p8 = scmp.lt.s32.totalorder %s7071_s24, 3 }
  0x13   : > { %p381_p9 = pnand %p5442_p7, %p380_p8 }
  0x14   : > { %p430_p10 = scmp.lt.s32.totalorder (!%p381_p9), %s7165_s25, 1  ;;  %s8474_s0 = sld [smem:[#allocation8_spill]] (!%p381_p9) }
  0x15   : > { %384 = sbr.rel (%p381_p9) target bundleno = 12368 (0x3050), region = 64  ;;  %s8475_s2 = sld [smem:[#allocation9_spill]] (!%p381_p9) }
  0x16   : > { %s8476_s3 = sld [smem:[#allocation10_spill]] (!%p381_p9) }
  0x17   : > { %s8477_s4 = sld [smem:[#allocation11_spill]] (!%p381_p9) }
  0x1a   : > { %s7194_s15 = scalar_select %p430_p10, %s7165_s25, 1  ;;  %vm480_vm0 = vcmask 523264   ;;  %vm546_vm1 = vcmask 261120   ;;  %vm2033_vm2 = vcmask 130048  }
  0x1b   : > { %v6635_v4 = vld [vmem:[%s8475_s2] sm:$0xff]  ;;  %v6638_v5 = vld [vmem:[%s8475_s2 + $0x8] sm:$0xff]  ;;  %v6644_v10 = vld [vmem:[%s8475_s2 + $0x18] sm:$0xff] }
  0x1c   : > { %s6630_s16 = sshll.u32 %s7194_s15, 5  ;;  %v6640_v6 = vld [vmem:[%s8476_s3 + $0x18] sm:$0xff]  ;;  %v6637_v7 = vld [vmem:[%s8476_s3 + $0x8] sm:$0xff]  ;;  %v6639_v8 = vld [vmem:[%s8476_s3 + $0x10] sm:$0xff] }
  0x1d   : > { %s434_s19 = scalar_lea.vmem %s8474_s0, %s6630_s16  ;;  %556 = vmatpush.bf16.msra.mxu2 %v6640_v6  ;;  %585 = vmatpush.bf16.msra.mxu3 %v6637_v7  ;;  %v6636_v9 = vld [vmem:[%s8476_s3] sm:$0xff]  ;;  %v6650_v17 = vld [vmem:[%s8475_s2 + $0x28] sm:$0xff]  ;;  %v6641_v18 = vld [vmem:[%s8475_s2 + $0x10] sm:$0xff] }
  0x1e   : > { %v7200_v0 = vld [vmem:[%s434_s19 + $0x18] sm:$0xff]  ;;  %v7202_v1 = vld [vmem:[%s434_s19 + $0x10] sm:$0xff]  ;;  %v7208_v2 = vld [vmem:[%s434_s19 + $0x8] sm:$0xff] }
  0x1f   : > { %488 = vmatpush.bf16.msra.mxu0 %v7200_v0  ;;  %518 = vmatpush.bf16.msra.mxu1 %v7200_v0  ;;  %v7212_v3 = vld [vmem:[%s434_s19] sm:$0xff]  ;;  %v6656_v19 = vld [vmem:[%s8475_s2 + $0x38] sm:$0xff]  ;;  %v6662_v21 = vld [vmem:[%s8475_s2 + $0x48] sm:$0xff] }
  0x20   : > { %v6647_v20 = vld [vmem:[%s8475_s2 + $0x20] sm:$0xff]  ;;  %v6653_v22 = vld [vmem:[%s8475_s2 + $0x30] sm:$0xff]  ;;  %v6668_v23 = vld [vmem:[%s8475_s2 + $0x58] sm:$0xff] }
  0x21   : > { %557 = vmatpush.bf16.msra.mxu2 %v6639_v8  ;;  %586 = vmatpush.bf16.msra.mxu3 %v6636_v9  ;;  %v6659_v24 = vld [vmem:[%s8475_s2 + $0x40] sm:$0xff]  ;;  %v6674_v25 = vld [vmem:[%s8475_s2 + $0x68] sm:$0xff]  ;;  %v6665_v26 = vld [vmem:[%s8475_s2 + $0x50] sm:$0xff] }
  0x22   : > { %v6680_v27 = vld [vmem:[%s8475_s2 + $0x78] sm:$0xff]  ;;  %v6671_v28 = vld [vmem:[%s8475_s2 + $0x60] sm:$0xff]  ;;  %v6686_v29 = vld [vmem:[%s8475_s2 + $0x88] sm:$0xff] }
  0x23   : > { %489 = vmatpush.bf16.msra.mxu0 %v7202_v1  ;;  %519 = vmatpush.bf16.msra.mxu1 %v7202_v1  ;;  %v6677_v30 = vld [vmem:[%s8475_s2 + $0x70] sm:$0xff]  ;;  %v6643_v31 = vld [vmem:[%s8476_s3 + $0x28] sm:$0xff]  ;;  %v6692_v32 = vld [vmem:[%s8475_s2 + $0x98] sm:$0xff] }
  0x24   : > { %v6642_v34 = vld [vmem:[%s8476_s3 + $0x20] sm:$0xff]  ;;  %v6646_v35 = vld [vmem:[%s8476_s3 + $0x38] sm:$0xff]  ;;  %v6645_v37 = vld [vmem:[%s8476_s3 + $0x30] sm:$0xff] }
  0x25   : > { %608 = vmatpush.bf16.msrb.mxu2 %v7200_v0  ;;  %645 = vmatpush.bf16.msrb.mxu3 %v6643_v31  ;;  %v6683_v36 = vld [vmem:[%s8475_s2 + $0x80] sm:$0xff]  ;;  %v6649_v42 = vld [vmem:[%s8476_s3 + $0x48] sm:$0xff]  ;;  %v6652_v47 = vld [vmem:[%s8476_s3 + $0x58] sm:$0xff] }
  0x26   : > { %v6698_v43 = vld [vmem:[%s8475_s2 + $0xa8] sm:$0xff]  ;;  %v6648_v46 = vld [vmem:[%s8476_s3 + $0x40] sm:$0xff]  ;;  %v6689_v49 = vld [vmem:[%s8475_s2 + $0x90] sm:$0xff] }
  0x27   : > { %490 = vmatpush.bf16.msra.mxu0 %v7208_v2  ;;  %520 = vmatpush.bf16.msra.mxu1 %v7208_v2  ;;  %v6651_v50 = vld [vmem:[%s8476_s3 + $0x50] sm:$0xff]  ;;  %v6704_v54 = vld [vmem:[%s8475_s2 + $0xb8] sm:$0xff]  ;;  %v6655_v58 = vld [vmem:[%s8476_s3 + $0x68] sm:$0xff] }
  0x28   : > { %v6658_v56 = vld [vmem:[%s8476_s3 + $0x78] sm:$0xff]  ;;  %v6695_v60 = vld [vmem:[%s8475_s2 + $0xa0] sm:$0xff]  ;;  %v6657_v61 = vld [vmem:[%s8476_s3 + $0x70] sm:$0xff] }
  0x29   : > { %609 = vmatpush.bf16.msrb.mxu2 %v7202_v1  ;;  %646 = vmatpush.bf16.msrb.mxu3 %v6642_v34  ;;  %v6654_v63 = vld [vmem:[%s8476_s3 + $0x60] sm:$0xff]  ;;  %v6664_v7 = vld [vmem:[%s8476_s3 + $0x98] sm:$0xff]  ;;  %v6661_v9 = vld [vmem:[%s8476_s3 + $0x88] sm:$0xff] }
  0x2a   : > { %v6672_v31 = vld [vmem:[%s8476_s3 + $0xc0] sm:$0xff] }
  0x2b   : > { %491 = vmatpush.bf16.msra.mxu0 %v7212_v3  ;;  %521 = vmatpush.bf16.msra.mxu1 %v7212_v3 }
  0x2d   : > { %610 = vmatpush.bf16.msrb.mxu2 %v7208_v2 }
  0x2e   : > { %5467 = vmatmul.msk.bf16.vlgmr.msra.gmra.mxu0 %vm480_vm0, %v6635_v4  ;;  %5474 = vmatmul.msk.bf16.vlgmr.msra.gmra.mxu1 %vm480_vm0, %v6638_v5 }
  0x2f   : > { %670 = vmatpush.bf16.msrb.mxu0 %v7200_v0  ;;  %707 = vmatpush.bf16.msrb.mxu1 %v6646_v35  ;;  %v6682_v35 = vld [vmem:[%s8476_s3 + $0xf8] sm:$0xff] }
  0x31   : > { %611 = vmatpush.bf16.msrb.mxu2 %v7212_v3 }
  0x33   : > { %671 = vmatpush.bf16.msrb.mxu0 %v7202_v1  ;;  %708 = vmatpush.bf16.msrb.mxu1 %v6645_v37  ;;  %v6679_v37 = vld [vmem:[%s8476_s3 + $0xe8] sm:$0xff] }
  0x37   : > { %672 = vmatpush.bf16.msrb.mxu0 %v7208_v2  ;;  %831 = vmatpush.bf16.msra.mxu1 %v6652_v47 }
  0x3b   : > { %673 = vmatpush.bf16.msrb.mxu0 %v7212_v3  ;;  %832 = vmatpush.bf16.msra.mxu1 %v6651_v50 }
  0x3e   : > { %5523 = vmatmul.msk.bf16.vlgmr.msrb.gmra.mxu0 %vm480_vm0, %v6644_v10  ;;  %v6701_v10 = vld [vmem:[%s8475_s2 + $0xb0] sm:$0xff] }
  0x3f   : > { %794 = vmatpush.bf16.msra.mxu0 %v7200_v0 }
  0x43   : > { %795 = vmatpush.bf16.msra.mxu0 %v7202_v1 }
  0x47   : > { %796 = vmatpush.bf16.msra.mxu0 %v7208_v2 }
  0x4b   : > { %797 = vmatpush.bf16.msra.mxu0 %v7212_v3 }
  0x4e   : > { %5563 = vmatmul.msk.bf16.vlgmr.msra.gmra.mxu0 %vm480_vm0, %v6650_v17 }
  0x4f   : > { %918 = vmatpush.bf16.msrb.mxu0 %v7200_v0 }
  0x53   : > { %919 = vmatpush.bf16.msrb.mxu0 %v7202_v1 }
  0x57   : > { %920 = vmatpush.bf16.msrb.mxu0 %v7208_v2 }
  0x5b   : > { %921 = vmatpush.bf16.msrb.mxu0 %v7212_v3 }
  0x5e   : > { %5603 = vmatmul.msk.bf16.vlgmr.msrb.gmra.mxu0 %vm480_vm0, %v6656_v19  ;;  %v6669_v19 = vld [vmem:[%s8476_s3 + $0xb0] sm:$0xff] }
  0x5f   : > { %1042 = vmatpush.bf16.msra.mxu0 %v7200_v0 }
  0x63   : > { %1043 = vmatpush.bf16.msra.mxu0 %v7202_v1 }
  0x67   : > { %1044 = vmatpush.bf16.msra.mxu0 %v7208_v2 }
  0x6b   : > { %1045 = vmatpush.bf16.msra.mxu0 %v7212_v3 }
  0x6e   : > { %5643 = vmatmul.msk.bf16.vlgmr.msra.gmra.mxu0 %vm480_vm0, %v6662_v21  ;;  %v6666_v21 = vld [vmem:[%s8476_s3 + $0xa0] sm:$0xff] }
  0x6f   : > { %1166 = vmatpush.bf16.msrb.mxu0 %v7200_v0 }
  0x73   : > { %1167 = vmatpush.bf16.msrb.mxu0 %v7202_v1 }
  0x77   : > { %1168 = vmatpush.bf16.msrb.mxu0 %v7208_v2 }
  0x7b   : > { %1169 = vmatpush.bf16.msrb.mxu0 %v7212_v3 }
  0x7e   : > { %5683 = vmatmul.msk.bf16.vlgmr.msrb.gmra.mxu0 %vm480_vm0, %v6668_v23 }
  0x7f   : > { %1290 = vmatpush.bf16.msra.mxu0 %v7200_v0 }
  0x83   : > { %1291 = vmatpush.bf16.msra.mxu0 %v7202_v1 }
  0x87   : > { %1292 = vmatpush.bf16.msra.mxu0 %v7208_v2 }
  0x8b   : > { %1293 = vmatpush.bf16.msra.mxu0 %v7212_v3 }
  0x8e   : > { %5723 = vmatmul.msk.bf16.vlgmr.msra.gmra.mxu0 %vm480_vm0, %v6674_v25  ;;  %v6676_v25 = vld [vmem:[%s8476_s3 + $0xd8] sm:$0xff] }
  0x8f   : > { %1414 = vmatpush.bf16.msrb.mxu0 %v7200_v0 }
  0x93   : > { %1415 = vmatpush.bf16.msrb.mxu0 %v7202_v1 }
  0x97   : > { %1416 = vmatpush.bf16.msrb.mxu0 %v7208_v2 }
  0x9b   : > { %1417 = vmatpush.bf16.msrb.mxu0 %v7212_v3 }
  0x9e   : > { %5763 = vmatmul.msk.bf16.vlgmr.msrb.gmra.mxu0 %vm480_vm0, %v6680_v27  ;;  %v6673_v27 = vld [vmem:[%s8476_s3 + $0xc8] sm:$0xff] }
  0x9f   : > { %1538 = vmatpush.bf16.msra.mxu0 %v7200_v0 }
  0xa3   : > { %1539 = vmatpush.bf16.msra.mxu0 %v7202_v1 }
  0xa7   : > { %1540 = vmatpush.bf16.msra.mxu0 %v7208_v2 }
  0xab   : > { %v493_v11 = vpop.f32.mrf.mxu0  ;;  %v523_v12 = vpop.f32.mrf.mxu1  ;;  %1541 = vmatpush.bf16.msra.mxu0 %v7212_v3 }
  0xae   : > { %5803 = vmatmul.msk.bf16.vlgmr.msra.gmra.mxu0 %vm480_vm0, %v6686_v29  ;;  %v6675_v29 = vld [vmem:[%s8476_s3 + $0xd0] sm:$0xff] }
  0xaf   : > { %1662 = vmatpush.bf16.msrb.mxu0 %v7200_v0 }
  0xb3   : > { %v495_v13 = vpop.f32.mrf.mxu0  ;;  %v525_v14 = vpop.f32.mrf.mxu1  ;;  %1663 = vmatpush.bf16.msrb.mxu0 %v7202_v1 }
  0xb4   : > { %v502_v15 = vpack.c.bf16 %v495_v13, %v493_v11  ;;  %v533_v16 = vpack.c.bf16 %v525_v14, %v523_v12  ;;  %v6660_v11 = vld [vmem:[%s8476_s3 + $0x80] sm:$0xff]  ;;  %v6670_v14 = vld [vmem:[%s8476_s3 + $0xb8] sm:$0xff] }
  0xb6   : > { %5487 = vmatmul.msk.bf16.vlgmr.msra.gmra.mxu2 %vm546_vm1, %v533_v16  ;;  %5496 = vmatmul.msk.bf16.vlgmr.msra.gmra.mxu3 %vm546_vm1, %v502_v15  ;;  %v6667_v16 = vld [vmem:[%s8476_s3 + $0xa8] sm:$0xff] }
  0xb7   : > { %732 = vmatpush.bf16.msra.mxu2 %v7200_v0  ;;  %1664 = vmatpush.bf16.msrb.mxu0 %v7208_v2 }
  0xb8   : > { %769 = vmatpush.bf16.msra.mxu3 %v6649_v42 }
  0xbb   : > { %733 = vmatpush.bf16.msra.mxu2 %v7202_v1  ;;  %1665 = vmatpush.bf16.msrb.mxu0 %v7212_v3  ;;  %v675_v33 = vpop.f32.mrf.mxu0 }
  0xbc   : > { %770 = vmatpush.bf16.msra.mxu3 %v6648_v46  ;;  %v6688_v46 = vld [vmem:[%s8476_s3 + $0x118] sm:$0xff] }
  0xbe   : > { %5843 = vmatmul.msk.bf16.vlgmr.msrb.gmra.mxu0 %vm480_vm0, %v6692_v32 }
  0xbf   : > { %734 = vmatpush.bf16.msra.mxu2 %v7208_v2  ;;  %1786 = vmatpush.bf16.msra.mxu0 %v7200_v0 }
  0xc3   : > { %735 = vmatpush.bf16.msra.mxu2 %v7212_v3  ;;  %1787 = vmatpush.bf16.msra.mxu0 %v7202_v1  ;;  %v677_v38 = vpop.f32.mrf.mxu0 }
  0xc4   : > { %v685_v39 = vpack.c.bf16 %v677_v38, %v675_v33 }
  0xc6   : > { %5503 = vmatmul.msk.bf16.vlgmr.msrb.gmra.mxu2 %vm480_vm0, %v6641_v18  ;;  %5536 = vmatmul.msk.bf16.vlgmr.msrb.gmra.mxu1 %vm546_vm1, %v685_v39  ;;  %v6707_v18 = vld [vmem:[%s8475_s2 + $0xc0] sm:$0xff]  ;;  %v6681_v39 = vld [vmem:[%s8476_s3 + $0xf0] sm:$0xff] }
  0xc7   : > { %856 = vmatpush.bf16.msrb.mxu2 %v7200_v0  ;;  %1788 = vmatpush.bf16.msra.mxu0 %v7208_v2 }
  0xc8   : > { %955 = vmatpush.bf16.msrb.mxu1 %v6658_v56 }
  0xcb   : > { %857 = vmatpush.bf16.msrb.mxu2 %v7202_v1  ;;  %1789 = vmatpush.bf16.msra.mxu0 %v7212_v3  ;;  %v799_v45 = vpop.f32.mrf.mxu0 }
  0xcc   : > { %956 = vmatpush.bf16.msrb.mxu1 %v6657_v61  ;;  %v6693_v61 = vld [vmem:[%s8476_s3 + $0x130] sm:$0xff] }
  0xce   : > { %5883 = vmatmul.msk.bf16.vlgmr.msra.gmra.mxu0 %vm480_vm0, %v6698_v43 }
  0xcf   : > { %858 = vmatpush.bf16.msrb.mxu2 %v7208_v2  ;;  %1910 = vmatpush.bf16.msrb.mxu0 %v7200_v0 }
  0xd3   : > { %859 = vmatpush.bf16.msrb.mxu2 %v7212_v3  ;;  %1911 = vmatpush.bf16.msrb.mxu0 %v7202_v1  ;;  %v801_v51 = vpop.f32.mrf.mxu0 }
  0xd4   : > { %v809_v52 = vpack.c.bf16 %v801_v51, %v799_v45  ;;  %v6687_v51 = vld [vmem:[%s8476_s3 + $0x110] sm:$0xff] }
  0xd6   : > { %5543 = vmatmul.msk.bf16.vlgmr.msra.gmra.mxu2 %vm480_vm0, %v6647_v20  ;;  %5576 = vmatmul.msk.bf16.vlgmr.msra.gmra.mxu1 %vm546_vm1, %v809_v52 }
  0xd7   : > { %980 = vmatpush.bf16.msra.mxu2 %v7200_v0  ;;  %1912 = vmatpush.bf16.msrb.mxu0 %v7208_v2 }
  0xd8   : > { %1079 = vmatpush.bf16.msra.mxu1 %v6664_v7 }
  0xdb   : > { %981 = vmatpush.bf16.msra.mxu2 %v7202_v1  ;;  %1913 = vmatpush.bf16.msrb.mxu0 %v7212_v3  ;;  %v923_v55 = vpop.f32.mrf.mxu0 }
  0xde   : > { %5923 = vmatmul.msk.bf16.vlgmr.msrb.gmra.mxu0 %vm480_vm0, %v6704_v54 }
  0xdf   : > { %982 = vmatpush.bf16.msra.mxu2 %v7208_v2 }
  0xe3   : > { %983 = vmatpush.bf16.msra.mxu2 %v7212_v3  ;;  %v925_v62 = vpop.f32.mrf.mxu0 }
  0xe4   : > { %v933_v4 = vpack.c.bf16 %v925_v62, %v923_v55 }
  0xe6   : > { %5583 = vmatmul.msk.bf16.vlgmr.msrb.gmra.mxu2 %vm480_vm0, %v6653_v22  ;;  %5616 = vmatmul.msk.bf16.vlgmr.msrb.gmra.mxu1 %vm546_vm1, %v933_v4 }
  0xe7   : > { %1104 = vmatpush.bf16.msrb.mxu2 %v7200_v0 }
  0xeb   : > { %1105 = vmatpush.bf16.msrb.mxu2 %v7202_v1  ;;  %v1047_v6 = vpop.f32.mrf.mxu0 }
  0xef   : > { %1106 = vmatpush.bf16.msrb.mxu2 %v7208_v2 }
  0xf3   : > { %1107 = vmatpush.bf16.msrb.mxu2 %v7212_v3 }
  0xf6   : > { %5623 = vmatmul.msk.bf16.vlgmr.msra.gmra.mxu2 %vm480_vm0, %v6659_v24 }
  0xf7   : > { %1228 = vmatpush.bf16.msra.mxu2 %v7200_v0 }
  0xfb   : > { %1229 = vmatpush.bf16.msra.mxu2 %v7202_v1 }
  0xff   : > { %1230 = vmatpush.bf16.msra.mxu2 %v7208_v2 }
 0x103   : > { %1231 = vmatpush.bf16.msra.mxu2 %v7212_v3 }
 0x106   : > { %5663 = vmatmul.msk.bf16.vlgmr.msrb.gmra.mxu2 %vm480_vm0, %v6665_v26 }
 0x107   : > { %1352 = vmatpush.bf16.msrb.mxu2 %v7200_v0 }
 0x10b   : > { %1353 = vmatpush.bf16.msrb.mxu2 %v7202_v1 }
 0x10f   : > { %1354 = vmatpush.bf16.msrb.mxu2 %v7208_v2 }
 0x113   : > { %1355 = vmatpush.bf16.msrb.mxu2 %v7212_v3 }
 0x116   : > { %5703 = vmatmul.msk.bf16.vlgmr.msra.gmra.mxu2 %vm480_vm0, %v6671_v28 }
 0x117   : > { %1476 = vmatpush.bf16.msra.mxu2 %v7200_v0 }
 0x11b   : > { %1477 = vmatpush.bf16.msra.mxu2 %v7202_v1 }
 0x11f   : > { %1478 = vmatpush.bf16.msra.mxu2 %v7208_v2 }
 0x123   : > { %1479 = vmatpush.bf16.msra.mxu2 %v7212_v3 }
 0x126   : > { %5743 = vmatmul.msk.bf16.vlgmr.msrb.gmra.mxu2 %vm480_vm0, %v6677_v30 }
 0x127   : > { %1600 = vmatpush.bf16.msrb.mxu2 %v7200_v0 }
 0x12b   : > { %1601 = vmatpush.bf16.msrb.mxu2 %v7202_v1 }
 0x12f   : > { %1602 = vmatpush.bf16.msrb.mxu2 %v7208_v2 }
 0x133   : > { %1603 = vmatpush.bf16.msrb.mxu2 %v7212_v3 }
 0x136   : > { %5783 = vmatmul.msk.bf16.vlgmr.msra.gmra.mxu2 %vm480_vm0, %v6683_v36 }
 0x137   : > { %1724 = vmatpush.bf16.msra.mxu2 %v7200_v0 }
 0x139   : > { %v559_v40 = vpop.f32.mrf.mxu2  ;;  %v588_v41 = vpop.f32.mrf.mxu3 }
 0x13a   : > { %v7405_v44 = vadd.f32 %v588_v41, %v559_v40  ;;  %v6678_v41 = vld [vmem:[%s8476_s3 + $0xe0] sm:$0xff] }
 0x13b   : > { %1725 = vmatpush.bf16.msra.mxu2 %v7202_v1 }
 0x13f   : > { %1726 = vmatpush.bf16.msra.mxu2 %v7208_v2 }
 0x141   : > { %v7417_v48 = vpop.f32.mrf.mxu2 }
 0x143   : > { %1727 = vmatpush.bf16.msra.mxu2 %v7212_v3 }
 0x146   : > { %5823 = vmatmul.msk.bf16.vlgmr.msrb.gmra.mxu2 %vm480_vm0, %v6689_v49  ;;  %v6685_v49 = vld [vmem:[%s8476_s3 + $0x108] sm:$0xff] }
 0x147   : > { %1848 = vmatpush.bf16.msrb.mxu2 %v7200_v0 }
 0x149   : > { %v613_v53 = vpop.f32.mrf.mxu2 }
 0x14b   : > { %1849 = vmatpush.bf16.msrb.mxu2 %v7202_v1 }
 0x14f   : > { %1850 = vmatpush.bf16.msrb.mxu2 %v7208_v2 }
 0x151   : > { %v615_v57 = vpop.f32.mrf.mxu2 }
 0x152   : > { %v623_v59 = vpack.c.bf16 %v615_v57, %v613_v53  ;;  %v6684_v53 = vld [vmem:[%s8476_s3 + $0x100] sm:$0xff]  ;;  %v6694_v57 = vld [vmem:[%s8476_s3 + $0x138] sm:$0xff] }
 0x153   : > { %1851 = vmatpush.bf16.msrb.mxu2 %v7212_v3 }
 0x154   : > { %5516 = vmatmul.msk.bf16.vlgmr.msrb.gmra.mxu3 %vm546_vm1, %v623_v59  ;;  %v6691_v59 = vld [vmem:[%s8476_s3 + $0x128] sm:$0xff] }
 0x155   : > { %893 = vmatpush.bf16.msrb.mxu3 %v6655_v58 }
 0x156   : > { %5863 = vmatmul.msk.bf16.vlgmr.msra.gmra.mxu2 %vm480_vm0, %v6695_v60 }
 0x157   : > { %1972 = vmatpush.bf16.msra.mxu2 %v7200_v0 }
 0x159   : > { %v737_v5 = vpop.f32.mrf.mxu2  ;;  %894 = vmatpush.bf16.msrb.mxu3 %v6654_v63  ;;  %v6690_v63 = vld [vmem:[%s8476_s3 + $0x120] sm:$0xff] }
 0x15b   : > { %1973 = vmatpush.bf16.msra.mxu2 %v7202_v1  ;;  %v6663_v1 = vld [vmem:[%s8476_s3 + $0x90] sm:$0xff] }
 0x15c   : > { %1080 = vmatpush.bf16.msra.mxu1 %v6663_v1  ;;  %v6699_v1 = vld [vmem:[%s8476_s3 + $0x150] sm:$0xff] }
 0x15f   : > { %1974 = vmatpush.bf16.msra.mxu2 %v7208_v2  ;;  %v1049_v2 = vpop.f32.mrf.mxu0 }
 0x160   : > { %v1057_v12 = vpack.c.bf16 %v1049_v2, %v1047_v6  ;;  %1203 = vmatpush.bf16.msrb.mxu1 %v6670_v14  ;;  %v710_v6 = vpop.f32.mrf.mxu1 }
 0x161   : > { %v739_v8 = vpop.f32.mrf.mxu2 }
 0x162   : > { %v747_v0 = vpack.c.bf16 %v739_v8, %v737_v5  ;;  %5656 = vmatmul.msk.bf16.vlgmr.msra.gmra.mxu1 %vm546_vm1, %v1057_v12  ;;  %v6700_v8 = vld [vmem:[%s8476_s3 + $0x158] sm:$0xff]  ;;  %v6696_v12 = vld [vmem:[%s8476_s3 + $0x140] sm:$0xff] }
 0x163   : > { %1975 = vmatpush.bf16.msra.mxu2 %v7212_v3 }
 0x164   : > { %5556 = vmatmul.msk.bf16.vlgmr.msra.gmra.mxu3 %vm546_vm1, %v747_v0  ;;  %1204 = vmatpush.bf16.msrb.mxu1 %v6669_v19  ;;  %v6697_v0 = vld [vmem:[%s8476_s3 + $0x148] sm:$0xff] }
 0x165   : > { %1017 = vmatpush.bf16.msra.mxu3 %v6661_v9  ;;  %v6703_v19 = vld [vmem:[%s8476_s3 + $0x168] sm:$0xff] }
 0x166   : > { %5903 = vmatmul.msk.bf16.vlgmr.msrb.gmra.mxu2 %vm480_vm0, %v6701_v10 }
 0x167   : > { %v1171_v3 = vpop.f32.mrf.mxu0 }
 0x168   : > { %1327 = vmatpush.bf16.msra.mxu1 %v6676_v25 }
 0x169   : > { %v861_v13 = vpop.f32.mrf.mxu2  ;;  %1018 = vmatpush.bf16.msra.mxu3 %v6660_v11  ;;  %v7560_v11 = vpop.f32.mrf.mxu1 }
 0x16c   : > { %1328 = vmatpush.bf16.msra.mxu1 %v6675_v29 }
 0x16f   : > { %v1173_v20 = vpop.f32.mrf.mxu0 }
 0x170   : > { %v1181_v22 = vpack.c.bf16 %v1173_v20, %v1171_v3 }
 0x171   : > { %v863_v15 = vpop.f32.mrf.mxu2 }
 0x172   : > { %v871_v17 = vpack.c.bf16 %v863_v15, %v861_v13  ;;  %5696 = vmatmul.msk.bf16.vlgmr.msrb.gmra.mxu1 %vm546_vm1, %v1181_v22  ;;  %v7566_v15 = vpop.f32.mrf.mxu3 }
 0x173   : > { %1451 = vmatpush.bf16.msrb.mxu1 %v6682_v35 }
 0x174   : > { %5596 = vmatmul.msk.bf16.vlgmr.msrb.gmra.mxu3 %vm546_vm1, %v871_v17  ;;  %v6706_v17 = vld [vmem:[%s8476_s3 + $0x178] sm:$0xff] }
 0x175   : > { %1141 = vmatpush.bf16.msrb.mxu3 %v6667_v16  ;;  %v834_v16 = vpop.f32.mrf.mxu1 }
 0x176   : > { %5943 = vmatmul.msk.bf16.vlgmr.msra.gmra.mxu2 %vm480_vm0, %v6707_v18 }
 0x177   : > { %v1295_v24 = vpop.f32.mrf.mxu0  ;;  %1452 = vmatpush.bf16.msrb.mxu1 %v6681_v39 }
 0x179   : > { %v985_v23 = vpop.f32.mrf.mxu2  ;;  %1142 = vmatpush.bf16.msrb.mxu3 %v6666_v21  ;;  %v6705_v21 = vld [vmem:[%s8476_s3 + $0x170] sm:$0xff] }
 0x17f   : > { %v1297_v30 = vpop.f32.mrf.mxu0 }
 0x180   : > { %v1305_v32 = vpack.c.bf16 %v1297_v30, %v1295_v24 }
 0x181   : > { %v987_v26 = vpop.f32.mrf.mxu2 }
 0x182   : > { %v995_v28 = vpack.c.bf16 %v987_v26, %v985_v23  ;;  %5736 = vmatmul.msk.bf16.vlgmr.msra.gmra.mxu1 %vm546_vm1, %v1305_v32  ;;  %v6702_v23 = vld [vmem:[%s8476_s3 + $0x160] sm:$0xff]  ;;  %v6709_v32 = vld [vmem:[%s8476_s3 + $0x188] sm:$0xff] }
 0x183   : > { %1575 = vmatpush.bf16.msra.mxu1 %v6688_v46 }
 0x184   : > { %5636 = vmatmul.msk.bf16.vlgmr.msra.gmra.mxu3 %vm546_vm1, %v995_v28  ;;  %v836_v28 = vpop.f32.mrf.mxu1 }
 0x185   : > { %1265 = vmatpush.bf16.msra.mxu3 %v6673_v27 }
 0x187   : > { %v1419_v34 = vpop.f32.mrf.mxu0  ;;  %1576 = vmatpush.bf16.msra.mxu1 %v6687_v51 }
 0x189   : > { %v1109_v33 = vpop.f32.mrf.mxu2  ;;  %1266 = vmatpush.bf16.msra.mxu3 %v6672_v31 }
 0x18f   : > { %v1421_v40 = vpop.f32.mrf.mxu0 }
 0x190   : > { %v1429_v42 = vpack.c.bf16 %v1421_v40, %v1419_v34  ;;  %v958_v34 = vpop.f32.mrf.mxu1 }
 0x191   : > { %v1111_v36 = vpop.f32.mrf.mxu2 }
 0x192   : > { %v1119_v38 = vpack.c.bf16 %v1111_v36, %v1109_v33  ;;  %5776 = vmatmul.msk.bf16.vlgmr.msrb.gmra.mxu1 %vm546_vm1, %v1429_v42 }
 0x193   : > { %1699 = vmatpush.bf16.msrb.mxu1 %v6694_v57 }
 0x194   : > { %5676 = vmatmul.msk.bf16.vlgmr.msrb.gmra.mxu3 %vm546_vm1, %v1119_v38 }
 0x195   : > { %1389 = vmatpush.bf16.msrb.mxu3 %v6679_v37 }
 0x197   : > { %v1543_v45 = vpop.f32.mrf.mxu0  ;;  %1700 = vmatpush.bf16.msrb.mxu1 %v6693_v61 }
 0x198   : > { %v960_v39 = vpop.f32.mrf.mxu1 }
 0x199   : > { %v1233_v43 = vpop.f32.mrf.mxu2  ;;  %1390 = vmatpush.bf16.msrb.mxu3 %v6678_v41 }
 0x19f   : > { %v1545_v52 = vpop.f32.mrf.mxu0 }
 0x1a0   : > { %v1553_v54 = vpack.c.bf16 %v1545_v52, %v1543_v45 }
 0x1a1   : > { %v1235_v47 = vpop.f32.mrf.mxu2 }
 0x1a2   : > { %v1243_v50 = vpack.c.bf16 %v1235_v47, %v1233_v43  ;;  %5816 = vmatmul.msk.bf16.vlgmr.msra.gmra.mxu1 %vm546_vm1, %v1553_v54 }
 0x1a3   : > { %1823 = vmatpush.bf16.msra.mxu1 %v6700_v8 }
 0x1a4   : > { %5716 = vmatmul.msk.bf16.vlgmr.msra.gmra.mxu3 %vm546_vm1, %v1243_v50 }
 0x1a5   : > { %1513 = vmatpush.bf16.msra.mxu3 %v6685_v49 }
 0x1a7   : > { %v1667_v56 = vpop.f32.mrf.mxu0  ;;  %1824 = vmatpush.bf16.msra.mxu1 %v6699_v1 }
 0x1a9   : > { %v1357_v55 = vpop.f32.mrf.mxu2  ;;  %1514 = vmatpush.bf16.msra.mxu3 %v6684_v53 }
 0x1af   : > { %v1669_v62 = vpop.f32.mrf.mxu0 }
 0x1b0   : > { %v1677_v4 = vpack.c.bf16 %v1669_v62, %v1667_v56 }
 0x1b1   : > { %v1359_v58 = vpop.f32.mrf.mxu2 }
 0x1b2   : > { %v1367_v60 = vpack.c.bf16 %v1359_v58, %v1357_v55  ;;  %5856 = vmatmul.msk.bf16.vlgmr.msrb.gmra.mxu1 %vm546_vm1, %v1677_v4 }
 0x1b3   : > { %1947 = vmatpush.bf16.msrb.mxu1 %v6706_v17 }
 0x1b4   : > { %5756 = vmatmul.msk.bf16.vlgmr.msrb.gmra.mxu3 %vm546_vm1, %v1367_v60 }
 0x1b5   : > { %1637 = vmatpush.bf16.msrb.mxu3 %v6691_v59 }
 0x1b7   : > { %v1791_v7 = vpop.f32.mrf.mxu0  ;;  %1948 = vmatpush.bf16.msrb.mxu1 %v6705_v21 }
 0x1b9   : > { %v1481_v5 = vpop.f32.mrf.mxu2  ;;  %1638 = vmatpush.bf16.msrb.mxu3 %v6690_v63 }
 0x1bf   : > { %v1793_v2 = vpop.f32.mrf.mxu0 }
 0x1c0   : > { %v1801_v13 = vpack.c.bf16 %v1793_v2, %v1791_v7 }
 0x1c1   : > { %v1483_v9 = vpop.f32.mrf.mxu2 }
 0x1c2   : > { %v1491_v10 = vpack.c.bf16 %v1483_v9, %v1481_v5  ;;  %5896 = vmatmul.msk.bf16.vlgmr.msra.gmra.mxu1 %vm546_vm1, %v1801_v13 }
 0x1c4   : > { %5796 = vmatmul.msk.bf16.vlgmr.msra.gmra.mxu3 %vm546_vm1, %v1491_v10 }
 0x1c5   : > { %1761 = vmatpush.bf16.msra.mxu3 %v6697_v0 }
 0x1c7   : > { %v1915_v14 = vpop.f32.mrf.mxu0 }
 0x1c9   : > { %v1605_v3 = vpop.f32.mrf.mxu2  ;;  %1762 = vmatpush.bf16.msra.mxu3 %v6696_v12 }
 0x1cf   : > { %v1917_v22 = vpop.f32.mrf.mxu0 }
 0x1d0   : > { %v1925_v24 = vpack.c.bf16 %v1917_v22, %v1915_v14  ;;  %v591_v14 = vadd.f32 %v7566_v15, %v7417_v48 }
 0x1d1   : > { %v1607_v18 = vpop.f32.mrf.mxu2 }
 0x1d2   : > { %v1615_v20 = vpack.c.bf16 %v1607_v18, %v1605_v3  ;;  %5936 = vmatmul.msk.bf16.vlgmr.msrb.gmra.mxu1 %vm546_vm1, %v1925_v24 }
 0x1d4   : > { %5836 = vmatmul.msk.bf16.vlgmr.msrb.gmra.mxu3 %vm546_vm1, %v1615_v20 }
 0x1d5   : > { %1885 = vmatpush.bf16.msrb.mxu3 %v6703_v19 }
 0x1d7   : > { %v648_v25 = vpop.f32.mrf.mxu3 }
 0x1d8   : > { %v653_v26 = vadd.f32 %v648_v25, %v7405_v44  ;;  %v6708_v44 = vld [vmem:[%s8476_s3 + $0x180] sm:$0xff]  ;;  %s7077_s3 = smov 32  }
 0x1d9   : > { %v1729_v27 = vpop.f32.mrf.mxu2  ;;  %1886 = vmatpush.bf16.msrb.mxu3 %v6702_v23 }
 0x1da   : > { %v715_v29 = vadd.f32 %v710_v6, %v653_v26 }
 0x1df   : > { %v650_v30 = vpop.f32.mrf.mxu3  ;;  %v1082_v45 = vpop.f32.mrf.mxu1 }
 0x1e1   : > { %v1731_v31 = vpop.f32.mrf.mxu2 }
 0x1e2   : > { %v1739_v33 = vpack.c.bf16 %v1731_v31, %v1729_v27 }
 0x1e4   : > { %5876 = vmatmul.msk.bf16.vlgmr.msra.gmra.mxu3 %vm546_vm1, %v1739_v33 }
 0x1e5   : > { %2009 = vmatpush.bf16.msra.mxu3 %v6709_v32 }
 0x1e7   : > { %v772_v35 = vpop.f32.mrf.mxu3  ;;  %v1084_v52 = vpop.f32.mrf.mxu1 }
 0x1e8   : > { %v777_v36 = vadd.f32 %v772_v35, %v715_v29 }
 0x1e9   : > { %v1853_v37 = vpop.f32.mrf.mxu2  ;;  %2010 = vmatpush.bf16.msra.mxu3 %v6708_v44 }
 0x1ea   : > { %v839_v38 = vadd.f32 %v834_v16, %v777_v36  ;;  %v654_v16 = vadd.f32 %v650_v30, %v591_v14  ;;  %v6740_v14 = vld [vmem:[%s8477_s4 + $0x50] sm:$0xff] }
 0x1ec   : > { %v716_v19 = vadd.f32 %v7560_v11, %v654_v16  ;;  %v6715_v11 = vld [vmem:[%s8460_s5 + $0x18] sm:$0xff]  ;;  %v6746_v16 = vld [vmem:[%s8477_s4 + $0x60] sm:$0xff] }
 0x1ed   : > { %2108 = vmatpush.bf16.msrb.mxu2 %v6715_v11  ;;  %v6737_v11 = vld [vmem:[%s8477_s4 + $0x48] sm:$0xff] }
 0x1ef   : > { %v774_v40 = vpop.f32.mrf.mxu3  ;;  %v1206_v57 = vpop.f32.mrf.mxu1 }
 0x1f0   : > { %v778_v20 = vadd.f32 %v774_v40, %v716_v19  ;;  %v6752_v19 = vld [vmem:[%s8477_s4 + $0x70] sm:$0xff] }
 0x1f1   : > { %v1855_v41 = vpop.f32.mrf.mxu2 }
 0x1f2   : > { %v1863_v42 = vpack.c.bf16 %v1855_v41, %v1853_v37  ;;  %v840_v22 = vadd.f32 %v836_v28, %v778_v20  ;;  %v6714_v37 = vld [vmem:[%s8460_s5 + $0x10] sm:$0xff]  ;;  %v6718_v20 = vld [vmem:[%s8460_s5 + $0x28] sm:$0xff] }
 0x1f3   : > { %2109 = vmatpush.bf16.msrb.mxu2 %v6714_v37 }
 0x1f4   : > { %5916 = vmatmul.msk.bf16.vlgmr.msrb.gmra.mxu3 %vm546_vm1, %v1863_v42 }
 0x1f7   : > { %v896_v43 = vpop.f32.mrf.mxu3  ;;  %v1208_v59 = vpop.f32.mrf.mxu1 }
 0x1f8   : > { %v901_v46 = vadd.f32 %v896_v43, %v839_v38 }
 0x1f9   : > { %v1977_v47 = vpop.f32.mrf.mxu2 }
 0x1fa   : > { %v963_v49 = vadd.f32 %v958_v34, %v901_v46 }
 0x1ff   : > { %v898_v50 = vpop.f32.mrf.mxu3  ;;  %v1330_v4 = vpop.f32.mrf.mxu1 }
 0x200   : > { %v902_v23 = vadd.f32 %v898_v50, %v840_v22  ;;  %v6758_v22 = vld [vmem:[%s8477_s4 + $0x80] sm:$0xff] }
 0x201   : > { %v1979_v51 = vpop.f32.mrf.mxu2 }
 0x202   : > { %v1987_v53 = vpack.c.bf16 %v1979_v51, %v1977_v47  ;;  %v964_v25 = vadd.f32 %v960_v39, %v902_v23 }
 0x204   : > { %5956 = vmatmul.msk.bf16.vlgmr.msra.gmra.mxu3 %vm546_vm1, %v1987_v53 }
 0x207   : > { %v1020_v54 = vpop.f32.mrf.mxu3  ;;  %v1332_v7 = vpop.f32.mrf.mxu1 }
 0x208   : > { %v1025_v55 = vadd.f32 %v1020_v54, %v963_v49 }
 0x20a   : > { %v1087_v56 = vadd.f32 %v1082_v45, %v1025_v55 }
 0x20f   : > { %v1022_v58 = vpop.f32.mrf.mxu3  ;;  %v1454_v0 = vpop.f32.mrf.mxu1 }
 0x210   : > { %v1026_v27 = vadd.f32 %v1022_v58, %v964_v25 }
 0x212   : > { %v1088_v29 = vadd.f32 %v1084_v52, %v1026_v27 }
 0x217   : > { %v1144_v60 = vpop.f32.mrf.mxu3  ;;  %v1456_v2 = vpop.f32.mrf.mxu1 }
 0x218   : > { %v1149_v61 = vadd.f32 %v1144_v60, %v1087_v56 }
 0x21a   : > { %v1211_v62 = vadd.f32 %v1206_v57, %v1149_v61  ;;  %v6870_v61 = vld [vmem:[%s8463_s8 + $0x10] ss:$0 sm:$0xff] }
 0x21f   : > { %v1146_v63 = vpop.f32.mrf.mxu3  ;;  %v1578_v13 = vpop.f32.mrf.mxu1 }
 0x220   : > { %v1150_v32 = vadd.f32 %v1146_v63, %v1088_v29 }
 0x222   : > { %v1212_v34 = vadd.f32 %v1208_v59, %v1150_v32 }
 0x227   : > { %v1268_v5 = vpop.f32.mrf.mxu3  ;;  %v1580_v18 = vpop.f32.mrf.mxu1 }
 0x228   : > { %v1273_v6 = vadd.f32 %v1268_v5, %v1211_v62 }
 0x22a   : > { %v1335_v8 = vadd.f32 %v1330_v4, %v1273_v6 }
 0x22f   : > { %v1270_v9 = vpop.f32.mrf.mxu3  ;;  %v1702_v24 = vpop.f32.mrf.mxu1 }
 0x230   : > { %v1274_v44 = vadd.f32 %v1270_v9, %v1212_v34 }
 0x232   : > { %v1336_v30 = vadd.f32 %v1332_v7, %v1274_v44 }
 0x237   : > { %v1392_v10 = vpop.f32.mrf.mxu3  ;;  %v1704_v31 = vpop.f32.mrf.mxu1 }
 0x238   : > { %v1397_v1 = vadd.f32 %v1392_v10, %v1335_v8  ;;  %v6710_v10 = vld [vmem:[%s8477_s4] sm:$0xff] }
 0x23a   : > { %v1459_v28 = vadd.f32 %v1454_v0, %v1397_v1  ;;  %v6713_v1 = vld [vmem:[%s8477_s4 + $0x8] sm:$0xff] }
 0x23f   : > { %v1394_v12 = vpop.f32.mrf.mxu3  ;;  %v1826_v48 = vpop.f32.mrf.mxu1 }
 0x240   : > { %v1398_v35 = vadd.f32 %v1394_v12, %v1336_v30  ;;  %v6722_v12 = vld [vmem:[%s8477_s4 + $0x20] sm:$0xff]  ;;  %v6731_v30 = vld [vmem:[%s8477_s4 + $0x38] sm:$0xff] }
 0x242   : > { %v1460_v38 = vadd.f32 %v1456_v2, %v1398_v35  ;;  %v6716_v2 = vld [vmem:[%s8477_s4 + $0x10] sm:$0xff]  ;;  %v6743_v35 = vld [vmem:[%s8477_s4 + $0x58] sm:$0xff] }
 0x247   : > { %v1516_v3 = vpop.f32.mrf.mxu3  ;;  %v1828_v42 = vpop.f32.mrf.mxu1 }
 0x248   : > { %v1521_v36 = vadd.f32 %v1516_v3, %v1459_v28  ;;  %v6734_v3 = vld [vmem:[%s8477_s4 + $0x40] sm:$0xff]  ;;  %v6749_v28 = vld [vmem:[%s8477_s4 + $0x68] sm:$0xff] }
 0x24a   : > { %v1583_v41 = vadd.f32 %v1578_v13, %v1521_v36  ;;  %v6728_v13 = vld [vmem:[%s8477_s4 + $0x30] sm:$0xff]  ;;  %v6755_v36 = vld [vmem:[%s8477_s4 + $0x78] sm:$0xff] }
 0x24f   : > { %v1518_v17 = vpop.f32.mrf.mxu3  ;;  %v1950_v52 = vpop.f32.mrf.mxu1 }
 0x250   : > { %v1522_v40 = vadd.f32 %v1518_v17, %v1460_v38  ;;  %v6712_v17 = vld [vmem:[%s8460_s5 + $0x8] sm:$0xff] }
 0x251   : > { %2137 = vmatpush.bf16.msrb.mxu3 %v6712_v17  ;;  %v6724_v38 = vld [vmem:[%s8460_s5 + $0x48] sm:$0xff] }
 0x252   : > { %v1584_v45 = vadd.f32 %v1580_v18, %v1522_v40  ;;  %v6711_v18 = vld [vmem:[%s8460_s5] sm:$0xff] }
 0x255   : > { %2138 = vmatpush.bf16.msrb.mxu3 %v6711_v18 }
 0x257   : > { %v1640_v21 = vpop.f32.mrf.mxu3  ;;  %v1952_v62 = vpop.f32.mrf.mxu1 }
 0x258   : > { %v1645_v43 = vadd.f32 %v1640_v21, %v1583_v41  ;;  %v6717_v21 = vld [vmem:[%s8460_s5 + $0x20] sm:$0xff] }
 0x25a   : > { %v1707_v47 = vadd.f32 %v1702_v24, %v1645_v43  ;;  %v6720_v43 = vld [vmem:[%s8460_s5 + $0x30] sm:$0xff] }
 0x25f   : > { %v1642_v26 = vpop.f32.mrf.mxu3 }
 0x260   : > { %v1646_v46 = vadd.f32 %v1642_v26, %v1584_v45  ;;  %v6761_v45 = vld [vmem:[%s8477_s4 + $0x88] sm:$0xff] }
 0x262   : > { %v1708_v51 = vadd.f32 %v1704_v31, %v1646_v46  ;;  %v6764_v31 = vld [vmem:[%s8477_s4 + $0x90] sm:$0xff] }
 0x267   : > { %v1764_v33 = vpop.f32.mrf.mxu3 }
 0x268   : > { %v1769_v50 = vadd.f32 %v1764_v33, %v1707_v47  ;;  %v6719_v33 = vld [vmem:[%s8477_s4 + $0x18] sm:$0xff]  ;;  %v6776_v47 = vld [vmem:[%s8477_s4 + $0xb0] sm:$0xff] }
 0x26a   : > { %v1831_v54 = vadd.f32 %v1826_v48, %v1769_v50  ;;  %v6770_v48 = vld [vmem:[%s8477_s4 + $0xa0] sm:$0xff] }
 0x26b   : > { %v6729_v50 = vld [vmem:[%s8460_s5 + $0x60] sm:$0xff] }
 0x26f   : > { %v1766_v15 = vpop.f32.mrf.mxu3 }
 0x270   : > { %v1770_v53 = vadd.f32 %v1766_v15, %v1708_v51  ;;  %v6725_v15 = vld [vmem:[%s8477_s4 + $0x28] sm:$0xff] }
 0x272   : > { %v1832_v57 = vadd.f32 %v1828_v42, %v1770_v53  ;;  %v6721_v42 = vld [vmem:[%s8460_s5 + $0x38] sm:$0xff] }
 0x273   : > { %2259 = vmatpush.bf16.msra.mxu3 %v6721_v42  ;;  %v6727_v53 = vld [vmem:[%s8460_s5 + $0x58] sm:$0xff] }
 0x277   : > { %v1888_v39 = vpop.f32.mrf.mxu3  ;;  %2260 = vmatpush.bf16.msra.mxu3 %v6720_v43 }
 0x278   : > { %v1893_v55 = vadd.f32 %v1888_v39, %v1831_v54  ;;  %v6723_v39 = vld [vmem:[%s8460_s5 + $0x40] sm:$0xff] }
 0x27a   : > { %v1955_v59 = vadd.f32 %v1950_v52, %v1893_v55 }
 0x27f   : > { %v1890_v49 = vpop.f32.mrf.mxu3 }
 0x280   : > { %v1894_v58 = vadd.f32 %v1890_v49, %v1832_v57  ;;  %v6730_v49 = vld [vmem:[%s8460_s5 + $0x68] sm:$0xff]  ;;  %v6726_v57 = vld [vmem:[%s8460_s5 + $0x50] sm:$0xff] }
 0x282   : > { %v1956_v63 = vadd.f32 %v1952_v62, %v1894_v58  ;;  %v6782_v62 = vld [vmem:[%s8477_s4 + $0xc0] sm:$0xff] }
 0x287   : > { %v2012_v56 = vpop.f32.mrf.mxu3 }
 0x288   : > { %v2017_v60 = vadd.f32 %v2012_v56, %v1955_v59  ;;  %v6767_v59 = vld [vmem:[%s8477_s4 + $0x98] sm:$0xff] }
 0x28a   : > { %v2020_v5 = vadd.f32 %v6870_v61, %v2017_v60 }
 0x28c   : > { %v2022_v8 = vmax.f32 %v2020_v5, 0.0  ;;  %v6735_v5 = vld [vmem:[%s8460_s5 + $0x80] sm:$0xff] }
 0x28f   : > { %v2014_v4 = vpop.f32.mrf.mxu3 }
 0x290   : > { %v2018_v6 = vadd.f32 %v2014_v4, %v1956_v63  ;;  %v6736_v4 = vld [vmem:[%s8460_s5 + $0x88] sm:$0xff] }
 0x292   : > { %v2021_v7 = vadd.f32 %v6870_v61, %v2018_v6 }
 0x294   : > { %v2023_v9 = vmax.f32 %v2021_v7, 0.0 }
 0x296   : > { %v7604_v0 = vpack.c.bf16 %v2023_v9, %v2022_v8 }
 0x298   : > { %2044 = vmatpush.bf16.msra.mxu0 %v7604_v0  ;;  %2074 = vmatpush.bf16.msra.mxu1 %v7604_v0 }
 0x299   : > { %2225 = vmatpush.bf16.msra.mxu2 %v7604_v0 }
 0x29b   : > { %5961 = vmatmul.msk.bf16.vlgmr.msra.gmra.mxu0 %vm2033_vm2, %v6710_v10  ;;  %5968 = vmatmul.msk.bf16.vlgmr.msra.gmra.mxu1 %vm2033_vm2, %v6713_v1  ;;  %v6733_v10 = vld [vmem:[%s8460_s5 + $0x78] sm:$0xff] }
 0x29c   : > { %2163 = vmatpush.bf16.msrb.mxu0 %v7604_v0  ;;  %2197 = vmatpush.bf16.msrb.mxu1 %v6718_v20 }
 0x2a0   : > { %2287 = vmatpush.bf16.msra.mxu0 %v7604_v0  ;;  %2198 = vmatpush.bf16.msrb.mxu1 %v6717_v21  ;;  %v6779_v21 = vld [vmem:[%s8477_s4 + $0xb8] sm:$0xff] }
 0x2a4   : > { %2321 = vmatpush.bf16.msra.mxu1 %v6724_v38 }
 0x2a8   : > { %2322 = vmatpush.bf16.msra.mxu1 %v6723_v39  ;;  %v6760_v39 = vld [vmem:[%s8460_s5 + $0x108] sm:$0xff] }
 0x2ab   : > { %5997 = vmatmul.msk.bf16.vlgmr.msrb.gmra.mxu0 %vm2033_vm2, %v6716_v2 }
 0x2ac   : > { %2411 = vmatpush.bf16.msrb.mxu0 %v7604_v0 }
 0x2bb   : > { %6037 = vmatmul.msk.bf16.vlgmr.msra.gmra.mxu0 %vm2033_vm2, %v6722_v12  ;;  %v6742_v12 = vld [vmem:[%s8460_s5 + $0xa8] sm:$0xff] }
 0x2bc   : > { %2535 = vmatpush.bf16.msra.mxu0 %v7604_v0 }
 0x2cb   : > { %6077 = vmatmul.msk.bf16.vlgmr.msrb.gmra.mxu0 %vm2033_vm2, %v6728_v13  ;;  %v6732_v13 = vld [vmem:[%s8460_s5 + $0x70] sm:$0xff] }
 0x2cc   : > { %2659 = vmatpush.bf16.msrb.mxu0 %v7604_v0 }
 0x2db   : > { %6117 = vmatmul.msk.bf16.vlgmr.msra.gmra.mxu0 %vm2033_vm2, %v6734_v3  ;;  %v6741_v3 = vld [vmem:[%s8460_s5 + $0xa0] sm:$0xff] }
 0x2dc   : > { %2783 = vmatpush.bf16.msra.mxu0 %v7604_v0 }
 0x2eb   : > { %6157 = vmatmul.msk.bf16.vlgmr.msrb.gmra.mxu0 %vm2033_vm2, %v6740_v14 }
 0x2ec   : > { %2907 = vmatpush.bf16.msrb.mxu0 %v7604_v0 }
 0x2fb   : > { %6197 = vmatmul.msk.bf16.vlgmr.msra.gmra.mxu0 %vm2033_vm2, %v6746_v16 }
 0x2fc   : > { %3031 = vmatpush.bf16.msra.mxu0 %v7604_v0 }
 0x30b   : > { %6237 = vmatmul.msk.bf16.vlgmr.msrb.gmra.mxu0 %vm2033_vm2, %v6752_v19  ;;  %v6739_v19 = vld [vmem:[%s8460_s5 + $0x98] sm:$0xff] }
 0x30c   : > { %3155 = vmatpush.bf16.msrb.mxu0 %v7604_v0 }
 0x318   : > { %v2046_v23 = vpop.f32.mrf.mxu0  ;;  %v2076_v24 = vpop.f32.mrf.mxu1 }
 0x31b   : > { %6277 = vmatmul.msk.bf16.vlgmr.msra.gmra.mxu0 %vm2033_vm2, %v6758_v22 }
 0x31c   : > { %3279 = vmatpush.bf16.msra.mxu0 %v7604_v0 }
 0x320   : > { %v2048_v25 = vpop.f32.mrf.mxu0  ;;  %v2078_v26 = vpop.f32.mrf.mxu1 }
 0x321   : > { %v2055_v27 = vpack.c.bf16 %v2048_v25, %v2046_v23  ;;  %v2086_v29 = vpack.c.bf16 %v2078_v26, %v2076_v24  ;;  %v6748_v23 = vld [vmem:[%s8460_s5 + $0xc8] sm:$0xff]  ;;  %v6738_v24 = vld [vmem:[%s8460_s5 + $0x90] sm:$0xff]  ;;  %v6747_v25 = vld [vmem:[%s8460_s5 + $0xc0] sm:$0xff] }
 0x323   : > { %5981 = vmatmul.msk.bf16.vlgmr.msrb.gmra.mxu2 %vm546_vm1, %v2086_v29  ;;  %5990 = vmatmul.msk.bf16.vlgmr.msrb.gmra.mxu3 %vm546_vm1, %v2055_v27 }
 0x324   : > { %2349 = vmatpush.bf16.msrb.mxu2 %v7604_v0  ;;  %2383 = vmatpush.bf16.msrb.mxu3 %v6727_v53  ;;  %v6765_v53 = vld [vmem:[%s8460_s5 + $0x120] sm:$0xff] }
 0x328   : > { %v2165_v32 = vpop.f32.mrf.mxu0  ;;  %2384 = vmatpush.bf16.msrb.mxu3 %v6726_v57 }
 0x32b   : > { %6317 = vmatmul.msk.bf16.vlgmr.msrb.gmra.mxu0 %vm2033_vm2, %v6764_v31 }
 0x32c   : > { %3403 = vmatpush.bf16.msrb.mxu0 %v7604_v0 }
 0x330   : > { %v2167_v34 = vpop.f32.mrf.mxu0 }
 0x331   : > { %v2175_v44 = vpack.c.bf16 %v2167_v34, %v2165_v32  ;;  %v6745_v32 = vld [vmem:[%s8460_s5 + $0xb8] sm:$0xff] }
 0x333   : > { %6010 = vmatmul.msk.bf16.vlgmr.msrb.gmra.mxu1 %vm546_vm1, %v2175_v44  ;;  %6017 = vmatmul.msk.bf16.vlgmr.msra.gmra.mxu2 %vm2033_vm2, %v6719_v33  ;;  %v6754_v44 = vld [vmem:[%s8460_s5 + $0xe8] sm:$0xff] }
 0x334   : > { %2473 = vmatpush.bf16.msra.mxu2 %v7604_v0  ;;  %2445 = vmatpush.bf16.msrb.mxu1 %v6730_v49 }
 0x338   : > { %v2289_v37 = vpop.f32.mrf.mxu0  ;;  %2446 = vmatpush.bf16.msrb.mxu1 %v6729_v50 }
 0x33b   : > { %6357 = vmatmul.msk.bf16.vlgmr.msra.gmra.mxu0 %vm2033_vm2, %v6770_v48  ;;  %v6744_v48 = vld [vmem:[%s8460_s5 + $0xb0] sm:$0xff] }
 0x33c   : > { %3527 = vmatpush.bf16.msra.mxu0 %v7604_v0 }
 0x340   : > { %v2291_v40 = vpop.f32.mrf.mxu0 }
 0x341   : > { %v2299_v41 = vpack.c.bf16 %v2291_v40, %v2289_v37  ;;  %v6750_v40 = vld [vmem:[%s8460_s5 + $0xd0] sm:$0xff] }
 0x343   : > { %6057 = vmatmul.msk.bf16.vlgmr.msrb.gmra.mxu2 %vm2033_vm2, %v6725_v15  ;;  %6050 = vmatmul.msk.bf16.vlgmr.msra.gmra.mxu1 %vm546_vm1, %v2299_v41  ;;  %v6753_v15 = vld [vmem:[%s8460_s5 + $0xe0] sm:$0xff] }
 0x344   : > { %2597 = vmatpush.bf16.msrb.mxu2 %v7604_v0  ;;  %2569 = vmatpush.bf16.msra.mxu1 %v6736_v4  ;;  %v6759_v41 = vld [vmem:[%s8460_s5 + $0x100] sm:$0xff]  ;;  %v6762_v4 = vld [vmem:[%s8460_s5 + $0x110] sm:$0xff] }
 0x348   : > { %v2413_v46 = vpop.f32.mrf.mxu0  ;;  %2570 = vmatpush.bf16.msra.mxu1 %v6735_v5 }
 0x34b   : > { %6397 = vmatmul.msk.bf16.vlgmr.msrb.gmra.mxu0 %vm2033_vm2, %v6776_v47  ;;  %v6757_v47 = vld [vmem:[%s8460_s5 + $0xf8] sm:$0xff] }
 0x350   : > { %v2415_v55 = vpop.f32.mrf.mxu0 }
 0x351   : > { %v2423_v56 = vpack.c.bf16 %v2415_v55, %v2413_v46 }
 0x353   : > { %6097 = vmatmul.msk.bf16.vlgmr.msra.gmra.mxu2 %vm2033_vm2, %v6731_v30  ;;  %6090 = vmatmul.msk.bf16.vlgmr.msrb.gmra.mxu1 %vm546_vm1, %v2423_v56 }
 0x354   : > { %2721 = vmatpush.bf16.msra.mxu2 %v7604_v0  ;;  %2693 = vmatpush.bf16.msrb.mxu1 %v6742_v12 }
 0x358   : > { %v2537_v60 = vpop.f32.mrf.mxu0  ;;  %2694 = vmatpush.bf16.msrb.mxu1 %v6741_v3  ;;  %v6768_v3 = vld [vmem:[%s8460_s5 + $0x130] sm:$0xff] }
 0x35b   : > { %6437 = vmatmul.msk.bf16.vlgmr.msra.gmra.mxu0 %vm2033_vm2, %v6782_v62  ;;  %v6772_v62 = vld [vmem:[%s8460_s5 + $0x148] sm:$0xff] }
 0x360   : > { %v2539_v7 = vpop.f32.mrf.mxu0 }
 0x361   : > { %v2547_v8 = vpack.c.bf16 %v2539_v7, %v2537_v60 }
 0x363   : > { %6137 = vmatmul.msk.bf16.vlgmr.msrb.gmra.mxu2 %vm2033_vm2, %v6737_v11  ;;  %6130 = vmatmul.msk.bf16.vlgmr.msra.gmra.mxu1 %vm546_vm1, %v2547_v8 }
 0x364   : > { %2845 = vmatpush.bf16.msrb.mxu2 %v7604_v0  ;;  %2817 = vmatpush.bf16.msra.mxu1 %v6748_v23 }
 0x368   : > { %v2661_v2 = vpop.f32.mrf.mxu0  ;;  %2818 = vmatpush.bf16.msra.mxu1 %v6747_v25  ;;  %v6784_v25 = vld [vmem:[%s8460_s5 + $0x188] sm:$0xff] }
 0x370   : > { %v2663_v16 = vpop.f32.mrf.mxu0 }
 0x371   : > { %v2671_v17 = vpack.c.bf16 %v2663_v16, %v2661_v2 }
 0x373   : > { %6177 = vmatmul.msk.bf16.vlgmr.msra.gmra.mxu2 %vm2033_vm2, %v6743_v35  ;;  %6170 = vmatmul.msk.bf16.vlgmr.msrb.gmra.mxu1 %vm546_vm1, %v2671_v17 }
 0x374   : > { %2969 = vmatpush.bf16.msra.mxu2 %v7604_v0  ;;  %2941 = vmatpush.bf16.msrb.mxu1 %v6754_v44 }
 0x378   : > { %v2785_v22 = vpop.f32.mrf.mxu0  ;;  %2942 = vmatpush.bf16.msrb.mxu1 %v6753_v15 }
 0x380   : > { %v2787_v27 = vpop.f32.mrf.mxu0 }
 0x381   : > { %v2795_v29 = vpack.c.bf16 %v2787_v27, %v2785_v22  ;;  %v6783_v27 = vld [vmem:[%s8460_s5 + $0x180] sm:$0xff] }
 0x383   : > { %6217 = vmatmul.msk.bf16.vlgmr.msrb.gmra.mxu2 %vm2033_vm2, %v6749_v28  ;;  %6210 = vmatmul.msk.bf16.vlgmr.msra.gmra.mxu1 %vm546_vm1, %v2795_v29 }
 0x384   : > { %3093 = vmatpush.bf16.msrb.mxu2 %v7604_v0  ;;  %3065 = vmatpush.bf16.msra.mxu1 %v6760_v39 }
 0x388   : > { %v2909_v34 = vpop.f32.mrf.mxu0  ;;  %3066 = vmatpush.bf16.msra.mxu1 %v6759_v41 }
 0x390   : > { %v2911_v11 = vpop.f32.mrf.mxu0 }
 0x391   : > { %v2919_v35 = vpack.c.bf16 %v2911_v11, %v2909_v34 }
 0x393   : > { %6257 = vmatmul.msk.bf16.vlgmr.msra.gmra.mxu2 %vm2033_vm2, %v6755_v36  ;;  %6250 = vmatmul.msk.bf16.vlgmr.msrb.gmra.mxu1 %vm546_vm1, %v2919_v35  ;;  %v6751_v36 = vld [vmem:[%s8460_s5 + $0xd8] sm:$0xff] }
 0x394   : > { %3217 = vmatpush.bf16.msra.mxu2 %v7604_v0 }
 0x398   : > { %v3033_v38 = vpop.f32.mrf.mxu0 }
 0x3a0   : > { %v3035_v43 = vpop.f32.mrf.mxu0 }
 0x3a3   : > { %6297 = vmatmul.msk.bf16.vlgmr.msrb.gmra.mxu2 %vm2033_vm2, %v6761_v45  ;;  %v3043_v45 = vpack.c.bf16 %v3035_v43, %v3033_v38 }
 0x3a4   : > { %3341 = vmatpush.bf16.msrb.mxu2 %v7604_v0 }
 0x3a5   : > { %6290 = vmatmul.msk.bf16.vlgmr.msra.gmra.mxu1 %vm546_vm1, %v3043_v45 }
 0x3a6   : > { %v2111_v51 = vpop.f32.mrf.mxu2  ;;  %v2140_v52 = vpop.f32.mrf.mxu3 }
 0x3a7   : > { %v2141_v54 = vadd.f32 %v2140_v52, %v2111_v51  ;;  %v6766_v51 = vld [vmem:[%s8460_s5 + $0x128] sm:$0xff]  ;;  %v6756_v52 = vld [vmem:[%s8460_s5 + $0xf0] sm:$0xff] }
 0x3a8   : > { %v3157_v50 = vpop.f32.mrf.mxu0  ;;  %3189 = vmatpush.bf16.msrb.mxu1 %v6766_v51 }
 0x3ac   : > { %3190 = vmatpush.bf16.msrb.mxu1 %v6765_v53 }
 0x3ae   : > { %v7755_v58 = vpop.f32.mrf.mxu2  ;;  %v2142_v34 = vpop.f32.mrf.mxu3 }
 0x3b0   : > { %v2200_v61 = vpop.f32.mrf.mxu1  ;;  %v3159_v55 = vpop.f32.mrf.mxu0  ;;  %3313 = vmatpush.bf16.msra.mxu1 %v6772_v62 }
 0x3b1   : > { %v7763_v63 = vadd.f32 %v2200_v61, %v2141_v54  ;;  %v3167_v56 = vpack.c.bf16 %v3159_v55, %v3157_v50 }
 0x3b3   : > { %6337 = vmatmul.msk.bf16.vlgmr.msra.gmra.mxu2 %vm2033_vm2, %v6767_v59  ;;  %v6763_v59 = vld [vmem:[%s8460_s5 + $0x118] sm:$0xff] }
 0x3b4   : > { %3465 = vmatpush.bf16.msra.mxu2 %v7604_v0  ;;  %v6773_v0 = vld [vmem:[%s8477_s4 + $0xa8] sm:$0xff]  ;;  %s7075_s4 = smov 96  }
 0x3b5   : > { %6330 = vmatmul.msk.bf16.vlgmr.msrb.gmra.mxu1 %vm546_vm1, %v3167_v56 }
 0x3b6   : > { %v2227_v6 = vpop.f32.mrf.mxu2 }
 0x3b8   : > { %v3281_v61 = vpop.f32.mrf.mxu0  ;;  %v7863_v5 = vpop.f32.mrf.mxu1 }
 0x3be   : > { %v2229_v9 = vpop.f32.mrf.mxu2 }
 0x3bf   : > { %v2237_v1 = vpack.c.bf16 %v2229_v9, %v2227_v6  ;;  %v6771_v6 = vld [vmem:[%s8460_s5 + $0x140] sm:$0xff] }
 0x3c0   : > { %v3283_v8 = vpop.f32.mrf.mxu0  ;;  %3314 = vmatpush.bf16.msra.mxu1 %v6771_v6 }
 0x3c1   : > { %6030 = vmatmul.msk.bf16.vlgmr.msra.gmra.mxu3 %vm546_vm1, %v2237_v1  ;;  %v3291_v9 = vpack.c.bf16 %v3283_v8, %v3281_v61 }
 0x3c2   : > { %2507 = vmatpush.bf16.msra.mxu3 %v6733_v10  ;;  %v2324_v10 = vpop.f32.mrf.mxu1 }
 0x3c3   : > { %6377 = vmatmul.msk.bf16.vlgmr.msrb.gmra.mxu2 %vm2033_vm2, %v6773_v0  ;;  %v6769_v0 = vld [vmem:[%s8460_s5 + $0x138] sm:$0xff] }
 0x3c5   : > { %6370 = vmatmul.msk.bf16.vlgmr.msra.gmra.mxu1 %vm546_vm1, %v3291_v9 }
 0x3c6   : > { %v2351_v14 = vpop.f32.mrf.mxu2  ;;  %2508 = vmatpush.bf16.msra.mxu3 %v6732_v13  ;;  %v6778_v13 = vld [vmem:[%s8460_s5 + $0x168] sm:$0xff] }
 0x3c7   : > { %3437 = vmatpush.bf16.msrb.mxu1 %v6778_v13 }
 0x3c8   : > { %v3405_v12 = vpop.f32.mrf.mxu0 }
 0x3ca   : > { %v2326_v17 = vpop.f32.mrf.mxu1 }
 0x3ce   : > { %v2353_v18 = vpop.f32.mrf.mxu2 }
 0x3cf   : > { %v2361_v20 = vpack.c.bf16 %v2353_v18, %v2351_v14  ;;  %v6777_v14 = vld [vmem:[%s8460_s5 + $0x160] sm:$0xff] }
 0x3d0   : > { %v3407_v18 = vpop.f32.mrf.mxu0  ;;  %3438 = vmatpush.bf16.msrb.mxu1 %v6777_v14 }
 0x3d1   : > { %6070 = vmatmul.msk.bf16.vlgmr.msrb.gmra.mxu3 %vm546_vm1, %v2361_v20 }
 0x3d2   : > { %2631 = vmatpush.bf16.msrb.mxu3 %v6739_v19  ;;  %v3415_v19 = vpack.c.bf16 %v3407_v18, %v3405_v12 }
 0x3d3   : > { %6417 = vmatmul.msk.bf16.vlgmr.msra.gmra.mxu2 %vm2033_vm2, %v6779_v21  ;;  %v6775_v21 = vld [vmem:[%s8460_s5 + $0x158] sm:$0xff] }
 0x3d4   : > { %3561 = vmatpush.bf16.msra.mxu1 %v6784_v25 }
 0x3d5   : > { %6410 = vmatmul.msk.bf16.vlgmr.msrb.gmra.mxu1 %vm546_vm1, %v3415_v19 }
 0x3d6   : > { %v2475_v26 = vpop.f32.mrf.mxu2  ;;  %2632 = vmatpush.bf16.msrb.mxu3 %v6738_v24  ;;  %v2448_v24 = vpop.f32.mrf.mxu1 }
 0x3d8   : > { %v3529_v23 = vpop.f32.mrf.mxu0  ;;  %3562 = vmatpush.bf16.msra.mxu1 %v6783_v27 }
 0x3de   : > { %v2477_v31 = vpop.f32.mrf.mxu2 }
 0x3df   : > { %v2485_v33 = vpack.c.bf16 %v2477_v31, %v2475_v26  ;;  %v6774_v26 = vld [vmem:[%s8460_s5 + $0x150] sm:$0xff] }
 0x3e0   : > { %v3531_v31 = vpop.f32.mrf.mxu0 }
 0x3e1   : > { %6110 = vmatmul.msk.bf16.vlgmr.msra.gmra.mxu3 %vm546_vm1, %v2485_v33  ;;  %v2450_v33 = vpop.f32.mrf.mxu1 }
 0x3e2   : > { %2755 = vmatpush.bf16.msra.mxu3 %v6745_v32  ;;  %v3539_v32 = vpack.c.bf16 %v3531_v31, %v3529_v23 }
 0x3e5   : > { %6450 = vmatmul.msk.bf16.vlgmr.msra.gmra.mxu1 %vm546_vm1, %v3539_v32 }
 0x3e6   : > { %v2599_v30 = vpop.f32.mrf.mxu2  ;;  %2756 = vmatpush.bf16.msra.mxu3 %v6744_v48  ;;  %v6781_v48 = vld [vmem:[%s8460_s5 + $0x178] sm:$0xff] }
 0x3e9   : > { %v2572_v35 = vpop.f32.mrf.mxu1 }
 0x3ee   : > { %v2601_v28 = vpop.f32.mrf.mxu2 }
 0x3ef   : > { %v2609_v37 = vpack.c.bf16 %v2601_v28, %v2599_v30  ;;  %v6780_v30 = vld [vmem:[%s8460_s5 + $0x170] sm:$0xff] }
 0x3f1   : > { %6150 = vmatmul.msk.bf16.vlgmr.msrb.gmra.mxu3 %vm546_vm1, %v2609_v37 }
 0x3f2   : > { %2879 = vmatpush.bf16.msrb.mxu3 %v6751_v36 }
 0x3f6   : > { %v2723_v42 = vpop.f32.mrf.mxu2  ;;  %2880 = vmatpush.bf16.msrb.mxu3 %v6750_v40  ;;  %v2574_v40 = vpop.f32.mrf.mxu1 }
 0x3fe   : > { %v2725_v46 = vpop.f32.mrf.mxu2 }
 0x3ff   : > { %v2733_v49 = vpack.c.bf16 %v2725_v46, %v2723_v42  ;;  %v2143_v42 = vadd.f32 %v2142_v34, %v7755_v58 }
 0x401   : > { %6190 = vmatmul.msk.bf16.vlgmr.msra.gmra.mxu3 %vm546_vm1, %v2733_v49  ;;  %v2206_v45 = vadd.f32 %v7863_v5, %v2143_v42  ;;  %v2696_v49 = vpop.f32.mrf.mxu1 }
 0x402   : > { %3003 = vmatpush.bf16.msra.mxu3 %v6757_v47 }
 0x406   : > { %v2847_v54 = vpop.f32.mrf.mxu2  ;;  %3004 = vmatpush.bf16.msra.mxu3 %v6756_v52 }
 0x409   : > { %v2698_v55 = vpop.f32.mrf.mxu1 }
 0x40e   : > { %v2849_v57 = vpop.f32.mrf.mxu2 }
 0x40f   : > { %v2857_v60 = vpack.c.bf16 %v2849_v57, %v2847_v54 }
 0x411   : > { %6230 = vmatmul.msk.bf16.vlgmr.msrb.gmra.mxu3 %vm546_vm1, %v2857_v60  ;;  %v2820_v60 = vpop.f32.mrf.mxu1 }
 0x412   : > { %3127 = vmatpush.bf16.msrb.mxu3 %v6763_v59 }
 0x416   : > { %v2971_v7 = vpop.f32.mrf.mxu2  ;;  %3128 = vmatpush.bf16.msrb.mxu3 %v6762_v4 }
 0x41e   : > { %v2973_v1 = vpop.f32.mrf.mxu2 }
 0x41f   : > { %v2981_v2 = vpack.c.bf16 %v2973_v1, %v2971_v7  ;;  %v2822_v7 = vpop.f32.mrf.mxu1 }
 0x421   : > { %6270 = vmatmul.msk.bf16.vlgmr.msra.gmra.mxu3 %vm546_vm1, %v2981_v2 }
 0x422   : > { %3251 = vmatpush.bf16.msra.mxu3 %v6769_v0 }
 0x426   : > { %v3095_v16 = vpop.f32.mrf.mxu2  ;;  %3252 = vmatpush.bf16.msra.mxu3 %v6768_v3 }
 0x427   : > { %v2944_v0 = vpop.f32.mrf.mxu1 }
 0x42e   : > { %v3097_v20 = vpop.f32.mrf.mxu2 }
 0x42f   : > { %v3105_v22 = vpack.c.bf16 %v3097_v20, %v3095_v16  ;;  %v2946_v12 = vpop.f32.mrf.mxu1 }
 0x431   : > { %6310 = vmatmul.msk.bf16.vlgmr.msrb.gmra.mxu3 %vm546_vm1, %v3105_v22 }
 0x432   : > { %3375 = vmatpush.bf16.msrb.mxu3 %v6775_v21 }
 0x436   : > { %v3219_v29 = vpop.f32.mrf.mxu2  ;;  %3376 = vmatpush.bf16.msrb.mxu3 %v6774_v26 }
 0x437   : > { %v3068_v18 = vpop.f32.mrf.mxu1 }
 0x43e   : > { %v3221_v44 = vpop.f32.mrf.mxu2 }
 0x43f   : > { %v3229_v15 = vpack.c.bf16 %v3221_v44, %v3219_v29  ;;  %v3070_v20 = vpop.f32.mrf.mxu1 }
 0x441   : > { %6350 = vmatmul.msk.bf16.vlgmr.msra.gmra.mxu3 %vm546_vm1, %v3229_v15 }
 0x442   : > { %3499 = vmatpush.bf16.msra.mxu3 %v6781_v48 }
 0x444   : > { %v2262_v11 = vpop.f32.mrf.mxu3 }
 0x445   : > { %v2267_v28 = vadd.f32 %v2262_v11, %v7763_v63 }
 0x446   : > { %v3343_v36 = vpop.f32.mrf.mxu2  ;;  %3500 = vmatpush.bf16.msra.mxu3 %v6780_v30 }
 0x447   : > { %v2329_v37 = vadd.f32 %v2324_v10, %v2267_v28  ;;  %v3192_v22 = vpop.f32.mrf.mxu1 }
 0x44c   : > { %v2264_v38 = vpop.f32.mrf.mxu3 }
 0x44d   : > { %v2268_v47 = vadd.f32 %v2264_v38, %v2206_v45 }
 0x44e   : > { %v3345_v39 = vpop.f32.mrf.mxu2 }
 0x44f   : > { %v3353_v41 = vpack.c.bf16 %v3345_v39, %v3343_v36  ;;  %v2330_v50 = vadd.f32 %v2326_v17, %v2268_v47 }
 0x451   : > { %6390 = vmatmul.msk.bf16.vlgmr.msrb.gmra.mxu3 %vm546_vm1, %v3353_v41 }
 0x454   : > { %v2386_v43 = vpop.f32.mrf.mxu3 }
 0x455   : > { %v2391_v57 = vadd.f32 %v2386_v43, %v2329_v37 }
 0x456   : > { %v3467_v46 = vpop.f32.mrf.mxu2 }
 0x457   : > { %v2453_v58 = vadd.f32 %v2448_v24, %v2391_v57  ;;  %v3194_v24 = vpop.f32.mrf.mxu1  ;;  %v6871_v57 = vld [vmem:[%s8463_s8 + $0x11] ss:$0 sm:$0xff] }
 0x45c   : > { %v2388_v51 = vpop.f32.mrf.mxu3 }
 0x45d   : > { %v2392_v63 = vadd.f32 %v2388_v51, %v2330_v50 }
 0x45e   : > { %v3469_v52 = vpop.f32.mrf.mxu2 }
 0x45f   : > { %v3477_v53 = vpack.c.bf16 %v3469_v52, %v3467_v46  ;;  %v2454_v54 = vadd.f32 %v2450_v33, %v2392_v63  ;;  %v3316_v26 = vpop.f32.mrf.mxu1 }
 0x461   : > { %6430 = vmatmul.msk.bf16.vlgmr.msra.gmra.mxu3 %vm546_vm1, %v3477_v53 }
 0x464   : > { %v2510_v56 = vpop.f32.mrf.mxu3 }
 0x465   : > { %v2515_v62 = vadd.f32 %v2510_v56, %v2453_v58 }
 0x467   : > { %v2577_v4 = vadd.f32 %v2572_v35, %v2515_v62  ;;  %v3318_v33 = vpop.f32.mrf.mxu1 }
 0x46c   : > { %v2512_v59 = vpop.f32.mrf.mxu3 }
 0x46d   : > { %v2516_v61 = vadd.f32 %v2512_v59, %v2454_v54 }
 0x46f   : > { %v2578_v9 = vadd.f32 %v2574_v40, %v2516_v61  ;;  %v3440_v11 = vpop.f32.mrf.mxu1 }
 0x474   : > { %v2634_v5 = vpop.f32.mrf.mxu3 }
 0x475   : > { %v2639_v6 = vadd.f32 %v2634_v5, %v2577_v4 }
 0x477   : > { %v2701_v8 = vadd.f32 %v2696_v49, %v2639_v6  ;;  %v3442_v42 = vpop.f32.mrf.mxu1  ;;  %v6451_v6 = vld [vmem:[%s8465_s10 + $0x20] sm:$0xff] }
 0x47c   : > { %v2636_v10 = vpop.f32.mrf.mxu3 }
 0x47d   : > { %v2640_v1 = vadd.f32 %v2636_v10, %v2578_v9 }
 0x47f   : > { %v2702_v13 = vadd.f32 %v2698_v55, %v2640_v1  ;;  %v3564_v63 = vpop.f32.mrf.mxu1 }
 0x484   : > { %v2758_v2 = vpop.f32.mrf.mxu3 }
 0x485   : > { %v2763_v29 = vadd.f32 %v2758_v2, %v2701_v8  ;;  %v6452_v8 = vld [vmem:[%s8465_s10 + $0x28] sm:$0xff] }
 0x487   : > { %v2825_v32 = vadd.f32 %v2820_v60, %v2763_v29  ;;  %v3566_v62 = vpop.f32.mrf.mxu1 }
 0x48c   : > { %v2760_v3 = vpop.f32.mrf.mxu3 }
 0x48d   : > { %v2764_v14 = vadd.f32 %v2760_v3, %v2702_v13  ;;  %v7073_v13 = vmov 512.0  }
 0x48e   : > { %6890 = vrcp.f32 %v7073_v13 }
 0x48f   : > { %v2826_v16 = vadd.f32 %v2822_v7, %v2764_v14 }
 0x494   : > { %v2882_v17 = vpop.f32.mrf.mxu3  ;;  %v6891_v3 = vpop.eup %6890 }
 0x495   : > { %v2887_v34 = vadd.f32 %v2882_v17, %v2825_v32  ;;  %v3594_v14 = vmul.f32 512.0, %v6891_v3  ;;  %vm3598_vm3 = vweird.f32 %v6891_v3 }
 0x497   : > { %v2949_v44 = vadd.f32 %v2944_v0, %v2887_v34 }
 0x49c   : > { %v2884_v19 = vpop.f32.mrf.mxu3 }
 0x49d   : > { %v2888_v30 = vadd.f32 %v2884_v19, %v2826_v16  ;;  %v3595_v16 = vsub.f32 1.0, %v3594_v14 }
 0x49f   : > { %v2950_v28 = vadd.f32 %v2946_v12, %v2888_v30 }
 0x4a4   : > { %v3006_v21 = vpop.f32.mrf.mxu3 }
 0x4a5   : > { %v3011_v15 = vadd.f32 %v3006_v21, %v2949_v44 }
 0x4a7   : > { %v3073_v35 = vadd.f32 %v3068_v18, %v3011_v15 }
 0x4ac   : > { %v3008_v23 = vpop.f32.mrf.mxu3 }
 0x4ad   : > { %v3012_v38 = vadd.f32 %v3008_v23, %v2950_v28 }
 0x4af   : > { %v3074_v40 = vadd.f32 %v3070_v20, %v3012_v38  ;;  %v3596_v20 = vmul.f32 %v6891_v3, %v3595_v16  ;;  %v7074_v16 = vmov 32.0  }
 0x4b1   : > { %v3597_v23 = vadd.f32 %v6891_v3, %v3596_v20 }
 0x4b4   : > { %v3130_v25 = vpop.f32.mrf.mxu3 }
 0x4b5   : > { %v3135_v36 = vadd.f32 %v3130_v25, %v3073_v35 }
 0x4b7   : > { %v3197_v39 = vadd.f32 %v3192_v22, %v3135_v36 }
 0x4bc   : > { %v3132_v27 = vpop.f32.mrf.mxu3 }
 0x4bd   : > { %v3136_v43 = vadd.f32 %v3132_v27, %v3074_v40 }
 0x4bf   : > { %v3198_v47 = vadd.f32 %v3194_v24, %v3136_v43 }
 0x4c4   : > { %v3254_v31 = vpop.f32.mrf.mxu3 }
 0x4c5   : > { %v3259_v41 = vadd.f32 %v3254_v31, %v3197_v39 }
 0x4c7   : > { %v3321_v46 = vadd.f32 %v3316_v26, %v3259_v41  ;;  %v3599_v26 = vsel %vm3598_vm3, %v6891_v3, %v3597_v23 }
 0x4cc   : > { %v3256_v48 = vpop.f32.mrf.mxu3 }
 0x4cd   : > { %v3260_v50 = vadd.f32 %v3256_v48, %v3198_v47  ;;  %v6786_v47 = vld [vmem:[%s8461_s6 + $0x8] sm:$0xff] }
 0x4ce   : > { %3681 = vmatpush.bf16.msrb.mxu2 %v6786_v47 }
 0x4cf   : > { %v3322_v53 = vadd.f32 %v3318_v33, %v3260_v50 }
 0x4d4   : > { %v3378_v37 = vpop.f32.mrf.mxu3 }
 0x4d5   : > { %v3383_v49 = vadd.f32 %v3378_v37, %v3321_v46 }
 0x4d7   : > { %v3445_v51 = vadd.f32 %v3440_v11, %v3383_v49  ;;  %v6785_v49 = vld [vmem:[%s8461_s6] sm:$0xff] }
 0x4d8   : > { %3682 = vmatpush.bf16.msrb.mxu2 %v6785_v49 }
 0x4dc   : > { %v3380_v45 = vpop.f32.mrf.mxu3 }
 0x4dd   : > { %v3384_v55 = vadd.f32 %v3380_v45, %v3322_v53 }
 0x4df   : > { %v3446_v60 = vadd.f32 %v3442_v42, %v3384_v55  ;;  %v6454_v55 = vld [vmem:[%s8465_s10 + $0x18] sm:$0xff] }
 0x4e4   : > { %v3502_v52 = vpop.f32.mrf.mxu3 }
 0x4e5   : > { %v3507_v54 = vadd.f32 %v3502_v52, %v3445_v51  ;;  %v3644_v51 = vld [vmem:[%s8465_s10] sm:$0xff] }
 0x4e7   : > { %v3569_v56 = vadd.f32 %v3564_v63, %v3507_v54  ;;  %v3645_v63 = vld [vmem:[%s8465_s10 + $0x8] sm:$0xff]  ;;  %v6453_v54 = vld [vmem:[%s8465_s10 + $0x10] sm:$0xff] }
 0x4e9   : > { %v3572_v59 = vadd.f32 %v6871_v57, %v3569_v56 }
 0x4eb   : > { %v3574_v5 = vmax.f32 %v3572_v59, 0.0 }
 0x4ec   : > { %v3504_v58 = vpop.f32.mrf.mxu3 }
 0x4ed   : > { %v3508_v61 = vadd.f32 %v3504_v58, %v3446_v60  ;;  %v3579_v10 = vadd.f32 %v6451_v6, %v3574_v5  ;;  %v6873_v5 = vld [vmem:[%s8463_s8 + $0xc] ss:$0 sm:$0xff]  ;;  %v6874_v6 = vld [vmem:[%s8463_s8 + $0xb] ss:$0 sm:$0xff] }
 0x4ef   : > { %v3570_v4 = vadd.f32 %v3566_v62, %v3508_v61  ;;  %v3581_v0 = vsel %vm546_vm1, %v3579_v10, 0.0  ;;  %v6788_v61 = vld [vmem:[%s8461_s6 + $0x18] sm:$0xff]  ;;  %v6787_v62 = vld [vmem:[%s8461_s6 + $0x10] sm:$0xff] }
 0x4f0   : > { %3720 = vmatpush.bf16.msrb.mxu3 %v6788_v61 }
 0x4f1   : > { %v3573_v7 = vadd.f32 %v6871_v57, %v3570_v4 }
 0x4f3   : > { %v3575_v9 = vmax.f32 %v3573_v7, 0.0 }
 0x4f4   : > { %3721 = vmatpush.bf16.msrb.mxu3 %v6787_v62  ;;  %v6790_v62 = vld [vmem:[%s8462_s7 + $0x8] sm:$0xff] }
 0x4f5   : > { %v3580_v1 = vadd.f32 %v6452_v8, %v3575_v9  ;;  %3817 = vmatpush.bf16.msrb.mxu0 %v6790_v62 }
 0x4f7   : > { %v3582_v2 = vsel %vm546_vm1, %v3580_v1, 0.0 }
 0x4f8   : > { %v3583_v12 = vadd.f32 %v3582_v2, %v3581_v0 }
 0x4fa   : > { %3584 = vadd.xlane.f32.xlu0 %v3583_v12 }
 0x56d   : > { %v3585_v17 = vpop.xlane.xlu0 %3584 }
 0x56e   : > { %v3586_v18 = vrot.slane %v3585_v17, 4 }
 0x570   : > { %v3587_v19 = vadd.f32 %v3586_v18, %v3585_v17 }
 0x572   : > { %v3588_v21 = vrot.slane %v3587_v19, 2 }
 0x574   : > { %v3589_v22 = vadd.f32 %v3588_v21, %v3587_v19  ;;  %v6875_v21 = vld [vmem:[%s8463_s8 + $0x1] ss:$0 sm:$0xff] }
 0x576   : > { %v3590_v24 = vrot.slane %v3589_v22, 1 }
 0x578   : > { %v3591_v25 = vadd.f32 %v3590_v24, %v3589_v22 }
 0x57a   : > { %6807 = vpush %v3591_v25 }
 0x57b   : > { %6809 = vpush %v3599_v26 }
 0x5ab   : > { %s6808_s26 = spop %6807 }
 0x5ac   : > { %s6810_s28 = spop %6809 }
 0x5ad   : > { %s3601_s0 = smul.f32 %s6810_s28, %s6808_s26 }
 0x5af   : > { %v3602_v27 = vstv %s3601_s0  ;;  %s6997_s0 = scalar_lea.hbm %s8467_s12, 16 }
 0x5b0   : > { %v3603_v29 = vsub.f32 %v3579_v10, %v3602_v27  ;;  %v3604_v31 = vsub.f32 %v3580_v1, %v3602_v27  ;;  %v6872_v1 = vld [vmem:[%s8463_s8] ss:$0 sm:$0xff] }
 0x5b2   : > { %v3605_v32 = vmul.f32 %v3603_v29, %v3603_v29  ;;  %v3606_v33 = vmul.f32 %v3604_v31, %v3604_v31 }
 0x5b4   : > { %v3607_v34 = vsel %vm546_vm1, %v3605_v32, 0.0  ;;  %v3608_v44 = vsel %vm546_vm1, %v3606_v33, 0.0 }
 0x5b5   : > { %v3609_v48 = vadd.f32 %v3608_v44, %v3607_v34 }
 0x5b7   : > { %3610 = vadd.xlane.f32.xlu0 %v3609_v48 }
 0x62a   : > { %v3611_v15 = vpop.xlane.xlu0 %3610 }
 0x62b   : > { %v3612_v30 = vrot.slane %v3611_v15, 4 }
 0x62d   : > { %v3613_v11 = vadd.f32 %v3612_v30, %v3611_v15 }
 0x62f   : > { %v3614_v35 = vrot.slane %v3613_v11, 2 }
 0x631   : > { %v3615_v28 = vadd.f32 %v3614_v35, %v3613_v11 }
 0x633   : > { %v3616_v36 = vrot.slane %v3615_v28, 1 }
 0x635   : > { %v3617_v37 = vadd.f32 %v3616_v36, %v3615_v28 }
 0x637   : > { %6811 = vpush %v3617_v37  ;;  %v7983_v37 = vld [vmem:[%s8461_s6 + $0x28] sm:$0xff] }
 0x638   : > { %3889 = vmatpush.bf16.msrb.mxu1 %v7983_v37 }
 0x668   : > { %s6812_s29 = spop %6811 }
 0x669   : > { %s3627_s16 = smul.f32 %s6812_s29, %s6810_s28  ;;  %s5446_s29 = sshll.u32 %s7194_s15, 3 }
 0x66a   : > { %s438_s20 = scalar_lea.vmem %s8456_s1, %s5446_s29  ;;  %s7076_s15 = smov 64  }
 0x66b   : > { %s3628_s17 = sadd.f32 1e-05, %s3627_s16  ;;  %v3827_v4 = vld [vmem:[%s438_s20] sm:$0xff] }
 0x66c   : > { %v3829_v7 = vmul.f32 %v6873_v5, %v3827_v4 }
 0x66d   : > { %v3629_v38 = vstv %s3628_s17 }
 0x66e   : > { %6892 = vrsqrt.f32 %v3629_v38  ;;  %vm3636_vm5 = vweird.f32 %v3629_v38  ;;  %v7957_v8 = vadd.f32 %v6874_v6, %v3829_v7  ;;  %v6789_v6 = vld [vmem:[%s8462_s7] sm:$0xff] }
 0x66f   : > { %6894 = vrcp.f32 %v7074_v16  ;;  %3818 = vmatpush.bf16.msrb.mxu0 %v6789_v6 }
 0x670   : > { %v3834_v9 = vsel %vm546_vm1, %v7957_v8, 0.0 }
 0x671   : > { %3835 = vadd.xlane.f32.xlu2 %v3834_v9 }
 0x674   : > { %v6893_v39 = vpop.eup %6892 }
 0x675   : > { %v3631_v40 = vmul.f32 %v6893_v39, %v3629_v38  ;;  %vm3637_vm4 = vweird.f32 %v6893_v39  ;;  %v6895_v17 = vpop.eup %6894 }
 0x676   : > { %vm3638_vm6 = vmor %vm3636_vm5, %vm3637_vm4  ;;  %v3739_v18 = vmul.f32 32.0, %v6895_v17  ;;  %vm3743_vm7 = vweird.f32 %v6895_v17 }
 0x677   : > { %v3632_v41 = vmul.f32 %v6893_v39, %v3631_v40 }
 0x678   : > { %v3740_v19 = vsub.f32 1.0, %v3739_v18 }
 0x679   : > { %v3633_v42 = vmul.f32 0.5, %v3632_v41  ;;  %v7991_v41 = vld [vmem:[%s8461_s6 + $0x20] sm:$0xff] }
 0x67a   : > { %v3741_v20 = vmul.f32 %v6895_v17, %v3740_v19  ;;  %3890 = vmatpush.bf16.msrb.mxu1 %v7991_v41 }
 0x67b   : > { %v3634_v43 = vsub.f32 1.5, %v3633_v42 }
 0x67c   : > { %v3742_v23 = vadd.f32 %v6895_v17, %v3741_v20 }
 0x67d   : > { %v3635_v45 = vmul.f32 %v6893_v39, %v3634_v43 }
 0x67e   : > { %v7968_v26 = vsel %vm3743_vm7, %v6895_v17, %v3742_v23 }
 0x67f   : > { %v3639_v46 = vsel %vm3638_vm6, %v6893_v39, %v3635_v45 }
 0x680   : > { %6813 = vpush %v3639_v46 }
 0x6b1   : > { %s6814_s28 = spop %6813 }
 0x6b2   : > { %v3641_v50 = vstv %s6814_s28  ;;  %s8400_s28 = sand.u32 1, %s7063_s22  }
 0x6b3   : > { %v3642_v52 = vmul.f32 %v3641_v50, %v3603_v29  ;;  %v3643_v53 = vmul.f32 %v3641_v50, %v3604_v31  ;;  %s5443_s2 = sshll.u32 %s8400_s28, 3  ;;  %s5312_s18 = scalar_lea.sflag [#allocation5], %s8400_s28 }
 0x6b4   : > { %s429_s16 = scalar_lea.vmem [#allocation4], %s5443_s2 }
 0x6b5   : > { %v3646_v56 = vmul.f32 %v3644_v51, %v3642_v52  ;;  %v3647_v57 = vmul.f32 %v3645_v63, %v3643_v53  ;;  %s5337_s17 = sshll.u32 %s429_s16, 4  ;;  %s5338_s17 = int_to_ptr.vmem [resolvable:$true] %s5337_s17 }
 0x6b7   : > { %v3651_v59 = vadd.f32 %v6453_v54, %v3646_v56  ;;  %v3652_v60 = vadd.f32 %v6454_v55, %v3647_v57  ;;  %v7999_v55 = vld [vmem:[%s8463_s8 + $0x5] ss:$0 sm:$0xff]  ;;  %v8004_v57 = vld [vmem:[%s8463_s8 + $0x6] ss:$0 sm:$0xff] }
 0x6b9   : > { %v3657_v58 = vpack.c.bf16 %v3652_v60, %v3651_v59 }
 0x6bb   : > { %6463 = vmatmul.msk.bf16.vlgmr.msrb.gmra.mxu2 %vm546_vm1, %v3657_v58 }
 0x6e4   : > { %v3836_v27 = vpop.xlane.xlu2 %3835 }
 0x6e5   : > { %v3837_v31 = vmul.f32 %v3836_v27, %v7968_v26  ;;  %v6879_v27 = vld [vmem:[%s8463_s8 + $0x3] ss:$0 sm:$0xff] }
 0x6e7   : > { %v3838_v44 = vsub.f32 %v7957_v8, %v3837_v31 }
 0x6e9   : > { %v3839_v15 = vmul.f32 %v3838_v44, %v3838_v44 }
 0x6eb   : > { %v3840_v30 = vsel %vm546_vm1, %v3839_v15, 0.0 }
 0x73e   : > { %v3684_v10 = vpop.f32.mrf.mxu2 }
 0x73f   : > { %v3685_v0 = vadd.f32 %v6872_v1, %v3684_v10 }
 0x741   : > { %v3689_v13 = vmax.f32 %v3685_v0, 0.0 }
 0x746   : > { %v3686_v2 = vpop.f32.mrf.mxu2 }
 0x747   : > { %v3687_v12 = vadd.f32 %v6872_v1, %v3686_v2 }
 0x749   : > { %v3690_v3 = vmax.f32 %v3687_v12, 0.0 }
 0x74b   : > { %v3696_v14 = vpack.c.bf16 %v3690_v3, %v3689_v13 }
 0x74d   : > { %6476 = vmatmul.msk.bf16.vlgmr.msrb.gmra.mxu3 %vm546_vm1, %v3696_v14 }
 0x7d0   : > { %v3723_v22 = vpop.f32.mrf.mxu3 }
 0x7d1   : > { %v3724_v24 = vadd.f32 %v6875_v21, %v3723_v22  ;;  %v6878_v22 = vld [vmem:[%s8463_s8 + $0x2] ss:$0 sm:$0xff] }
 0x7d3   : > { %v3728_v25 = vmax.f32 %v3724_v24, 0.0 }
 0x7d5   : > { %v3732_v29 = vsel %vm546_vm1, %v3728_v25, 0.0 }
 0x7d6   : > { %3733 = vadd.xlane.f32.xlu1 %v3732_v29 }
 0x7d8   : > { %v3725_v32 = vpop.f32.mrf.mxu3 }
 0x7d9   : > { %v3726_v33 = vadd.f32 %v6875_v21, %v3725_v32 }
 0x7db   : > { %v3729_v34 = vmax.f32 %v3726_v33, 0.0 }
 0x7dd   : > { %v3735_v48 = vsel %vm546_vm1, %v3729_v34, 0.0 }
 0x7de   : > { %3736 = vadd.xlane.f32.xlu1 %v3735_v48 }
 0x7e6   : > { %3841 = vadd.xlane.f32.xlu1 %v3840_v30  ;;  %v8028_v30 = vld [vmem:[%s8462_s7 + $0x28] sm:$0xff] }
 0x7e7   : > { %4070 = vmatpush.bf16.msra.mxu1 %v8028_v30 }
 0x849   : > { %v3734_v11 = vpop.xlane.xlu1 %3733 }
 0x84a   : > { %v3745_v35 = vmul.f32 %v7968_v26, %v3734_v11  ;;  %v8034_v11 = vld [vmem:[%s8462_s7 + $0x20] sm:$0xff] }
 0x84b   : > { %4071 = vmatpush.bf16.msra.mxu1 %v8034_v11 }
 0x84c   : > { %v7976_v28 = vsub.f32 %v3728_v25, %v3745_v35  ;;  %v4046_v35 = vpack.c.bf16 %v7957_v8, %v7957_v8 }
 0x84e   : > { %v3749_v36 = vmul.f32 %v7976_v28, %v7976_v28 }
 0x850   : > { %v3751_v38 = vsel %vm546_vm1, %v3749_v36, 0.0  ;;  %v6881_v36 = vld [vmem:[%s8464_s9 + $0x2] ss:$0 sm:$0xff] }
 0x851   : > { %3752 = vadd.xlane.f32.xlu2 %v3751_v38  ;;  %v3737_v39 = vpop.xlane.xlu1 %3736 }
 0x852   : > { %v3746_v40 = vmul.f32 %v7968_v26, %v3737_v39 }
 0x854   : > { %v3748_v42 = vsub.f32 %v3729_v34, %v3746_v40 }
 0x856   : > { %v3750_v43 = vmul.f32 %v3748_v42, %v3748_v42 }
 0x858   : > { %v3754_v45 = vsel %vm546_vm1, %v3750_v43, 0.0  ;;  %v8056_v43 = vld [vmem:[%s8463_s8 + $0x4] ss:$0 sm:$0xff] }
 0x859   : > { %3755 = vadd.xlane.f32.xlu0 %v3754_v45  ;;  %v3842_v46 = vpop.xlane.xlu1 %3841  ;;  %v8061_v45 = vld [vmem:[%s8461_s6 + $0x38] sm:$0xff] }
 0x85a   : > { %v3843_v47 = vmul.f32 %v3842_v46, %v7968_v26 }
 0x85c   : > { %v3844_v49 = vadd.f32 1e-05, %v3843_v47  ;;  %v8076_v47 = vld [vmem:[%s8461_s6 + $0x30] sm:$0xff] }
 0x85e   : > { %6896 = vrsqrt.f32 %v3844_v49  ;;  %vm3851_vm8 = vweird.f32 %v3844_v49 }
 0x864   : > { %v6897_v50 = vpop.eup %6896 }
 0x865   : > { %v3846_v51 = vmul.f32 %v6897_v50, %v3844_v49  ;;  %vm3852_vm9 = vweird.f32 %v6897_v50 }
 0x866   : > { %vm3853_vm10 = vmor %vm3851_vm8, %vm3852_vm9 }
 0x867   : > { %v3847_v63 = vmul.f32 %v6897_v50, %v3846_v51 }
 0x869   : > { %v3848_v52 = vmul.f32 0.5, %v3847_v63 }
 0x86b   : > { %v3849_v53 = vsub.f32 1.5, %v3848_v52 }
 0x86d   : > { %v3850_v54 = vmul.f32 %v6897_v50, %v3849_v53 }
 0x86f   : > { %v3854_v56 = vsel %vm3853_vm10, %v6897_v50, %v3850_v54 }
 0x870   : > { %v3855_v59 = vmul.f32 %v3854_v56, %v3838_v44 }
 0x872   : > { %v3857_v60 = vmul.f32 %v7999_v55, %v3855_v59 }
 0x874   : > { %v3859_v58 = vadd.f32 %v8004_v57, %v3857_v60 }
 0x876   : > { %v3865_v61 = vpack.c.bf16 %v3859_v58, %v3859_v58 }
 0x878   : > { %6498 = vmatmul.msk.bf16.vlgmr.msrb.gmra.mxu1 %vm546_vm1, %v3865_v61 }
 0x888   : > { %6528 = vmatmul.msk.bf16.vlgmr.msra.gmra.mxu1 %vm546_vm1, %v4046_v35 }
 0x8c4   : > { %v3753_v4 = vpop.xlane.xlu2 %3752 }
 0x8c5   : > { %v3757_v5 = vmul.f32 %v3753_v4, %v7968_v26 }
 0x8c7   : > { %v3759_v7 = vadd.f32 1e-05, %v3757_v5 }
 0x8c9   : > { %6898 = vrsqrt.f32 %v3759_v7  ;;  %vm3767_vm12 = vweird.f32 %v3759_v7 }
 0x8cc   : > { %v3756_v9 = vpop.xlane.xlu0 %3755 }
 0x8cd   : > { %v3758_v10 = vmul.f32 %v3756_v9, %v7968_v26 }
 0x8cf   : > { %v6899_v1 = vpop.eup %6898  ;;  %v3760_v0 = vadd.f32 1e-05, %v3758_v10 }
 0x8d0   : > { %v3762_v2 = vmul.f32 %v6899_v1, %v3759_v7  ;;  %vm3768_vm11 = vweird.f32 %v6899_v1 }
 0x8d1   : > { %6900 = vrsqrt.f32 %v3760_v0  ;;  %vm3769_vm13 = vmor %vm3767_vm12, %vm3768_vm11  ;;  %vm3777_vm15 = vweird.f32 %v3760_v0 }
 0x8d2   : > { %v3763_v12 = vmul.f32 %v6899_v1, %v3762_v2 }
 0x8d4   : > { %v3764_v13 = vmul.f32 0.5, %v3763_v12 }
 0x8d6   : > { %v3765_v3 = vsub.f32 1.5, %v3764_v13 }
 0x8d7   : > { %v6901_v14 = vpop.eup %6900 }
 0x8d8   : > { %v3766_v16 = vmul.f32 %v6899_v1, %v3765_v3  ;;  %v3772_v17 = vmul.f32 %v6901_v14, %v3760_v0  ;;  %vm3778_vm14 = vweird.f32 %v6901_v14 }
 0x8d9   : > { %vm3779_vm0 = vmor %vm3777_vm15, %vm3778_vm14 }
 0x8da   : > { %v3773_v18 = vmul.f32 %v6901_v14, %v3772_v17  ;;  %v3770_v19 = vsel %vm3769_vm13, %v6899_v1, %v3766_v16 }
 0x8db   : > { %v3781_v23 = vmul.f32 %v3770_v19, %v7976_v28 }
 0x8dc   : > { %v3774_v20 = vmul.f32 0.5, %v3773_v18 }
 0x8dd   : > { %v3784_v29 = vmul.f32 %v6878_v22, %v3781_v23 }
 0x8de   : > { %v3775_v21 = vsub.f32 1.5, %v3774_v20 }
 0x8df   : > { %v3787_v33 = vadd.f32 %v6879_v27, %v3784_v29 }
 0x8e0   : > { %v3776_v24 = vmul.f32 %v6901_v14, %v3775_v21 }
 0x8e2   : > { %v3780_v25 = vsel %vm3779_vm0, %v6901_v14, %v3776_v24  ;;  %v8093_v24 = vld [vmem:[%s8462_s7 + $0x18] sm:$0xff] }
 0x8e3   : > { %v3782_v31 = vmul.f32 %v3780_v25, %v3748_v42  ;;  %4034 = vmatpush.bf16.msra.mxu0 %v8093_v24 }
 0x8e5   : > { %v3785_v32 = vmul.f32 %v6878_v22, %v3782_v31 }
 0x8e7   : > { %v3788_v34 = vadd.f32 %v6879_v27, %v3785_v32 }
 0x8e9   : > { %v3793_v44 = vpack.c.bf16 %v3788_v34, %v3787_v33 }
 0x8eb   : > { %6485 = vmatmul.msk.bf16.vlgmr.msrb.gmra.mxu0 %vm546_vm1, %v3793_v44 }
 0x8f5   : > { %v3892_v48 = vpop.f32.mrf.mxu1 }
 0x8f6   : > { %v3893_v46 = vadd.f32 %v8056_v43, %v3892_v48 }
 0x8fd   : > { %v3894_v15 = vpop.f32.mrf.mxu1 }
 0x968   : > { %v3820_v28 = vpop.f32.mrf.mxu0 }
 0x969   : > { %v8043_v39 = vadd.f32 %v6881_v36, %v3820_v28 }
 0x970   : > { %v3822_v38 = vpop.f32.mrf.mxu0 }
 0x971   : > { %v8045_v40 = vadd.f32 %v6881_v36, %v3822_v38  ;;  %v8100_v36 = vld [vmem:[%s8462_s7 + $0x10] sm:$0xff]  ;;  %v8107_v38 = vld [vmem:[%s8464_s9 + $0x1] ss:$0 sm:$0xff] }
 0x972   : > { %4035 = vmatpush.bf16.msra.mxu0 %v8100_v36 }
 0x973   : > { %6499 = vmatpush.xpose.msk.msra.mxu2 %vm546_vm1, %v8045_v40  ;;  %6557 = vmatpush.xpose.msk.msrb.mxu1 %vm546_vm1, %v8045_v40  ;;  %v6865_v42 = vpack.i.bf16 %v8043_v39, %v8045_v40 }
 0x975   : > { %6866 = vrot.lane.b32.xlu0 %v6865_v42, %s7075_s4  ;;  %v4073_v42 = vpop.f32.mrf.mxu1 }
 0x976   : > { %4299 = vmatpush.bf16.msrb.mxu0 %v7983_v37 }
 0x977   : > { %6500 = vmatpush.xpose.msk.msra.mxu2 %vm546_vm1, %v8043_v39  ;;  %6558 = vmatpush.xpose.msk.msrb.mxu1 %vm546_vm1, %v8043_v39 }
 0x97a   : > { %6501 = vmatmul.msk.f32.vlgmr.msra.gmra.mxu2 %vm546_vm1, %v3893_v46  ;;  %v4074_v46 = vadd.f32 %v8107_v38, %v4073_v42  ;;  %4300 = vmatpush.bf16.msrb.mxu0 %v7991_v41 }
 0x97b   : > { %4196 = vmatpush.bf16.msrb.mxu2 %v8061_v45  ;;  %4433 = vmatpush.bf16.msra.mxu1 %v8028_v30 }
 0x97c   : > { %4098 = vrot.lane.b32.xlu1 %v4074_v46, %s7076_s15 }
 0x97f   : > { %4434 = vmatpush.bf16.msra.mxu1 %v8034_v11  ;;  %4197 = vmatpush.bf16.msrb.mxu2 %v8076_v47 }
 0x9e7   : > { %v6867_v49 = vpop.permute.xlu0 %6866 }
 0x9e8   : > { %v8079_v50 = vunpack.i.l.bf16 %v6867_v49  ;;  %v8081_v51 = vunpack.i.h.bf16 %v6867_v49  ;;  %v4075_v49 = vpop.f32.mrf.mxu1 }
 0x9ea   : > { %3999 = vmatpush.msra.mxu3 %v8079_v50  ;;  %4397 = vmatpush.msra.mxu2 %v8079_v50 }
 0x9ec   : > { %4000 = vmatpush.msra.mxu3 %v8081_v51  ;;  %4398 = vmatpush.msra.mxu2 %v8081_v51 }
 0x9fd   : > { %v3922_v63 = vpop.f32.mrf.mxu2 }
 0x9fe   : > { %v3925_v52 = vsel %vm2033_vm2, %v3922_v63, -inf }
 0x9ff   : > { %v3926_v53 = vrot.slane %v3925_v52, 4 }
 0xa01   : > { %v3927_v54 = vmax.f32 %v3925_v52, %v3926_v53  ;;  %v8116_v53 = vld [vmem:[%s8464_s9] ss:$0 sm:$0xff] }
 0xa03   : > { %v3928_v56 = vrot.slane %v3927_v54, 2 }
 0xa05   : > { %v3929_v59 = vmax.f32 %v3927_v54, %v3928_v56 }
 0xa07   : > { %v3930_v60 = vrot.slane %v3929_v59, 1 }
 0xa09   : > { %v3931_v58 = vmax.f32 %v3929_v59, %v3930_v60 }
 0xa0b   : > { %v3932_v61 = vsub.f32 %v3922_v63, %v3931_v58 }
 0xa0d   : > { %v3933_v62 = vmul.f32 1.442695, %v3932_v61 }
 0xa0f   : > { %6902 = vpow2.f32 %v3933_v62 }
 0xa15   : > { %v6903_v4 = vpop.eup %6902 }
 0xa16   : > { %v3935_v5 = vsel %vm2033_vm2, %v6903_v4, 0.0 }
 0xa17   : > { %v3936_v6 = vrot.slane %v3935_v5, 4 }
 0xa19   : > { %v3937_v7 = vadd.f32 %v3936_v6, %v3935_v5 }
 0xa1b   : > { %v3938_v9 = vrot.slane %v3937_v7, 2 }
 0xa1d   : > { %v3939_v10 = vadd.f32 %v3938_v9, %v3937_v7 }
 0xa1f   : > { %v3940_v1 = vrot.slane %v3939_v10, 1 }
 0xa21   : > { %v3941_v0 = vadd.f32 %v3940_v1, %v3939_v10 }
 0xa23   : > { %6904 = vrcp.f32 %v3941_v0  ;;  %v3953_v3 = vand.u32 2147483648, %v3941_v0  ;;  %v3951_v16 = vand.u32 2147483647, %v3941_v0  ;;  %vm3947_vm4 = vweird.f32 %v3941_v0 }
 0xa25   : > { %v3954_v18 = vor.u32 1.1754944e-38, %v3953_v3  ;;  %vm3952_vm6 = vcmp.eq.f32.partialorder %v3951_v16, 8.507059e+37 }
 0xa29   : > { %v6905_v2 = vpop.eup %6904 }
 0xa2a   : > { %v3943_v12 = vmul.f32 %v6905_v2, %v3941_v0  ;;  %vm3948_vm3 = vweird.f32 %v6905_v2  ;;  %v4099_v0 = vpop.permute.xlu1 %4098 }
 0xa2b   : > { %vm3949_vm5 = vmor %vm3947_vm4, %vm3948_vm3 }
 0xa2c   : > { %v3944_v13 = vsub.f32 1.0, %v3943_v12 }
 0xa2e   : > { %v3945_v14 = vmul.f32 %v6905_v2, %v3944_v13 }
 0xa30   : > { %v3946_v17 = vadd.f32 %v6905_v2, %v3945_v14 }
 0xa32   : > { %v3950_v19 = vsel %vm3949_vm5, %v6905_v2, %v3946_v17 }
 0xa33   : > { %v3955_v20 = vsel %vm3952_vm6, %v3954_v18, %v3950_v19 }
 0xa34   : > { %v3956_v21 = vmul.f32 %v6903_v4, %v3955_v20 }
 0xa36   : > { %v3957_v22 = vadd.f32 1e-08, %v3956_v21 }
 0xa38   : > { %v3958_v23 = vsel %vm2033_vm2, %v3957_v22, 0.0 }
 0xa39   : > { %3959 = vadd.xlane.f32.xlu2 %v3958_v23 }
 0xaac   : > { %v3960_v25 = vpop.xlane.xlu2 %3959 }
 0xaad   : > { %6906 = vrcp.f32 %v3960_v25  ;;  %v3972_v32 = vand.u32 2147483648, %v3960_v25  ;;  %v3970_v34 = vand.u32 2147483647, %v3960_v25  ;;  %vm3966_vm8 = vweird.f32 %v3960_v25 }
 0xaaf   : > { %v3973_v48 = vor.u32 1.1754944e-38, %v3972_v32  ;;  %vm3971_vm10 = vcmp.eq.f32.partialorder %v3970_v34, 8.507059e+37  ;;  %v6885_v34 = vld [vmem:[%s8463_s8 + $0x8] ss:$0 sm:$0xff] }
 0xab3   : > { %v6907_v27 = vpop.eup %6906 }
 0xab4   : > { %v3962_v29 = vmul.f32 %v6907_v27, %v3960_v25  ;;  %vm3967_vm7 = vweird.f32 %v6907_v27 }
 0xab5   : > { %vm3968_vm9 = vmor %vm3966_vm8, %vm3967_vm7 }
 0xab6   : > { %v3963_v31 = vsub.f32 1.0, %v3962_v29 }
 0xab8   : > { %v3964_v33 = vmul.f32 %v6907_v27, %v3963_v31 }
 0xaba   : > { %v3965_v44 = vadd.f32 %v6907_v27, %v3964_v33  ;;  %v6884_v33 = vld [vmem:[%s8463_s8 + $0x7] ss:$0 sm:$0xff] }
 0xabc   : > { %v3969_v15 = vsel %vm3968_vm9, %v6907_v27, %v3965_v44 }
 0xabd   : > { %v3974_v35 = vsel %vm3971_vm10, %v3973_v48, %v3969_v15 }
 0xabe   : > { %v3975_v28 = vmul.f32 %v3974_v35, %v3957_v22 }
 0xac0   : > { %6502 = vmatmul.msk.f32.vlgmr.msra.gmra.mxu3 %vm2033_vm2, %v3975_v28 }
 0xb43   : > { %v4002_v63 = vpop.f32.mrf.mxu3 }
 0xb44   : > { %v4010_v52 = vpack.c.bf16 %v4002_v63, %v4002_v63 }
 0xb46   : > { %6515 = vmatmul.msk.bf16.vlgmr.msra.gmra.mxu0 %vm546_vm1, %v4010_v52 }
 0xbc3   : > { %v4037_v54 = vpop.f32.mrf.mxu0 }
 0xbc4   : > { %v4038_v56 = vadd.f32 %v8116_v53, %v4037_v54 }
 0xbc6   : > { %v4077_v59 = vadd.f32 %v4074_v46, %v4038_v56 }
 0xbc8   : > { %v6529_v60 = vmul.f32 -1.442695, %v4077_v59 }
 0xbca   : > { %6908 = vpow2.f32 %v6529_v60 }
 0xbcb   : > { %v4039_v58 = vpop.f32.mrf.mxu0 }
 0xbd0   : > { %v6909_v61 = vpop.eup %6908 }
 0xbd1   : > { %v4081_v62 = vadd.f32 1.0, %v6909_v61 }
 0xbd3   : > { %6910 = vrcp.f32 %v4081_v62  ;;  %v4093_v7 = vand.u32 2147483648, %v4081_v62  ;;  %v4091_v10 = vand.u32 2147483647, %v4081_v62  ;;  %vm4087_vm12 = vweird.f32 %v4081_v62 }
 0xbd5   : > { %v4094_v2 = vor.u32 1.1754944e-38, %v4093_v7  ;;  %vm4092_vm14 = vcmp.eq.f32.partialorder %v4091_v10, 8.507059e+37  ;;  %v8161_v7 = vld [vmem:[%s8461_s6 + $0x40] sm:$0xff] }
 0xbd9   : > { %v6911_v4 = vpop.eup %6910 }
 0xbda   : > { %v4083_v5 = vmul.f32 %v6911_v4, %v4081_v62  ;;  %vm4088_vm11 = vweird.f32 %v6911_v4 }
 0xbdb   : > { %vm4089_vm13 = vmor %vm4087_vm12, %vm4088_vm11 }
 0xbdc   : > { %v4084_v6 = vsub.f32 1.0, %v4083_v5 }
 0xbde   : > { %v4085_v9 = vmul.f32 %v6911_v4, %v4084_v6  ;;  %v8154_v6 = vld [vmem:[%s8461_s6 + $0x48] sm:$0xff] }
 0xbdf   : > { %4233 = vmatpush.bf16.msrb.mxu3 %v8154_v6  ;;  %4542 = vmatpush.bf16.msra.mxu0 %v8154_v6 }
 0xbe0   : > { %v4086_v1 = vadd.f32 %v6911_v4, %v4085_v9  ;;  %v8170_v9 = vld [vmem:[%s8463_s8 + $0x9] ss:$0 sm:$0xff] }
 0xbe2   : > { %v4090_v12 = vsel %vm4089_vm13, %v6911_v4, %v4086_v1 }
 0xbe3   : > { %v4095_v13 = vsel %vm4092_vm14, %v4094_v2, %v4090_v12  ;;  %4234 = vmatpush.bf16.msrb.mxu3 %v8161_v7  ;;  %4543 = vmatpush.bf16.msra.mxu0 %v8161_v7 }
 0xbe4   : > { %v4101_v3 = vmul.f32 %v4099_v0, %v4095_v13  ;;  %v4108_v19 = vsub.f32 1.0, %v4095_v13 }
 0xbe6   : > { %4103 = vrot.lane.b32.xlu2 %v4101_v3, %s7076_s15 }
 0xbe7   : > { %4413 = vmatpush.bf16.msra.mxu3 %v8093_v24 }
 0xbeb   : > { %4414 = vmatpush.bf16.msra.mxu3 %v8100_v36 }
 0xbee   : > { %4115 = vrot.lane.b32.xlu2 %v7957_v8, %s7077_s3 }
 0xc40   : > { %v4104_v14 = vpop.permute.xlu2 %4103 }
 0xc41   : > { %v4106_v16 = vadd.f32 %v4104_v14, %v4038_v56 }
 0xc43   : > { %6912 = vtanh.f32 %v4106_v16 }
 0xc48   : > { %v4116_v18 = vpop.permute.xlu2 %4115 }
 0xc49   : > { %v6913_v17 = vpop.eup %6912  ;;  %v4118_v21 = vmul.f32 %v4116_v18, %v4095_v13  ;;  %v8179_v13 = vld [vmem:[%s8463_s8 + $0xa] ss:$0 sm:$0xff] }
 0xc4a   : > { %4110 = vrot.lane.b32.xlu0 %v6913_v17, %s7075_s4 }
 0xcbc   : > { %v4111_v20 = vpop.permute.xlu0 %4110 }
 0xcbd   : > { %v4113_v22 = vmul.f32 %v4111_v20, %v4108_v19 }
 0xcbf   : > { %v8123_v23 = vadd.f32 %v4118_v21, %v4113_v22 }
 0xcc1   : > { %4123 = vrot.lane.b32.xlu1 %v8123_v23, %s7075_s4 }
 0xd33   : > { %v4124_v25 = vpop.permute.xlu1 %4123 }
 0xd34   : > { %v4126_v27 = vsel %vm546_vm1, %v4124_v25, 0.0 }
 0xd35   : > { %4127 = vadd.xlane.f32.xlu0 %v4126_v27 }
 0xda8   : > { %v4128_v8 = vpop.xlane.xlu0 %4127 }
 0xda9   : > { %v4129_v29 = vmul.f32 %v4128_v8, %v7968_v26 }
 0xdab   : > { %v4130_v31 = vsub.f32 %v8123_v23, %v4129_v29 }
 0xdad   : > { %v4131_v32 = vmul.f32 %v4130_v31, %v4130_v31 }
 0xdaf   : > { %4133 = vrot.lane.b32.xlu2 %v4131_v32, %s7075_s4 }
 0xdb7   : > { %4154 = vrot.lane.b32.xlu2 %v6884_v33, %s7077_s3 }
 0xdbf   : > { %4160 = vrot.lane.b32.xlu2 %v6885_v34, %s7077_s3 }
 0xe09   : > { %v4134_v44 = vpop.permute.xlu2 %4133 }
 0xe0a   : > { %v4136_v48 = vsel %vm546_vm1, %v4134_v44, 0.0 }
 0xe0b   : > { %4137 = vadd.xlane.f32.xlu1 %v4136_v48 }
 0xe11   : > { %v8141_v63 = vpop.permute.xlu2 %4154 }
 0xe19   : > { %v8143_v58 = vpop.permute.xlu2 %4160 }
 0xe7e   : > { %v4138_v15 = vpop.xlane.xlu1 %4137 }
 0xe7f   : > { %v4139_v35 = vmul.f32 %v4138_v15, %v7968_v26 }
 0xe81   : > { %v4140_v28 = vadd.f32 1e-05, %v4139_v35 }
 0xe83   : > { %6914 = vrsqrt.f32 %v4140_v28  ;;  %vm4147_vm0 = vweird.f32 %v4140_v28 }
 0xe89   : > { %v6915_v42 = vpop.eup %6914 }
 0xe8a   : > { %v4142_v46 = vmul.f32 %v6915_v42, %v4140_v28  ;;  %vm4148_vm15 = vweird.f32 %v6915_v42 }
 0xe8b   : > { %vm4149_vm3 = vmor %vm4147_vm0, %vm4148_vm15 }
 0xe8c   : > { %v4143_v49 = vmul.f32 %v6915_v42, %v4142_v46 }
 0xe8e   : > { %v4144_v52 = vmul.f32 0.5, %v4143_v49 }
 0xe90   : > { %v4145_v54 = vsub.f32 1.5, %v4144_v52 }
 0xe92   : > { %v4146_v56 = vmul.f32 %v6915_v42, %v4145_v54 }
 0xe94   : > { %v4150_v59 = vsel %vm4149_vm3, %v6915_v42, %v4146_v56 }
 0xe95   : > { %v4151_v60 = vmul.f32 %v4150_v59, %v4130_v31 }
 0xe97   : > { %v4157_v61 = vmul.f32 %v8141_v63, %v4151_v60 }
 0xe99   : > { %v4163_v62 = vadd.f32 %v8143_v58, %v4157_v61 }
 0xe9b   : > { %v4169_v4 = vpack.c.bf16 %v4163_v62, %v4163_v62 }
 0xe9d   : > { %4173 = vrot.lane.b32.xlu2 %v4169_v4, %s7075_s4 }
 0xef7   : > { %v4174_v5 = vpop.permute.xlu2 %4173 }
 0xef8   : > { %6542 = vmatmul.msk.bf16.vlgmr.msrb.gmra.mxu2 %vm546_vm1, %v4174_v5 }
 0xef9   : > { %4524 = vmatpush.bf16.msrb.mxu2 %v8061_v45 }
 0xefd   : > { %4525 = vmatpush.bf16.msrb.mxu2 %v8076_v47 }
 0xf7b   : > { %v4199_v10 = vpop.f32.mrf.mxu2 }
 0xf7c   : > { %v4200_v1 = vadd.f32 %v8170_v9, %v4199_v10 }
 0xf7e   : > { %v4203_v0 = vmax.f32 %v4200_v1, 0.0 }
 0xf80   : > { %v4209_v2 = vpack.c.bf16 %v4203_v0, %v4203_v0 }
 0xf82   : > { %6555 = vmatmul.msk.bf16.vlgmr.msrb.gmra.mxu3 %vm546_vm1, %v4209_v2 }
 0xf83   : > { %v4201_v12 = vpop.f32.mrf.mxu2  ;;  %4600 = vmatpush.bf16.msrb.mxu3 %v7983_v37 }
 0xf87   : > { %4601 = vmatpush.bf16.msrb.mxu3 %v7991_v41 }
0x1005   : > { %v4236_v3 = vpop.f32.mrf.mxu3 }
0x1006   : > { %v4237_v14 = vadd.f32 %v8179_v13, %v4236_v3 }
0x1008   : > { %v4240_v16 = vmax.f32 %v4237_v14, 0.0 }
0x100a   : > { %4242 = vrot.lane.b32.xlu2 %v4240_v16, %s7077_s3 }
0x100d   : > { %v4238_v17 = vpop.f32.mrf.mxu3 }
0x1064   : > { %v4243_v18 = vpop.permute.xlu2 %4242 }
0x1065   : > { %v8184_v19 = vadd.f32 %v4243_v18, %v8123_v23 }
0x1067   : > { %4247 = vrot.lane.b32.xlu0 %v8184_v19, %s7075_s4  ;;  %v4420_v31 = vpack.c.bf16 %v8184_v19, %v8184_v19 }
0x10d9   : > { %v4248_v20 = vpop.permute.xlu0 %4247 }
0x10da   : > { %v4250_v21 = vsel %vm546_vm1, %v4248_v20, 0.0 }
0x10db   : > { %4251 = vadd.xlane.f32.xlu2 %v4250_v21 }
0x114e   : > { %v4252_v22 = vpop.xlane.xlu2 %4251 }
0x114f   : > { %v4253_v25 = vmul.f32 %v4252_v22, %v7968_v26 }
0x1151   : > { %v4254_v27 = vsub.f32 %v8184_v19, %v4253_v25 }
0x1153   : > { %v4255_v8 = vmul.f32 %v4254_v27, %v4254_v27 }
0x1155   : > { %4257 = vrot.lane.b32.xlu1 %v4255_v8, %s7075_s4 }
0x115d   : > { %4277 = vrot.lane.b32.xlu1 %v7999_v55, %s7077_s3 }
0x1165   : > { %4282 = vrot.lane.b32.xlu1 %v8004_v57, %s7077_s3 }
0x11c7   : > { %v4258_v23 = vpop.permute.xlu1 %4257 }
0x11c8   : > { %v4260_v29 = vsel %vm546_vm1, %v4258_v23, 0.0 }
0x11c9   : > { %4261 = vadd.xlane.f32.xlu0 %v4260_v29 }
0x11cf   : > { %v8201_v15 = vpop.permute.xlu1 %4277 }
0x11d7   : > { %v8203_v49 = vpop.permute.xlu1 %4282 }
0x11dd   : > { %4422 = vrot.lane.b32.xlu0 %v4420_v31, %s7075_s4 }
0x123c   : > { %v4262_v32 = vpop.xlane.xlu0 %4261 }
0x123d   : > { %v4263_v33 = vmul.f32 %v4262_v32, %v7968_v26 }
0x123f   : > { %v4264_v34 = vadd.f32 1e-05, %v4263_v33 }
0x1241   : > { %6916 = vrsqrt.f32 %v4264_v34  ;;  %vm4271_vm5 = vweird.f32 %v4264_v34 }
0x1247   : > { %v6917_v44 = vpop.eup %6916 }
0x1248   : > { %v4266_v48 = vmul.f32 %v6917_v44, %v4264_v34  ;;  %vm4272_vm4 = vweird.f32 %v6917_v44 }
0x1249   : > { %vm4273_vm6 = vmor %vm4271_vm5, %vm4272_vm4 }
0x124a   : > { %v4267_v55 = vmul.f32 %v6917_v44, %v4266_v48 }
0x124c   : > { %v4268_v57 = vmul.f32 0.5, %v4267_v55 }
0x124e   : > { %v4269_v35 = vsub.f32 1.5, %v4268_v57 }
0x124f   : > { %v4423_v4 = vpop.permute.xlu0 %4422 }
0x1250   : > { %v4270_v28 = vmul.f32 %v6917_v44, %v4269_v35 }
0x1252   : > { %v4274_v42 = vsel %vm4273_vm6, %v6917_v44, %v4270_v28 }
0x1253   : > { %v4275_v46 = vmul.f32 %v4274_v42, %v4254_v27 }
0x1255   : > { %v4280_v52 = vmul.f32 %v8201_v15, %v4275_v46 }
0x1257   : > { %v4285_v54 = vadd.f32 %v8203_v49, %v4280_v52 }
0x1259   : > { %v4286_v56 = vpack.c.bf16 %v4285_v54, %v4285_v54 }
0x125b   : > { %4288 = vrot.lane.b32.xlu2 %v4286_v56, %s7075_s4 }
0x12b5   : > { %v4289_v59 = vpop.permute.xlu2 %4288 }
0x12b6   : > { %6556 = vmatmul.msk.bf16.vlgmr.msrb.gmra.mxu0 %vm546_vm1, %v4289_v59 }
0x12b7   : > { %4714 = vmatpush.bf16.msrb.mxu0 %v8093_v24 }
0x12bb   : > { %4715 = vmatpush.bf16.msrb.mxu0 %v8100_v36 }
0x1333   : > { %v4302_v60 = vpop.f32.mrf.mxu0 }
0x1334   : > { %v4303_v61 = vadd.f32 %v8056_v43, %v4302_v60 }
0x1336   : > { %6559 = vmatmul.msk.f32.vlgmr.msrb.gmra.mxu1 %vm546_vm1, %v4303_v61 }
0x1337   : > { %6567 = vmatpush.xpose.msk.msrb.mxu1 %vm546_vm1, %v8045_v40 }
0x133b   : > { %6568 = vmatpush.xpose.msk.msrb.mxu1 %vm546_vm1, %v8043_v39  ;;  %v4304_v62 = vpop.f32.mrf.mxu0 }
0x133e   : > { %6562 = vmatmul.msk.bf16.vlgmr.msra.gmra.mxu1 %vm546_vm1, %v4423_v4 }
0x133f   : > { %4734 = vmatpush.bf16.msra.mxu1 %v8028_v30 }
0x1343   : > { %4735 = vmatpush.bf16.msra.mxu1 %v8034_v11 }
0x13b3   : > { %v4326_v5 = vpop.f32.mrf.mxu1 }
0x13b4   : > { %v4329_v10 = vsel %vm2033_vm2, %v4326_v5, -inf }
0x13b5   : > { %v4330_v1 = vrot.slane %v4329_v10, 4 }
0x13b7   : > { %v4331_v0 = vmax.f32 %v4329_v10, %v4330_v1 }
0x13b9   : > { %v4332_v2 = vrot.slane %v4331_v0, 2 }
0x13bb   : > { %v4333_v12 = vmax.f32 %v4331_v0, %v4332_v2  ;;  %v4436_v3 = vpop.f32.mrf.mxu1 }
0x13bc   : > { %v4437_v14 = vadd.f32 %v8107_v38, %v4436_v3 }
0x13bd   : > { %v4334_v16 = vrot.slane %v4333_v12, 1 }
0x13be   : > { %4461 = vrot.lane.b32.xlu2 %v4437_v14, %s7076_s15 }
0x13bf   : > { %v4335_v17 = vmax.f32 %v4333_v12, %v4334_v16 }
0x13c1   : > { %v4336_v18 = vsub.f32 %v4326_v5, %v4335_v17 }
0x13c3   : > { %v4337_v20 = vmul.f32 1.442695, %v4336_v18  ;;  %v4438_v21 = vpop.f32.mrf.mxu1 }
0x13c5   : > { %6918 = vpow2.f32 %v4337_v20 }
0x13cb   : > { %v6919_v22 = vpop.eup %6918 }
0x13cc   : > { %v4339_v25 = vsel %vm2033_vm2, %v6919_v22, 0.0 }
0x13cd   : > { %v4340_v27 = vrot.slane %v4339_v25, 4 }
0x13cf   : > { %v4341_v8 = vadd.f32 %v4340_v27, %v4339_v25 }
0x13d1   : > { %v4342_v23 = vrot.slane %v4341_v8, 2 }
0x13d3   : > { %v4343_v29 = vadd.f32 %v4342_v23, %v4341_v8 }
0x13d5   : > { %v4344_v31 = vrot.slane %v4343_v29, 1 }
0x13d7   : > { %v4345_v32 = vadd.f32 %v4344_v31, %v4343_v29 }
0x13d9   : > { %6920 = vrcp.f32 %v4345_v32  ;;  %v4357_v48 = vand.u32 2147483648, %v4345_v32  ;;  %v4355_v57 = vand.u32 2147483647, %v4345_v32  ;;  %vm4351_vm8 = vweird.f32 %v4345_v32 }
0x13db   : > { %v4358_v28 = vor.u32 1.1754944e-38, %v4357_v48  ;;  %vm4356_vm10 = vcmp.eq.f32.partialorder %v4355_v57, 8.507059e+37 }
0x13df   : > { %v6921_v33 = vpop.eup %6920 }
0x13e0   : > { %v4347_v34 = vmul.f32 %v6921_v33, %v4345_v32  ;;  %vm4352_vm7 = vweird.f32 %v6921_v33 }
0x13e1   : > { %vm4353_vm9 = vmor %vm4351_vm8, %vm4352_vm7 }
0x13e2   : > { %v4348_v44 = vsub.f32 1.0, %v4347_v34 }
0x13e4   : > { %v4349_v55 = vmul.f32 %v6921_v33, %v4348_v44 }
0x13e6   : > { %v4350_v35 = vadd.f32 %v6921_v33, %v4349_v55 }
0x13e8   : > { %v4354_v42 = vsel %vm4353_vm9, %v6921_v33, %v4350_v35 }
0x13e9   : > { %v4359_v46 = vsel %vm4356_vm10, %v4358_v28, %v4354_v42 }
0x13ea   : > { %v4360_v52 = vmul.f32 %v6919_v22, %v4359_v46 }
0x13ec   : > { %v4361_v54 = vadd.f32 1e-08, %v4360_v52 }
0x13ee   : > { %v4362_v56 = vsel %vm2033_vm2, %v4361_v54, 0.0 }
0x13ef   : > { %4363 = vadd.xlane.f32.xlu1 %v4362_v56 }
0x1462   : > { %v4364_v59 = vpop.xlane.xlu1 %4363 }
0x1463   : > { %6922 = vrcp.f32 %v4364_v59  ;;  %v4376_v4 = vand.u32 2147483648, %v4364_v59  ;;  %v4374_v10 = vand.u32 2147483647, %v4364_v59  ;;  %vm4370_vm12 = vweird.f32 %v4364_v59 }
0x1465   : > { %v4377_v0 = vor.u32 1.1754944e-38, %v4376_v4  ;;  %vm4375_vm14 = vcmp.eq.f32.partialorder %v4374_v10, 8.507059e+37 }
0x1469   : > { %v6923_v60 = vpop.eup %6922 }
0x146a   : > { %v4366_v61 = vmul.f32 %v6923_v60, %v4364_v59  ;;  %vm4371_vm11 = vweird.f32 %v6923_v60 }
0x146b   : > { %vm4372_vm13 = vmor %vm4370_vm12, %vm4371_vm11 }
0x146c   : > { %v4367_v62 = vsub.f32 1.0, %v4366_v61 }
0x146e   : > { %v4368_v5 = vmul.f32 %v6923_v60, %v4367_v62 }
0x1470   : > { %v4369_v1 = vadd.f32 %v6923_v60, %v4368_v5 }
0x1472   : > { %v4373_v2 = vsel %vm4372_vm13, %v6923_v60, %v4369_v1 }
0x1473   : > { %v4378_v12 = vsel %vm4375_vm14, %v4377_v0, %v4373_v2 }
0x1474   : > { %v4379_v3 = vmul.f32 %v4378_v12, %v4361_v54 }
0x1476   : > { %6560 = vmatmul.msk.f32.vlgmr.msra.gmra.mxu2 %vm2033_vm2, %v4379_v3 }
0x1477   : > { %4698 = vmatpush.msra.mxu2 %v8079_v50 }
0x1479   : > { %4699 = vmatpush.msra.mxu2 %v8081_v51 }
0x14f9   : > { %v4400_v16 = vpop.f32.mrf.mxu2 }
0x14fa   : > { %v4403_v17 = vpack.c.bf16 %v4400_v16, %v4400_v16 }
0x14fc   : > { %6561 = vmatmul.msk.bf16.vlgmr.msra.gmra.mxu3 %vm546_vm1, %v4403_v17 }
0x14fd   : > { %4843 = vmatpush.bf16.msra.mxu3 %v8154_v6 }
0x1501   : > { %4844 = vmatpush.bf16.msra.mxu3 %v8161_v7 }
0x157f   : > { %v4416_v18 = vpop.f32.mrf.mxu3 }
0x1580   : > { %v4417_v20 = vadd.f32 %v8116_v53, %v4416_v18 }
0x1582   : > { %v4440_v21 = vadd.f32 %v4437_v14, %v4417_v20  ;;  %v4462_v14 = vpop.permute.xlu2 %4461 }
0x1584   : > { %v6563_v22 = vmul.f32 -1.442695, %v4440_v21 }
0x1586   : > { %6924 = vpow2.f32 %v6563_v22 }
0x1587   : > { %v4418_v25 = vpop.f32.mrf.mxu3 }
0x158c   : > { %v6925_v27 = vpop.eup %6924 }
0x158d   : > { %v4444_v8 = vadd.f32 1.0, %v6925_v27 }
0x158f   : > { %6926 = vrcp.f32 %v4444_v8  ;;  %v4456_v32 = vand.u32 2147483648, %v4444_v8  ;;  %v4454_v34 = vand.u32 2147483647, %v4444_v8  ;;  %vm4450_vm0 = vweird.f32 %v4444_v8 }
0x1591   : > { %v4457_v48 = vor.u32 1.1754944e-38, %v4456_v32  ;;  %vm4455_vm4 = vcmp.eq.f32.partialorder %v4454_v34, 8.507059e+37 }
0x1595   : > { %v6927_v23 = vpop.eup %6926 }
0x1596   : > { %v4446_v29 = vmul.f32 %v6927_v23, %v4444_v8  ;;  %vm4451_vm15 = vweird.f32 %v6927_v23 }
0x1597   : > { %vm4452_vm3 = vmor %vm4450_vm0, %vm4451_vm15 }
0x1598   : > { %v4447_v31 = vsub.f32 1.0, %v4446_v29 }
0x159a   : > { %v4448_v33 = vmul.f32 %v6927_v23, %v4447_v31 }
0x159c   : > { %v4449_v44 = vadd.f32 %v6927_v23, %v4448_v33 }
0x159e   : > { %v4453_v55 = vsel %vm4452_vm3, %v6927_v23, %v4449_v44 }
0x159f   : > { %v4458_v57 = vsel %vm4455_vm4, %v4457_v48, %v4453_v55 }
0x15a0   : > { %v4464_v35 = vmul.f32 %v4462_v14, %v4458_v57  ;;  %v4471_v52 = vsub.f32 1.0, %v4458_v57  ;;  %v4477_v56 = vmul.f32 %v4458_v57, %v8184_v19 }
0x15a2   : > { %4466 = vrot.lane.b32.xlu2 %v4464_v35, %s7076_s15 }
0x15fc   : > { %v4467_v28 = vpop.permute.xlu2 %4466 }
0x15fd   : > { %v4469_v42 = vadd.f32 %v4467_v28, %v4417_v20 }
0x15ff   : > { %6928 = vtanh.f32 %v4469_v42 }
0x1605   : > { %v6929_v46 = vpop.eup %6928 }
0x1606   : > { %4473 = vrot.lane.b32.xlu0 %v6929_v46, %s7075_s4 }
0x1678   : > { %v4474_v54 = vpop.permute.xlu0 %4473 }
0x1679   : > { %v4476_v59 = vmul.f32 %v4474_v54, %v4471_v52 }
0x167b   : > { %v4478_v60 = vadd.f32 %v4477_v56, %v4476_v59 }
0x167d   : > { %4480 = vrot.lane.b32.xlu2 %v4478_v60, %s7075_s4 }
0x16d7   : > { %v4481_v61 = vpop.permute.xlu2 %4480 }
0x16d8   : > { %v4483_v62 = vsel %vm546_vm1, %v4481_v61, 0.0 }
0x16d9   : > { %4484 = vadd.xlane.f32.xlu1 %v4483_v62 }
0x174c   : > { %v4485_v4 = vpop.xlane.xlu1 %4484 }
0x174d   : > { %v4486_v5 = vmul.f32 %v4485_v4, %v7968_v26 }
0x174f   : > { %v4487_v10 = vsub.f32 %v4478_v60, %v4486_v5 }
0x1751   : > { %v4488_v1 = vmul.f32 %v4487_v10, %v4487_v10 }
0x1753   : > { %4490 = vrot.lane.b32.xlu0 %v4488_v1, %s7075_s4 }
0x17c5   : > { %v4491_v0 = vpop.permute.xlu0 %4490 }
0x17c6   : > { %v4493_v2 = vsel %vm546_vm1, %v4491_v0, 0.0 }
0x17c7   : > { %4494 = vadd.xlane.f32.xlu2 %v4493_v2 }
0x183a   : > { %v4495_v19 = vpop.xlane.xlu2 %4494 }
0x183b   : > { %v4496_v12 = vmul.f32 %v4495_v19, %v7968_v26 }
0x183d   : > { %v4497_v3 = vadd.f32 1e-05, %v4496_v12 }
0x183f   : > { %6930 = vrsqrt.f32 %v4497_v3  ;;  %vm4504_vm6 = vweird.f32 %v4497_v3 }
0x1845   : > { %v6931_v16 = vpop.eup %6930 }
0x1846   : > { %v4499_v17 = vmul.f32 %v6931_v16, %v4497_v3  ;;  %vm4505_vm5 = vweird.f32 %v6931_v16 }
0x1847   : > { %vm4506_vm7 = vmor %vm4504_vm6, %vm4505_vm5 }
0x1848   : > { %v4500_v18 = vmul.f32 %v6931_v16, %v4499_v17 }
0x184a   : > { %v4501_v20 = vmul.f32 0.5, %v4500_v18 }
0x184c   : > { %v4502_v21 = vsub.f32 1.5, %v4501_v20 }
0x184e   : > { %v4503_v22 = vmul.f32 %v6931_v16, %v4502_v21 }
0x1850   : > { %v4507_v25 = vsel %vm4506_vm7, %v6931_v16, %v4503_v22 }
0x1851   : > { %v4508_v27 = vmul.f32 %v4507_v25, %v4487_v10 }
0x1853   : > { %v4509_v8 = vmul.f32 %v4508_v27, %v8141_v63 }
0x1855   : > { %v4510_v23 = vadd.f32 %v4509_v8, %v8143_v58 }
0x1857   : > { %v4511_v29 = vpack.c.bf16 %v4510_v23, %v4510_v23 }
0x1859   : > { %4513 = vrot.lane.b32.xlu1 %v4511_v29, %s7075_s4 }
0x18cb   : > { %v4514_v31 = vpop.permute.xlu1 %4513 }
0x18cc   : > { %6564 = vmatmul.msk.bf16.vlgmr.msrb.gmra.mxu2 %vm546_vm1, %v4514_v31 }
0x18cd   : > { %4825 = vmatpush.bf16.msrb.mxu2 %v8061_v45 }
0x18d1   : > { %4826 = vmatpush.bf16.msrb.mxu2 %v8076_v47 }
0x194f   : > { %v4527_v32 = vpop.f32.mrf.mxu2 }
0x1950   : > { %v4528_v33 = vadd.f32 %v8170_v9, %v4527_v32 }
0x1952   : > { %v4531_v34 = vmax.f32 %v4528_v33, 0.0 }
0x1954   : > { %v4532_v44 = vpack.c.bf16 %v4531_v34, %v4531_v34 }
0x1956   : > { %6565 = vmatmul.msk.bf16.vlgmr.msra.gmra.mxu0 %vm546_vm1, %v4532_v44 }
0x1957   : > { %v4529_v48 = vpop.f32.mrf.mxu2  ;;  %4901 = vmatpush.bf16.msra.mxu0 %v7983_v37 }
0x195b   : > { %4902 = vmatpush.bf16.msra.mxu0 %v7991_v41 }
0x19d3   : > { %v4545_v55 = vpop.f32.mrf.mxu0 }
0x19d4   : > { %v4546_v14 = vadd.f32 %v8179_v13, %v4545_v55 }
0x19d6   : > { %v4549_v57 = vmax.f32 %v4546_v14, 0.0 }
0x19d8   : > { %4551 = vrot.lane.b32.xlu0 %v4549_v57, %s7077_s3 }
0x19db   : > { %v4547_v45 = vpop.f32.mrf.mxu0 }
0x1a4a   : > { %v4552_v47 = vpop.permute.xlu0 %4551 }
0x1a4b   : > { %v8253_v35 = vadd.f32 %v4552_v47, %v4478_v60 }
0x1a4d   : > { %4556 = vrot.lane.b32.xlu0 %v8253_v35, %s7075_s4  ;;  %v4721_v17 = vpack.c.bf16 %v8253_v35, %v8253_v35 }
0x1abf   : > { %v4557_v28 = vpop.permute.xlu0 %4556 }
0x1ac0   : > { %v4559_v42 = vsel %vm546_vm1, %v4557_v28, 0.0 }
0x1ac1   : > { %4560 = vadd.xlane.f32.xlu0 %v4559_v42 }
0x1b34   : > { %v4561_v37 = vpop.xlane.xlu0 %4560 }
0x1b35   : > { %v4562_v41 = vmul.f32 %v4561_v37, %v7968_v26 }
0x1b37   : > { %v4563_v46 = vsub.f32 %v8253_v35, %v4562_v41 }
0x1b39   : > { %v4564_v52 = vmul.f32 %v4563_v46, %v4563_v46 }
0x1b3b   : > { %4566 = vrot.lane.b32.xlu1 %v4564_v52, %s7075_s4 }
0x1bad   : > { %v4567_v54 = vpop.permute.xlu1 %4566 }
0x1bae   : > { %v4569_v56 = vsel %vm546_vm1, %v4567_v54, 0.0 }
0x1baf   : > { %4570 = vadd.xlane.f32.xlu1 %v4569_v56 }
0x1c22   : > { %v4571_v59 = vpop.xlane.xlu1 %4570 }
0x1c23   : > { %v4572_v60 = vmul.f32 %v4571_v59, %v7968_v26 }
0x1c25   : > { %v4573_v61 = vadd.f32 1e-05, %v4572_v60 }
0x1c27   : > { %6932 = vrsqrt.f32 %v4573_v61  ;;  %vm4580_vm9 = vweird.f32 %v4573_v61 }
0x1c2d   : > { %v6933_v62 = vpop.eup %6932 }
0x1c2e   : > { %v4575_v4 = vmul.f32 %v6933_v62, %v4573_v61  ;;  %vm4581_vm8 = vweird.f32 %v6933_v62 }
0x1c2f   : > { %vm4582_vm10 = vmor %vm4580_vm9, %vm4581_vm8 }
0x1c30   : > { %v4576_v5 = vmul.f32 %v6933_v62, %v4575_v4 }
0x1c32   : > { %v4577_v10 = vmul.f32 0.5, %v4576_v5 }
0x1c34   : > { %v4578_v1 = vsub.f32 1.5, %v4577_v10 }
0x1c36   : > { %v4579_v0 = vmul.f32 %v6933_v62, %v4578_v1 }
0x1c38   : > { %v4583_v2 = vsel %vm4582_vm10, %v6933_v62, %v4579_v0 }
0x1c39   : > { %v4584_v19 = vmul.f32 %v4583_v2, %v4563_v46 }
0x1c3b   : > { %v4585_v12 = vmul.f32 %v4584_v19, %v8201_v15 }
0x1c3d   : > { %v4586_v3 = vadd.f32 %v4585_v12, %v8203_v49 }
0x1c3f   : > { %v4587_v16 = vpack.c.bf16 %v4586_v3, %v4586_v3 }
0x1c41   : > { %4589 = vrot.lane.b32.xlu2 %v4587_v16, %s7075_s4 }
0x1c49   : > { %4723 = vrot.lane.b32.xlu2 %v4721_v17, %s7075_s4 }
0x1c9b   : > { %v4590_v18 = vpop.permute.xlu2 %4589 }
0x1c9c   : > { %6566 = vmatmul.msk.bf16.vlgmr.msrb.gmra.mxu3 %vm546_vm1, %v4590_v18 }
0x1c9d   : > { %5015 = vmatpush.bf16.msrb.mxu3 %v8093_v24 }
0x1ca1   : > { %5016 = vmatpush.bf16.msrb.mxu3 %v8100_v36 }
0x1ca3   : > { %v4724_v25 = vpop.permute.xlu2 %4723 }
0x1d1f   : > { %v4603_v20 = vpop.f32.mrf.mxu3 }
0x1d20   : > { %v4604_v21 = vadd.f32 %v8056_v43, %v4603_v20 }
0x1d22   : > { %6569 = vmatmul.msk.f32.vlgmr.msrb.gmra.mxu1 %vm546_vm1, %v4604_v21 }
0x1d23   : > { %6577 = vmatpush.xpose.msk.msrb.mxu1 %vm546_vm1, %v8045_v40 }
0x1d27   : > { %6578 = vmatpush.xpose.msk.msrb.mxu1 %vm546_vm1, %v8043_v39  ;;  %v4605_v22 = vpop.f32.mrf.mxu3 }
0x1d2a   : > { %6572 = vmatmul.msk.bf16.vlgmr.msra.gmra.mxu1 %vm546_vm1, %v4724_v25 }
0x1d2b   : > { %5035 = vmatpush.bf16.msra.mxu1 %v8028_v30 }
0x1d2f   : > { %5036 = vmatpush.bf16.msra.mxu1 %v8034_v11 }
0x1d9f   : > { %v4627_v24 = vpop.f32.mrf.mxu1 }
0x1da0   : > { %v4630_v36 = vsel %vm2033_vm2, %v4627_v24, -inf }
0x1da1   : > { %v4631_v43 = vrot.slane %v4630_v36, 4 }
0x1da3   : > { %v4632_v27 = vmax.f32 %v4630_v36, %v4631_v43 }
0x1da5   : > { %v4633_v8 = vrot.slane %v4632_v27, 2 }
0x1da7   : > { %v4634_v23 = vmax.f32 %v4632_v27, %v4633_v8  ;;  %v4737_v29 = vpop.f32.mrf.mxu1 }
0x1da8   : > { %v4738_v62 = vadd.f32 %v8107_v38, %v4737_v29 }
0x1da9   : > { %v4635_v40 = vrot.slane %v4634_v23, 1 }
0x1dab   : > { %v4636_v31 = vmax.f32 %v4634_v23, %v4635_v40 }
0x1dad   : > { %v4637_v32 = vsub.f32 %v4627_v24, %v4636_v31 }
0x1daf   : > { %v4638_v39 = vmul.f32 1.442695, %v4637_v32  ;;  %v4739_v33 = vpop.f32.mrf.mxu1 }
0x1db1   : > { %6934 = vpow2.f32 %v4638_v39 }
0x1db7   : > { %v6935_v34 = vpop.eup %6934 }
0x1db8   : > { %v4640_v44 = vsel %vm2033_vm2, %v6935_v34, 0.0 }
0x1db9   : > { %v4641_v30 = vrot.slane %v4640_v44, 4 }
0x1dbb   : > { %v4642_v48 = vadd.f32 %v4641_v30, %v4640_v44 }
0x1dbd   : > { %v4643_v11 = vrot.slane %v4642_v48, 2 }
0x1dbf   : > { %v4644_v55 = vadd.f32 %v4643_v11, %v4642_v48 }
0x1dc1   : > { %v4645_v14 = vrot.slane %v4644_v55, 1 }
0x1dc3   : > { %v4646_v57 = vadd.f32 %v4645_v14, %v4644_v55 }
0x1dc5   : > { %6936 = vrcp.f32 %v4646_v57  ;;  %v4658_v42 = vand.u32 2147483648, %v4646_v57  ;;  %v4656_v41 = vand.u32 2147483647, %v4646_v57  ;;  %vm4652_vm12 = vweird.f32 %v4646_v57 }
0x1dc7   : > { %v4659_v52 = vor.u32 1.1754944e-38, %v4658_v42  ;;  %vm4657_vm14 = vcmp.eq.f32.partialorder %v4656_v41, 8.507059e+37 }
0x1dcb   : > { %v6937_v45 = vpop.eup %6936 }
0x1dcc   : > { %v4648_v47 = vmul.f32 %v6937_v45, %v4646_v57  ;;  %vm4653_vm11 = vweird.f32 %v6937_v45 }
0x1dcd   : > { %vm4654_vm13 = vmor %vm4652_vm12, %vm4653_vm11 }
0x1dce   : > { %v4649_v28 = vsub.f32 1.0, %v4648_v47 }
0x1dd0   : > { %v4650_v37 = vmul.f32 %v6937_v45, %v4649_v28 }
0x1dd2   : > { %v4651_v46 = vadd.f32 %v6937_v45, %v4650_v37 }
0x1dd4   : > { %v4655_v54 = vsel %vm4654_vm13, %v6937_v45, %v4651_v46 }
0x1dd5   : > { %v4660_v56 = vsel %vm4657_vm14, %v4659_v52, %v4655_v54 }
0x1dd6   : > { %v4661_v59 = vmul.f32 %v6935_v34, %v4660_v56 }
0x1dd8   : > { %v4662_v60 = vadd.f32 1e-08, %v4661_v59 }
0x1dda   : > { %v4663_v61 = vsel %vm2033_vm2, %v4662_v60, 0.0 }
0x1ddb   : > { %4664 = vadd.xlane.f32.xlu0 %v4663_v61 }
0x1def   : > { %4762 = vrot.lane.b32.xlu0 %v4738_v62, %s7076_s15 }
0x1e4e   : > { %v4665_v4 = vpop.xlane.xlu0 %4664 }
0x1e4f   : > { %6938 = vrcp.f32 %v4665_v4  ;;  %v4677_v0 = vand.u32 2147483648, %v4665_v4  ;;  %v4675_v19 = vand.u32 2147483647, %v4665_v4  ;;  %vm4671_vm0 = vweird.f32 %v4665_v4 }
0x1e51   : > { %v4678_v3 = vor.u32 1.1754944e-38, %v4677_v0  ;;  %vm4676_vm4 = vcmp.eq.f32.partialorder %v4675_v19, 8.507059e+37 }
0x1e55   : > { %v6939_v5 = vpop.eup %6938 }
0x1e56   : > { %v4667_v10 = vmul.f32 %v6939_v5, %v4665_v4  ;;  %vm4672_vm15 = vweird.f32 %v6939_v5 }
0x1e57   : > { %vm4673_vm3 = vmor %vm4671_vm0, %vm4672_vm15 }
0x1e58   : > { %v4668_v1 = vsub.f32 1.0, %v4667_v10 }
0x1e5a   : > { %v4669_v2 = vmul.f32 %v6939_v5, %v4668_v1 }
0x1e5c   : > { %v4670_v12 = vadd.f32 %v6939_v5, %v4669_v2 }
0x1e5e   : > { %v4674_v16 = vsel %vm4673_vm3, %v6939_v5, %v4670_v12  ;;  %v6970_v12 = vld [vmem:[%s8461_s6 + $0x38] sm:$0xff] }
0x1e5f   : > { %v4679_v17 = vsel %vm4676_vm4, %v4678_v3, %v4674_v16  ;;  %v6971_v3 = vld [vmem:[%s8461_s6 + $0x30] sm:$0xff] }
0x1e60   : > { %v4680_v18 = vmul.f32 %v4679_v17, %v4662_v60 }
0x1e62   : > { %6570 = vmatmul.msk.f32.vlgmr.msra.gmra.mxu2 %vm2033_vm2, %v4680_v18 }
0x1e63   : > { %4999 = vmatpush.msra.mxu2 %v8079_v50 }
0x1e65   : > { %5000 = vmatpush.msra.mxu2 %v8081_v51 }
0x1ee5   : > { %v4701_v38 = vpop.f32.mrf.mxu2 }
0x1ee6   : > { %v4704_v20 = vpack.c.bf16 %v4701_v38, %v4701_v38 }
0x1ee8   : > { %6571 = vmatmul.msk.bf16.vlgmr.msrb.gmra.mxu0 %vm546_vm1, %v4704_v20 }
0x1ee9   : > { %5144 = vmatpush.bf16.msrb.mxu0 %v8154_v6 }
0x1eed   : > { %5145 = vmatpush.bf16.msrb.mxu0 %v8161_v7 }
0x1f65   : > { %v4717_v21 = vpop.f32.mrf.mxu0 }
0x1f66   : > { %v4718_v22 = vadd.f32 %v8116_v53, %v4717_v21  ;;  %v4763_v53 = vpop.permute.xlu0 %4762 }
0x1f68   : > { %v4741_v25 = vadd.f32 %v4738_v62, %v4718_v22 }
0x1f6a   : > { %v6573_v24 = vmul.f32 -1.442695, %v4741_v25 }
0x1f6c   : > { %6940 = vpow2.f32 %v6573_v24 }
0x1f6d   : > { %v4719_v36 = vpop.f32.mrf.mxu0 }
0x1f72   : > { %v6941_v43 = vpop.eup %6940 }
0x1f73   : > { %v4745_v27 = vadd.f32 1.0, %v6941_v43 }
0x1f75   : > { %6942 = vrcp.f32 %v4745_v27  ;;  %v4757_v23 = vand.u32 2147483648, %v4745_v27  ;;  %v4755_v40 = vand.u32 2147483647, %v4745_v27  ;;  %vm4751_vm6 = vweird.f32 %v4745_v27 }
0x1f77   : > { %v4758_v7 = vor.u32 1.1754944e-38, %v4757_v23  ;;  %vm4756_vm8 = vcmp.eq.f32.partialorder %v4755_v40, 8.507059e+37 }
0x1f7b   : > { %v6943_v50 = vpop.eup %6942 }
0x1f7c   : > { %v4747_v51 = vmul.f32 %v6943_v50, %v4745_v27  ;;  %vm4752_vm5 = vweird.f32 %v6943_v50 }
0x1f7d   : > { %vm4753_vm7 = vmor %vm4751_vm6, %vm4752_vm5 }
0x1f7e   : > { %v4748_v8 = vsub.f32 1.0, %v4747_v51 }
0x1f80   : > { %v4749_v29 = vmul.f32 %v6943_v50, %v4748_v8 }
0x1f82   : > { %v4750_v6 = vadd.f32 %v6943_v50, %v4749_v29 }
0x1f84   : > { %v4754_v31 = vsel %vm4753_vm7, %v6943_v50, %v4750_v6 }
0x1f85   : > { %v4759_v32 = vsel %vm4756_vm8, %v4758_v7, %v4754_v31 }
0x1f86   : > { %v4765_v39 = vmul.f32 %v4763_v53, %v4759_v32  ;;  %v4772_v30 = vsub.f32 1.0, %v4759_v32  ;;  %v4778_v11 = vmul.f32 %v4759_v32, %v8253_v35 }
0x1f88   : > { %4767 = vrot.lane.b32.xlu2 %v4765_v39, %s7076_s15 }
0x1fe2   : > { %v4768_v33 = vpop.permute.xlu2 %4767 }
0x1fe3   : > { %v4770_v34 = vadd.f32 %v4768_v33, %v4718_v22 }
0x1fe5   : > { %6944 = vtanh.f32 %v4770_v34 }
0x1feb   : > { %v6945_v44 = vpop.eup %6944 }
0x1fec   : > { %4774 = vrot.lane.b32.xlu1 %v6945_v44, %s7075_s4 }
0x205e   : > { %v4775_v48 = vpop.permute.xlu1 %4774 }
0x205f   : > { %v4777_v55 = vmul.f32 %v4775_v48, %v4772_v30 }
0x2061   : > { %v4779_v14 = vadd.f32 %v4778_v11, %v4777_v55 }
0x2063   : > { %4781 = vrot.lane.b32.xlu2 %v4779_v14, %s7075_s4 }
0x20bd   : > { %v4782_v57 = vpop.permute.xlu2 %4781 }
0x20be   : > { %v4784_v45 = vsel %vm546_vm1, %v4782_v57, 0.0 }
0x20bf   : > { %4785 = vadd.xlane.f32.xlu2 %v4784_v45 }
0x2132   : > { %v4786_v47 = vpop.xlane.xlu2 %4785 }
0x2133   : > { %v4787_v28 = vmul.f32 %v4786_v47, %v7968_v26  ;;  %v6972_v47 = vld [vmem:[%s8463_s8 + $0x4] ss:$0 sm:$0xff] }
0x2135   : > { %v4788_v42 = vsub.f32 %v4779_v14, %v4787_v28 }
0x2137   : > { %v4789_v37 = vmul.f32 %v4788_v42, %v4788_v42 }
0x2139   : > { %4791 = vrot.lane.b32.xlu0 %v4789_v37, %s7075_s4 }
0x21ab   : > { %v4792_v41 = vpop.permute.xlu0 %4791 }
0x21ac   : > { %v4794_v46 = vsel %vm546_vm1, %v4792_v41, 0.0 }
0x21ad   : > { %4795 = vadd.xlane.f32.xlu0 %v4794_v46 }
0x2220   : > { %v4796_v35 = vpop.xlane.xlu0 %4795 }
0x2221   : > { %v4797_v52 = vmul.f32 %v4796_v35, %v7968_v26 }
0x2223   : > { %v4798_v54 = vadd.f32 1e-05, %v4797_v52 }
0x2225   : > { %6946 = vrsqrt.f32 %v4798_v54  ;;  %vm4805_vm10 = vweird.f32 %v4798_v54 }
0x222b   : > { %v6947_v56 = vpop.eup %6946 }
0x222c   : > { %v4800_v59 = vmul.f32 %v6947_v56, %v4798_v54  ;;  %vm4806_vm9 = vweird.f32 %v6947_v56 }
0x222d   : > { %vm4807_vm11 = vmor %vm4805_vm10, %vm4806_vm9 }
0x222e   : > { %v4801_v60 = vmul.f32 %v6947_v56, %v4800_v59 }
0x2230   : > { %v4802_v61 = vmul.f32 0.5, %v4801_v60 }
0x2232   : > { %v4803_v62 = vsub.f32 1.5, %v4802_v61 }
0x2234   : > { %v4804_v4 = vmul.f32 %v6947_v56, %v4803_v62 }
0x2236   : > { %v4808_v5 = vsel %vm4807_vm11, %v6947_v56, %v4804_v4  ;;  %v6973_v56 = vld [vmem:[%s8464_s9 + $0x1] ss:$0 sm:$0xff] }
0x2237   : > { %v4809_v10 = vmul.f32 %v4808_v5, %v4788_v42 }
0x2239   : > { %v4810_v1 = vmul.f32 %v4809_v10, %v8141_v63 }
0x223b   : > { %v4811_v0 = vadd.f32 %v4810_v1, %v8143_v58 }
0x223d   : > { %v4812_v2 = vpack.c.bf16 %v4811_v0, %v4811_v0 }
0x223f   : > { %4814 = vrot.lane.b32.xlu1 %v4812_v2, %s7075_s4 }
0x22b1   : > { %v4815_v19 = vpop.permute.xlu1 %4814 }
0x22b2   : > { %6574 = vmatmul.msk.bf16.vlgmr.msrb.gmra.mxu2 %vm546_vm1, %v4815_v19 }
0x22b3   : > { %5126 = vmatpush.bf16.msrb.mxu2 %v6970_v12 }
0x22b7   : > { %5127 = vmatpush.bf16.msrb.mxu2 %v6971_v3 }
0x2335   : > { %v4828_v16 = vpop.f32.mrf.mxu2 }
0x2336   : > { %v4829_v17 = vadd.f32 %v8170_v9, %v4828_v16 }
0x2338   : > { %v4832_v18 = vmax.f32 %v4829_v17, 0.0 }
0x233a   : > { %v4833_v38 = vpack.c.bf16 %v4832_v18, %v4832_v18 }
0x233c   : > { %6575 = vmatmul.msk.bf16.vlgmr.msra.gmra.mxu3 %vm546_vm1, %v4833_v38 }
0x233d   : > { %v4830_v20 = vpop.f32.mrf.mxu2 }
0x23bf   : > { %v4846_v21 = vpop.f32.mrf.mxu3 }
0x23c0   : > { %v4847_v22 = vadd.f32 %v8179_v13, %v4846_v21 }
0x23c2   : > { %v4850_v25 = vmax.f32 %v4847_v22, 0.0 }
0x23c4   : > { %4852 = vrot.lane.b32.xlu1 %v4850_v25, %s7077_s3 }
0x23c7   : > { %v4848_v24 = vpop.f32.mrf.mxu3 }
0x2436   : > { %v4853_v36 = vpop.permute.xlu1 %4852 }
0x2437   : > { %v8316_v43 = vadd.f32 %v4853_v36, %v4779_v14 }
0x2439   : > { %4857 = vrot.lane.b32.xlu1 %v8316_v43, %s7075_s4  ;;  %v5022_v14 = vpack.c.bf16 %v8316_v43, %v8316_v43 }
0x24ab   : > { %v4858_v27 = vpop.permute.xlu1 %4857 }
0x24ac   : > { %v4860_v9 = vsel %vm546_vm1, %v4858_v27, 0.0 }
0x24ad   : > { %4861 = vadd.xlane.f32.xlu1 %v4860_v9 }
0x2520   : > { %v4862_v50 = vpop.xlane.xlu1 %4861 }
0x2521   : > { %v4863_v51 = vmul.f32 %v4862_v50, %v7968_v26 }
0x2523   : > { %v4864_v8 = vsub.f32 %v8316_v43, %v4863_v51 }
0x2525   : > { %v4865_v13 = vmul.f32 %v4864_v8, %v4864_v8 }
0x2527   : > { %4867 = vrot.lane.b32.xlu2 %v4865_v13, %s7075_s4 }
0x2581   : > { %v4868_v23 = vpop.permute.xlu2 %4867 }
0x2582   : > { %v4870_v29 = vsel %vm546_vm1, %v4868_v23, 0.0 }
0x2583   : > { %4871 = vadd.xlane.f32.xlu0 %v4870_v29 }
0x25f6   : > { %v4872_v40 = vpop.xlane.xlu0 %4871 }
0x25f7   : > { %v4873_v6 = vmul.f32 %v4872_v40, %v7968_v26 }
0x25f9   : > { %v4874_v7 = vadd.f32 1e-05, %v4873_v6 }
0x25fb   : > { %6948 = vrsqrt.f32 %v4874_v7  ;;  %vm4881_vm13 = vweird.f32 %v4874_v7 }
0x2601   : > { %v6949_v31 = vpop.eup %6948 }
0x2602   : > { %v4876_v53 = vmul.f32 %v6949_v31, %v4874_v7  ;;  %vm4882_vm12 = vweird.f32 %v6949_v31 }
0x2603   : > { %vm4883_vm14 = vmor %vm4881_vm13, %vm4882_vm12 }
0x2604   : > { %v4877_v32 = vmul.f32 %v6949_v31, %v4876_v53 }
0x2606   : > { %v4878_v39 = vmul.f32 0.5, %v4877_v32 }
0x2608   : > { %v4879_v33 = vsub.f32 1.5, %v4878_v39 }
0x260a   : > { %v4880_v34 = vmul.f32 %v6949_v31, %v4879_v33 }
0x260c   : > { %v4884_v44 = vsel %vm4883_vm14, %v6949_v31, %v4880_v34 }
0x260d   : > { %v4885_v30 = vmul.f32 %v4884_v44, %v4864_v8 }
0x260f   : > { %v4886_v48 = vmul.f32 %v4885_v30, %v8201_v15 }
0x2611   : > { %v4887_v11 = vadd.f32 %v4886_v48, %v8203_v49  ;;  %v6974_v48 = vld [vmem:[%s8464_s9] ss:$0 sm:$0xff] }
0x2613   : > { %v4888_v55 = vpack.c.bf16 %v4887_v11, %v4887_v11 }
0x2615   : > { %4890 = vrot.lane.b32.xlu0 %v4888_v55, %s7075_s4 }
0x261d   : > { %5024 = vrot.lane.b32.xlu0 %v5022_v14, %s7075_s4 }
0x2687   : > { %v4891_v57 = vpop.permute.xlu0 %4890 }
0x2688   : > { %6576 = vmatmul.msk.bf16.vlgmr.msra.gmra.mxu0 %vm546_vm1, %v4891_v57 }
0x268f   : > { %v5025_v49 = vpop.permute.xlu0 %5024 }
0x2705   : > { %v4904_v45 = vpop.f32.mrf.mxu0 }
0x2706   : > { %v4905_v28 = vadd.f32 %v6972_v47, %v4904_v45 }
0x2708   : > { %6579 = vmatmul.msk.f32.vlgmr.msrb.gmra.mxu1 %vm546_vm1, %v4905_v28 }
0x270d   : > { %v4906_v15 = vpop.f32.mrf.mxu0 }
0x2710   : > { %6582 = vmatmul.msk.bf16.vlgmr.msra.gmra.mxu1 %vm546_vm1, %v5025_v49 }
0x2785   : > { %v4928_v42 = vpop.f32.mrf.mxu1 }
0x2786   : > { %v4931_v37 = vsel %vm2033_vm2, %v4928_v42, -inf }
0x2787   : > { %v4932_v41 = vrot.slane %v4931_v37, 4 }
0x2789   : > { %v4933_v46 = vmax.f32 %v4931_v37, %v4932_v41 }
0x278b   : > { %v4934_v35 = vrot.slane %v4933_v46, 2 }
0x278d   : > { %v4935_v52 = vmax.f32 %v4933_v46, %v4934_v35  ;;  %v5038_v54 = vpop.f32.mrf.mxu1 }
0x278e   : > { %v5039_v59 = vadd.f32 %v6973_v56, %v5038_v54 }
0x278f   : > { %v4936_v60 = vrot.slane %v4935_v52, 1 }
0x2790   : > { %5063 = vrot.lane.b32.xlu1 %v5039_v59, %s7076_s15 }
0x2791   : > { %v4937_v61 = vmax.f32 %v4935_v52, %v4936_v60 }
0x2793   : > { %v4938_v62 = vsub.f32 %v4928_v42, %v4937_v61 }
0x2795   : > { %v4939_v4 = vmul.f32 1.442695, %v4938_v62  ;;  %v5040_v5 = vpop.f32.mrf.mxu1 }
0x2797   : > { %6950 = vpow2.f32 %v4939_v4 }
0x279d   : > { %v6951_v10 = vpop.eup %6950 }
0x279e   : > { %v4941_v1 = vsel %vm2033_vm2, %v6951_v10, 0.0 }
0x279f   : > { %v4942_v0 = vrot.slane %v4941_v1, 4 }
0x27a1   : > { %v4943_v2 = vadd.f32 %v4942_v0, %v4941_v1 }
0x27a3   : > { %v4944_v19 = vrot.slane %v4943_v2, 2 }
0x27a5   : > { %v4945_v12 = vadd.f32 %v4944_v19, %v4943_v2 }
0x27a7   : > { %v4946_v3 = vrot.slane %v4945_v12, 1 }
0x27a9   : > { %v4947_v16 = vadd.f32 %v4946_v3, %v4945_v12 }
0x27ab   : > { %6952 = vrcp.f32 %v4947_v16  ;;  %v4959_v20 = vand.u32 2147483648, %v4947_v16  ;;  %v4957_v22 = vand.u32 2147483647, %v4947_v16  ;;  %vm4953_vm0 = vweird.f32 %v4947_v16 }
0x27ad   : > { %v4960_v24 = vor.u32 1.1754944e-38, %v4959_v20  ;;  %vm4958_vm4 = vcmp.eq.f32.partialorder %v4957_v22, 8.507059e+37 }
0x27b1   : > { %v6953_v17 = vpop.eup %6952 }
0x27b2   : > { %v4949_v18 = vmul.f32 %v6953_v17, %v4947_v16  ;;  %vm4954_vm15 = vweird.f32 %v6953_v17 }
0x27b3   : > { %vm4955_vm3 = vmor %vm4953_vm0, %vm4954_vm15 }
0x27b4   : > { %v4950_v38 = vsub.f32 1.0, %v4949_v18 }
0x27b6   : > { %v4951_v21 = vmul.f32 %v6953_v17, %v4950_v38 }
0x27b8   : > { %v4952_v25 = vadd.f32 %v6953_v17, %v4951_v21 }
0x27ba   : > { %v4956_v36 = vsel %vm4955_vm3, %v6953_v17, %v4952_v25 }
0x27bb   : > { %v4961_v27 = vsel %vm4958_vm4, %v4960_v24, %v4956_v36  ;;  %vm5252_vm4 = vcmask 64512  }
0x27bc   : > { %v4962_v9 = vmul.f32 %v6951_v10, %v4961_v27 }
0x27be   : > { %v4963_v50 = vadd.f32 1e-08, %v4962_v9 }
0x27c0   : > { %v4964_v51 = vsel %vm2033_vm2, %v4963_v50, 0.0 }
0x27c1   : > { %4965 = vadd.xlane.f32.xlu2 %v4964_v51 }
0x2802   : > { %v5064_v54 = vpop.permute.xlu1 %5063 }
0x2834   : > { %v4966_v8 = vpop.xlane.xlu2 %4965 }
0x2835   : > { %6954 = vrcp.f32 %v4966_v8  ;;  %v4978_v40 = vand.u32 2147483648, %v4966_v8  ;;  %v4976_v7 = vand.u32 2147483647, %v4966_v8  ;;  %vm4972_vm6 = vweird.f32 %v4966_v8 }
0x2837   : > { %v4979_v53 = vor.u32 1.1754944e-38, %v4978_v40  ;;  %vm4977_vm8 = vcmp.eq.f32.partialorder %v4976_v7, 8.507059e+37  ;;  %v6975_v40 = vld [vmem:[%s8463_s8 + $0x9] ss:$0 sm:$0xff] }
0x283b   : > { %v6955_v13 = vpop.eup %6954 }
0x283c   : > { %v4968_v23 = vmul.f32 %v6955_v13, %v4966_v8  ;;  %vm4973_vm5 = vweird.f32 %v6955_v13 }
0x283d   : > { %vm4974_vm7 = vmor %vm4972_vm6, %vm4973_vm5 }
0x283e   : > { %v4969_v29 = vsub.f32 1.0, %v4968_v23 }
0x2840   : > { %v4970_v6 = vmul.f32 %v6955_v13, %v4969_v29 }
0x2842   : > { %v4971_v31 = vadd.f32 %v6955_v13, %v4970_v6 }
0x2844   : > { %v4975_v32 = vsel %vm4974_vm7, %v6955_v13, %v4971_v31 }
0x2845   : > { %v4980_v39 = vsel %vm4977_vm8, %v4979_v53, %v4975_v32 }
0x2846   : > { %v4981_v33 = vmul.f32 %v4980_v39, %v4963_v50 }
0x2848   : > { %6580 = vmatmul.msk.f32.vlgmr.msra.gmra.mxu2 %vm2033_vm2, %v4981_v33 }
0x28cb   : > { %v5002_v34 = vpop.f32.mrf.mxu2 }
0x28cc   : > { %v5005_v44 = vpack.c.bf16 %v5002_v34, %v5002_v34  ;;  %v6802_v34 = vld [vmem:[%s8461_s6 + $0x58] sm:$0xff] }
0x28cd   : > { %5189 = vmatpush.bf16.msra.mxu3 %v6802_v34 }
0x28ce   : > { %6581 = vmatmul.msk.bf16.vlgmr.msrb.gmra.mxu3 %vm546_vm1, %v5005_v44  ;;  %v6801_v44 = vld [vmem:[%s8461_s6 + $0x50] sm:$0xff] }
0x28d1   : > { %5190 = vmatpush.bf16.msra.mxu3 %v6801_v44 }
0x2951   : > { %v5018_v30 = vpop.f32.mrf.mxu3 }
0x2952   : > { %v5019_v11 = vadd.f32 %v6974_v48, %v5018_v30 }
0x2954   : > { %v5042_v55 = vadd.f32 %v5039_v59, %v5019_v11 }
0x2956   : > { %v6583_v14 = vmul.f32 -1.442695, %v5042_v55 }
0x2958   : > { %6956 = vpow2.f32 %v6583_v14  ;;  %v6804_v14 = vld [vmem:[%s8461_s6 + $0x68] sm:$0xff] }
0x2959   : > { %v5020_v57 = vpop.f32.mrf.mxu3  ;;  %5226 = vmatpush.bf16.msrb.mxu1 %v6804_v14 }
0x295a   : > { %v6803_v57 = vld [vmem:[%s8461_s6 + $0x60] sm:$0xff] }
0x295d   : > { %5227 = vmatpush.bf16.msrb.mxu1 %v6803_v57 }
0x295e   : > { %v6957_v45 = vpop.eup %6956 }
0x295f   : > { %v5046_v47 = vadd.f32 1.0, %v6957_v45  ;;  %v6806_v45 = vld [vmem:[%s8461_s6 + $0x78] sm:$0xff] }
0x2960   : > { %5281 = vmatpush.bf16.msra.mxu2 %v6806_v45 }
0x2961   : > { %6958 = vrcp.f32 %v5046_v47  ;;  %v5058_v42 = vand.u32 2147483648, %v5046_v47  ;;  %v5056_v41 = vand.u32 2147483647, %v5046_v47  ;;  %vm5052_vm9 = vweird.f32 %v5046_v47 }
0x2963   : > { %v5059_v35 = vor.u32 1.1754944e-38, %v5058_v42  ;;  %vm5057_vm11 = vcmp.eq.f32.partialorder %v5056_v41, 8.507059e+37  ;;  %v6805_v41 = vld [vmem:[%s8461_s6 + $0x70] sm:$0xff] }
0x2964   : > { %5282 = vmatpush.bf16.msra.mxu2 %v6805_v41 }
0x2967   : > { %v6959_v28 = vpop.eup %6958 }
0x2968   : > { %v5048_v15 = vmul.f32 %v6959_v28, %v5046_v47  ;;  %vm5053_vm2 = vweird.f32 %v6959_v28  ;;  %v6888_v47 = vld [vmem:[%s8463_s8 + $0xd] ss:$0 sm:$0xff] }
0x2969   : > { %vm5054_vm10 = vmor %vm5052_vm9, %vm5053_vm2 }
0x296a   : > { %v5049_v49 = vsub.f32 1.0, %v5048_v15 }
0x296c   : > { %v5050_v37 = vmul.f32 %v6959_v28, %v5049_v49 }
0x296e   : > { %v5051_v46 = vadd.f32 %v6959_v28, %v5050_v37 }
0x2970   : > { %v5055_v52 = vsel %vm5054_vm10, %v6959_v28, %v5051_v46  ;;  %v6889_v46 = vld [vmem:[%s8463_s8 + $0xe] ss:$0 sm:$0xff] }
0x2971   : > { %v5060_v56 = vsel %vm5057_vm11, %v5059_v35, %v5055_v52 }
0x2972   : > { %v5066_v59 = vmul.f32 %v5064_v54, %v5060_v56  ;;  %v5073_v4 = vsub.f32 1.0, %v5060_v56  ;;  %v5079_v10 = vmul.f32 %v5060_v56, %v8316_v43 }
0x2974   : > { %5068 = vrot.lane.b32.xlu0 %v5066_v59, %s7076_s15 }
0x29e6   : > { %v5069_v60 = vpop.permute.xlu0 %5068 }
0x29e7   : > { %v5071_v61 = vadd.f32 %v5069_v60, %v5019_v11 }
0x29e9   : > { %6960 = vtanh.f32 %v5071_v61 }
0x29ef   : > { %v6961_v62 = vpop.eup %6960 }
0x29f0   : > { %5075 = vrot.lane.b32.xlu0 %v6961_v62, %s7075_s4 }
0x2a62   : > { %v5076_v5 = vpop.permute.xlu0 %5075 }
0x2a63   : > { %v5078_v1 = vmul.f32 %v5076_v5, %v5073_v4 }
0x2a65   : > { %v5080_v0 = vadd.f32 %v5079_v10, %v5078_v1 }
0x2a67   : > { %5082 = vrot.lane.b32.xlu0 %v5080_v0, %s7075_s4 }
0x2ad9   : > { %v5083_v2 = vpop.permute.xlu0 %5082 }
0x2ada   : > { %v5085_v19 = vsel %vm546_vm1, %v5083_v2, 0.0 }
0x2adb   : > { %5086 = vadd.xlane.f32.xlu2 %v5085_v19 }
0x2b4e   : > { %v5087_v12 = vpop.xlane.xlu2 %5086 }
0x2b4f   : > { %v5088_v3 = vmul.f32 %v5087_v12, %v7968_v26 }
0x2b51   : > { %v5089_v16 = vsub.f32 %v5080_v0, %v5088_v3 }
0x2b53   : > { %v5090_v17 = vmul.f32 %v5089_v16, %v5089_v16 }
0x2b55   : > { %5092 = vrot.lane.b32.xlu1 %v5090_v17, %s7075_s4 }
0x2bc7   : > { %v5093_v18 = vpop.permute.xlu1 %5092 }
0x2bc8   : > { %v5095_v38 = vsel %vm546_vm1, %v5093_v18, 0.0 }
0x2bc9   : > { %5096 = vadd.xlane.f32.xlu0 %v5095_v38 }
0x2c3c   : > { %v5097_v43 = vpop.xlane.xlu0 %5096 }
0x2c3d   : > { %v5098_v20 = vmul.f32 %v5097_v43, %v7968_v26 }
0x2c3f   : > { %v5099_v21 = vadd.f32 1e-05, %v5098_v20 }
0x2c41   : > { %6962 = vrsqrt.f32 %v5099_v21  ;;  %vm5106_vm13 = vweird.f32 %v5099_v21 }
0x2c47   : > { %v6963_v22 = vpop.eup %6962 }
0x2c48   : > { %v5101_v25 = vmul.f32 %v6963_v22, %v5099_v21  ;;  %vm5107_vm12 = vweird.f32 %v6963_v22 }
0x2c49   : > { %vm5108_vm14 = vmor %vm5106_vm13, %vm5107_vm12 }
0x2c4a   : > { %v5102_v24 = vmul.f32 %v6963_v22, %v5101_v25 }
0x2c4c   : > { %v5103_v36 = vmul.f32 0.5, %v5102_v24 }
0x2c4e   : > { %v5104_v27 = vsub.f32 1.5, %v5103_v36 }
0x2c50   : > { %v5105_v9 = vmul.f32 %v6963_v22, %v5104_v27 }
0x2c52   : > { %v5109_v50 = vsel %vm5108_vm14, %v6963_v22, %v5105_v9 }
0x2c53   : > { %v5110_v51 = vmul.f32 %v5109_v50, %v5089_v16 }
0x2c55   : > { %v5111_v8 = vmul.f32 %v5110_v51, %v8141_v63 }
0x2c57   : > { %v5112_v13 = vadd.f32 %v5111_v8, %v8143_v58  ;;  %v6976_v58 = vld [vmem:[%s8463_s8 + $0xa] ss:$0 sm:$0xff] }
0x2c59   : > { %v5113_v23 = vpack.c.bf16 %v5112_v13, %v5112_v13 }
0x2c5b   : > { %5115 = vrot.lane.b32.xlu2 %v5113_v23, %s7075_s4 }
0x2cb5   : > { %v5116_v26 = vpop.permute.xlu2 %5115 }
0x2cb6   : > { %6584 = vmatmul.msk.bf16.vlgmr.msrb.gmra.mxu2 %vm546_vm1, %v5116_v26 }
0x2d39   : > { %v5129_v29 = vpop.f32.mrf.mxu2 }
0x2d3a   : > { %v5130_v6 = vadd.f32 %v6975_v40, %v5129_v29 }
0x2d3c   : > { %v5133_v7 = vmax.f32 %v5130_v6, 0.0 }
0x2d3e   : > { %v5134_v31 = vpack.c.bf16 %v5133_v7, %v5133_v7 }
0x2d40   : > { %6585 = vmatmul.msk.bf16.vlgmr.msrb.gmra.mxu0 %vm546_vm1, %v5134_v31 }
0x2d41   : > { %v5131_v53 = vpop.f32.mrf.mxu2 }
0x2dbd   : > { %v5147_v63 = vpop.f32.mrf.mxu0 }
0x2dbe   : > { %v5148_v32 = vadd.f32 %v6976_v58, %v5147_v63 }
0x2dc0   : > { %v5151_v39 = vmax.f32 %v5148_v32, 0.0 }
0x2dc2   : > { %5153 = vrot.lane.b32.xlu1 %v5151_v39, %s7077_s3  ;;  %s6627_s3 = sshll.u32 %s7165_s25, 3 }
0x2dc3   : > { %s5335_s15 = scalar_lea.hbm %s8467_s12, %s6627_s3 }
0x2dc5   : > { %v5149_v33 = vpop.f32.mrf.mxu0 }
0x2e34   : > { %v5154_v30 = vpop.permute.xlu1 %5153 }
0x2e35   : > { %v5156_v48 = vadd.f32 %v5154_v30, %v5080_v0 }
0x2e37   : > { %v5162_v11 = vpack.c.bf16 %v5156_v48, %v5156_v48 }
0x2e39   : > { %5166 = vrot.lane.b32.xlu1 %v5162_v11, %s7075_s4  ;;  %s5339_s4 = sshll.u32 %s5335_s15, 4  ;;  %s5340_s4 = int_to_ptr.hbm [resolvable:$true] %s5339_s4 }
0x2e3a   : > { %s6991_s19 = sshra.s32 %s5340_s4, 4  ;;  %s6992_s19 = int_to_ptr.hbm [resolvable:$true] %s6991_s19 }
0x2e3b   : > { %s6993_s20 = scalar_lea.hbm %s6992_s19, 8  ;;  %p6998_p0 = scmp.lt.s32.totalorder %s6992_s19, %s8467_s12 }
0x2e3c   : > { %p6994_p11 = scmp.ne.s32.totalorder %s6992_s19, %s6993_s20  ;;  %p6999_p1 = scmp.lt.s32.totalorder %s6997_s0, %s6993_s20 }
0x2e3e   : > { %p6995_p12 = pnand %p6994_p11, %p7182_p5  ;;  %p7000_p2 = por %p6999_p1, %p6998_p0 }
0x2e40   : > { %p6996_p13 = pneg %p6995_p12 }
0x2e42   : > { %p7001_p3 = pnand %p7000_p2, %p6996_p13 }
0x2eab   : > { %v5167_v55 = vpop.permute.xlu1 %5166 }
0x2eac   : > { %6598 = vmatmul.msk.bf16.vlgmr.msra.gmra.mxu3 %vm546_vm1, %v5167_v55 }
0x2f2f   : > { %v5192_v28 = vpop.f32.mrf.mxu3 }
0x2f30   : > { %v5193_v15 = vadd.f32 %v6888_v47, %v5192_v28 }
0x2f32   : > { %v5196_v49 = vmax.f32 %v5193_v15, 0.0 }
0x2f34   : > { %v5202_v42 = vpack.c.bf16 %v5196_v49, %v5196_v49 }
0x2f36   : > { %6611 = vmatmul.msk.bf16.vlgmr.msrb.gmra.mxu1 %vm546_vm1, %v5202_v42 }
0x2f37   : > { %v5194_v37 = vpop.f32.mrf.mxu3 }
0x2fb3   : > { %v5229_v35 = vpop.f32.mrf.mxu1 }
0x2fb4   : > { %v5230_v52 = vadd.f32 %v6889_v46, %v5229_v35 }
0x2fb6   : > { %v6612_v54 = vmul.f32 -1.442695, %v5230_v52  ;;  %v5259_v56 = vpack.c.bf16 %v5230_v52, %v5230_v52 }
0x2fb8   : > { %6964 = vpow2.f32 %v6612_v54  ;;  %6625 = vmatmul.msk.bf16.vlgmr.msra.gmra.mxu2 %vm546_vm1, %v5259_v56 }
0x2fbb   : > { %v5231_v59 = vpop.f32.mrf.mxu1 }
0x2fbe   : > { %v6965_v60 = vpop.eup %6964 }
0x2fbf   : > { %v5236_v61 = vadd.f32 1.0, %v6965_v60 }
0x2fc1   : > { %6966 = vrcp.f32 %v5236_v61  ;;  %v5248_v10 = vand.u32 2147483648, %v5236_v61  ;;  %v5246_v0 = vand.u32 2147483647, %v5236_v61  ;;  %vm5242_vm0 = vweird.f32 %v5236_v61 }
0x2fc3   : > { %v5249_v19 = vor.u32 1.1754944e-38, %v5248_v10  ;;  %vm5247_vm5 = vcmp.eq.f32.partialorder %v5246_v0, 8.507059e+37 }
0x2fc7   : > { %v6967_v62 = vpop.eup %6966 }
0x2fc8   : > { %v5238_v4 = vmul.f32 %v6967_v62, %v5236_v61  ;;  %vm5243_vm15 = vweird.f32 %v6967_v62 }
0x2fc9   : > { %vm5244_vm3 = vmor %vm5242_vm0, %vm5243_vm15 }
0x2fca   : > { %v5239_v5 = vsub.f32 1.0, %v5238_v4 }
0x2fcc   : > { %v5240_v1 = vmul.f32 %v6967_v62, %v5239_v5 }
0x2fce   : > { %v5241_v2 = vadd.f32 %v6967_v62, %v5240_v1 }
0x2fd0   : > { %v5245_v12 = vsel %vm5244_vm3, %v6967_v62, %v5241_v2 }
0x2fd1   : > { %v5250_v3 = vsel %vm5247_vm5, %v5249_v19, %v5245_v12 }
0x2fd2   : > { %5253 = vst.msk [vmem:[%s429_s16] sm:$0xff] %vm5252_vm4, %v5250_v3 }
0x2fd3   : > { %7004 = shalt.err (!%p7001_p3)
}
0x2fd4   : > { %6816 = dma.vmem_to_hbm [thread:$0]  (%p7182_p5), %s5338_s17, 128, %s5340_s4, %s5312_s18   ;;  %v7078_v16 = vmov 8.0   ;;  %v5303_v13 = vld [vmem:[%s8463_s8 + $0xf] sm:$0x1] }
0x2fd5   : > { %6968 = vrcp.f32 %v7078_v16  ;;  %s5321_s17 = scalar_lea.hbm %s8466_s11, %s7165_s25  ;;  %s422_s19 = scalar_lea.vmem [#allocation2], %s8400_s28 }
0x2fd6   : > { %s5323_s20 = sshll.u32 %s422_s19, 4  ;;  %s5325_s26 = sshll.u32 %s5321_s17, 4  ;;  %s5324_s20 = int_to_ptr.vmem [resolvable:$true] %s5323_s20  ;;  %s5326_s26 = int_to_ptr.hbm [resolvable:$true] %s5325_s26 }
0x2fd7   : > { %s5308_s3 = scalar_lea.sflag [#allocation3], %s8400_s28  ;;  %s7019_s0 = sshra.s32 %s5326_s26, 4  ;;  %s7020_s0 = int_to_ptr.hbm [resolvable:$true] %s7019_s0 }
0x2fd8   : > { %s7021_s25 = scalar_lea.hbm %s7020_s0, 1  ;;  %s7025_s15 = scalar_lea.hbm %s8466_s11, 2 }
0x2fd9   : > { %p7022_p4 = scmp.ne.s32.totalorder %s7020_s0, %s7021_s25  ;;  %p7026_p9 = scmp.lt.s32.totalorder %s7020_s0, %s8466_s11 }
0x2fda   : > { %p7027_p10 = scmp.lt.s32.totalorder %s7025_s15, %s7021_s25 }
0x2fdb   : > { %v6969_v17 = vpop.eup %6968  ;;  %p7023_p7 = pnand %p7022_p4, %p7182_p5 }
0x2fdc   : > { %v5296_v18 = vmul.f32 8.0, %v6969_v17  ;;  %vm5300_vm6 = vweird.f32 %v6969_v17  ;;  %p7028_p11 = por %p7027_p10, %p7026_p9 }
0x2fdd   : > { %p7024_p8 = pneg %p7023_p7 }
0x2fde   : > { %v5297_v38 = vsub.f32 1.0, %v5296_v18 }
0x2fdf   : > { %p7029_p12 = pnand %p7028_p11, %p7024_p8 }
0x2fe0   : > { %v5298_v22 = vmul.f32 %v6969_v17, %v5297_v38 }
0x2fe2   : > { %v5299_v36 = vadd.f32 %v6969_v17, %v5298_v22 }
0x2fe4   : > { %v5301_v51 = vsel %vm5300_vm6, %v6969_v17, %v5299_v36 }
0x303b   : > { %v5284_v43 = vpop.f32.mrf.mxu2 }
0x303c   : > { %v5288_v20 = vsel %vm546_vm1, %v5284_v43, 0.0  ;;  %vm5305_vm1 = vcmask 24576  }
0x303d   : > { %v5289_v21 = vrot.slane %v5288_v20, 4 }
0x303f   : > { %v5290_v25 = vadd.f32 %v5289_v21, %v5288_v20 }
0x3041   : > { %v5291_v24 = vrot.slane %v5290_v25, 2 }
0x3043   : > { %v5292_v27 = vadd.f32 %v5291_v24, %v5290_v25  ;;  %v5286_v9 = vpop.f32.mrf.mxu2 }
0x3045   : > { %v5293_v50 = vrot.slane %v5292_v27, 1 }
0x3047   : > { %v5294_v8 = vadd.f32 %v5293_v50, %v5292_v27 }
0x3049   : > { %v5302_v23 = vmul.f32 %v5301_v51, %v5294_v8 }
0x304b   : > { %v5304_v26 = vadd.f32 %v5303_v13, %v5302_v23 }
0x304d   : > { %5306 = vst.msk [vmem:[%s422_s19] sm:$0x1] %vm5305_vm1, %v5304_v26 }
0x304e   : > { %7032 = shalt.err (!%p7029_p12)
}
0x304f   : > { %6815 = dma.vmem_to_hbm [thread:$0]  (%p7182_p5), %s5324_s20, 16, %s5326_s26, %s5308_s3  }
0x3050 PF: > { %p6826_p13 = scmp.ge.s32.totalorder %s7071_s24, 2  ;;  %s5351_s28 = sand.u32 1, %s7059_s21  }
0x3051   : > { %s5352_s4 = scalar_lea.sflag [#allocation3], %s5351_s28 }
0x3052   : > { %p6820_p0 = pnand %p6826_p13, %p7186_p6 }
0x3054   : > { %p6821_p1 = pneg %p6820_p0 }
0x3056   : > { %7050 = dma.done.wait (%p6821_p1), %s5352_s4, 16  }
0x3057   : > { %7052 = vsyncadd (%p6821_p1), %s5352_s4, 4294967280  ;;  %s5361_s18 = scalar_lea.sflag [#allocation5], %s5351_s28 }
0x3058   : > { %7054 = dma.done.wait (%p6821_p1), %s5361_s18, 128  }
0x3059   : > { %7056 = vsyncadd (%p6821_p1), %s5361_s18, 4294967168  ;;  %p26_p5 = scmp.ge.s32.totalorder %s7169_s27, 4   ;;  %s8478_s21 = smov %s7063_s22 }
0x305a   : > { %s8479_s22 = smov %s7067_s23  ;;  %s8480_s23 = smov %s7180_s30 }
0x305b   : > { %s8481_s24 = smov %s7169_s27  ;;  %28 = sbr.rel (!%p26_p5) target bundleno = 10 (0xa), region = 226 }
0x3060   :  { %5367 = vsyncpa [#allocation3], 1 }
0x3061   :  { %5369 = vsyncpa [#allocation3 + $0x1], 1 }
0x3062   :  { %5370 = vsyncpa [#allocation5], 1 }
0x3063   :  { %5372 = vsyncpa [#allocation5 + $0x1], 1 }

</bundles_post_ra>
